<compile_context>
chip_gen: v7x
topology: tpu7x:2x2x1
jax: 0.10.0
libtpu: 0.0.40
codegen_flags: <defaults>
</compile_context>

<pallas_src>
import jax
import jax.numpy as jnp
from jax.experimental import pallas as pl
from jax.experimental.pallas import tpu as pltpu

TAU = 2.0                  # MultiStepLIFNode default
V_TH = 1.0                 # v_threshold default
DECAY = 1.0 - 1.0 / TAU    # decay_input=False, v_reset=0.0 (hard reset)


# ----------------------------------------------------------------------------
# Fused BasicBlock kernel: one timestep of one batch tile per grid step.
# ----------------------------------------------------------------------------
def _basic_block_kernel(x_ref, w1_ref, b1_ref, w2_ref, b2_ref,
                        o_ref, xpad_ref, spad_ref, v1_ref, v2_ref):
    # x_ref   : (1, BT, H, W, Cin)   f32 input tile (timestep t, batch tile b)
    # w1_ref  : (9*Cin, C)  bf16     im2col conv1 weights (BN1 scale folded in)
    # w2_ref  : (9*C, C)    bf16     im2col conv2 weights (BN2 scale folded in)
    # b1_ref, b2_ref : (1, C) f32    folded BN bias
    # o_ref   : (1, BT, H, W, C)     f32 spike output
    # xpad_ref: (BT, H+2, W+2, Cin)  bf16 scratch, zero halo for conv1
    # spad_ref: (BT, H+2, W+2, C)    bf16 scratch, zero halo for conv2 (spike1)
    # v1_ref, v2_ref : (BT*H*W, C)   f32 LIF membrane potentials (persist over T)
    t = pl.program_id(1)
    _, bt, H, W, Cin = x_ref.shape
    Cout = o_ref.shape[-1]
    M = bt * H * W

    @pl.when(t == 0)
    def _init():
        # Zero halos once per batch tile (edges are never rewritten afterwards)
        # and reset both LIF membranes at the start of the time loop.
        xpad_ref[...] = jnp.zeros_like(xpad_ref)
        spad_ref[...] = jnp.zeros_like(spad_ref)
        v1_ref[...] = jnp.zeros_like(v1_ref)
        v2_ref[...] = jnp.zeros_like(v2_ref)

    x_t = x_ref[0]                                        # (bt, H, W, Cin) f32 (residual)
    xpad_ref[:, 1:H + 1, 1:W + 1, :] = x_t.astype(jnp.bfloat16)  # interior only

    def im2col(pad_ref, c):
        # padded bf16 scratch (bt, H+2, W+2, c) -> bf16 patch matrix (bt*H*W, 9*c)
        taps = []
        for kh in range(3):
            for kw in range(3):
                taps.append(pad_ref[:, kh:kh + H, kw:kw + W, :].reshape(M, c))
        return jnp.concatenate(taps, axis=-1)

    # ---- conv1 (single K=9*Cin matmul, bf16 MXU, f32 accumulate) + folded BN1 bias
    z1 = jnp.dot(im2col(xpad_ref, Cin), w1_ref[...],
                 preferred_element_type=jnp.float32)      # (M, Cout) f32
    z1 = z1 + b1_ref[...]

    # ---- LIF spike1 (decay_input=False, hard reset to 0)
    u1 = v1_ref[...] * DECAY + z1
    spk1 = u1 >= V_TH
    v1_ref[...] = jnp.where(spk1, 0.0, u1)
    spad_ref[:, 1:H + 1, 1:W + 1, :] = (
        spk1.astype(jnp.bfloat16).reshape(bt, H, W, Cout))  # 0/1 exact in bf16

    # ---- conv2 + folded BN2 bias
    z2 = jnp.dot(im2col(spad_ref, Cout), w2_ref[...],
                 preferred_element_type=jnp.float32)      # (M, Cout) f32
    z2 = z2 + b2_ref[...]

    # ---- residual add (stride=1, downsample=None => identity = x, f32) + LIF spike2
    u2 = v2_ref[...] * DECAY + (z2 + x_t.reshape(M, Cin))
    spk2 = u2 >= V_TH
    v2_ref[...] = jnp.where(spk2, 0.0, u2)
    o_ref[0] = spk2.astype(jnp.float32).reshape(bt, H, W, Cout)


# ----------------------------------------------------------------------------
# Wrapper: layout plumbing + pallas_call
# ----------------------------------------------------------------------------
def basic_block_forward(x, params, *, block_b=1, vmem_limit_bytes=48 * 1024 * 1024):
    # x: (T, B, C, H, W) float32 (time-major PyTorch layout)
    T, B, C, H, W = x.shape
    Cout = params["w1"].shape[-1]
    assert params["w1"].shape[0] == 9 * C
    # downsample=None & stride=1 requires inplanes == planes for the residual add.
    assert C == Cout, "BasicBlock with downsample=None requires inplanes == planes"
    assert B % block_b == 0
    nb = B // block_b

    # NHWC inside the kernel (channels on the lane dim).
    x_nhwc = jnp.transpose(x, (0, 1, 3, 4, 2))            # (T, B, H, W, C)

    # Constant operands: resident across the whole grid -> no double buffer.
    wmap = lambda b, t: (0, 0)
    const_spec = lambda shape: pl.BlockSpec(shape, wmap, pipeline_mode=pl.Buffered(1))

    out = pl.pallas_call(
        _basic_block_kernel,
        out_shape=jax.ShapeDtypeStruct((T, B, H, W, Cout), jnp.float32),
        grid=(nb, T),
        in_specs=[
            pl.BlockSpec((1, block_b, H, W, C), lambda b, t: (t, b, 0, 0, 0)),
            const_spec((9 * C, Cout)),      # w1 (BN1 scale folded)
            const_spec((1, Cout)),          # bias1
            const_spec((9 * Cout, Cout)),   # w2 (BN2 scale folded)
            const_spec((1, Cout)),          # bias2
        ],
        out_specs=pl.BlockSpec((1, block_b, H, W, Cout),
                               lambda b, t: (t, b, 0, 0, 0)),
        scratch_shapes=[
            pltpu.VMEM((block_b, H + 2, W + 2, C), jnp.bfloat16),     # padded input halo
            pltpu.VMEM((block_b, H + 2, W + 2, Cout), jnp.bfloat16),  # padded spike1 halo
            pltpu.VMEM((block_b * H * W, Cout), jnp.float32),         # LIF1 membrane
            pltpu.VMEM((block_b * H * W, Cout), jnp.float32),         # LIF2 membrane
        ],
        compiler_params=pltpu.CompilerParams(
            dimension_semantics=("parallel", "arbitrary"),
            vmem_limit_bytes=vmem_limit_bytes),
    )(x_nhwc, params["w1"], params["bias1"], params["w2"], params["bias2"])

    # back to PyTorch layout (T, B, C, H, W)
    return jnp.transpose(out, (0, 1, 4, 2, 3))


# ----------------------------------------------------------------------------
# Deterministic synthetic parameters (inference-mode BN folded into the conv
# weights: w_col[:, c] *= scale[c] in f32 before the bf16 cast; bias kept).
# ----------------------------------------------------------------------------
def init_params(key, inplanes, planes, eps=1e-5):
    ks = jax.random.split(key, 10)

    def conv_w_f32(k, cin, cout):
        # PyTorch Conv2d weight (Cout, Cin, 3, 3) -> im2col layout (9*Cin, Cout),
        # K index = (kh*3 + kw)*Cin + ci  (matches the in-kernel tap ordering).
        w = 0.1 * jax.random.normal(k, (cout, cin, 3, 3), jnp.float32)
        return jnp.transpose(w, (2, 3, 1, 0)).reshape(9 * cin, cout)

    def bn_fold(kg, kb, km, kv, c):
        gamma = 1.0 + 0.1 * jax.random.normal(kg, (c,), jnp.float32)
        beta = 0.1 * jax.random.normal(kb, (c,), jnp.float32)
        mean = 0.05 * jax.random.normal(km, (c,), jnp.float32)
        var = 1.0 + 0.1 * jnp.abs(jax.random.normal(kv, (c,), jnp.float32))
        scale = gamma / jnp.sqrt(var + eps)
        bias = beta - mean * scale
        return scale, bias

    w1 = conv_w_f32(ks[0], inplanes, planes)
    w2 = conv_w_f32(ks[1], planes, planes)
    s1, b1 = bn_fold(ks[2], ks[3], ks[4], ks[5], planes)
    s2, b2 = bn_fold(ks[6], ks[7], ks[8], ks[9], planes)

    return {
        "w1": (w1 * s1[None, :]).astype(jnp.bfloat16),
        "bias1": b1.reshape(1, planes),
        "w2": (w2 * s2[None, :]).astype(jnp.bfloat16),
        "bias2": b2.reshape(1, planes),
    }


if __name__ == "__main__":
    T, B, C, H, W = 4, 2, 8, 16, 16   # inplanes = planes = 8, stride = 1, T = 4
    key = jax.random.PRNGKey(0)
    kx, kp = jax.random.split(key)
    x = jax.random.normal(kx, (T, B, C, H, W), jnp.float32)
    params = init_params(kp, C, C)

    y = jax.jit(basic_block_forward)(x, params)
    jax.block_until_ready(y)

    assert y.shape == (T, B, C, H, W) and y.dtype == jnp.float32
    # spike outputs must be binary
    assert bool(jnp.all((y == 0.0) | (y == 1.0)))
    print("KERNEL_OK")
</pallas_src>

<mosaic_0001>
module attributes {stable_mosaic.version = 11 : i64} {
  func.func @_basic_block_kernel(%arg0: i32, %arg1: i32, %arg2: memref<1x1x16x16x8xf32, #tpu.memory_space<vmem>>, %arg3: memref<72x8xbf16, #tpu.memory_space<vmem>>, %arg4: memref<1x8xf32, #tpu.memory_space<vmem>>, %arg5: memref<72x8xbf16, #tpu.memory_space<vmem>>, %arg6: memref<1x8xf32, #tpu.memory_space<vmem>>, %arg7: memref<1x1x16x16x8xf32, #tpu.memory_space<vmem>>, %arg8: memref<1x18x18x8xbf16, #tpu.memory_space<vmem>>, %arg9: memref<1x18x18x8xbf16, #tpu.memory_space<vmem>>, %arg10: memref<256x8xf32, #tpu.memory_space<vmem>>, %arg11: memref<256x8xf32, #tpu.memory_space<vmem>>) attributes {dimension_semantics = [#tpu.dimension_semantics<parallel>, #tpu.dimension_semantics<arbitrary>], iteration_bounds = array<i64: 2, 4>, scalar_prefetch = 0 : i64, scratch_operands = 4 : i64, tpu.core_type = #tpu.core_type<tc>, window_params = [{transform_indices = @transform_0, window_bounds = array<i64: 1, 1, 16, 16, 8>}, {pipeline_mode = #tpu.pipeline_mode<synchronous>, transform_indices = @transform_1, window_bounds = array<i64: 72, 8>}, {pipeline_mode = #tpu.pipeline_mode<synchronous>, transform_indices = @transform_2, window_bounds = array<i64: 1, 8>}, {pipeline_mode = #tpu.pipeline_mode<synchronous>, transform_indices = @transform_3, window_bounds = array<i64: 72, 8>}, {pipeline_mode = #tpu.pipeline_mode<synchronous>, transform_indices = @transform_4, window_bounds = array<i64: 1, 8>}, {transform_indices = @transform_5, window_bounds = array<i64: 1, 1, 16, 16, 8>}]} {
    %c0_i32 = arith.constant 0 : i32
    %0 = arith.cmpi eq, %arg1, %c0_i32 : i32
    %1 = arith.extui %0 : i1 to i32
    %c0_i32_0 = arith.constant 0 : i32
    %2 = arith.cmpi ne, %1, %c0_i32_0 : i32
    scf.if %2 {
      %cst_111 = arith.constant 0.000000e+00 : bf16
      %86 = vector.broadcast %cst_111 : bf16 to vector<1x18x18x8xbf16>
      %c0_112 = arith.constant 0 : index
      %c0_113 = arith.constant 0 : index
      %c0_114 = arith.constant 0 : index
      %c0_115 = arith.constant 0 : index
      %87 = vector.load %arg8[%c0_112, %c0_113, %c0_114, %c0_115] : memref<1x18x18x8xbf16, #tpu.memory_space<vmem>>, vector<1x18x18x8xbf16>
      tpu.vector_store %arg8[%c0_112, %c0_113, %c0_114, %c0_115], %86 {strides = array<i32>} : memref<1x18x18x8xbf16, #tpu.memory_space<vmem>>, vector<1x18x18x8xbf16>,
      %cst_116 = arith.constant 0.000000e+00 : bf16
      %88 = vector.broadcast %cst_116 : bf16 to vector<1x18x18x8xbf16>
      %c0_117 = arith.constant 0 : index
      %c0_118 = arith.constant 0 : index
      %c0_119 = arith.constant 0 : index
      %c0_120 = arith.constant 0 : index
      %89 = vector.load %arg9[%c0_117, %c0_118, %c0_119, %c0_120] : memref<1x18x18x8xbf16, #tpu.memory_space<vmem>>, vector<1x18x18x8xbf16>
      tpu.vector_store %arg9[%c0_117, %c0_118, %c0_119, %c0_120], %88 {strides = array<i32>} : memref<1x18x18x8xbf16, #tpu.memory_space<vmem>>, vector<1x18x18x8xbf16>,
      %cst_121 = arith.constant 0.000000e+00 : f32
      %90 = vector.broadcast %cst_121 : f32 to vector<256x8xf32>
      %c0_122 = arith.constant 0 : index
      %c0_123 = arith.constant 0 : index
      %91 = vector.load %arg10[%c0_122, %c0_123] : memref<256x8xf32, #tpu.memory_space<vmem>>, vector<256x8xf32>
      tpu.vector_store %arg10[%c0_122, %c0_123], %90 {strides = array<i32>} : memref<256x8xf32, #tpu.memory_space<vmem>>, vector<256x8xf32>,
      %cst_124 = arith.constant 0.000000e+00 : f32
      %92 = vector.broadcast %cst_124 : f32 to vector<256x8xf32>
      %c0_125 = arith.constant 0 : index
      %c0_126 = arith.constant 0 : index
      %93 = vector.load %arg11[%c0_125, %c0_126] : memref<256x8xf32, #tpu.memory_space<vmem>>, vector<256x8xf32>
      tpu.vector_store %arg11[%c0_125, %c0_126], %92 {strides = array<i32>} : memref<256x8xf32, #tpu.memory_space<vmem>>, vector<256x8xf32>,
    } else {
    }
    %c0 = arith.constant 0 : index
    %c0_1 = arith.constant 0 : index
    %c0_2 = arith.constant 0 : index
    %c0_3 = arith.constant 0 : index
    %c0_4 = arith.constant 0 : index
    %3 = vector.load %arg2[%c0, %c0_1, %c0_2, %c0_3, %c0_4] : memref<1x1x16x16x8xf32, #tpu.memory_space<vmem>>, vector<1x1x16x16x8xf32>
    %4 = vector.shape_cast %3 : vector<1x1x16x16x8xf32> to vector<1x16x16x8xf32>
    %5 = arith.truncf %4 : vector<1x16x16x8xf32> to vector<1x16x16x8xbf16>
    %c0_5 = arith.constant 0 : index
    %c1 = arith.constant 1 : index
    %c1_6 = arith.constant 1 : index
    %c0_7 = arith.constant 0 : index
    %6 = vector.load %arg8[%c0_5, %c1, %c1_6, %c0_7] : memref<1x18x18x8xbf16, #tpu.memory_space<vmem>>, vector<1x16x16x8xbf16>
    tpu.vector_store %arg8[%c0_5, %c1, %c1_6, %c0_7], %5 {strides = array<i32>} : memref<1x18x18x8xbf16, #tpu.memory_space<vmem>>, vector<1x16x16x8xbf16>,
    %c0_8 = arith.constant 0 : index
    %c0_9 = arith.constant 0 : index
    %c0_10 = arith.constant 0 : index
    %c0_11 = arith.constant 0 : index
    %7 = vector.load %arg8[%c0_8, %c0_9, %c0_10, %c0_11] : memref<1x18x18x8xbf16, #tpu.memory_space<vmem>>, vector<1x16x16x8xbf16>
    %8 = vector.shape_cast %7 : vector<1x16x16x8xbf16> to vector<256x8xbf16>
    %c0_12 = arith.constant 0 : index
    %c0_13 = arith.constant 0 : index
    %c1_14 = arith.constant 1 : index
    %c0_15 = arith.constant 0 : index
    %9 = vector.load %arg8[%c0_12, %c0_13, %c1_14, %c0_15] : memref<1x18x18x8xbf16, #tpu.memory_space<vmem>>, vector<1x16x16x8xbf16>
    %10 = vector.shape_cast %9 : vector<1x16x16x8xbf16> to vector<256x8xbf16>
    %c0_16 = arith.constant 0 : index
    %c0_17 = arith.constant 0 : index
    %c2 = arith.constant 2 : index
    %c0_18 = arith.constant 0 : index
    %11 = vector.load %arg8[%c0_16, %c0_17, %c2, %c0_18] : memref<1x18x18x8xbf16, #tpu.memory_space<vmem>>, vector<1x16x16x8xbf16>
    %12 = vector.shape_cast %11 : vector<1x16x16x8xbf16> to vector<256x8xbf16>
    %c0_19 = arith.constant 0 : index
    %c1_20 = arith.constant 1 : index
    %c0_21 = arith.constant 0 : index
    %c0_22 = arith.constant 0 : index
    %13 = vector.load %arg8[%c0_19, %c1_20, %c0_21, %c0_22] : memref<1x18x18x8xbf16, #tpu.memory_space<vmem>>, vector<1x16x16x8xbf16>
    %14 = vector.shape_cast %13 : vector<1x16x16x8xbf16> to vector<256x8xbf16>
    %c0_23 = arith.constant 0 : index
    %c1_24 = arith.constant 1 : index
    %c1_25 = arith.constant 1 : index
    %c0_26 = arith.constant 0 : index
    %15 = vector.load %arg8[%c0_23, %c1_24, %c1_25, %c0_26] : memref<1x18x18x8xbf16, #tpu.memory_space<vmem>>, vector<1x16x16x8xbf16>
    %16 = vector.shape_cast %15 : vector<1x16x16x8xbf16> to vector<256x8xbf16>
    %c0_27 = arith.constant 0 : index
    %c1_28 = arith.constant 1 : index
    %c2_29 = arith.constant 2 : index
    %c0_30 = arith.constant 0 : index
    %17 = vector.load %arg8[%c0_27, %c1_28, %c2_29, %c0_30] : memref<1x18x18x8xbf16, #tpu.memory_space<vmem>>, vector<1x16x16x8xbf16>
    %18 = vector.shape_cast %17 : vector<1x16x16x8xbf16> to vector<256x8xbf16>
    %c0_31 = arith.constant 0 : index
    %c2_32 = arith.constant 2 : index
    %c0_33 = arith.constant 0 : index
    %c0_34 = arith.constant 0 : index
    %19 = vector.load %arg8[%c0_31, %c2_32, %c0_33, %c0_34] : memref<1x18x18x8xbf16, #tpu.memory_space<vmem>>, vector<1x16x16x8xbf16>
    %20 = vector.shape_cast %19 : vector<1x16x16x8xbf16> to vector<256x8xbf16>
    %c0_35 = arith.constant 0 : index
    %c2_36 = arith.constant 2 : index
    %c1_37 = arith.constant 1 : index
    %c0_38 = arith.constant 0 : index
    %21 = vector.load %arg8[%c0_35, %c2_36, %c1_37, %c0_38] : memref<1x18x18x8xbf16, #tpu.memory_space<vmem>>, vector<1x16x16x8xbf16>
    %22 = vector.shape_cast %21 : vector<1x16x16x8xbf16> to vector<256x8xbf16>
    %c0_39 = arith.constant 0 : index
    %c2_40 = arith.constant 2 : index
    %c2_41 = arith.constant 2 : index
    %c0_42 = arith.constant 0 : index
    %23 = vector.load %arg8[%c0_39, %c2_40, %c2_41, %c0_42] : memref<1x18x18x8xbf16, #tpu.memory_space<vmem>>, vector<1x16x16x8xbf16>
    %24 = vector.shape_cast %23 : vector<1x16x16x8xbf16> to vector<256x8xbf16>
    %25 = tpu.concatenate %8, %10, %12, %14, %16, %18, %20, %22, %24 in 1 : vector<256x8xbf16>, vector<256x8xbf16>, vector<256x8xbf16>, vector<256x8xbf16>, vector<256x8xbf16>, vector<256x8xbf16>, vector<256x8xbf16>, vector<256x8xbf16>, vector<256x8xbf16> -> vector<256x72xbf16>
    %c0_43 = arith.constant 0 : index
    %c0_44 = arith.constant 0 : index
    %26 = vector.load %arg3[%c0_43, %c0_44] : memref<72x8xbf16, #tpu.memory_space<vmem>>, vector<72x8xbf16>
    %cst = arith.constant dense<0.000000e+00> : vector<256x8xf32>
    %27 = tpu.matmul %25, %26, %cst {dimension_numbers = #tpu.dot_dimension_numbers<[1], [0], [0], [1], [0, 0, 1, 1], [], []>} : vector<256x72xbf16>, vector<72x8xbf16>, vector<256x8xf32> -> vector<256x8xf32>
    %c0_45 = arith.constant 0 : index
    %c0_46 = arith.constant 0 : index
    %28 = vector.load %arg4[%c0_45, %c0_46] : memref<1x8xf32, #tpu.memory_space<vmem>>, vector<1x8xf32>
    %29 = vector.broadcast %28 : vector<1x8xf32> to vector<256x8xf32>
    %30 = arith.addf %27, %29 : vector<256x8xf32>
    %c0_47 = arith.constant 0 : index
    %c0_48 = arith.constant 0 : index
    %31 = vector.load %arg10[%c0_47, %c0_48] : memref<256x8xf32, #tpu.memory_space<vmem>>, vector<256x8xf32>
    %cst_49 = arith.constant 5.000000e-01 : f32
    %32 = vector.broadcast %cst_49 : f32 to vector<256x8xf32>
    %33 = arith.mulf %31, %32 : vector<256x8xf32>
    %34 = arith.addf %33, %30 : vector<256x8xf32>
    %cst_50 = arith.constant 1.000000e+00 : f32
    %35 = vector.broadcast %cst_50 : f32 to vector<256x8xf32>
    %36 = arith.cmpf oge, %34, %35 : vector<256x8xf32>
    %cst_51 = arith.constant 0.000000e+00 : f32
    %37 = vector.broadcast %cst_51 : f32 to vector<256x8xf32>
    %38 = arith.select %36, %37, %34 : vector<256x8xi1>, vector<256x8xf32>
    %c0_52 = arith.constant 0 : index
    %c0_53 = arith.constant 0 : index
    %39 = vector.load %arg10[%c0_52, %c0_53] : memref<256x8xf32, #tpu.memory_space<vmem>>, vector<256x8xf32>
    tpu.vector_store %arg10[%c0_52, %c0_53], %38 {strides = array<i32>} : memref<256x8xf32, #tpu.memory_space<vmem>>, vector<256x8xf32>,
    %40 = arith.extui %36 : vector<256x8xi1> to vector<256x8xi32>
    %41 = arith.sitofp %40 : vector<256x8xi32> to vector<256x8xf32>
    %42 = arith.truncf %41 : vector<256x8xf32> to vector<256x8xbf16>
    %43 = vector.shape_cast %42 : vector<256x8xbf16> to vector<1x16x16x8xbf16>
    %c0_54 = arith.constant 0 : index
    %c1_55 = arith.constant 1 : index
    %c1_56 = arith.constant 1 : index
    %c0_57 = arith.constant 0 : index
    %44 = vector.load %arg9[%c0_54, %c1_55, %c1_56, %c0_57] : memref<1x18x18x8xbf16, #tpu.memory_space<vmem>>, vector<1x16x16x8xbf16>
    tpu.vector_store %arg9[%c0_54, %c1_55, %c1_56, %c0_57], %43 {strides = array<i32>} : memref<1x18x18x8xbf16, #tpu.memory_space<vmem>>, vector<1x16x16x8xbf16>,
    %c0_58 = arith.constant 0 : index
    %c0_59 = arith.constant 0 : index
    %c0_60 = arith.constant 0 : index
    %c0_61 = arith.constant 0 : index
    %45 = vector.load %arg9[%c0_58, %c0_59, %c0_60, %c0_61] : memref<1x18x18x8xbf16, #tpu.memory_space<vmem>>, vector<1x16x16x8xbf16>
    %46 = vector.shape_cast %45 : vector<1x16x16x8xbf16> to vector<256x8xbf16>
    %c0_62 = arith.constant 0 : index
    %c0_63 = arith.constant 0 : index
    %c1_64 = arith.constant 1 : index
    %c0_65 = arith.constant 0 : index
    %47 = vector.load %arg9[%c0_62, %c0_63, %c1_64, %c0_65] : memref<1x18x18x8xbf16, #tpu.memory_space<vmem>>, vector<1x16x16x8xbf16>
    %48 = vector.shape_cast %47 : vector<1x16x16x8xbf16> to vector<256x8xbf16>
    %c0_66 = arith.constant 0 : index
    %c0_67 = arith.constant 0 : index
    %c2_68 = arith.constant 2 : index
    %c0_69 = arith.constant 0 : index
    %49 = vector.load %arg9[%c0_66, %c0_67, %c2_68, %c0_69] : memref<1x18x18x8xbf16, #tpu.memory_space<vmem>>, vector<1x16x16x8xbf16>
    %50 = vector.shape_cast %49 : vector<1x16x16x8xbf16> to vector<256x8xbf16>
    %c0_70 = arith.constant 0 : index
    %c1_71 = arith.constant 1 : index
    %c0_72 = arith.constant 0 : index
    %c0_73 = arith.constant 0 : index
    %51 = vector.load %arg9[%c0_70, %c1_71, %c0_72, %c0_73] : memref<1x18x18x8xbf16, #tpu.memory_space<vmem>>, vector<1x16x16x8xbf16>
    %52 = vector.shape_cast %51 : vector<1x16x16x8xbf16> to vector<256x8xbf16>
    %c0_74 = arith.constant 0 : index
    %c1_75 = arith.constant 1 : index
    %c1_76 = arith.constant 1 : index
    %c0_77 = arith.constant 0 : index
    %53 = vector.load %arg9[%c0_74, %c1_75, %c1_76, %c0_77] : memref<1x18x18x8xbf16, #tpu.memory_space<vmem>>, vector<1x16x16x8xbf16>
    %54 = vector.shape_cast %53 : vector<1x16x16x8xbf16> to vector<256x8xbf16>
    %c0_78 = arith.constant 0 : index
    %c1_79 = arith.constant 1 : index
    %c2_80 = arith.constant 2 : index
    %c0_81 = arith.constant 0 : index
    %55 = vector.load %arg9[%c0_78, %c1_79, %c2_80, %c0_81] : memref<1x18x18x8xbf16, #tpu.memory_space<vmem>>, vector<1x16x16x8xbf16>
    %56 = vector.shape_cast %55 : vector<1x16x16x8xbf16> to vector<256x8xbf16>
    %c0_82 = arith.constant 0 : index
    %c2_83 = arith.constant 2 : index
    %c0_84 = arith.constant 0 : index
    %c0_85 = arith.constant 0 : index
    %57 = vector.load %arg9[%c0_82, %c2_83, %c0_84, %c0_85] : memref<1x18x18x8xbf16, #tpu.memory_space<vmem>>, vector<1x16x16x8xbf16>
    %58 = vector.shape_cast %57 : vector<1x16x16x8xbf16> to vector<256x8xbf16>
    %c0_86 = arith.constant 0 : index
    %c2_87 = arith.constant 2 : index
    %c1_88 = arith.constant 1 : index
    %c0_89 = arith.constant 0 : index
    %59 = vector.load %arg9[%c0_86, %c2_87, %c1_88, %c0_89] : memref<1x18x18x8xbf16, #tpu.memory_space<vmem>>, vector<1x16x16x8xbf16>
    %60 = vector.shape_cast %59 : vector<1x16x16x8xbf16> to vector<256x8xbf16>
    %c0_90 = arith.constant 0 : index
    %c2_91 = arith.constant 2 : index
    %c2_92 = arith.constant 2 : index
    %c0_93 = arith.constant 0 : index
    %61 = vector.load %arg9[%c0_90, %c2_91, %c2_92, %c0_93] : memref<1x18x18x8xbf16, #tpu.memory_space<vmem>>, vector<1x16x16x8xbf16>
    %62 = vector.shape_cast %61 : vector<1x16x16x8xbf16> to vector<256x8xbf16>
    %63 = tpu.concatenate %46, %48, %50, %52, %54, %56, %58, %60, %62 in 1 : vector<256x8xbf16>, vector<256x8xbf16>, vector<256x8xbf16>, vector<256x8xbf16>, vector<256x8xbf16>, vector<256x8xbf16>, vector<256x8xbf16>, vector<256x8xbf16>, vector<256x8xbf16> -> vector<256x72xbf16>
    %c0_94 = arith.constant 0 : index
    %c0_95 = arith.constant 0 : index
    %64 = vector.load %arg5[%c0_94, %c0_95] : memref<72x8xbf16, #tpu.memory_space<vmem>>, vector<72x8xbf16>
    %cst_96 = arith.constant dense<0.000000e+00> : vector<256x8xf32>
    %65 = tpu.matmul %63, %64, %cst_96 {dimension_numbers = #tpu.dot_dimension_numbers<[1], [0], [0], [1], [0, 0, 1, 1], [], []>} : vector<256x72xbf16>, vector<72x8xbf16>, vector<256x8xf32> -> vector<256x8xf32>
    %c0_97 = arith.constant 0 : index
    %c0_98 = arith.constant 0 : index
    %66 = vector.load %arg6[%c0_97, %c0_98] : memref<1x8xf32, #tpu.memory_space<vmem>>, vector<1x8xf32>
    %67 = vector.broadcast %66 : vector<1x8xf32> to vector<256x8xf32>
    %68 = arith.addf %65, %67 : vector<256x8xf32>
    %c0_99 = arith.constant 0 : index
    %c0_100 = arith.constant 0 : index
    %69 = vector.load %arg11[%c0_99, %c0_100] : memref<256x8xf32, #tpu.memory_space<vmem>>, vector<256x8xf32>
    %cst_101 = arith.constant 5.000000e-01 : f32
    %70 = vector.broadcast %cst_101 : f32 to vector<256x8xf32>
    %71 = arith.mulf %69, %70 : vector<256x8xf32>
    %72 = vector.shape_cast %4 : vector<1x16x16x8xf32> to vector<256x8xf32>
    %73 = arith.addf %68, %72 : vector<256x8xf32>
    %74 = arith.addf %71, %73 : vector<256x8xf32>
    %cst_102 = arith.constant 1.000000e+00 : f32
    %75 = vector.broadcast %cst_102 : f32 to vector<256x8xf32>
    %76 = arith.cmpf oge, %74, %75 : vector<256x8xf32>
    %cst_103 = arith.constant 0.000000e+00 : f32
    %77 = vector.broadcast %cst_103 : f32 to vector<256x8xf32>
    %78 = arith.select %76, %77, %74 : vector<256x8xi1>, vector<256x8xf32>
    %c0_104 = arith.constant 0 : index
    %c0_105 = arith.constant 0 : index
    %79 = vector.load %arg11[%c0_104, %c0_105] : memref<256x8xf32, #tpu.memory_space<vmem>>, vector<256x8xf32>
    tpu.vector_store %arg11[%c0_104, %c0_105], %78 {strides = array<i32>} : memref<256x8xf32, #tpu.memory_space<vmem>>, vector<256x8xf32>,
    %80 = arith.extui %76 : vector<256x8xi1> to vector<256x8xi32>
    %81 = arith.sitofp %80 : vector<256x8xi32> to vector<256x8xf32>
    %82 = vector.shape_cast %81 : vector<256x8xf32> to vector<1x16x16x8xf32>
    %c0_106 = arith.constant 0 : index
    %c0_107 = arith.constant 0 : index
    %c0_108 = arith.constant 0 : index
    %c0_109 = arith.constant 0 : index
    %c0_110 = arith.constant 0 : index
    %83 = vector.load %arg7[%c0_106, %c0_107, %c0_108, %c0_109, %c0_110] : memref<1x1x16x16x8xf32, #tpu.memory_space<vmem>>, vector<1x1x16x16x8xf32>
    %84 = vector.shape_cast %83 : vector<1x1x16x16x8xf32> to vector<1x16x16x8xf32>
    %85 = vector.shape_cast %82 : vector<1x16x16x8xf32> to vector<1x1x16x16x8xf32>
    tpu.vector_store %arg7[%c0_106, %c0_107, %c0_108, %c0_109, %c0_110], %85 {strides = array<i32>} : memref<1x1x16x16x8xf32, #tpu.memory_space<vmem>>, vector<1x1x16x16x8xf32>,
    return
  }
  func.func @transform_0(%arg0: i32, %arg1: i32) -> (i32, i32, i32, i32, i32) {
    %c0_i32 = arith.constant 0 : i32
    %c0_i32_0 = arith.constant 0 : i32
    %c0_i32_1 = arith.constant 0 : i32
    %c0_i32_2 = arith.constant 0 : i32
    return %arg1, %arg0, %c0_i32, %c0_i32_0, %c0_i32_1 : i32, i32, i32, i32, i32
  }
  func.func @transform_1(%arg0: i32, %arg1: i32) -> (i32, i32) {
    %c0_i32 = arith.constant 0 : i32
    %c0_i32_0 = arith.constant 0 : i32
    %c0_i32_1 = arith.constant 0 : i32
    return %c0_i32, %c0_i32_0 : i32, i32
  }
  func.func @transform_2(%arg0: i32, %arg1: i32) -> (i32, i32) {
    %c0_i32 = arith.constant 0 : i32
    %c0_i32_0 = arith.constant 0 : i32
    %c0_i32_1 = arith.constant 0 : i32
    return %c0_i32, %c0_i32_0 : i32, i32
  }
  func.func @transform_3(%arg0: i32, %arg1: i32) -> (i32, i32) {
    %c0_i32 = arith.constant 0 : i32
    %c0_i32_0 = arith.constant 0 : i32
    %c0_i32_1 = arith.constant 0 : i32
    return %c0_i32, %c0_i32_0 : i32, i32
  }
  func.func @transform_4(%arg0: i32, %arg1: i32) -> (i32, i32) {
    %c0_i32 = arith.constant 0 : i32
    %c0_i32_0 = arith.constant 0 : i32
    %c0_i32_1 = arith.constant 0 : i32
    return %c0_i32, %c0_i32_0 : i32, i32
  }
  func.func @transform_5(%arg0: i32, %arg1: i32) -> (i32, i32, i32, i32, i32) {
    %c0_i32 = arith.constant 0 : i32
    %c0_i32_0 = arith.constant 0 : i32
    %c0_i32_1 = arith.constant 0 : i32
    %c0_i32_2 = arith.constant 0 : i32
    return %arg1, %arg0, %c0_i32, %c0_i32_0, %c0_i32_1 : i32, i32, i32, i32, i32
  }
}

</mosaic_0001>

<bundles_post_ra>
// kernel: basic_block_forward.1
= control target key start
LH: loop header
LB: loop body
LE: loop exit
PB: predicated region body
PF: predicated region fallthrough
CT: control target
= control target key end

     0   :  { %s9426_s18 = smov 0   ;;  %s9428_s19 = smov 0   ;;  %s13808_s0 = inlined_call_operand.vmem [shape: f32[4,2,16,16,8], index: 0, kind: input, shape index: {}]   ;;  %s13809_s1 = inlined_call_operand.vmem [shape: bf16[72,8], index: 1, kind: input, shape index: {}]   ;;  %s13810_s2 = inlined_call_operand.vmem [shape: f32[1,8], index: 2, kind: input, shape index: {}]   ;;  %s13811_s3 = inlined_call_operand.vmem [shape: bf16[72,8], index: 3, kind: input, shape index: {}]   ;;  %s13812_s4 = inlined_call_operand.vmem [shape: f32[1,8], index: 4, kind: input, shape index: {}]   ;;  %s13813_s5 = inlined_call_operand.vmem [shape: f32[4,2,16,16,8], index: 5, kind: output, shape index: {}]  }
   0x1   :  { %s9430_s20 = smov 0   ;;  %s9432_s21 = smov 0  }
   0x2   :  { %s9434_s22 = smov 0  }
   0x3 LB: > { %s24_s23 = sadd.s32 1, %s9375_s20  ;;  %s27_s24 = sadd.s32 1, %s9379_s21  ;;  %s9383_s22 = sphi %s9434_s22, %s15_s22   ;;  %s9379_s21 = sphi %s9432_s21, %s13960_s21   ;;  %s9375_s20 = sphi %s9430_s20, %s13959_s20   ;;  %s9371_s19 = sphi %s9428_s19, %s13958_s19   ;;  %s9367_s18 = sphi %s9426_s18, %s13957_s18  }
   0x4   : > { %p25_p0 = scmp.ge.s32.totalorder %s24_s23, 4  ;;  %p8375_p1 = scmp.ge.s32.totalorder %s9383_s22, 1 }
   0x5   : > { %p207_p2 = scmp.lt.s32.totalorder %s9383_s22, 9 }
   0x6   : > { %s13962_s23 = smov (%p25_p0, %s24_s23), 0  ;;  %s13964_s24 = smov (!%p25_p0, %s27_s24), %s9379_s21 }
   0x7   : > { %p208_p3 = pnand %p8375_p1, %p207_p2  ;;  %p29_p4 = scmp.ge.s32.totalorder %s13964_s24, 2 }
   0x9   : > { %s13966_s24 = smov (%p29_p4, %s13964_s24), 0  ;;  %211 = sbr.rel (%p208_p3) target bundleno = 1325 (0x52d), region = 40 }
  0x10   : > { %p243_p5 = scmp.lt.s32.totalorder %s9367_s18, 3  ;;  %p245_p6 = scmp.lt.s32.totalorder %s9371_s19, 1 }
  0x11   : > { %p8382_p7 = scmp.ne.s32.totalorder %s9367_s18, 0 }
  0x12   : > { %s244_s25 = scalar_select %p243_p5, %s9367_s18, 3 }
  0x13   : > { %s13968_s19 = smov (!%p245_p6, %s9371_s19), 1  ;;  %265 = sbr.rel (%p8382_p7) target bundleno = 107 (0x6b), region = 44 }
  0x14   : > { %s8377_s26 = sshll.u32 %s244_s25, 6  ;;  %s8376_s27 = sshll.u32 %s13968_s19, 5  ;;  %vm266_vm0 = vcmask (!%p8382_p7), 60416   ;;  %vm269_vm1 = vcmask (!%p8382_p7), 57344   ;;  %vm376_vm2 = vcmask (!%p8382_p7), 64512   ;;  %v9385_v0 = vmov (!%p8382_p7), 0  }
  0x15   : > { %s249_s28 = sadd.s32 %s8377_s26, %s8376_s27  ;;  %267 = vst.msk [vmem:[#allocation2] sm:$0xf] (!%p8382_p7), %vm266_vm0, %v9385_v0  ;;  %268 = vst.msk [vmem:[#allocation2 + $0x4] sm:$0xf] (!%p8382_p7), %vm266_vm0, %v9385_v0  ;;  %v9386_v1 = vmov (!%p8382_p7), 0.0  }
  0x16   : > { %s8378_s29 = sshll.u32 %s249_s28, 3  ;;  %271 = vst.msk [vmem:[#allocation2 + $0xc] sm:$0xf] (!%p8382_p7), %vm266_vm0, %v9385_v0  ;;  %272 = vst.msk [vmem:[#allocation2 + $0x10] sm:$0xf] (!%p8382_p7), %vm266_vm0, %v9385_v0 }
  0x17   : > { %s9459_s7 = scalar_lea.vmem %s13808_s0, %s8378_s29  ;;  %s9464_s10 = scalar_lea.vmem %s13813_s5, %s8378_s29  ;;  %274 = vst.msk [vmem:[#allocation2 + $0x18] sm:$0xf] (!%p8382_p7), %vm266_vm0, %v9385_v0  ;;  %275 = vst.msk [vmem:[#allocation2 + $0x1c] sm:$0xf] (!%p8382_p7), %vm266_vm0, %v9385_v0 }
  0x18   : > { %277 = vst.msk [vmem:[#allocation2 + $0x24] sm:$0xf] (!%p8382_p7), %vm266_vm0, %v9385_v0  ;;  %278 = vst.msk [vmem:[#allocation2 + $0x28] sm:$0xf] (!%p8382_p7), %vm266_vm0, %v9385_v0 }
  0x19   : > { %280 = vst.msk [vmem:[#allocation2 + $0x30] sm:$0xf] (!%p8382_p7), %vm266_vm0, %v9385_v0  ;;  %281 = vst.msk [vmem:[#allocation2 + $0x34] sm:$0xf] (!%p8382_p7), %vm266_vm0, %v9385_v0 }
  0x1a   : > { %283 = vst.msk [vmem:[#allocation2 + $0x3c] sm:$0xf] %vm266_vm0, %v9385_v0  ;;  %284 = vst.msk [vmem:[#allocation2 + $0x40] sm:$0xf] %vm266_vm0, %v9385_v0 }
  0x1b   : > { %286 = vst.msk [vmem:[#allocation2 + $0x48] sm:$0xf] %vm266_vm0, %v9385_v0  ;;  %287 = vst.msk [vmem:[#allocation2 + $0x4c] sm:$0xf] %vm266_vm0, %v9385_v0 }
  0x1c   : > { %289 = vst.msk [vmem:[#allocation2 + $0x54] sm:$0xf] %vm266_vm0, %v9385_v0  ;;  %290 = vst.msk [vmem:[#allocation2 + $0x58] sm:$0xf] %vm266_vm0, %v9385_v0 }
  0x1d   : > { %292 = vst.msk [vmem:[#allocation2 + $0x60] sm:$0xf] %vm266_vm0, %v9385_v0  ;;  %293 = vst.msk [vmem:[#allocation2 + $0x64] sm:$0xf] %vm266_vm0, %v9385_v0 }
  0x1e   : > { %295 = vst.msk [vmem:[#allocation2 + $0x6c] sm:$0xf] %vm266_vm0, %v9385_v0  ;;  %296 = vst.msk [vmem:[#allocation2 + $0x70] sm:$0xf] %vm266_vm0, %v9385_v0 }
  0x1f   : > { %298 = vst.msk [vmem:[#allocation2 + $0x78] sm:$0xf] %vm266_vm0, %v9385_v0  ;;  %299 = vst.msk [vmem:[#allocation2 + $0x7c] sm:$0xf] %vm266_vm0, %v9385_v0 }
  0x20   : > { %301 = vst.msk [vmem:[#allocation2 + $0x84] sm:$0xf] %vm266_vm0, %v9385_v0  ;;  %302 = vst.msk [vmem:[#allocation2 + $0x88] sm:$0xf] %vm266_vm0, %v9385_v0 }
  0x21   : > { %304 = vst.msk [vmem:[#allocation2 + $0x90] sm:$0xf] %vm266_vm0, %v9385_v0  ;;  %305 = vst.msk [vmem:[#allocation2 + $0x94] sm:$0xf] %vm266_vm0, %v9385_v0 }
  0x22   : > { %307 = vst.msk [vmem:[#allocation2 + $0x9c] sm:$0xf] %vm266_vm0, %v9385_v0  ;;  %308 = vst.msk [vmem:[#allocation2 + $0xa0] sm:$0xf] %vm266_vm0, %v9385_v0 }
  0x23   : > { %310 = vst.msk [vmem:[#allocation2 + $0xa8] sm:$0xf] %vm266_vm0, %v9385_v0  ;;  %311 = vst.msk [vmem:[#allocation2 + $0xac] sm:$0xf] %vm266_vm0, %v9385_v0 }
  0x24   : > { %313 = vst.msk [vmem:[#allocation2 + $0xb4] sm:$0xf] %vm266_vm0, %v9385_v0  ;;  %314 = vst.msk [vmem:[#allocation2 + $0xb8] sm:$0xf] %vm266_vm0, %v9385_v0 }
  0x25   : > { %316 = vst.msk [vmem:[#allocation2 + $0xc0] sm:$0xf] %vm266_vm0, %v9385_v0  ;;  %317 = vst.msk [vmem:[#allocation2 + $0xc4] sm:$0xf] %vm266_vm0, %v9385_v0 }
  0x26   : > { %319 = vst.msk [vmem:[#allocation2 + $0xcc] sm:$0xf] %vm266_vm0, %v9385_v0  ;;  %320 = vst.msk [vmem:[#allocation2 + $0xd0] sm:$0xf] %vm266_vm0, %v9385_v0 }
  0x27   : > { %322 = vst.msk [vmem:[#allocation3] sm:$0xf] %vm266_vm0, %v9385_v0  ;;  %323 = vst.msk [vmem:[#allocation3 + $0x4] sm:$0xf] %vm266_vm0, %v9385_v0 }
  0x28   : > { %325 = vst.msk [vmem:[#allocation3 + $0xc] sm:$0xf] %vm266_vm0, %v9385_v0  ;;  %326 = vst.msk [vmem:[#allocation3 + $0x10] sm:$0xf] %vm266_vm0, %v9385_v0 }
  0x29   : > { %328 = vst.msk [vmem:[#allocation3 + $0x18] sm:$0xf] %vm266_vm0, %v9385_v0  ;;  %329 = vst.msk [vmem:[#allocation3 + $0x1c] sm:$0xf] %vm266_vm0, %v9385_v0 }
  0x2a   : > { %331 = vst.msk [vmem:[#allocation3 + $0x24] sm:$0xf] %vm266_vm0, %v9385_v0  ;;  %332 = vst.msk [vmem:[#allocation3 + $0x28] sm:$0xf] %vm266_vm0, %v9385_v0 }
  0x2b   : > { %334 = vst.msk [vmem:[#allocation3 + $0x30] sm:$0xf] %vm266_vm0, %v9385_v0  ;;  %335 = vst.msk [vmem:[#allocation3 + $0x34] sm:$0xf] %vm266_vm0, %v9385_v0 }
  0x2c   : > { %337 = vst.msk [vmem:[#allocation3 + $0x3c] sm:$0xf] %vm266_vm0, %v9385_v0  ;;  %338 = vst.msk [vmem:[#allocation3 + $0x40] sm:$0xf] %vm266_vm0, %v9385_v0 }
  0x2d   : > { %340 = vst.msk [vmem:[#allocation3 + $0x48] sm:$0xf] %vm266_vm0, %v9385_v0  ;;  %341 = vst.msk [vmem:[#allocation3 + $0x4c] sm:$0xf] %vm266_vm0, %v9385_v0 }
  0x2e   : > { %343 = vst.msk [vmem:[#allocation3 + $0x54] sm:$0xf] %vm266_vm0, %v9385_v0  ;;  %344 = vst.msk [vmem:[#allocation3 + $0x58] sm:$0xf] %vm266_vm0, %v9385_v0 }
  0x2f   : > { %346 = vst.msk [vmem:[#allocation3 + $0x60] sm:$0xf] %vm266_vm0, %v9385_v0  ;;  %347 = vst.msk [vmem:[#allocation3 + $0x64] sm:$0xf] %vm266_vm0, %v9385_v0 }
  0x30   : > { %349 = vst.msk [vmem:[#allocation3 + $0x6c] sm:$0xf] %vm266_vm0, %v9385_v0  ;;  %350 = vst.msk [vmem:[#allocation3 + $0x70] sm:$0xf] %vm266_vm0, %v9385_v0 }
  0x31   : > { %352 = vst.msk [vmem:[#allocation3 + $0x78] sm:$0xf] %vm266_vm0, %v9385_v0  ;;  %353 = vst.msk [vmem:[#allocation3 + $0x7c] sm:$0xf] %vm266_vm0, %v9385_v0 }
  0x32   : > { %355 = vst.msk [vmem:[#allocation3 + $0x84] sm:$0xf] %vm266_vm0, %v9385_v0  ;;  %356 = vst.msk [vmem:[#allocation3 + $0x88] sm:$0xf] %vm266_vm0, %v9385_v0 }
  0x33   : > { %358 = vst.msk [vmem:[#allocation3 + $0x90] sm:$0xf] %vm266_vm0, %v9385_v0  ;;  %359 = vst.msk [vmem:[#allocation3 + $0x94] sm:$0xf] %vm266_vm0, %v9385_v0 }
  0x34   : > { %361 = vst.msk [vmem:[#allocation3 + $0x9c] sm:$0xf] %vm266_vm0, %v9385_v0  ;;  %362 = vst.msk [vmem:[#allocation3 + $0xa0] sm:$0xf] %vm266_vm0, %v9385_v0 }
  0x35   : > { %364 = vst.msk [vmem:[#allocation3 + $0xa8] sm:$0xf] %vm266_vm0, %v9385_v0  ;;  %365 = vst.msk [vmem:[#allocation3 + $0xac] sm:$0xf] %vm266_vm0, %v9385_v0 }
  0x36   : > { %367 = vst.msk [vmem:[#allocation3 + $0xb4] sm:$0xf] %vm266_vm0, %v9385_v0  ;;  %368 = vst.msk [vmem:[#allocation3 + $0xb8] sm:$0xf] %vm266_vm0, %v9385_v0 }
  0x37   : > { %370 = vst.msk [vmem:[#allocation3 + $0xc0] sm:$0xf] %vm266_vm0, %v9385_v0  ;;  %371 = vst.msk [vmem:[#allocation3 + $0xc4] sm:$0xf] %vm266_vm0, %v9385_v0 }
  0x38   : > { %373 = vst.msk [vmem:[#allocation3 + $0xcc] sm:$0xf] %vm266_vm0, %v9385_v0  ;;  %374 = vst.msk [vmem:[#allocation3 + $0xd0] sm:$0xf] %vm266_vm0, %v9385_v0 }
  0x39   : > { %270 = vst.msk [vmem:[#allocation2 + $0x8] sm:$0x1] %vm269_vm1, %v9385_v0  ;;  %273 = vst.msk [vmem:[#allocation2 + $0x14] sm:$0x1] %vm269_vm1, %v9385_v0 }
  0x3a   : > { %276 = vst.msk [vmem:[#allocation2 + $0x20] sm:$0x1] %vm269_vm1, %v9385_v0  ;;  %279 = vst.msk [vmem:[#allocation2 + $0x2c] sm:$0x1] %vm269_vm1, %v9385_v0 }
  0x3b   : > { %282 = vst.msk [vmem:[#allocation2 + $0x38] sm:$0x1] %vm269_vm1, %v9385_v0  ;;  %285 = vst.msk [vmem:[#allocation2 + $0x44] sm:$0x1] %vm269_vm1, %v9385_v0 }
  0x3c   : > { %288 = vst.msk [vmem:[#allocation2 + $0x50] sm:$0x1] %vm269_vm1, %v9385_v0  ;;  %291 = vst.msk [vmem:[#allocation2 + $0x5c] sm:$0x1] %vm269_vm1, %v9385_v0 }
  0x3d   : > { %294 = vst.msk [vmem:[#allocation2 + $0x68] sm:$0x1] %vm269_vm1, %v9385_v0  ;;  %297 = vst.msk [vmem:[#allocation2 + $0x74] sm:$0x1] %vm269_vm1, %v9385_v0 }
  0x3e   : > { %300 = vst.msk [vmem:[#allocation2 + $0x80] sm:$0x1] %vm269_vm1, %v9385_v0  ;;  %303 = vst.msk [vmem:[#allocation2 + $0x8c] sm:$0x1] %vm269_vm1, %v9385_v0 }
  0x3f   : > { %306 = vst.msk [vmem:[#allocation2 + $0x98] sm:$0x1] %vm269_vm1, %v9385_v0  ;;  %309 = vst.msk [vmem:[#allocation2 + $0xa4] sm:$0x1] %vm269_vm1, %v9385_v0 }
  0x40   : > { %312 = vst.msk [vmem:[#allocation2 + $0xb0] sm:$0x1] %vm269_vm1, %v9385_v0  ;;  %315 = vst.msk [vmem:[#allocation2 + $0xbc] sm:$0x1] %vm269_vm1, %v9385_v0 }
  0x41   : > { %318 = vst.msk [vmem:[#allocation2 + $0xc8] sm:$0x1] %vm269_vm1, %v9385_v0  ;;  %321 = vst.msk [vmem:[#allocation2 + $0xd4] sm:$0x1] %vm269_vm1, %v9385_v0 }
  0x42   : > { %324 = vst.msk [vmem:[#allocation3 + $0x8] sm:$0x1] %vm269_vm1, %v9385_v0  ;;  %327 = vst.msk [vmem:[#allocation3 + $0x14] sm:$0x1] %vm269_vm1, %v9385_v0 }
  0x43   : > { %330 = vst.msk [vmem:[#allocation3 + $0x20] sm:$0x1] %vm269_vm1, %v9385_v0  ;;  %333 = vst.msk [vmem:[#allocation3 + $0x2c] sm:$0x1] %vm269_vm1, %v9385_v0 }
  0x44   : > { %336 = vst.msk [vmem:[#allocation3 + $0x38] sm:$0x1] %vm269_vm1, %v9385_v0  ;;  %339 = vst.msk [vmem:[#allocation3 + $0x44] sm:$0x1] %vm269_vm1, %v9385_v0 }
  0x45   : > { %342 = vst.msk [vmem:[#allocation3 + $0x50] sm:$0x1] %vm269_vm1, %v9385_v0  ;;  %345 = vst.msk [vmem:[#allocation3 + $0x5c] sm:$0x1] %vm269_vm1, %v9385_v0 }
  0x46   : > { %348 = vst.msk [vmem:[#allocation3 + $0x68] sm:$0x1] %vm269_vm1, %v9385_v0  ;;  %351 = vst.msk [vmem:[#allocation3 + $0x74] sm:$0x1] %vm269_vm1, %v9385_v0 }
  0x47   : > { %354 = vst.msk [vmem:[#allocation3 + $0x80] sm:$0x1] %vm269_vm1, %v9385_v0  ;;  %357 = vst.msk [vmem:[#allocation3 + $0x8c] sm:$0x1] %vm269_vm1, %v9385_v0 }
  0x48   : > { %360 = vst.msk [vmem:[#allocation3 + $0x98] sm:$0x1] %vm269_vm1, %v9385_v0  ;;  %363 = vst.msk [vmem:[#allocation3 + $0xa4] sm:$0x1] %vm269_vm1, %v9385_v0 }
  0x49   : > { %366 = vst.msk [vmem:[#allocation3 + $0xb0] sm:$0x1] %vm269_vm1, %v9385_v0  ;;  %369 = vst.msk [vmem:[#allocation3 + $0xbc] sm:$0x1] %vm269_vm1, %v9385_v0 }
  0x4a   : > { %372 = vst.msk [vmem:[#allocation3 + $0xc8] sm:$0x1] %vm269_vm1, %v9385_v0  ;;  %375 = vst.msk [vmem:[#allocation3 + $0xd4] sm:$0x1] %vm269_vm1, %v9385_v0 }
  0x4b   : > { %377 = vst.msk [vmem:[#allocation4] sm:$0xff] %vm376_vm2, %v9386_v1  ;;  %378 = vst.msk [vmem:[#allocation4 + $0x8] sm:$0xff] %vm376_vm2, %v9386_v1 }
  0x4c   : > { %379 = vst.msk [vmem:[#allocation4 + $0x10] sm:$0xff] %vm376_vm2, %v9386_v1  ;;  %380 = vst.msk [vmem:[#allocation4 + $0x18] sm:$0xff] %vm376_vm2, %v9386_v1 }
  0x4d   : > { %381 = vst.msk [vmem:[#allocation4 + $0x20] sm:$0xff] %vm376_vm2, %v9386_v1  ;;  %382 = vst.msk [vmem:[#allocation4 + $0x28] sm:$0xff] %vm376_vm2, %v9386_v1 }
  0x4e   : > { %383 = vst.msk [vmem:[#allocation4 + $0x30] sm:$0xff] %vm376_vm2, %v9386_v1  ;;  %384 = vst.msk [vmem:[#allocation4 + $0x38] sm:$0xff] %vm376_vm2, %v9386_v1 }
  0x4f   : > { %385 = vst.msk [vmem:[#allocation4 + $0x40] sm:$0xff] %vm376_vm2, %v9386_v1  ;;  %386 = vst.msk [vmem:[#allocation4 + $0x48] sm:$0xff] %vm376_vm2, %v9386_v1 }
  0x50   : > { %387 = vst.msk [vmem:[#allocation4 + $0x50] sm:$0xff] %vm376_vm2, %v9386_v1  ;;  %388 = vst.msk [vmem:[#allocation4 + $0x58] sm:$0xff] %vm376_vm2, %v9386_v1 }
  0x51   : > { %389 = vst.msk [vmem:[#allocation4 + $0x60] sm:$0xff] %vm376_vm2, %v9386_v1  ;;  %390 = vst.msk [vmem:[#allocation4 + $0x68] sm:$0xff] %vm376_vm2, %v9386_v1 }
  0x52   : > { %391 = vst.msk [vmem:[#allocation4 + $0x70] sm:$0xff] %vm376_vm2, %v9386_v1  ;;  %392 = vst.msk [vmem:[#allocation4 + $0x78] sm:$0xff] %vm376_vm2, %v9386_v1 }
  0x53   : > { %393 = vst.msk [vmem:[#allocation4 + $0x80] sm:$0xff] %vm376_vm2, %v9386_v1  ;;  %394 = vst.msk [vmem:[#allocation4 + $0x88] sm:$0xff] %vm376_vm2, %v9386_v1 }
  0x54   : > { %395 = vst.msk [vmem:[#allocation4 + $0x90] sm:$0xff] %vm376_vm2, %v9386_v1  ;;  %396 = vst.msk [vmem:[#allocation4 + $0x98] sm:$0xff] %vm376_vm2, %v9386_v1 }
  0x55   : > { %397 = vst.msk [vmem:[#allocation4 + $0xa0] sm:$0xff] %vm376_vm2, %v9386_v1  ;;  %398 = vst.msk [vmem:[#allocation4 + $0xa8] sm:$0xff] %vm376_vm2, %v9386_v1 }
  0x56   : > { %399 = vst.msk [vmem:[#allocation4 + $0xb0] sm:$0xff] %vm376_vm2, %v9386_v1  ;;  %400 = vst.msk [vmem:[#allocation4 + $0xb8] sm:$0xff] %vm376_vm2, %v9386_v1 }
  0x57   : > { %401 = vst.msk [vmem:[#allocation4 + $0xc0] sm:$0xff] %vm376_vm2, %v9386_v1  ;;  %402 = vst.msk [vmem:[#allocation4 + $0xc8] sm:$0xff] %vm376_vm2, %v9386_v1 }
  0x58   : > { %403 = vst.msk [vmem:[#allocation4 + $0xd0] sm:$0xff] %vm376_vm2, %v9386_v1  ;;  %404 = vst.msk [vmem:[#allocation4 + $0xd8] sm:$0xff] %vm376_vm2, %v9386_v1 }
  0x59   : > { %405 = vst.msk [vmem:[#allocation4 + $0xe0] sm:$0xff] %vm376_vm2, %v9386_v1  ;;  %406 = vst.msk [vmem:[#allocation4 + $0xe8] sm:$0xff] %vm376_vm2, %v9386_v1 }
  0x5a   : > { %407 = vst.msk [vmem:[#allocation4 + $0xf0] sm:$0xff] %vm376_vm2, %v9386_v1  ;;  %408 = vst.msk [vmem:[#allocation4 + $0xf8] sm:$0xff] %vm376_vm2, %v9386_v1 }
  0x5b   : > { %409 = vst.msk [vmem:[#allocation5] sm:$0xff] %vm376_vm2, %v9386_v1  ;;  %410 = vst.msk [vmem:[#allocation5 + $0x8] sm:$0xff] %vm376_vm2, %v9386_v1 }
  0x5c   : > { %411 = vst.msk [vmem:[#allocation5 + $0x10] sm:$0xff] %vm376_vm2, %v9386_v1  ;;  %412 = vst.msk [vmem:[#allocation5 + $0x18] sm:$0xff] %vm376_vm2, %v9386_v1 }
  0x5d   : > { %413 = vst.msk [vmem:[#allocation5 + $0x20] sm:$0xff] %vm376_vm2, %v9386_v1  ;;  %414 = vst.msk [vmem:[#allocation5 + $0x28] sm:$0xff] %vm376_vm2, %v9386_v1 }
  0x5e   : > { %415 = vst.msk [vmem:[#allocation5 + $0x30] sm:$0xff] %vm376_vm2, %v9386_v1  ;;  %416 = vst.msk [vmem:[#allocation5 + $0x38] sm:$0xff] %vm376_vm2, %v9386_v1 }
  0x5f   : > { %417 = vst.msk [vmem:[#allocation5 + $0x40] sm:$0xff] %vm376_vm2, %v9386_v1  ;;  %418 = vst.msk [vmem:[#allocation5 + $0x48] sm:$0xff] %vm376_vm2, %v9386_v1 }
  0x60   : > { %419 = vst.msk [vmem:[#allocation5 + $0x50] sm:$0xff] %vm376_vm2, %v9386_v1  ;;  %420 = vst.msk [vmem:[#allocation5 + $0x58] sm:$0xff] %vm376_vm2, %v9386_v1 }
  0x61   : > { %421 = vst.msk [vmem:[#allocation5 + $0x60] sm:$0xff] %vm376_vm2, %v9386_v1  ;;  %422 = vst.msk [vmem:[#allocation5 + $0x68] sm:$0xff] %vm376_vm2, %v9386_v1 }
  0x62   : > { %423 = vst.msk [vmem:[#allocation5 + $0x70] sm:$0xff] %vm376_vm2, %v9386_v1  ;;  %424 = vst.msk [vmem:[#allocation5 + $0x78] sm:$0xff] %vm376_vm2, %v9386_v1 }
  0x63   : > { %425 = vst.msk [vmem:[#allocation5 + $0x80] sm:$0xff] %vm376_vm2, %v9386_v1  ;;  %426 = vst.msk [vmem:[#allocation5 + $0x88] sm:$0xff] %vm376_vm2, %v9386_v1 }
  0x64   : > { %427 = vst.msk [vmem:[#allocation5 + $0x90] sm:$0xff] %vm376_vm2, %v9386_v1  ;;  %428 = vst.msk [vmem:[#allocation5 + $0x98] sm:$0xff] %vm376_vm2, %v9386_v1 }
  0x65   : > { %429 = vst.msk [vmem:[#allocation5 + $0xa0] sm:$0xff] %vm376_vm2, %v9386_v1  ;;  %430 = vst.msk [vmem:[#allocation5 + $0xa8] sm:$0xff] %vm376_vm2, %v9386_v1 }
  0x66   : > { %431 = vst.msk [vmem:[#allocation5 + $0xb0] sm:$0xff] %vm376_vm2, %v9386_v1  ;;  %432 = vst.msk [vmem:[#allocation5 + $0xb8] sm:$0xff] %vm376_vm2, %v9386_v1 }
  0x67   : > { %433 = vst.msk [vmem:[#allocation5 + $0xc0] sm:$0xff] %vm376_vm2, %v9386_v1  ;;  %434 = vst.msk [vmem:[#allocation5 + $0xc8] sm:$0xff] %vm376_vm2, %v9386_v1 }
  0x68   : > { %435 = vst.msk [vmem:[#allocation5 + $0xd0] sm:$0xff] %vm376_vm2, %v9386_v1  ;;  %436 = vst.msk [vmem:[#allocation5 + $0xd8] sm:$0xff] %vm376_vm2, %v9386_v1 }
  0x69   : > { %437 = vst.msk [vmem:[#allocation5 + $0xe0] sm:$0xff] %vm376_vm2, %v9386_v1  ;;  %438 = vst.msk [vmem:[#allocation5 + $0xe8] sm:$0xff] %vm376_vm2, %v9386_v1 }
  0x6a   : > { %439 = vst.msk [vmem:[#allocation5 + $0xf0] sm:$0xff] %vm376_vm2, %v9386_v1  ;;  %440 = vst.msk [vmem:[#allocation5 + $0xf8] sm:$0xff] %vm376_vm2, %v9386_v1 }
  0x6b PF: > { %v1043_v4 = vld [vmem:[#allocation2 + $0x8] sm:$0x1]  ;;  %vm1510_vm3 = vcmask 1042432   ;;  %vm1511_vm4 = vcmask 1046532   ;;  %vm1059_vm6 = vsmask.f32 3328 }
  0x6c   : > { %vm9810_vm5 = vmor %vm1510_vm3, %vm1511_vm4  ;;  %v1518_v8 = vrot.slane %v1043_v4, 5  ;;  %vm1060_vm7 = vsmask.f32 7440  ;;  %v443_v14 = vld [vmem:[%s9459_s7 + $0x10] sm:$0xff]  ;;  %v444_v15 = vld [vmem:[%s9459_s7 + $0x18] sm:$0xff]  ;;  %v1082_v19 = vshll.u32 %v1043_v4, 16 }
  0x6d   : > { %v1012_v2 = vld [vmem:[#allocation2 + $0x4] sm:$0xf]  ;;  %v1446_v3 = vld [vmem:[#allocation2] sm:$0xe]  ;;  %v8943_v22 = vpack.c.bf16 %v443_v14, %v443_v14  ;;  %v8944_v23 = vpack.c.bf16 %v444_v15, %v444_v15  ;;  %vm569_vm8 = vsmask.f32 256  ;;  %vm9826_vm10 = vmor %vm1059_vm6, %vm1060_vm7 }
  0x6e   : > { %v8415_v5 = vrot.slane %v1446_v3, 9  ;;  %v1515_v6 = vrot.slane %v1012_v2, 5  ;;  %v1011_v9 = vld [vmem:[#allocation2] sm:$0xf]  ;;  %v1072_v10 = vshll.u32 %v1012_v2, 16  ;;  %v1076_v18 = vshrl.u32 %v1012_v2, 16 }
  0x6f   : > { %v1063_v13 = vshrl.u32 %v1011_v9, 16  ;;  %v1066_v16 = vshll.u32 %v1011_v9, 16  ;;  %v1084_v27 = vrot.slane %v1082_v19, 5  ;;  %v441_v28 = vld [vmem:[%s9459_s7] sm:$0xff]  ;;  %vm570_vm9 = vsmask.f32 4368 }
  0x70   : > { %v1516_v11 = vsel %vm9810_vm5, %v8415_v5, %v1515_v6  ;;  %v1517_v12 = vrot.slane %v1515_v6, 4  ;;  %v1074_v17 = vrot.slane %v1072_v10, 5  ;;  %v1078_v26 = vrot.slane %v1076_v18, 4  ;;  %s9387_s11 = smov 16   ;;  %v442_v35 = vld [vmem:[%s9459_s7 + $0x8] sm:$0xff]  ;;  %v445_v36 = vld [vmem:[%s9459_s7 + $0x20] sm:$0xff]  ;;  %vm9837_vm15 = vmor %vm569_vm8, %vm570_vm9 }
  0x71   : > { %v1065_v21 = vrot.slane %v1063_v13, 4  ;;  %v1068_v25 = vrot.slane %v1066_v16, 5  ;;  %v590_v29 = vshrl.u32 %v8943_v22, 16  ;;  %v593_v30 = vshll.u32 %v8943_v22, 16  ;;  %v906_v43 = vld [vmem:[#allocation2 + $0x18] sm:$0xf] }
  0x72   : > { %v1519_v20 = vsel %vm9810_vm5, %v1517_v12, %v1518_v8  ;;  %v1079_v32 = vor.u32 %v1078_v26, %v1074_v17  ;;  %v598_v33 = vshrl.u32 %v8944_v23, 16  ;;  %v601_v34 = vshll.u32 %v8944_v23, 16  ;;  %v446_v49 = vld [vmem:[%s9459_s7 + $0x28] sm:$0xff]  ;;  %v910_v0 = vld [vmem:[#allocation2 + $0x20] sm:$0x1]  ;;  %s9388_s12 = smov 8  }
  0x73   : > { %v8495_v24 = vcombine.low %v1516_v11, %v1519_v20  ;;  %v1069_v31 = vor.u32 %v1068_v25, %v1065_v21  ;;  %v592_v38 = vrot.slane %v590_v29, 7  ;;  %vm893_vm11 = vcmask 60416   ;;  %v896_v62 = vld [vmem:[#allocation2 + $0xc] sm:$0xf]  ;;  %v447_v5 = vld [vmem:[%s9459_s7 + $0x30] sm:$0xff]  ;;  %v448_v6 = vld [vmem:[%s9459_s7 + $0x38] sm:$0xff] }
  0x74   : > { %vm894_vm12 = vsmask.f32 7938  ;;  %vm901_vm13 = vcmask 57344   ;;  %v1080_v40 = vrot.slane %v1079_v32, 4  ;;  %v600_v41 = vrot.slane %v598_v33, 7  ;;  %v449_v20 = vld [vmem:[%s9459_s7 + $0x40] sm:$0xff] }
  0x75   : > { %3034 = vrot.lane.b32.xlu1 %v8495_v24, %s9387_s11  ;;  %v1070_v39 = vrot.slane %v1069_v31, 4  ;;  %vm9831_vm14 = vmand %vm893_vm11, %vm894_vm12  ;;  %v8941_v44 = vpack.c.bf16 %v441_v28, %v441_v28  ;;  %v595_v46 = vor.u32 %v593_v30, %v592_v38  ;;  %v596_v47 = vrot.slane %v592_v38, 4  ;;  %v913_v13 = vld [vmem:[#allocation2 + $0x24] sm:$0xf]  ;;  %v903_v14 = vld [vmem:[#allocation2 + $0x14] sm:$0x1] }
  0x76   : > { %v8942_v48 = vpack.c.bf16 %v442_v35, %v442_v35  ;;  %v8945_v50 = vpack.c.bf16 %v445_v36, %v445_v36  ;;  %v1085_v52 = vsel %vm9826_vm10, %v1080_v40, %v1084_v27  ;;  %v603_v53 = vor.u32 %v601_v34, %v600_v41  ;;  %vm9856_vm0 = vmand %vm901_vm13, %vm569_vm8  ;;  %v917_v19 = vld [vmem:[#allocation2 + $0x2c] sm:$0x1]  ;;  %v451_v26 = vld [vmem:[%s9459_s7 + $0x50] sm:$0xff]  ;;  %s9389_s13 = smov 24   ;;  %s9390_s14 = smov 48  }
  0x77   : > { %v1075_v51 = vsel %vm9826_vm10, %v1070_v39, %v1074_v17  ;;  %v573_v54 = vshrl.u32 %v8941_v44, 16  ;;  %v907_v56 = vsel %vm9831_vm14, %v595_v46, %v906_v43  ;;  %v576_v57 = vshll.u32 %v8941_v44, 16  ;;  %v450_v25 = vld [vmem:[%s9459_s7 + $0x48] sm:$0xff]  ;;  %s9391_s15 = smov 40   ;;  %s9392_s16 = smov 64  }
  0x78   : > { %v8479_v55 = vcombine.low %v1075_v51, %v1085_v52  ;;  %v581_v58 = vshrl.u32 %v8942_v48, 16  ;;  %v604_v59 = vsel %vm9837_vm15, %v596_v47, %v603_v53  ;;  %908 = vst [vmem:[#allocation2 + $0x18] sm:$0xf] %v907_v56  ;;  %v584_v61 = vshll.u32 %v8942_v48, 16  ;;  %v453_v56 = vld [vmem:[%s9459_s7 + $0x60] sm:$0xff]  ;;  %s9393_s17 = smov 32  }
  0x79   : > { %v575_v60 = vrot.slane %v573_v54, 7  ;;  %v8946_v63 = vpack.c.bf16 %v446_v49, %v446_v49  ;;  %909 = vst.msk [vmem:[#allocation2 + $0x1c] sm:$0xf] %vm893_vm11, %v604_v59  ;;  %v607_v2 = vshrl.u32 %v8945_v50, 16  ;;  %v610_v3 = vshll.u32 %v8945_v50, 16  ;;  %s9394_s18 = smov 56  }
  0x7a   : > { %2954 = vrot.lane.b32.xlu0 %v8479_v55, %s9388_s12  ;;  %v583_v1 = vrot.slane %v581_v58, 7  ;;  %v605_v4 = vrot.slane %v600_v41, 4  ;;  %v9865_v23 = vpack.c.bf16 %v447_v5, %v447_v5  ;;  %v9867_v24 = vpack.c.bf16 %v448_v6, %v448_v6  ;;  %v452_v55 = vld [vmem:[%s9459_s7 + $0x58] sm:$0xff] }
  0x7b   : > { %v578_v9 = vor.u32 %v576_v57, %v575_v60  ;;  %v579_v10 = vrot.slane %v575_v60, 4  ;;  %v615_v11 = vshrl.u32 %v8946_v63, 16  ;;  %v618_v12 = vshll.u32 %v8946_v63, 16  ;;  %v454_v57 = vld [vmem:[%s9459_s7 + $0x68] sm:$0xff] }
  0x7c   : > { %v586_v15 = vor.u32 %v584_v61, %v583_v1  ;;  %v609_v16 = vrot.slane %v607_v2, 7  ;;  %v588_v17 = vrot.slane %v583_v1, 4  ;;  %v911_v18 = vsel %vm9856_vm0, %v605_v4, %v910_v0 }
  0x7d   : > { %v897_v21 = vsel %vm9831_vm14, %v578_v9, %v896_v62  ;;  %v617_v22 = vrot.slane %v615_v11, 7  ;;  %912 = vst [vmem:[#allocation2 + $0x20] sm:$0x1] %v911_v18  ;;  %v624_v33 = vshrl.u32 %v9865_v23, 16  ;;  %v627_v34 = vshll.u32 %v9865_v23, 16  ;;  %v9200_v23 = vld [vmem:[%s13809_s1] sm:$0xff]  }
  0x7e   : > { %v587_v27 = vsel %vm9837_vm15, %v579_v10, %v586_v15  ;;  %898 = vst [vmem:[#allocation2 + $0xc] sm:$0xf] %v897_v21  ;;  %v612_v28 = vor.u32 %v610_v3, %v609_v16  ;;  %v613_v29 = vrot.slane %v609_v16, 4  ;;  %v904_v30 = vsel %vm9856_vm0, %v588_v17, %v903_v14  ;;  %9047 = vmatprep.subr.bf16.mxu0 %v9200_v23 }
  0x7f   : > { %900 = vst.msk [vmem:[#allocation2 + $0x10] sm:$0xf] %vm893_vm11, %v587_v27  ;;  %v620_v31 = vor.u32 %v618_v12, %v617_v22  ;;  %905 = vst [vmem:[#allocation2 + $0x14] sm:$0x1] %v904_v30  ;;  %v622_v32 = vrot.slane %v617_v22, 4  ;;  %v9882_v40 = vpack.c.bf16 %v449_v20, %v449_v20  ;;  %v9884_v41 = vpack.c.bf16 %v450_v25, %v450_v25 }
  0x80   : > { %v1627_v35 = vld [vmem:[#allocation2 + $0x18] sm:$0xf]  ;;  %v914_v36 = vsel %vm9831_vm14, %v612_v28, %v913_v13  ;;  %v9886_v43 = vpack.c.bf16 %v451_v26, %v451_v26  ;;  %v9888_v44 = vld [vmem:[#allocation2 + $0x1c] sm:$0xf]  ;;  %v9913_v6 = vpack.c.bf16 %v452_v55, %v452_v55  ;;  %v9915_v9 = vpack.c.bf16 %v453_v56, %v453_v56  ;;  %9048 = vmatpush3.bf16.msra.mxu0 %v9200_v23 }
  0x81   : > { %v9880_v38 = vld [vmem:[#allocation2 + $0x18] sm:$0xf]  ;;  %v1698_v46 = vshrl.u32 %v1627_v35, 16  ;;  %v1701_v47 = vshll.u32 %v1627_v35, 16  ;;  %v621_v48 = vsel %vm9837_vm15, %v613_v29, %v620_v31  ;;  %915 = vst [vmem:[#allocation2 + $0x24] sm:$0xf] %v914_v36  ;;  %v918_v50 = vsel %vm9856_vm0, %v622_v32, %v917_v19 }
  0x82   : > { %v2666_v39 = vld [vmem:[#allocation2 + $0x18] sm:$0xe]  ;;  %v9892_v49 = vld [vmem:[#allocation2 + $0x1c] sm:$0xf]  ;;  %v1711_v51 = vshrl.u32 %v9888_v44, 16  ;;  %v8512_v52 = vcombine.low %v1627_v35, %v9888_v44  ;;  %v2283_v53 = vshrl.u32 %v9880_v38, 16  ;;  %v9917_v10 = vpack.c.bf16 %v454_v57, %v454_v57 }
  0x83   : > { %916 = vst.msk [vmem:[#allocation2 + $0x28] sm:$0xf] %vm893_vm11, %v621_v48  ;;  %v2286_v54 = vshll.u32 %v9880_v38, 16  ;;  %919 = vst [vmem:[#allocation2 + $0x2c] sm:$0x1] %v918_v50  ;;  %v1700_v58 = vrot.slane %v1698_v46, 4  ;;  %v8559_v61 = vcombine.low %v9880_v38, %v9892_v49 }
  0x84   : > { %v1703_v59 = vrot.slane %v1701_v47, 5  ;;  %v2296_v60 = vshrl.u32 %v9892_v49, 16  ;;  %3132 = vrot.lane.b32.xlu1 %v8512_v52, %s9389_s13  ;;  %v9908_v62 = vrot.slane %v2283_v53, 4  ;;  %v8447_v0 = vrot.slane %v2666_v39, 9  ;;  %v9934_v22 = vld [vmem:[#allocation2 + $0x20] sm:$0x1] }
  0x85   : > { %v9910_v63 = vrot.slane %v2286_v54, 5  ;;  %v2732_v1 = vrot.slane %v9892_v49, 5  ;;  %v1625_v2 = vld [vmem:[#allocation2 + $0xc] sm:$0xf]  ;;  %v2058_v30 = vld [vmem:[#allocation2 + $0x18] sm:$0xe] }
  0x86   : > { %v2057_v3 = vld [vmem:[#allocation2 + $0xc] sm:$0xe]  ;;  %v1704_v5 = vor.u32 %v1703_v59, %v1700_v58  ;;  %v9919_v11 = vld [vmem:[#allocation2 + $0x10] sm:$0xf]  ;;  %v1674_v12 = vshrl.u32 %v1625_v2, 16  ;;  %v1677_v13 = vshll.u32 %v1625_v2, 16 }
  0x87   : > { %v1447_v4 = vld [vmem:[#allocation2 + $0xc] sm:$0xe]  ;;  %v9921_v14 = vld [vmem:[#allocation2 + $0x14] sm:$0x1]  ;;  %v9925_v15 = vsel %vm9810_vm5, %v8447_v0, %v2732_v1  ;;  %v2289_v16 = vor.u32 %v9910_v63, %v9908_v62  ;;  %v1687_v17 = vshrl.u32 %v9919_v11, 16  ;;  %v8511_v18 = vcombine.low %v1625_v2, %v9919_v11 }
  0x88   : > { %v8431_v19 = vrot.slane %v2057_v3, 9  ;;  %v2123_v20 = vrot.slane %v9919_v11, 5  ;;  %v9932_v21 = vld [vmem:[#allocation2 + $0x10] sm:$0xf]  ;;  %v9936_v25 = vrot.slane %v1674_v12, 4  ;;  %v9938_v26 = vrot.slane %v1677_v13, 5 }
  0x89   : > { %v2236_v27 = vld [vmem:[#allocation2 + $0x24] sm:$0xf]  ;;  %v2126_v28 = vrot.slane %v9921_v14, 5  ;;  %v8416_v29 = vrot.slane %v1447_v4, 9  ;;  %3130 = vrot.lane.b32.xlu0 %v8511_v18, %s9389_s13  ;;  %v1044_v47 = vld [vmem:[#allocation2 + $0x14] sm:$0x1] }
  0x8a   : > { %v9942_v31 = vld [vmem:[#allocation2 + $0x28] sm:$0xf]  ;;  %v2307_v32 = vshrl.u32 %v2236_v27, 16  ;;  %v2310_v35 = vshll.u32 %v2236_v27, 16  ;;  %v2124_v36 = vsel %vm9810_vm5, %v8431_v19, %v2123_v20  ;;  %v2125_v38 = vrot.slane %v2123_v20, 4 }
  0x8b   : > { %v2320_v39 = vshrl.u32 %v9942_v31, 16  ;;  %v8560_v46 = vcombine.low %v2236_v27, %v9942_v31  ;;  %v1522_v48 = vrot.slane %v9932_v21, 5  ;;  %v2734_v50 = vrot.slane %v2732_v1, 4  ;;  %v1658_v56 = vld [vmem:[#allocation2 + $0x20] sm:$0x1] }
  0x8c   : > { %v2309_v52 = vrot.slane %v2307_v32, 4  ;;  %v2312_v53 = vrot.slane %v2310_v35, 5  ;;  %v2127_v54 = vsel %vm9810_vm5, %v2125_v38, %v2126_v28  ;;  %v1525_v55 = vrot.slane %v1044_v47, 5  ;;  %v9957_v12 = vld [vmem:[#allocation2 + $0xc] sm:$0xf] }
  0x8d   : > { %3388 = vrot.lane.b32.xlu1 %v8560_v46, %s9390_s14  ;;  %v8543_v57 = vcombine.low %v2124_v36, %v2127_v54  ;;  %v1523_v58 = vsel %vm9810_vm5, %v8416_v29, %v1522_v48  ;;  %v1524_v59 = vrot.slane %v1522_v48, 4  ;;  %v2735_v0 = vrot.slane %v9934_v22, 5  ;;  %3386 = vrot.lane.b32.xlu0 %v8559_v61, %s9390_s14  ;;  %v9979_v54 = vld [vmem:[#allocation2 + $0x2c] sm:$0x1] }
  0x8e   : > { %v8432_v1 = vrot.slane %v2058_v30, 9  ;;  %v2130_v2 = vrot.slane %v9888_v44, 5  ;;  %v2133_v3 = vrot.slane %v1658_v56, 5  ;;  %v1705_v4 = vrot.slane %v1704_v5, 4 }
  0x8f   : > { %v1526_v13 = vsel %vm9810_vm5, %v1524_v59, %v1525_v55  ;;  %v2736_v18 = vsel %vm9810_vm5, %v2734_v50, %v2735_v0  ;;  %v1707_v19 = vshll.u32 %v9888_v44, 16  ;;  %v1713_v20 = vrot.slane %v1711_v51, 4 }
  0x90   : > { %v8496_v27 = vcombine.low %v1523_v58, %v1526_v13  ;;  %v8591_v61 = vcombine.low %v9925_v15, %v2736_v18  ;;  %v2131_v28 = vsel %vm9810_vm5, %v8432_v1, %v2130_v2  ;;  %v2132_v5 = vrot.slane %v2130_v2, 4 }
  0x91   : > { %v1709_v29 = vrot.slane %v1707_v19, 5  ;;  %v1717_v30 = vshll.u32 %v1658_v56, 16  ;;  %v1087_v32 = vshrl.u32 %v9957_v12, 16  ;;  %v1090_v35 = vshll.u32 %v9957_v12, 16  ;;  %3290 = vrot.lane.b32.xlu0 %v8543_v57, %s9391_s15 }
  0x92   : > { %3036 = vrot.lane.b32.xlu1 %v8496_v27, %s9387_s11  ;;  %v2134_v44 = vsel %vm9810_vm5, %v2132_v5, %v2133_v3  ;;  %v1096_v51 = vshll.u32 %v9932_v21, 16  ;;  %v1100_v15 = vshrl.u32 %v9932_v21, 16  ;;  %v1106_v36 = vshll.u32 %v1044_v47, 16  ;;  %v9989_v5 = vld [vmem:[#allocation2 + $0x1c] sm:$0xf] }
  0x93   : > { %v8544_v38 = vcombine.low %v2131_v28, %v2134_v44  ;;  %v1710_v46 = vsel %vm9826_vm10, %v1705_v4, %v1709_v29  ;;  %v1714_v48 = vor.u32 %v1713_v20, %v1709_v29  ;;  %v1719_v50 = vrot.slane %v1717_v30, 5 }
  0x94   : > { %v1089_v55 = vrot.slane %v1087_v32, 4  ;;  %v1092_v56 = vrot.slane %v1090_v35, 5  ;;  %v1098_v57 = vrot.slane %v1096_v51, 5  ;;  %v1102_v58 = vrot.slane %v1100_v15, 4  ;;  %v10002_v51 = vld [vmem:[#allocation2 + $0x20] sm:$0x1] }
  0x95   : > { %v1715_v59 = vrot.slane %v1714_v48, 4  ;;  %v1108_v0 = vrot.slane %v1106_v36, 5  ;;  %v2313_v1 = vor.u32 %v2312_v53, %v2309_v52  ;;  %v2316_v2 = vshll.u32 %v9942_v31, 16  ;;  %3546 = vrot.lane.b32.xlu0 %v8591_v61, %s9392_s16  ;;  %v1015_v53 = vld [vmem:[#allocation2 + $0x18] sm:$0xf] }
  0x96   : > { %3292 = vrot.lane.b32.xlu1 %v8544_v38, %s9391_s15  ;;  %v1093_v21 = vor.u32 %v1092_v56, %v1089_v55  ;;  %v1103_v47 = vor.u32 %v1102_v58, %v1098_v57  ;;  %v2322_v3 = vrot.slane %v2320_v39, 4  ;;  %v2326_v4 = vshll.u32 %v9979_v54, 16 }
  0x97   : > { %v1720_v13 = vsel %vm9826_vm10, %v1715_v59, %v1719_v50  ;;  %v2314_v18 = vrot.slane %v2313_v1, 4  ;;  %v2318_v19 = vrot.slane %v2316_v2, 5  ;;  %v1680_v52 = vor.u32 %v9938_v26, %v9936_v25 }
  0x98   : > { %v8528_v20 = vcombine.low %v1710_v46, %v1720_v13  ;;  %v1094_v27 = vrot.slane %v1093_v21, 4  ;;  %v1104_v28 = vrot.slane %v1103_v47, 4  ;;  %v2328_v61 = vrot.slane %v2326_v4, 5  ;;  %v1018_v13 = vld [vmem:[#allocation2 + $0x28] sm:$0xf] }
  0x99   : > { %v2319_v39 = vsel %vm9826_vm10, %v2314_v18, %v2318_v19  ;;  %v2323_v29 = vor.u32 %v2322_v3, %v2318_v19  ;;  %v1681_v30 = vrot.slane %v1680_v52, 4  ;;  %v1683_v32 = vshll.u32 %v9919_v11, 16 }
  0x9a   : > { %3212 = vrot.lane.b32.xlu1 %v8528_v20, %s9393_s17  ;;  %v1099_v25 = vsel %vm9826_vm10, %v1094_v27, %v1098_v57  ;;  %v1109_v26 = vsel %vm9826_vm10, %v1104_v28, %v1108_v0  ;;  %v1689_v35 = vrot.slane %v1687_v17, 4  ;;  %v1693_v44 = vshll.u32 %v9921_v14, 16  ;;  %v1017_v57 = vld [vmem:[#allocation2 + $0x24] sm:$0xf]  ;;  %v1046_v20 = vld [vmem:[#allocation2 + $0x2c] sm:$0x1] }
  0x9b   : > { %v8480_v15 = vcombine.low %v1099_v25, %v1109_v26  ;;  %v2324_v36 = vrot.slane %v2323_v29, 4  ;;  %v1685_v38 = vrot.slane %v1683_v32, 5  ;;  %v1111_v46 = vshrl.u32 %v1015_v53, 16 }
  0x9c   : > { %v1695_v48 = vrot.slane %v1693_v44, 5  ;;  %v1114_v50 = vshll.u32 %v1015_v53, 16  ;;  %v1120_v55 = vshll.u32 %v9989_v5, 16  ;;  %v1124_v56 = vshrl.u32 %v9989_v5, 16 }
  0x9d   : > { %2956 = vrot.lane.b32.xlu0 %v8480_v15, %s9388_s12  ;;  %v2329_v11 = vsel %vm9826_vm10, %v2324_v36, %v2328_v61  ;;  %v1686_v14 = vsel %vm9826_vm10, %v1681_v30, %v1685_v38  ;;  %v1690_v17 = vor.u32 %v1689_v35, %v1685_v38  ;;  %v1113_v58 = vrot.slane %v1111_v46, 4 }
  0x9e   : > { %v8576_v59 = vcombine.low %v2319_v39, %v2329_v11  ;;  %v1116_v0 = vrot.slane %v1114_v50, 5  ;;  %v1122_v1 = vrot.slane %v1120_v55, 5  ;;  %v1126_v2 = vrot.slane %v1124_v56, 4 }
  0x9f   : > { %v1691_v21 = vrot.slane %v1690_v17, 4  ;;  %v1130_v47 = vshll.u32 %v10002_v51, 16  ;;  %v2290_v3 = vrot.slane %v2289_v16, 4  ;;  %v2292_v4 = vshll.u32 %v9892_v49, 16 }
  0xa0   : > { %3468 = vrot.lane.b32.xlu1 %v8576_v59, %s9394_s18  ;;  %v1117_v18 = vor.u32 %v1116_v0, %v1113_v58  ;;  %v1127_v19 = vor.u32 %v1126_v2, %v1122_v1  ;;  %v2298_v52 = vrot.slane %v2296_v60, 4  ;;  %v2302_v53 = vshll.u32 %v9934_v22, 16  ;;  %v2667_v60 = vld [vmem:[#allocation2 + $0x24] sm:$0xe]  ;;  %v1448_v59 = vld [vmem:[#allocation2 + $0x18] sm:$0xe] }
  0xa1   : > { %v1696_v27 = vsel %vm9826_vm10, %v1691_v21, %v1695_v48  ;;  %v1132_v28 = vrot.slane %v1130_v47, 5  ;;  %v2294_v62 = vrot.slane %v2292_v4, 5  ;;  %v1135_v63 = vshrl.u32 %v1017_v57, 16 }
  0xa2   : > { %v8527_v16 = vcombine.low %v1686_v14, %v1696_v27  ;;  %v1118_v61 = vrot.slane %v1117_v18, 4  ;;  %v1128_v39 = vrot.slane %v1127_v19, 4  ;;  %v2304_v29 = vrot.slane %v2302_v53, 5 }
  0xa3   : > { %v2295_v30 = vsel %vm9826_vm10, %v2290_v3, %v2294_v62  ;;  %v2299_v32 = vor.u32 %v2298_v52, %v2294_v62  ;;  %v1137_v25 = vrot.slane %v1135_v63, 4  ;;  %v1138_v49 = vshll.u32 %v1017_v57, 16  ;;  %v1449_v57 = vld [vmem:[#allocation2 + $0x24] sm:$0xe] }
  0xa4   : > { %3210 = vrot.lane.b32.xlu0 %v8527_v16, %s9393_s17  ;;  %v1123_v22 = vsel %vm9826_vm10, %v1118_v61, %v1122_v1  ;;  %v1133_v26 = vsel %vm9826_vm10, %v1128_v39, %v1132_v28  ;;  %v1144_v35 = vshll.u32 %v1018_v13, 16  ;;  %v1148_v44 = vshrl.u32 %v1018_v13, 16  ;;  %v1629_v63 = vld [vmem:[#allocation2 + $0x24] sm:$0xf] }
  0xa5   : > { %v8481_v15 = vcombine.low %v1123_v22, %v1133_v26  ;;  %v2300_v36 = vrot.slane %v2299_v32, 4  ;;  %v1140_v38 = vrot.slane %v1138_v49, 5  ;;  %v1154_v46 = vshll.u32 %v1046_v20, 16  ;;  %v1630_v32 = vld [vmem:[#allocation2 + $0x28] sm:$0xf] }
  0xa6   : > { %v1146_v48 = vrot.slane %v1144_v35, 5  ;;  %v1150_v50 = vrot.slane %v1148_v44, 4  ;;  %v8448_v55 = vrot.slane %v2667_v60, 9  ;;  %v2739_v56 = vrot.slane %v9942_v31, 5  ;;  %v920_v22 = vld [vmem:[#allocation2 + $0x30] sm:$0xf] }
  0xa7   : > { %2958 = vrot.lane.b32.xlu1 %v8481_v15, %s9388_s12  ;;  %v2305_v11 = vsel %vm9826_vm10, %v2300_v36, %v2304_v29  ;;  %v1141_v14 = vor.u32 %v1140_v38, %v1137_v25  ;;  %v1156_v17 = vrot.slane %v1154_v46, 5  ;;  %v2742_v58 = vrot.slane %v9979_v54, 5  ;;  %v1659_v15 = vld [vmem:[#allocation2 + $0x2c] sm:$0x1]  ;;  %v2059_v36 = vld [vmem:[#allocation2 + $0x24] sm:$0xe] }
  0xa8   : > { %v8575_v0 = vcombine.low %v2295_v30, %v2305_v11  ;;  %v1151_v1 = vor.u32 %v1150_v50, %v1146_v48  ;;  %v2740_v2 = vsel %vm9810_vm5, %v8448_v55, %v2739_v56  ;;  %v2741_v21 = vrot.slane %v2739_v56, 4  ;;  %v924_v55 = vld [vmem:[#allocation2 + $0x38] sm:$0x1] }
  0xa9   : > { %v1142_v47 = vrot.slane %v1141_v14, 4  ;;  %v8418_v3 = vrot.slane %v1449_v57, 9  ;;  %v1536_v31 = vrot.slane %v1018_v13, 5  ;;  %v1539_v4 = vrot.slane %v1046_v20, 5 }
  0xaa   : > { %3466 = vrot.lane.b32.xlu0 %v8575_v0, %s9394_s18  ;;  %v1152_v18 = vrot.slane %v1151_v1, 4  ;;  %v2743_v19 = vsel %vm9810_vm5, %v2741_v21, %v2742_v58  ;;  %v8417_v52 = vrot.slane %v1448_v59, 9  ;;  %v1529_v54 = vrot.slane %v9989_v5, 5 }
  0xab   : > { %v1147_v53 = vsel %vm9826_vm10, %v1142_v47, %v1146_v48  ;;  %v8592_v27 = vcombine.low %v2740_v2, %v2743_v19  ;;  %v1537_v28 = vsel %vm9810_vm5, %v8418_v3, %v1536_v31  ;;  %v1538_v62 = vrot.slane %v1536_v31, 4 }
  0xac   : > { %v1157_v13 = vsel %vm9826_vm10, %v1152_v18, %v1156_v17  ;;  %v1530_v20 = vsel %vm9810_vm5, %v8417_v52, %v1529_v54  ;;  %v1531_v16 = vrot.slane %v1529_v54, 4  ;;  %v1532_v61 = vrot.slane %v10002_v51, 5  ;;  %v9201_v54 = vld [vmem:[%s13809_s1 + $0x8] sm:$0xff]  }
  0xad   : > { %v8482_v39 = vcombine.low %v1147_v53, %v1157_v13  ;;  %v1540_v5 = vsel %vm9810_vm5, %v1538_v62, %v1539_v4  ;;  %v626_v29 = vrot.slane %v624_v33, 7  ;;  %v632_v30 = vshrl.u32 %v9867_v24, 16  ;;  %9049 = vmatprep.subr.bf16.mxu0 %v9201_v54 }
  0xae   : > { %3548 = vrot.lane.b32.xlu0 %v8592_v27, %s9392_s16  ;;  %v8498_v25 = vcombine.low %v1537_v28, %v1540_v5  ;;  %v1533_v49 = vsel %vm9810_vm5, %v1531_v16, %v1532_v61  ;;  %v635_v60 = vshll.u32 %v9867_v24, 16  ;;  %v1722_v51 = vshrl.u32 %v1629_v63, 16  ;;  %9050 = vmatpush3.bf16.msra.mxu0 %v9201_v54 }
  0xaf   : > { %2960 = vrot.lane.b32.xlu1 %v8482_v39, %s9388_s12  ;;  %v8497_v26 = vcombine.low %v1530_v20, %v1533_v49  ;;  %v629_v35 = vor.u32 %v627_v34, %v626_v29  ;;  %v630_v33 = vrot.slane %v626_v29, 4  ;;  %v634_v44 = vrot.slane %v632_v30, 7  ;;  %v927_v30 = vld [vmem:[#allocation2 + $0x3c] sm:$0xf] }
  0xb0   : > { %v1724_v38 = vrot.slane %v1722_v51, 4  ;;  %v1725_v46 = vshll.u32 %v1629_v63, 16  ;;  %v1735_v48 = vshrl.u32 %v1630_v32, 16  ;;  %v8513_v50 = vcombine.low %v1629_v63, %v1630_v32  ;;  %v455_v63 = vld [vmem:[%s9459_s7 + $0x70] sm:$0xff] }
  0xb1   : > { %v637_v56 = vor.u32 %v635_v60, %v634_v44  ;;  %v921_v24 = vsel %vm9831_vm14, %v629_v35, %v920_v22  ;;  %v639_v57 = vrot.slane %v634_v44, 4  ;;  %v1731_v11 = vshll.u32 %v1630_v32, 16  ;;  %v9202_v44 = vld [vmem:[%s13809_s1 + $0x10] sm:$0xff]  }
  0xb2   : > { %3038 = vrot.lane.b32.xlu0 %v8497_v26, %s9387_s11  ;;  %922 = vst [vmem:[#allocation2 + $0x30] sm:$0xf] %v921_v24  ;;  %v1727_v34 = vrot.slane %v1725_v46, 5  ;;  %v1737_v14 = vrot.slane %v1735_v48, 4  ;;  %v1741_v17 = vshll.u32 %v1659_v15, 16  ;;  %v8433_v58 = vrot.slane %v2059_v36, 9  ;;  %9051 = vmatprep.subr.bf16.mxu0 %v9202_v44 }
  0xb3   : > { %3040 = vrot.lane.b32.xlu1 %v8498_v25, %s9387_s11  ;;  %v638_v59 = vsel %vm9837_vm15, %v630_v33, %v637_v56  ;;  %v925_v0 = vsel %vm9856_vm0, %v639_v57, %v924_v55  ;;  %v1733_v1 = vrot.slane %v1731_v11, 5  ;;  %v2137_v2 = vrot.slane %v1630_v32, 5  ;;  %v456_v32 = vld [vmem:[%s9459_s7 + $0x78] sm:$0xff]  ;;  %9052 = vmatpush3.bf16.msra.mxu0 %v9202_v44 }
  0xb4   : > { %923 = vst.msk [vmem:[#allocation2 + $0x34] sm:$0xf] %vm893_vm11, %v638_v59  ;;  %926 = vst [vmem:[#allocation2 + $0x38] sm:$0x1] %v925_v0  ;;  %v1728_v21 = vor.u32 %v1727_v34, %v1724_v38  ;;  %v1743_v47 = vrot.slane %v1741_v17, 5  ;;  %v2140_v3 = vrot.slane %v1659_v15, 5  ;;  %v10108_v55 = vpack.c.bf16 %v456_v32, %v456_v32 }
  0xb5   : > { %v641_v31 = vshrl.u32 %v9882_v40, 16  ;;  %v1738_v4 = vor.u32 %v1737_v14, %v1733_v1  ;;  %v10076_v18 = vsel %vm9810_vm5, %v8433_v58, %v2137_v2  ;;  %v2139_v19 = vrot.slane %v2137_v2, 4 }
  0xb6   : > { %v644_v52 = vshll.u32 %v9882_v40, 16  ;;  %3134 = vrot.lane.b32.xlu0 %v8513_v50, %s9389_s13  ;;  %v1729_v53 = vrot.slane %v1728_v21, 4  ;;  %v649_v28 = vshrl.u32 %v9884_v41, 16  ;;  %v652_v62 = vshll.u32 %v9884_v41, 16 }
  0xb7   : > { %v643_v27 = vrot.slane %v641_v31, 7  ;;  %v1739_v13 = vrot.slane %v1738_v4, 4  ;;  %v2141_v20 = vsel %vm9810_vm5, %v2139_v19, %v2140_v3  ;;  %v658_v40 = vshrl.u32 %v9886_v43, 16  ;;  %v931_v4 = vld [vmem:[#allocation2 + $0x44] sm:$0x1] }
  0xb8   : > { %v661_v16 = vshll.u32 %v9886_v43, 16  ;;  %v1734_v61 = vsel %vm9826_vm10, %v1729_v53, %v1733_v1  ;;  %v8545_v39 = vcombine.low %v10076_v18, %v2141_v20  ;;  %v651_v60 = vrot.slane %v649_v28, 7 }
  0xb9   : > { %v646_v5 = vor.u32 %v644_v52, %v643_v27  ;;  %v647_v29 = vrot.slane %v643_v27, 4  ;;  %v1631_v41 = vld [vmem:[#allocation2 + $0x30] sm:$0xf]  ;;  %v1744_v25 = vsel %vm9826_vm10, %v1739_v13, %v1743_v47  ;;  %v10096_v22 = vrot.slane %v658_v40, 7 }
  0xba   : > { %v2060_v49 = vld [vmem:[#allocation2 + $0x30] sm:$0xe]  ;;  %v10098_v43 = vpack.c.bf16 %v455_v63, %v455_v63  ;;  %v1746_v51 = vshrl.u32 %v1631_v41, 16  ;;  %v1749_v26 = vshll.u32 %v1631_v41, 16  ;;  %v8529_v35 = vcombine.low %v1734_v61, %v1744_v25 }
  0xbb   : > { %v8434_v33 = vrot.slane %v2060_v49, 9  ;;  %v1632_v15 = vld [vmem:[#allocation2 + $0x34] sm:$0xf]  ;;  %v1660_v36 = vld [vmem:[#allocation2 + $0x38] sm:$0x1]  ;;  %v654_v38 = vor.u32 %v652_v62, %v651_v60  ;;  %v928_v46 = vsel %vm9831_vm14, %v646_v5, %v927_v30  ;;  %v10106_v50 = vor.u32 %v661_v16, %v10096_v22 }
  0xbc   : > { %v2238_v48 = vld [vmem:[#allocation2 + $0x30] sm:$0xf]  ;;  %v1748_v56 = vrot.slane %v1746_v51, 4  ;;  %v1751_v24 = vrot.slane %v1749_v26, 5  ;;  %v1759_v57 = vshrl.u32 %v1632_v15, 16  ;;  %v8514_v11 = vcombine.low %v1631_v41, %v1632_v15  ;;  %3214 = vrot.lane.b32.xlu0 %v8529_v35, %s9393_s17 }
  0xbd   : > { %929 = vst [vmem:[#allocation2 + $0x3c] sm:$0xf] %v928_v46  ;;  %v1755_v23 = vshll.u32 %v1632_v15, 16  ;;  %v1765_v34 = vshll.u32 %v1660_v36, 16  ;;  %v2144_v14 = vrot.slane %v1632_v15, 5  ;;  %v2147_v17 = vrot.slane %v1660_v36, 5 }
  0xbe   : > { %v10111_v58 = vld [vmem:[#allocation2 + $0x34] sm:$0xf]  ;;  %3136 = vrot.lane.b32.xlu1 %v8514_v11, %s9389_s13  ;;  %v1752_v59 = vor.u32 %v1751_v24, %v1748_v56  ;;  %v1761_v0 = vrot.slane %v1759_v57, 4  ;;  %v655_v1 = vsel %vm9837_vm15, %v647_v29, %v654_v38  ;;  %v2331_v2 = vshrl.u32 %v2238_v48, 16  ;;  %v10123_v53 = vld [vmem:[#allocation2 + $0x38] sm:$0x1] }
  0xbf   : > { %v1757_v21 = vrot.slane %v1755_v23, 5  ;;  %v1767_v47 = vrot.slane %v1765_v34, 5  ;;  %v10118_v3 = vsel %vm9810_vm5, %v8434_v33, %v2144_v14  ;;  %v2146_v31 = vrot.slane %v2144_v14, 4  ;;  %930 = vst.msk [vmem:[#allocation2 + $0x40] sm:$0xf] %vm893_vm11, %v655_v1  ;;  %v9205_v56 = vld [vmem:[%s13809_s1 + $0x18] sm:$0xff]  }
  0xc0   : > { %v1753_v18 = vrot.slane %v1752_v59, 4  ;;  %3294 = vrot.lane.b32.xlu0 %v8545_v39, %s9391_s15  ;;  %v2333_v19 = vrot.slane %v2331_v2, 4  ;;  %v2334_v52 = vshll.u32 %v2238_v48, 16  ;;  %v2344_v54 = vshrl.u32 %v10111_v58, 16  ;;  %v1019_v61 = vld [vmem:[#allocation2 + $0x30] sm:$0xf]  ;;  %9053 = vmatprep.subr.bf16.mxu0 %v9205_v56 }
  0xc1   : > { %v1762_v27 = vor.u32 %v1761_v0, %v1757_v21  ;;  %v2148_v28 = vsel %vm9810_vm5, %v2146_v31, %v2147_v17  ;;  %v8561_v62 = vcombine.low %v2238_v48, %v10111_v58  ;;  %v656_v63 = vrot.slane %v651_v60, 4  ;;  %v10142_v35 = vld [vmem:[#allocation2 + $0x34] sm:$0xf]  ;;  %v10153_v34 = vld [vmem:[#allocation2 + $0x38] sm:$0x1]  ;;  %9054 = vmatpush3.bf16.msra.mxu0 %v9205_v56 }
  0xc2   : > { %v1758_v13 = vsel %vm9826_vm10, %v1753_v18, %v1757_v21  ;;  %v8546_v20 = vcombine.low %v10118_v3, %v2148_v28  ;;  %v2336_v40 = vrot.slane %v2334_v52, 5  ;;  %v2340_v16 = vshll.u32 %v10111_v58, 16  ;;  %v2668_v1 = vld [vmem:[#allocation2 + $0x30] sm:$0xe] }
  0xc3   : > { %v1763_v39 = vrot.slane %v1762_v27, 4  ;;  %v932_v29 = vsel %vm9856_vm0, %v656_v63, %v931_v4  ;;  %v2346_v30 = vrot.slane %v2344_v54, 4  ;;  %v2350_v32 = vshll.u32 %v10123_v53, 16 }
  0xc4   : > { %v10132_v5 = vld [vmem:[#allocation2 + $0x3c] sm:$0xf]  ;;  %3390 = vrot.lane.b32.xlu0 %v8561_v62, %s9390_s14  ;;  %933 = vst [vmem:[#allocation2 + $0x44] sm:$0x1] %v932_v29  ;;  %v2337_v49 = vor.u32 %v2336_v40, %v2333_v19  ;;  %v2342_v60 = vrot.slane %v2340_v16, 5  ;;  %v1159_v33 = vshrl.u32 %v1019_v61, 16 }
  0xc5   : > { %v2355_v41 = vshrl.u32 %v10132_v5, 16  ;;  %v2358_v25 = vshll.u32 %v10132_v5, 16  ;;  %v1768_v51 = vsel %vm9826_vm10, %v1763_v39, %v1767_v47  ;;  %v2352_v26 = vrot.slane %v2350_v32, 5  ;;  %v1021_v63 = vld [vmem:[#allocation2 + $0x3c] sm:$0xf] }
  0xc6   : > { %v1162_v44 = vshll.u32 %v1019_v61, 16  ;;  %v8530_v15 = vcombine.low %v1758_v13, %v1768_v51  ;;  %v10144_v36 = vld [vmem:[#allocation2 + $0x40] sm:$0xf]  ;;  %v2338_v48 = vrot.slane %v2337_v49, 4  ;;  %v2347_v23 = vor.u32 %v2346_v30, %v2342_v60 }
  0xc7   : > { %v2357_v38 = vrot.slane %v2355_v41, 4  ;;  %v2360_v46 = vrot.slane %v2358_v25, 5  ;;  %v2368_v24 = vshrl.u32 %v10144_v36, 16  ;;  %v8562_v57 = vcombine.low %v10132_v5, %v10144_v36  ;;  %v1022_v32 = vld [vmem:[#allocation2 + $0x40] sm:$0xf] }
  0xc8   : > { %v2364_v11 = vshll.u32 %v10144_v36, 16  ;;  %3216 = vrot.lane.b32.xlu1 %v8530_v15, %s9393_s17  ;;  %v2343_v17 = vsel %vm9826_vm10, %v2338_v48, %v2342_v60  ;;  %v1161_v59 = vrot.slane %v1159_v33, 4  ;;  %v1164_v0 = vrot.slane %v1162_v44, 5  ;;  %v2669_v48 = vld [vmem:[#allocation2 + $0x3c] sm:$0xe] }
  0xc9   : > { %v2361_v14 = vor.u32 %v2360_v46, %v2357_v38  ;;  %v2370_v21 = vrot.slane %v2368_v24, 4  ;;  %v2348_v47 = vrot.slane %v2347_v23, 4  ;;  %v1168_v3 = vshll.u32 %v10142_v35, 16 }
  0xca   : > { %v2366_v2 = vrot.slane %v2364_v11, 5  ;;  %v1165_v4 = vor.u32 %v1164_v0, %v1161_v59  ;;  %v1172_v18 = vshrl.u32 %v10142_v35, 16  ;;  %v1178_v19 = vshll.u32 %v10153_v34, 16  ;;  %v1451_v0 = vld [vmem:[#allocation2 + $0x3c] sm:$0xe] }
  0xcb   : > { %v2362_v31 = vrot.slane %v2361_v14, 4  ;;  %v10161_v52 = vld [vmem:[#allocation2 + $0x44] sm:$0x1]  ;;  %v2353_v27 = vsel %vm9826_vm10, %v2348_v47, %v2352_v26  ;;  %v1170_v28 = vrot.slane %v1168_v3, 5  ;;  %v8449_v62 = vrot.slane %v2668_v1, 9 }
  0xcc   : > { %v2371_v54 = vor.u32 %v2370_v21, %v2366_v2  ;;  %3296 = vrot.lane.b32.xlu1 %v8546_v20, %s9391_s15  ;;  %v2374_v40 = vshll.u32 %v10161_v52, 16  ;;  %v8577_v16 = vcombine.low %v2343_v17, %v2353_v27  ;;  %v1166_v61 = vrot.slane %v1165_v4, 4  ;;  %v1048_v33 = vld [vmem:[#allocation2 + $0x44] sm:$0x1]  ;;  %v1450_v47 = vld [vmem:[#allocation2 + $0x30] sm:$0xe] }
  0xcd   : > { %v2367_v13 = vsel %vm9826_vm10, %v2362_v31, %v2366_v2  ;;  %v1174_v5 = vrot.slane %v1172_v18, 4  ;;  %v1180_v29 = vrot.slane %v1178_v19, 5  ;;  %v2746_v30 = vrot.slane %v10111_v58, 5 }
  0xce   : > { %v2372_v39 = vrot.slane %v2371_v54, 4  ;;  %v2376_v41 = vrot.slane %v2374_v40, 5  ;;  %3470 = vrot.lane.b32.xlu0 %v8577_v16, %s9394_s18  ;;  %v1171_v25 = vsel %vm9826_vm10, %v1166_v61, %v1170_v28  ;;  %v2749_v20 = vrot.slane %v10123_v53, 5 }
  0xcf   : > { %v1183_v49 = vshrl.u32 %v1021_v63, 16  ;;  %v1175_v60 = vor.u32 %v1174_v5, %v1170_v28  ;;  %v2747_v51 = vsel %vm9810_vm5, %v8449_v62, %v2746_v30  ;;  %v2748_v26 = vrot.slane %v2746_v30, 4 }
  0xd0   : > { %v1186_v44 = vshll.u32 %v1021_v63, 16  ;;  %3392 = vrot.lane.b32.xlu1 %v8562_v57, %s9390_s14  ;;  %v2377_v58 = vsel %vm9826_vm10, %v2372_v39, %v2376_v41  ;;  %v1192_v38 = vshll.u32 %v1022_v32, 16  ;;  %v1196_v46 = vshrl.u32 %v1022_v32, 16  ;;  %v934_v39 = vld [vmem:[#allocation2 + $0x48] sm:$0xf] }
  0xd1   : > { %v1185_v15 = vrot.slane %v1183_v49, 4  ;;  %v8578_v56 = vcombine.low %v2367_v13, %v2377_v58  ;;  %v1176_v24 = vrot.slane %v1175_v60, 4  ;;  %v2750_v53 = vsel %vm9810_vm5, %v2748_v26, %v2749_v20  ;;  %v1633_v41 = vld [vmem:[#allocation2 + $0x3c] sm:$0xf] }
  0xd2   : > { %v1188_v11 = vrot.slane %v1186_v44, 5  ;;  %v8593_v23 = vcombine.low %v2747_v51, %v2750_v53  ;;  %v1194_v14 = vrot.slane %v1192_v38, 5  ;;  %v1198_v17 = vrot.slane %v1196_v46, 4  ;;  %v1661_v44 = vld [vmem:[#allocation2 + $0x44] sm:$0x1] }
  0xd3   : > { %v1202_v59 = vshll.u32 %v1048_v33, 16  ;;  %v1181_v57 = vsel %vm9826_vm10, %v1176_v24, %v1180_v29  ;;  %v8450_v2 = vrot.slane %v2669_v48, 9  ;;  %v2753_v21 = vrot.slane %v10144_v36, 5  ;;  %v2061_v46 = vld [vmem:[#allocation2 + $0x3c] sm:$0xe] }
  0xd4   : > { %v1189_v1 = vor.u32 %v1188_v11, %v1185_v15  ;;  %3472 = vrot.lane.b32.xlu1 %v8578_v56, %s9394_s18  ;;  %v8483_v3 = vcombine.low %v1171_v25, %v1181_v57  ;;  %3550 = vrot.lane.b32.xlu0 %v8593_v23, %s9392_s16  ;;  %v1199_v31 = vor.u32 %v1198_v17, %v1194_v14  ;;  %v2756_v18 = vrot.slane %v10161_v52, 5  ;;  %v938_v23 = vld [vmem:[#allocation2 + $0x50] sm:$0x1] }
  0xd5   : > { %v1204_v4 = vrot.slane %v1202_v59, 5  ;;  %v2754_v54 = vsel %vm9810_vm5, %v8450_v2, %v2753_v21  ;;  %v2755_v27 = vrot.slane %v2753_v21, 4  ;;  %v8420_v28 = vrot.slane %v1451_v0, 9 }
  0xd6   : > { %v1190_v19 = vrot.slane %v1189_v1, 4  ;;  %v1200_v62 = vrot.slane %v1199_v31, 4  ;;  %v1550_v63 = vrot.slane %v1022_v32, 5  ;;  %v1553_v13 = vrot.slane %v1048_v33, 5 }
  0xd7   : > { %v8419_v36 = vrot.slane %v1450_v47, 9  ;;  %v2757_v16 = vsel %vm9810_vm5, %v2755_v27, %v2756_v18  ;;  %v1543_v61 = vrot.slane %v10142_v35, 5  ;;  %v1546_v52 = vrot.slane %v10153_v34, 5  ;;  %v1634_v34 = vld [vmem:[#allocation2 + $0x40] sm:$0xf] }
  0xd8   : > { %v1195_v40 = vsel %vm9826_vm10, %v1190_v19, %v1194_v14  ;;  %2962 = vrot.lane.b32.xlu1 %v8483_v3, %s9388_s12  ;;  %v1205_v5 = vsel %vm9826_vm10, %v1200_v62, %v1204_v4  ;;  %v8594_v29 = vcombine.low %v2754_v54, %v2757_v16  ;;  %v1551_v30 = vsel %vm9810_vm5, %v8420_v28, %v1550_v63  ;;  %v457_v3 = vld [vmem:[%s9459_s7 + $0x80] sm:$0xff] }
  0xd9   : > { %v1552_v32 = vrot.slane %v1550_v63, 4  ;;  %v8484_v25 = vcombine.low %v1195_v40, %v1205_v5  ;;  %v1544_v20 = vsel %vm9810_vm5, %v8419_v36, %v1543_v61  ;;  %v1545_v49 = vrot.slane %v1543_v61, 4  ;;  %v10227_v16 = vld [vmem:[#allocation2 + $0x4] sm:$0xf]  ;;  %v10229_v61 = vld [vmem:[#allocation2] sm:$0xf] }
  0xda   : > { %v664_v35 = vrot.slane %v10096_v22, 4  ;;  %3552 = vrot.lane.b32.xlu0 %v8594_v29, %s9392_s16  ;;  %v666_v51 = vshrl.u32 %v9913_v6, 16  ;;  %v669_v26 = vshll.u32 %v9913_v6, 16  ;;  %v935_v33 = vsel %vm9831_vm14, %v10106_v50, %v934_v39 }
  0xdb   : > { %v1554_v60 = vsel %vm9810_vm5, %v1552_v32, %v1553_v13  ;;  %v1547_v15 = vsel %vm9810_vm5, %v1545_v49, %v1546_v52  ;;  %936 = vst [vmem:[#allocation2 + $0x48] sm:$0xf] %v935_v33  ;;  %v1770_v22 = vshrl.u32 %v1633_v41, 16  ;;  %v1773_v38 = vshll.u32 %v1633_v41, 16 }
  0xdc   : > { %v8500_v58 = vcombine.low %v1551_v30, %v1554_v60  ;;  %2964 = vrot.lane.b32.xlu1 %v8484_v25, %s9388_s12  ;;  %v8499_v48 = vcombine.low %v1544_v20, %v1547_v15  ;;  %v668_v56 = vrot.slane %v666_v51, 7  ;;  %v1783_v24 = vshrl.u32 %v1634_v34, 16 }
  0xdd   : > { %v8515_v6 = vcombine.low %v1633_v41, %v1634_v34  ;;  %v1772_v53 = vrot.slane %v1770_v22, 4  ;;  %v1775_v11 = vrot.slane %v1773_v38, 5  ;;  %v1779_v50 = vshll.u32 %v1634_v34, 16  ;;  %v941_v41 = vld [vmem:[#allocation2 + $0x54] sm:$0xf] }
  0xde   : > { %v1789_v14 = vshll.u32 %v1661_v44, 16  ;;  %3042 = vrot.lane.b32.xlu0 %v8499_v48, %s9387_s11  ;;  %v671_v17 = vor.u32 %v669_v26, %v668_v56  ;;  %v673_v59 = vrot.slane %v668_v56, 4  ;;  %v1785_v0 = vrot.slane %v1783_v24, 4 }
  0xdf   : > { %v8435_v57 = vrot.slane %v2061_v46, 9  ;;  %v1776_v1 = vor.u32 %v1775_v11, %v1772_v53  ;;  %v1781_v2 = vrot.slane %v1779_v50, 5  ;;  %v2151_v47 = vrot.slane %v1634_v34, 5 }
  0xe0   : > { %v1791_v21 = vrot.slane %v1789_v14, 5  ;;  %3044 = vrot.lane.b32.xlu1 %v8500_v58, %s9387_s11  ;;  %v672_v31 = vsel %vm9837_vm15, %v664_v35, %v671_v17  ;;  %v939_v4 = vsel %vm9856_vm0, %v673_v59, %v938_v23  ;;  %v2154_v18 = vrot.slane %v1661_v44, 5  ;;  %v458_v44 = vld [vmem:[%s9459_s7 + $0x88] sm:$0xff]  ;;  %v10253_v14 = vld [vmem:[#allocation2 + $0x10] sm:$0xf] }
  0xe1   : > { %v675_v19 = vshrl.u32 %v9915_v9, 16  ;;  %937 = vst.msk [vmem:[#allocation2 + $0x4c] sm:$0xf] %vm893_vm11, %v672_v31  ;;  %940 = vst [vmem:[#allocation2 + $0x50] sm:$0x1] %v939_v4  ;;  %v1777_v54 = vrot.slane %v1776_v1, 4  ;;  %v1786_v27 = vor.u32 %v1785_v0, %v1781_v2  ;;  %v2152_v28 = vsel %vm9810_vm5, %v8435_v57, %v2151_v47 }
  0xe2   : > { %v2153_v62 = vrot.slane %v2151_v47, 4  ;;  %v1635_v63 = vld [vmem:[#allocation2 + $0x48] sm:$0xf]  ;;  %3138 = vrot.lane.b32.xlu0 %v8515_v6, %s9389_s13  ;;  %v678_v40 = vshll.u32 %v9915_v9, 16  ;;  %v8463_v52 = vcombine.low %v10229_v61, %v10227_v16  ;;  %v10233_v39 = vpack.c.bf16 %v457_v3, %v457_v3 }
  0xe3   : > { %v2062_v13 = vld [vmem:[#allocation2 + $0x48] sm:$0xe]  ;;  %v677_v36 = vrot.slane %v675_v19, 7  ;;  %v1794_v5 = vshrl.u32 %v1635_v63, 16  ;;  %v1797_v29 = vshll.u32 %v1635_v63, 16  ;;  %v1782_v30 = vsel %vm9826_vm10, %v1777_v54, %v1781_v2 }
  0xe4   : > { %v1787_v32 = vrot.slane %v1786_v27, 4  ;;  %v8436_v25 = vrot.slane %v2062_v13, 9  ;;  %v2155_v9 = vsel %vm9810_vm5, %v2153_v62, %v2154_v18  ;;  %v2242_v35 = vld [vmem:[#allocation2 + $0x48] sm:$0xf]  ;;  %v683_v15 = vshrl.u32 %v9917_v10, 16 }
  0xe5   : > { %v680_v20 = vor.u32 %v678_v40, %v677_v36  ;;  %v681_v49 = vrot.slane %v677_v36, 4  ;;  %v10239_v34 = vld [vmem:[#allocation2 + $0x48] sm:$0xf]  ;;  %v1796_v60 = vrot.slane %v1794_v5, 4  ;;  %v1799_v51 = vrot.slane %v1797_v29, 5 }
  0xe6   : > { %v1792_v26 = vsel %vm9826_vm10, %v1787_v32, %v1791_v21  ;;  %v8547_v33 = vcombine.low %v2152_v28, %v2155_v9  ;;  %v686_v22 = vshll.u32 %v9917_v10, 16  ;;  %v2379_v48 = vshrl.u32 %v2242_v35, 16  ;;  %v945_v5 = vld [vmem:[#allocation2 + $0x5c] sm:$0x1] }
  0xe7   : > { %v8531_v58 = vcombine.low %v1782_v30, %v1792_v26  ;;  %v942_v38 = vsel %vm9831_vm14, %v680_v20, %v941_v41  ;;  %v1800_v46 = vor.u32 %v1799_v51, %v1796_v60  ;;  %v2382_v56 = vshll.u32 %v2242_v35, 16  ;;  %v2670_v51 = vld [vmem:[#allocation2 + $0x48] sm:$0xe] }
  0xe8   : > { %943 = vst [vmem:[#allocation2 + $0x54] sm:$0xf] %v942_v38  ;;  %v1207_v24 = vshrl.u32 %v10239_v34, 16  ;;  %v1636_v6 = vld [vmem:[#allocation2 + $0x4c] sm:$0xf]  ;;  %v685_v11 = vrot.slane %v683_v15, 7  ;;  %v10251_v50 = vpack.c.bf16 %v458_v44, %v458_v44  ;;  %v8464_v10 = vcombine.low %v9957_v12, %v10253_v14 }
  0xe9   : > { %v1662_v53 = vld [vmem:[#allocation2 + $0x50] sm:$0x1]  ;;  %3218 = vrot.lane.b32.xlu0 %v8531_v58, %s9393_s17  ;;  %v1210_v23 = vshll.u32 %v10239_v34, 16  ;;  %v1807_v17 = vshrl.u32 %v1636_v6, 16  ;;  %v8516_v59 = vcombine.low %v1635_v63, %v1636_v6  ;;  %v1801_v0 = vrot.slane %v1800_v46, 4 }
  0xea   : > { %v1803_v57 = vshll.u32 %v1636_v6, 16  ;;  %v1813_v1 = vshll.u32 %v1662_v53, 16  ;;  %v2158_v2 = vrot.slane %v1636_v6, 5  ;;  %v2161_v21 = vrot.slane %v1662_v53, 5  ;;  %v10257_v3 = vld [vmem:[#allocation2 + $0x4c] sm:$0xf] }
  0xeb   : > { %v688_v47 = vor.u32 %v686_v22, %v685_v11  ;;  %3140 = vrot.lane.b32.xlu1 %v8516_v59, %s9389_s13  ;;  %v1809_v4 = vrot.slane %v1807_v17, 4  ;;  %v2381_v18 = vrot.slane %v2379_v48, 4  ;;  %v2384_v19 = vrot.slane %v2382_v56, 5  ;;  %v10274_v41 = vld [vmem:[#allocation2 + $0x50] sm:$0x1] }
  0xec   : > { %v1805_v31 = vrot.slane %v1803_v57, 5  ;;  %v1815_v54 = vrot.slane %v1813_v1, 5  ;;  %v2159_v27 = vsel %vm9810_vm5, %v8436_v25, %v2158_v2  ;;  %v2160_v28 = vrot.slane %v2158_v2, 4  ;;  %v10282_v58 = vld [vmem:[#allocation2 + $0x4c] sm:$0xf] }
  0xed   : > { %3298 = vrot.lane.b32.xlu0 %v8547_v33, %s9391_s15  ;;  %v689_v62 = vsel %vm9837_vm15, %v681_v49, %v688_v47  ;;  %v2392_v36 = vshrl.u32 %v10257_v3, 16  ;;  %v8563_v40 = vcombine.low %v2242_v35, %v10257_v3  ;;  %v690_v32 = vrot.slane %v685_v11, 4  ;;  %v10287_v48 = vld [vmem:[#allocation2 + $0x50] sm:$0x1] }
  0xee   : > { %v1806_v63 = vsel %vm9826_vm10, %v1801_v0, %v1805_v31  ;;  %v1810_v13 = vor.u32 %v1809_v4, %v1805_v31  ;;  %944 = vst.msk [vmem:[#allocation2 + $0x58] sm:$0xf] %vm893_vm11, %v689_v62  ;;  %v2162_v29 = vsel %vm9810_vm5, %v2160_v28, %v2161_v21  ;;  %v2385_v25 = vor.u32 %v2384_v19, %v2381_v18 }
  0xef   : > { %v10272_v30 = vld [vmem:[#allocation2 + $0x54] sm:$0xf]  ;;  %v2388_v9 = vshll.u32 %v10257_v3, 16  ;;  %v8548_v49 = vcombine.low %v2159_v27, %v2162_v29  ;;  %v946_v35 = vsel %vm9856_vm0, %v690_v32, %v945_v5  ;;  %v2394_v44 = vrot.slane %v2392_v36, 4 }
  0xf0   : > { %v1811_v20 = vrot.slane %v1810_v13, 4  ;;  %v2403_v34 = vshrl.u32 %v10272_v30, 16  ;;  %v2406_v60 = vshll.u32 %v10272_v30, 16  ;;  %v2386_v26 = vrot.slane %v2385_v25, 4  ;;  %947 = vst [vmem:[#allocation2 + $0x5c] sm:$0x1] %v946_v35 }
  0xf1   : > { %3394 = vrot.lane.b32.xlu0 %v8563_v40, %s9390_s14  ;;  %v2390_v33 = vrot.slane %v2388_v9, 5  ;;  %v2398_v46 = vshll.u32 %v10274_v41, 16  ;;  %v1209_v11 = vrot.slane %v1207_v24, 4  ;;  %v1212_v0 = vrot.slane %v1210_v23, 5  ;;  %v1025_v62 = vld [vmem:[#allocation2 + $0x54] sm:$0xf] }
  0xf2   : > { %v1816_v15 = vsel %vm9826_vm10, %v1811_v20, %v1815_v54  ;;  %v2405_v22 = vrot.slane %v2403_v34, 4  ;;  %v2408_v38 = vrot.slane %v2406_v60, 5  ;;  %v1216_v57 = vshll.u32 %v10282_v58, 16  ;;  %v10308_v20 = vpop.permute.xlu1 %3034 }
  0xf3   : > { %v8532_v56 = vcombine.low %v1806_v63, %v1816_v15  ;;  %v2391_v6 = vsel %vm9826_vm10, %v2386_v26, %v2390_v33  ;;  %v2395_v53 = vor.u32 %v2394_v44, %v2390_v33  ;;  %v2400_v59 = vrot.slane %v2398_v46, 5  ;;  %v10303_v63 = vpop.permute.xlu0 %2954 }
  0xf4   : > { %v2409_v17 = vor.u32 %v2408_v38, %v2405_v22  ;;  %v1220_v21 = vshrl.u32 %v10282_v58, 16  ;;  %v1226_v47 = vshll.u32 %v10287_v48, 16  ;;  %v8451_v31 = vrot.slane %v2670_v51, 9 }
  0xf5   : > { %3220 = vrot.lane.b32.xlu1 %v8532_v56, %s9393_s17  ;;  %v10293_v1 = vld [vmem:[#allocation2 + $0x58] sm:$0xf]  ;;  %v2396_v2 = vrot.slane %v2395_v53, 4  ;;  %v1213_v54 = vor.u32 %v1212_v0, %v1209_v11  ;;  %v1218_v27 = vrot.slane %v1216_v57, 5  ;;  %v2760_v25 = vrot.slane %v10257_v3, 5 }
  0xf6   : > { %v2416_v4 = vshrl.u32 %v10293_v1, 16  ;;  %v8564_v24 = vcombine.low %v10272_v30, %v10293_v1  ;;  %v2410_v18 = vrot.slane %v2409_v17, 4  ;;  %v2412_v23 = vshll.u32 %v10293_v1, 16  ;;  %v1026_v35 = vld [vmem:[#allocation2 + $0x58] sm:$0xf] }
  0xf7   : > { %v2401_v19 = vsel %vm9826_vm10, %v2396_v2, %v2400_v59  ;;  %v1222_v28 = vrot.slane %v1220_v21, 4  ;;  %v1228_v5 = vrot.slane %v1226_v47, 5  ;;  %v2271_v29 = vld [vmem:[#allocation2 + $0x5c] sm:$0x1]  ;;  %v1214_v30 = vrot.slane %v1213_v54, 4 }
  0xf8   : > { %v2414_v13 = vrot.slane %v2412_v23, 5  ;;  %v2418_v36 = vrot.slane %v2416_v4, 4  ;;  %v8579_v40 = vcombine.low %v2391_v6, %v2401_v19  ;;  %v2763_v9 = vrot.slane %v10274_v41, 5  ;;  %v1050_v22 = vld [vmem:[#allocation2 + $0x5c] sm:$0x1]  ;;  %v10326_v23 = vpop.permute.xlu1 %3132 }
  0xf9   : > { %3300 = vrot.lane.b32.xlu1 %v8548_v49, %s9391_s15  ;;  %v1223_v32 = vor.u32 %v1222_v28, %v1218_v27  ;;  %v2422_v51 = vshll.u32 %v2271_v29, 16  ;;  %v1231_v26 = vshrl.u32 %v1025_v62, 16  ;;  %v1219_v49 = vsel %vm9826_vm10, %v1214_v30, %v1218_v27  ;;  %v2671_v17 = vld [vmem:[#allocation2 + $0x54] sm:$0xe] }
  0xfa   : > { %v2415_v34 = vsel %vm9826_vm10, %v2410_v18, %v2414_v13  ;;  %v2419_v60 = vor.u32 %v2418_v36, %v2414_v13  ;;  %3474 = vrot.lane.b32.xlu0 %v8579_v40, %s9394_s18  ;;  %v2761_v3 = vsel %vm9810_vm5, %v8451_v31, %v2760_v25  ;;  %v2762_v44 = vrot.slane %v2760_v25, 4  ;;  %v1453_v47 = vld [vmem:[#allocation2 + $0x54] sm:$0xe] }
  0xfb   : > { %v1224_v33 = vrot.slane %v1223_v32, 4  ;;  %v2424_v15 = vrot.slane %v2422_v51, 5  ;;  %v1233_v38 = vrot.slane %v1231_v26, 4  ;;  %v1234_v46 = vshll.u32 %v1025_v62, 16  ;;  %v10322_v59 = vpop.permute.xlu0 %3130  ;;  %v1452_v62 = vld [vmem:[#allocation2 + $0x48] sm:$0xe] }
  0xfc   : > { %v2420_v41 = vrot.slane %v2419_v60, 4  ;;  %v2764_v6 = vsel %vm9810_vm5, %v2762_v44, %v2763_v9  ;;  %v1240_v53 = vshll.u32 %v1026_v35, 16  ;;  %v1244_v11 = vshrl.u32 %v1026_v35, 16 }
  0xfd   : > { %3396 = vrot.lane.b32.xlu1 %v8564_v24, %s9390_s14  ;;  %v1229_v56 = vsel %vm9826_vm10, %v1224_v33, %v1228_v5  ;;  %v8595_v2 = vcombine.low %v2761_v3, %v2764_v6  ;;  %v1236_v21 = vrot.slane %v1234_v46, 5  ;;  %v1250_v18 = vshll.u32 %v1050_v22, 16 }
  0xfe   : > { %v2425_v0 = vsel %vm9826_vm10, %v2420_v41, %v2424_v15  ;;  %v8485_v57 = vcombine.low %v1219_v49, %v1229_v56  ;;  %v1242_v4 = vrot.slane %v1240_v53, 5  ;;  %v1246_v24 = vrot.slane %v1244_v11, 4 }
  0xff   : > { %v8580_v31 = vcombine.low %v2415_v34, %v2425_v0  ;;  %3554 = vrot.lane.b32.xlu0 %v8595_v2, %s9392_s16  ;;  %v1237_v19 = vor.u32 %v1236_v21, %v1233_v38  ;;  %v8452_v54 = vrot.slane %v2671_v17, 9  ;;  %v2767_v27 = vrot.slane %v10293_v1, 5  ;;  %v10331_v30 = vpop.permute.xlu0 %3386  ;;  %v1638_v38 = vld [vmem:[#allocation2 + $0x58] sm:$0xf]  ;;  %v10349_v46 = vpop.permute.xlu1 %3388  ;;  %v948_v21 = vld [vmem:[#allocation2 + $0x60] sm:$0xf] }
 0x100   : > { %v2770_v28 = vrot.slane %v2271_v29, 5  ;;  %v1247_v13 = vor.u32 %v1246_v24, %v1242_v4  ;;  %v1252_v36 = vrot.slane %v1250_v18, 5  ;;  %v8422_v40 = vrot.slane %v1453_v47, 9 }
 0x101   : > { %3476 = vrot.lane.b32.xlu1 %v8580_v31, %s9394_s18  ;;  %v1564_v5 = vrot.slane %v1026_v35, 5  ;;  %v1238_v32 = vrot.slane %v1237_v19, 4  ;;  %v2768_v25 = vsel %vm9810_vm5, %v8452_v54, %v2767_v27  ;;  %v2769_v9 = vrot.slane %v2767_v27, 4  ;;  %v1663_v27 = vld [vmem:[#allocation2 + $0x5c] sm:$0x1] }
 0x102   : > { %v1567_v34 = vrot.slane %v1050_v22, 5  ;;  %v1248_v60 = vrot.slane %v1247_v13, 4  ;;  %v8421_v51 = vrot.slane %v1452_v62, 9  ;;  %v1557_v49 = vrot.slane %v10282_v58, 5  ;;  %v1637_v22 = vld [vmem:[#allocation2 + $0x54] sm:$0xf] }
 0x103   : > { %v1565_v1 = vsel %vm9810_vm5, %v8422_v40, %v1564_v5  ;;  %v1566_v29 = vrot.slane %v1564_v5, 4  ;;  %v1243_v26 = vsel %vm9826_vm10, %v1238_v32, %v1242_v4  ;;  %v2771_v35 = vsel %vm9810_vm5, %v2769_v9, %v2770_v28  ;;  %v10351_v56 = vpop.permute.xlu0 %3290  ;;  %v2063_v28 = vld [vmem:[#allocation2 + $0x54] sm:$0xe] }
 0x104   : > { %v1560_v33 = vrot.slane %v10287_v48, 5  ;;  %v1253_v3 = vsel %vm9826_vm10, %v1248_v60, %v1252_v36  ;;  %v8596_v44 = vcombine.low %v2768_v25, %v2771_v35  ;;  %v692_v15 = vshrl.u32 %v10098_v43, 16  ;;  %v952_v36 = vld [vmem:[#allocation2 + $0x68] sm:$0x1]  ;;  %v10365_v9 = vpop.permute.xlu1 %3036 }
 0x105   : > { %2966 = vrot.lane.b32.xlu1 %v8485_v57, %s9388_s12  ;;  %v1568_v41 = vsel %vm9810_vm5, %v1566_v29, %v1567_v34  ;;  %v8486_v58 = vcombine.low %v1243_v26, %v1253_v3  ;;  %v1558_v48 = vsel %vm9810_vm5, %v8421_v51, %v1557_v49  ;;  %v1559_v53 = vrot.slane %v1557_v49, 4 }
 0x106   : > { %v8502_v6 = vcombine.low %v1565_v1, %v1568_v41  ;;  %3556 = vrot.lane.b32.xlu0 %v8596_v44, %s9392_s16  ;;  %v694_v11 = vrot.slane %v692_v15, 7  ;;  %v695_v17 = vshll.u32 %v10098_v43, 16  ;;  %v700_v0 = vshrl.u32 %v10108_v55, 16 }
 0x107   : > { %v703_v57 = vshll.u32 %v10108_v55, 16  ;;  %v1561_v2 = vsel %vm9810_vm5, %v1559_v53, %v1560_v33  ;;  %v1818_v47 = vshrl.u32 %v1637_v22, 16  ;;  %v1821_v31 = vshll.u32 %v1637_v22, 16  ;;  %v10367_v34 = vpop.permute.xlu0 %3546 }
 0x108   : > { %v1831_v4 = vshrl.u32 %v1638_v38, 16  ;;  %v8501_v24 = vcombine.low %v1558_v48, %v1561_v2  ;;  %v697_v18 = vor.u32 %v695_v17, %v694_v11  ;;  %v698_v19 = vrot.slane %v694_v11, 4  ;;  %v10391_v16 = vpop.permute.xlu1 %3292 }
 0x109   : > { %2968 = vrot.lane.b32.xlu1 %v8486_v58, %s9388_s12  ;;  %v702_v54 = vrot.slane %v700_v0, 7  ;;  %v1820_v43 = vrot.slane %v1818_v47, 4  ;;  %v1823_v62 = vrot.slane %v1821_v31, 5  ;;  %v8517_v13 = vcombine.low %v1637_v22, %v1638_v38  ;;  %v459_v47 = vld [vmem:[%s9459_s7 + $0x90] sm:$0xff] }
 0x10a   : > { %v1827_v55 = vshll.u32 %v1638_v38, 16  ;;  %3046 = vrot.lane.b32.xlu0 %v8501_v24, %s9387_s11  ;;  %v949_v5 = vsel %vm9831_vm14, %v697_v18, %v948_v21  ;;  %v1833_v25 = vrot.slane %v1831_v4, 4  ;;  %v1837_v29 = vshll.u32 %v1663_v27, 16  ;;  %v955_v21 = vld [vmem:[#allocation2 + $0x6c] sm:$0xf] }
 0x10b   : > { %v705_v40 = vor.u32 %v703_v57, %v702_v54  ;;  %v707_v32 = vrot.slane %v702_v54, 4  ;;  %950 = vst [vmem:[#allocation2 + $0x60] sm:$0xf] %v949_v5  ;;  %v1824_v60 = vor.u32 %v1823_v62, %v1820_v43  ;;  %v8437_v51 = vrot.slane %v2063_v28, 9 }
 0x10c   : > { %v1829_v1 = vrot.slane %v1827_v55, 5  ;;  %v2165_v49 = vrot.slane %v1638_v38, 5  ;;  %v2168_v33 = vrot.slane %v1663_v27, 5  ;;  %v1839_v41 = vrot.slane %v1837_v29, 5 }
 0x10d   : > { %3048 = vrot.lane.b32.xlu1 %v8502_v6, %s9387_s11  ;;  %v706_v26 = vsel %vm9837_vm15, %v698_v19, %v705_v40  ;;  %v953_v35 = vsel %vm9856_vm0, %v707_v32, %v952_v36  ;;  %v1825_v3 = vrot.slane %v1824_v60, 4  ;;  %vm3578_vm1 = vcmask 64512  }
 0x10e   : > { %951 = vst.msk [vmem:[#allocation2 + $0x64] sm:$0xf] %vm893_vm11, %v706_v26  ;;  %954 = vst [vmem:[#allocation2 + $0x68] sm:$0x1] %v953_v35  ;;  %v1834_v44 = vor.u32 %v1833_v25, %v1829_v1  ;;  %3142 = vrot.lane.b32.xlu0 %v8517_v13, %s9389_s13  ;;  %v2166_v15 = vsel %vm9810_vm5, %v8437_v51, %v2165_v49  ;;  %v2167_v22 = vrot.slane %v2165_v49, 4  ;;  %v709_v58 = vshrl.u32 %v10233_v39, 16 }
 0x10f   : > { %v3581_v38 = vsel %vm3578_vm1, %v8463_v52, %v10303_v63  ;;  %v1830_v6 = vsel %vm9826_vm10, %v1825_v3, %v1829_v1  ;;  %v712_v53 = vshll.u32 %v10233_v39, 16  ;;  %v717_v11 = vshrl.u32 %v10251_v50, 16  ;;  %v2957_v61 = vpop.permute.xlu0 %2956 }
 0x110   : > { %v1835_v48 = vrot.slane %v1834_v44, 4  ;;  %v2169_v17 = vsel %vm9810_vm5, %v2167_v22, %v2168_v33  ;;  %v711_v0 = vrot.slane %v709_v58, 7  ;;  %v720_v57 = vshll.u32 %v10251_v50, 16  ;;  %v959_v22 = vld [vmem:[#allocation2 + $0x74] sm:$0x1] }
 0x111   : > { %vm3627_vm2 = vcmask 130048   ;;  %v8549_v63 = vcombine.low %v2166_v15, %v2169_v17  ;;  %v10395_v2 = vrot.slane %v717_v11, 7  ;;  %vm3660_vm3 = vcmask 195584  }
 0x112   : > { %v1840_v52 = vsel %vm9826_vm10, %v1835_v48, %v1839_v41  ;;  %v3629_v39 = vsel %vm3627_vm2, %v3581_v38, %v10308_v20  ;;  %v1639_v31 = vld [vmem:[#allocation2 + $0x60] sm:$0xf]  ;;  %v714_v18 = vor.u32 %v712_v53, %v711_v0  ;;  %v715_v50 = vrot.slane %v711_v0, 4 }
 0x113   : > { %v8533_v4 = vcombine.low %v1830_v6, %v1840_v52  ;;  %v2064_v24 = vld [vmem:[#allocation2 + $0x60] sm:$0xe]  ;;  %v1842_v19 = vshrl.u32 %v1639_v31, 16  ;;  %v1845_v54 = vshll.u32 %v1639_v31, 16  ;;  %v722_v28 = vor.u32 %v720_v57, %v10395_v2 }
 0x114   : > { %v8438_v27 = vrot.slane %v2064_v24, 9  ;;  %v956_v13 = vsel %vm9831_vm14, %v714_v18, %v955_v21  ;;  %v2246_v20 = vld [vmem:[#allocation2 + $0x60] sm:$0xf]  ;;  %v10406_v36 = vsel %vm3660_vm3, %v3629_v39, %v10322_v59  ;;  %v10412_v55 = vsel %vm3578_vm1, %v8464_v10, %v2957_v61  ;;  %v10418_v59 = vpop.permute.xlu1 %3212 }
 0x115   : > { %v1640_v43 = vld [vmem:[#allocation2 + $0x64] sm:$0xf]  ;;  %v1664_v62 = vld [vmem:[#allocation2 + $0x68] sm:$0x1]  ;;  %3222 = vrot.lane.b32.xlu0 %v8533_v4, %s9393_s17  ;;  %v10414_v40 = vpack.c.bf16 %v459_v47, %v459_v47  ;;  %v1844_v5 = vrot.slane %v1842_v19, 4  ;;  %v1847_v32 = vrot.slane %v1845_v54, 5  ;;  %v723_v10 = vsel %vm9837_vm15, %v715_v50, %v722_v28 }
 0x116   : > { %v1855_v25 = vshrl.u32 %v1640_v43, 16  ;;  %v8518_v60 = vcombine.low %v1639_v31, %v1640_v43  ;;  %957 = vst [vmem:[#allocation2 + $0x6c] sm:$0xf] %v956_v13  ;;  %v1851_v1 = vshll.u32 %v1640_v43, 16  ;;  %v1861_v29 = vshll.u32 %v1664_v62, 16  ;;  %v10420_v49 = vpop.permute.xlu0 %3210 }
 0x117   : > { %v2172_v51 = vrot.slane %v1640_v43, 5  ;;  %v2175_v26 = vrot.slane %v1664_v62, 5  ;;  %v10416_v35 = vld [vmem:[#allocation2 + $0x64] sm:$0xf]  ;;  %v1848_v12 = vor.u32 %v1847_v32, %v1844_v5  ;;  %v2427_v33 = vshrl.u32 %v2246_v20, 16 }
 0x118   : > { %3144 = vrot.lane.b32.xlu1 %v8518_v60, %s9389_s13  ;;  %v1857_v14 = vrot.slane %v1855_v25, 4  ;;  %v1853_v3 = vrot.slane %v1851_v1, 5  ;;  %v1863_v44 = vrot.slane %v1861_v29, 5  ;;  %958 = vst.msk [vmem:[#allocation2 + $0x70] sm:$0xf] %vm893_vm11, %v723_v10  ;;  %v2430_v6 = vshll.u32 %v2246_v20, 16  ;;  %v10448_v18 = vpop.permute.xlu1 %3468 }
 0x119   : > { %v10427_v41 = vsel %vm9810_vm5, %v8438_v27, %v2172_v51  ;;  %v2174_v15 = vrot.slane %v2172_v51, 4  ;;  %3302 = vrot.lane.b32.xlu0 %v8549_v63, %s9391_s15  ;;  %v1849_v38 = vrot.slane %v1848_v12, 4  ;;  %v2429_v58 = vrot.slane %v2427_v33, 4  ;;  %v10432_v53 = vld [vmem:[#allocation2 + $0x68] sm:$0x1] }
 0x11a   : > { %v2440_v48 = vshrl.u32 %v10416_v35, 16  ;;  %v1858_v11 = vor.u32 %v1857_v14, %v1853_v3  ;;  %v8565_v0 = vcombine.low %v2246_v20, %v10416_v35  ;;  %v724_v57 = vrot.slane %v10395_v2, 4  ;;  %v1027_v39 = vld [vmem:[#allocation2 + $0x60] sm:$0xf]  ;;  %v10456_v13 = vld [vmem:[#allocation2 + $0x64] sm:$0xf] }
 0x11b   : > { %v2176_v17 = vsel %vm9810_vm5, %v2174_v15, %v2175_v26  ;;  %v1854_v61 = vsel %vm9826_vm10, %v1849_v38, %v1853_v3  ;;  %v2432_v63 = vrot.slane %v2430_v6, 5  ;;  %v2436_v21 = vshll.u32 %v10416_v35, 16  ;;  %v10464_v10 = vld [vmem:[#allocation2 + $0x68] sm:$0x1] }
 0x11c   : > { %v8550_v52 = vcombine.low %v10427_v41, %v2176_v17  ;;  %v1859_v47 = vrot.slane %v1858_v11, 4  ;;  %v960_v4 = vsel %vm9856_vm0, %v724_v57, %v959_v22  ;;  %v2442_v24 = vrot.slane %v2440_v48, 4  ;;  %v10450_v50 = vpop.permute.xlu0 %3466  ;;  %v2672_v22 = vld [vmem:[#allocation2 + $0x60] sm:$0xe]  ;;  %v10472_v11 = vpop.permute.xlu1 %2958 }
 0x11d   : > { %v10442_v31 = vld [vmem:[#allocation2 + $0x6c] sm:$0xf]  ;;  %3398 = vrot.lane.b32.xlu0 %v8565_v0, %s9390_s14  ;;  %v2446_v2 = vshll.u32 %v10432_v53, 16  ;;  %961 = vst [vmem:[#allocation2 + $0x74] sm:$0x1] %v960_v4  ;;  %v2433_v27 = vor.u32 %v2432_v63, %v2429_v58  ;;  %v2438_v28 = vrot.slane %v2436_v21, 5 }
 0x11e   : > { %v2451_v19 = vshrl.u32 %v10442_v31, 16  ;;  %v2454_v54 = vshll.u32 %v10442_v31, 16  ;;  %v1864_v43 = vsel %vm9826_vm10, %v1859_v47, %v1863_v44  ;;  %v1255_v20 = vshrl.u32 %v1027_v39, 16  ;;  %v1029_v4 = vld [vmem:[#allocation2 + $0x6c] sm:$0xf] }
 0x11f   : > { %v2448_v62 = vrot.slane %v2446_v2, 5  ;;  %v1258_v5 = vshll.u32 %v1027_v39, 16  ;;  %v8534_v32 = vcombine.low %v1854_v61, %v1864_v43  ;;  %v10458_v25 = vld [vmem:[#allocation2 + $0x70] sm:$0xf]  ;;  %v2434_v29 = vrot.slane %v2433_v27, 4 }
 0x120   : > { %v2453_v60 = vrot.slane %v2451_v19, 4  ;;  %v2456_v1 = vrot.slane %v2454_v54, 5  ;;  %v2464_v51 = vshrl.u32 %v10458_v25, 16  ;;  %v8566_v26 = vcombine.low %v10442_v31, %v10458_v25  ;;  %v10466_v33 = vpop.permute.xlu0 %3548 }
 0x121   : > { %v2460_v12 = vshll.u32 %v10458_v25, 16  ;;  %v2443_v14 = vor.u32 %v2442_v24, %v2438_v28  ;;  %3224 = vrot.lane.b32.xlu1 %v8534_v32, %s9393_s17  ;;  %v2439_v44 = vsel %vm9826_vm10, %v2434_v29, %v2438_v28  ;;  %v1257_v41 = vrot.slane %v1255_v20, 4 }
 0x122   : > { %v2457_v3 = vor.u32 %v2456_v1, %v2453_v60  ;;  %v1260_v15 = vrot.slane %v1258_v5, 5  ;;  %v2466_v58 = vrot.slane %v2464_v51, 4  ;;  %v1264_v48 = vshll.u32 %v10456_v13, 16 }
 0x123   : > { %v2462_v38 = vrot.slane %v2460_v12, 5  ;;  %v2444_v6 = vrot.slane %v2443_v14, 4  ;;  %v1268_v57 = vshrl.u32 %v10456_v13, 16  ;;  %v1274_v61 = vshll.u32 %v10464_v10, 16 }
 0x124   : > { %v2458_v17 = vrot.slane %v2457_v3, 4  ;;  %v1261_v0 = vor.u32 %v1260_v15, %v1257_v41  ;;  %v10476_v63 = vld [vmem:[#allocation2 + $0x74] sm:$0x1]  ;;  %v1266_v47 = vrot.slane %v1264_v48, 5  ;;  %v8453_v31 = vrot.slane %v2672_v22, 9  ;;  %v10480_v24 = vpop.permute.xlu0 %3038 }
 0x125   : > { %v2467_v21 = vor.u32 %v2466_v58, %v2462_v38  ;;  %v2449_v39 = vsel %vm9826_vm10, %v2444_v6, %v2448_v62  ;;  %3304 = vrot.lane.b32.xlu1 %v8550_v52, %s9391_s15  ;;  %v2470_v19 = vshll.u32 %v10476_v63, 16  ;;  %v1270_v43 = vrot.slane %v1268_v57, 4  ;;  %v1030_v62 = vld [vmem:[#allocation2 + $0x70] sm:$0xf]  ;;  %v1052_v14 = vld [vmem:[#allocation2 + $0x74] sm:$0x1] }
 0x126   : > { %v2463_v2 = vsel %vm9826_vm10, %v2458_v17, %v2462_v38  ;;  %v8581_v54 = vcombine.low %v2439_v44, %v2449_v39  ;;  %v1262_v27 = vrot.slane %v1261_v0, 4  ;;  %v1276_v20 = vrot.slane %v1274_v61, 5  ;;  %v10493_v44 = vpop.permute.xlu1 %2960  ;;  %v2673_v38 = vld [vmem:[#allocation2 + $0x6c] sm:$0xe] }
 0x127   : > { %v2468_v28 = vrot.slane %v2467_v21, 4  ;;  %v2774_v5 = vrot.slane %v10416_v35, 5  ;;  %v2472_v32 = vrot.slane %v2470_v19, 5  ;;  %v2777_v52 = vrot.slane %v10432_v53, 5  ;;  %v1455_v39 = vld [vmem:[#allocation2 + $0x6c] sm:$0xe] }
 0x128   : > { %3478 = vrot.lane.b32.xlu0 %v8581_v54, %s9394_s18  ;;  %v1267_v60 = vsel %vm9826_vm10, %v1262_v27, %v1266_v47  ;;  %v1279_v1 = vshrl.u32 %v1029_v4, 16  ;;  %v1271_v29 = vor.u32 %v1270_v43, %v1266_v47  ;;  %v1282_v3 = vshll.u32 %v1029_v4, 16  ;;  %v10495_v35 = vpop.permute.xlu0 %3134  ;;  %v1454_v19 = vld [vmem:[#allocation2 + $0x60] sm:$0xe] }
 0x129   : > { %v2775_v51 = vsel %vm9810_vm5, %v8453_v31, %v2774_v5  ;;  %v2776_v12 = vrot.slane %v2774_v5, 4  ;;  %3400 = vrot.lane.b32.xlu1 %v8566_v26, %s9390_s14  ;;  %v2473_v41 = vsel %vm9826_vm10, %v2468_v28, %v2472_v32  ;;  %v1288_v22 = vshll.u32 %v1030_v62, 16 }
 0x12a   : > { %v1281_v15 = vrot.slane %v1279_v1, 4  ;;  %v1292_v53 = vshrl.u32 %v1030_v62, 16  ;;  %v8582_v58 = vcombine.low %v2463_v2, %v2473_v41  ;;  %v1272_v6 = vrot.slane %v1271_v29, 4 }
 0x12b   : > { %v2778_v48 = vsel %vm9810_vm5, %v2776_v12, %v2777_v52  ;;  %v1284_v17 = vrot.slane %v1282_v3, 5  ;;  %v1290_v57 = vrot.slane %v1288_v22, 5  ;;  %v1298_v21 = vshll.u32 %v1052_v14, 16  ;;  %v10510_v52 = vpop.permute.xlu1 %3040 }
 0x12c   : > { %v8597_v0 = vcombine.low %v2775_v51, %v2778_v48  ;;  %v1294_v61 = vrot.slane %v1292_v53, 4  ;;  %v1277_v26 = vsel %vm9826_vm10, %v1272_v6, %v1276_v20  ;;  %v8454_v31 = vrot.slane %v2673_v38, 9  ;;  %v1641_v38 = vld [vmem:[#allocation2 + $0x6c] sm:$0xf] }
 0x12d   : > { %v1285_v47 = vor.u32 %v1284_v17, %v1281_v15  ;;  %v2781_v4 = vrot.slane %v10458_v25, 5  ;;  %3480 = vrot.lane.b32.xlu1 %v8582_v58, %s9394_s18  ;;  %v8487_v2 = vcombine.low %v1267_v60, %v1277_v26  ;;  %v1300_v27 = vrot.slane %v1298_v21, 5  ;;  %v460_v15 = vld [vmem:[%s9459_s7 + $0x98] sm:$0xff] }
 0x12e   : > { %3558 = vrot.lane.b32.xlu0 %v8597_v0, %s9392_s16  ;;  %v1295_v54 = vor.u32 %v1294_v61, %v1290_v57  ;;  %v2784_v28 = vrot.slane %v10476_v63, 5  ;;  %v8424_v32 = vrot.slane %v1455_v39, 9  ;;  %v10512_v25 = vpop.permute.xlu0 %3214  ;;  %v1578_v29 = vrot.slane %v1030_v62, 5  ;;  %v10537_v61 = vld [vmem:[#allocation2 + $0x70] sm:$0xf] }
 0x12f   : > { %v1286_v43 = vrot.slane %v1285_v47, 4  ;;  %v2782_v5 = vsel %vm9810_vm5, %v8454_v31, %v2781_v4  ;;  %v2783_v20 = vrot.slane %v2781_v4, 4  ;;  %v1581_v60 = vrot.slane %v1052_v14, 5 }
 0x130   : > { %v1296_v1 = vrot.slane %v1295_v54, 4  ;;  %v8423_v51 = vrot.slane %v1454_v19, 9  ;;  %v1571_v3 = vrot.slane %v10456_v13, 5  ;;  %v1574_v41 = vrot.slane %v10464_v10, 5 }
 0x131   : > { %v1291_v12 = vsel %vm9826_vm10, %v1286_v43, %v1290_v57  ;;  %v2785_v63 = vsel %vm9810_vm5, %v2783_v20, %v2784_v28  ;;  %2970 = vrot.lane.b32.xlu1 %v8487_v2, %s9388_s12  ;;  %v1579_v62 = vsel %vm9810_vm5, %v8424_v32, %v1578_v29  ;;  %v1580_v14 = vrot.slane %v1578_v29, 4  ;;  %v962_v2 = vld [vmem:[#allocation2 + $0x78] sm:$0xf] }
 0x132   : > { %v1301_v22 = vsel %vm9826_vm10, %v1296_v1, %v1300_v27  ;;  %v8598_v53 = vcombine.low %v2782_v5, %v2785_v63  ;;  %v1572_v6 = vsel %vm9810_vm5, %v8423_v51, %v1571_v3  ;;  %v1573_v48 = vrot.slane %v1571_v3, 4  ;;  %v10544_v47 = vpop.permute.xlu0 %3294  ;;  %v1665_v63 = vld [vmem:[#allocation2 + $0x74] sm:$0x1] }
 0x133   : > { %v8488_v58 = vcombine.low %v1291_v12, %v1301_v22  ;;  %v3631_v13 = vsel %vm3627_vm2, %v10412_v55, %v10365_v9  ;;  %v1582_v10 = vsel %vm9810_vm5, %v1580_v14, %v1581_v60  ;;  %v8960_v0 = vpack.c.bf16 %v460_v15, %v460_v15  ;;  %v10542_v55 = vpop.permute.xlu1 %3136  ;;  %v966_v12 = vld [vmem:[#allocation2 + $0x80] sm:$0x1]  ;;  %v2065_v14 = vld [vmem:[#allocation2 + $0x6c] sm:$0xe] }
 0x134   : > { %3560 = vrot.lane.b32.xlu0 %v8598_v53, %s9392_s16  ;;  %v3664_v17 = vsel %vm3660_vm3, %v3631_v13, %v10326_v23  ;;  %v726_v57 = vshrl.u32 %v10414_v40, 16  ;;  %v8504_v21 = vcombine.low %v1579_v62, %v1582_v10  ;;  %v1575_v39 = vsel %vm9810_vm5, %v1573_v48, %v1574_v41  ;;  %v9206_v53 = vld [vmem:[%s13809_s1 + $0x20] ss:$0 sps:$4 sm:$0xff]   ;;  %v9265_v10 = vld [vmem:[#allocation2 + $0x18] sm:$0xf] }
 0x135   : > { %v729_v26 = vshll.u32 %v10414_v40, 16  ;;  %v1866_v9 = vshrl.u32 %v1641_v38, 16  ;;  %2972 = vrot.lane.b32.xlu1 %v8488_v58, %s9388_s12  ;;  %v8503_v31 = vcombine.low %v1572_v6, %v1575_v39  ;;  %v734_v4 = vshrl.u32 %v8960_v0, 16 }
 0x136   : > { %v728_v23 = vrot.slane %v726_v57, 7  ;;  %v737_v19 = vshll.u32 %v8960_v0, 16  ;;  %v1869_v27 = vshll.u32 %v1641_v38, 16  ;;  %v1879_v28 = vshrl.u32 %v10537_v61, 16  ;;  %v10567_v62 = vpop.permute.xlu0 %3390 }
 0x137   : > { %v1868_v54 = vrot.slane %v1866_v9, 4  ;;  %v8519_v43 = vcombine.low %v1641_v38, %v10537_v61  ;;  %v736_v20 = vrot.slane %v734_v4, 7  ;;  %vm3693_vm4 = vcmask 261120  }
 0x138   : > { %3050 = vrot.lane.b32.xlu0 %v8503_v31, %s9387_s11  ;;  %v731_v40 = vor.u32 %v729_v26, %v728_v23  ;;  %v732_v5 = vrot.slane %v728_v23, 4  ;;  %v1871_v32 = vrot.slane %v1869_v27, 5  ;;  %vm3726_vm6 = vcmask 326656  }
 0x139   : > { %vm3759_vm7 = vcmask 392192   ;;  %vm13817_vm8 = vcmask 457728   ;;  %3052 = vrot.lane.b32.xlu1 %v8504_v21, %s9387_s11  ;;  %v739_v1 = vor.u32 %v737_v19, %v736_v20  ;;  %v3697_v60 = vsel %vm3693_vm4, %v3664_v17, %v10418_v59  ;;  %v9266_v17 = vld [vmem:[#allocation2 + $0x1c] sm:$0xf] }
 0x13a   : > { %v963_v29 = vsel %vm9831_vm14, %v731_v40, %v962_v2  ;;  %v3695_v51 = vsel %vm3693_vm4, %v10406_v36, %v10420_v49  ;;  %v3730_v3 = vsel %vm3726_vm6, %v3697_v60, %v10391_v16  ;;  %v741_v15 = vrot.slane %v736_v20, 4  ;;  %v10565_v59 = vpop.permute.xlu1 %3216 }
 0x13b   : > { %964 = vst [vmem:[#allocation2 + $0x78] sm:$0xf] %v963_v29  ;;  %v3728_v41 = vsel %vm3726_vm6, %v3695_v51, %v10351_v56  ;;  %v1872_v22 = vor.u32 %v1871_v32, %v1868_v54  ;;  %v740_v36 = vsel %vm9837_vm15, %v732_v5, %v739_v1  ;;  %v3763_v16 = vsel %vm3759_vm7, %v3730_v3, %v10349_v46  ;;  %v461_v3 = vld [vmem:[%s9459_s7 + $0xa0] sm:$0xff] }
 0x13c   : > { %3146 = vrot.lane.b32.xlu0 %v8519_v43, %s9389_s13  ;;  %v1875_v56 = vshll.u32 %v10537_v61, 16  ;;  %v1881_v49 = vrot.slane %v1879_v28, 4  ;;  %965 = vst.msk [vmem:[#allocation2 + $0x7c] sm:$0xf] %vm893_vm11, %v740_v36  ;;  %v3796_v38 = vsel %vm13817_vm8, %v3763_v16, %v10448_v18  ;;  %v967_v58 = vsel %vm9856_vm0, %v741_v15, %v966_v12  ;;  %v9268_v43 = vld [vmem:[#allocation2 + $0x28] sm:$0xf] }
 0x13d   : > { %v1873_v6 = vrot.slane %v1872_v22, 4  ;;  %v1885_v48 = vshll.u32 %v1665_v63, 16  ;;  %968 = vst [vmem:[#allocation2 + $0x80] sm:$0x1] %v967_v58  ;;  %v8465_v0 = vcombine.low %v9265_v10, %v9266_v17  ;;  %v3761_v46 = vsel %vm3759_vm7, %v3728_v41, %v10331_v30  ;;  %v462_v58 = vld [vmem:[%s9459_s7 + $0xa8] sm:$0xff] }
 0x13e   : > { %v1877_v13 = vrot.slane %v1875_v56, 5  ;;  %vm13814_vm9 = vcmask 1043456   ;;  %v3794_v21 = vsel %vm13817_vm8, %v3761_v46, %v10450_v50  ;;  %v8439_v18 = vrot.slane %v2065_v14, 9  ;;  %v10586_v26 = vpop.permute.xlu1 %3296 }
 0x13f   : > { %v1887_v57 = vrot.slane %v1885_v48, 5  ;;  %9131 = vmatprep.subr.msk.bf16.mxu0 %vm13814_vm9, %v9206_v53  ;;  %v2179_v39 = vrot.slane %v10537_v61, 5  ;;  %v10592_v23 = vsel %vm3578_vm1, %v8465_v0, %v10472_v11  ;;  %v2182_v30 = vrot.slane %v1665_v63, 5  ;;  %v9267_v11 = vld [vmem:[#allocation2 + $0x24] sm:$0xf] }
 0x140   : > { %v1878_v9 = vsel %vm9826_vm10, %v1873_v6, %v1877_v13  ;;  %v1882_v31 = vor.u32 %v1881_v49, %v1877_v13  ;;  %v3936_v19 = vsel %vm13814_vm9, %v9206_v53, 0  ;;  %vm13816_vm12 = vcmask 523264   ;;  %v10599_v61 = vpop.permute.xlu0 %3470 }
 0x141   : > { %v10596_v4 = vsel %vm9810_vm5, %v8439_v18, %v2179_v39  ;;  %v2181_v50 = vrot.slane %v2179_v39, 4  ;;  %9056 = vmatpush3.bf16.msra.mxu0 %v3936_v19  ;;  %v3827_v28 = vsel %vm13816_vm12, %v3794_v21, %v10367_v34  ;;  %vm13815_vm13 = vcmask 588800  }
 0x142   : > { %v1643_v2 = vld [vmem:[#allocation2 + $0x78] sm:$0xf]  ;;  %v1883_v54 = vrot.slane %v1882_v31, 4  ;;  %v8466_v40 = vcombine.low %v9267_v11, %v9268_v43  ;;  %9057 = vmatprep.mubr.msk.bf16.mxu0 %vm13815_vm13, %v3827_v28  ;;  %v10606_v29 = vpop.permute.xlu1 %3392  ;;  %v3829_v63 = vsel %vm13816_vm12, %v3796_v38, %v10466_v33  ;;  %v8961_v13 = vpack.c.bf16 %v461_v3, %v461_v3 }
 0x143   : > { %v2066_v27 = vld [vmem:[#allocation2 + $0x78] sm:$0xe]  ;;  %v1890_v5 = vshrl.u32 %v1643_v2, 16  ;;  %v1893_v20 = vshll.u32 %v1643_v2, 16  ;;  %v2183_v1 = vsel %vm9810_vm5, %v2181_v50, %v2182_v30  ;;  %v1644_v60 = vld [vmem:[#allocation2 + $0x7c] sm:$0xf]  ;;  %v8962_v21 = vpack.c.bf16 %v462_v58, %v462_v58 }
 0x144   : > { %v8440_v32 = vrot.slane %v2066_v27, 9  ;;  %v1888_v34 = vsel %vm9826_vm10, %v1883_v54, %v1887_v57  ;;  %v8551_v51 = vcombine.low %v10596_v4, %v2183_v1  ;;  %v3590_v12 = vsel %vm3578_vm1, %v8466_v40, %v10493_v44  ;;  %v1666_v36 = vld [vmem:[#allocation2 + $0x80] sm:$0x1]  ;;  %9058 = vmatmul.mubr.msk.bf16.vlgmr.msra.gmra.mrb[0].mxu0 %vm13815_vm13, %v3829_v63  ;;  %v2250_v33 = vld [vmem:[#allocation2 + $0x78] sm:$0xf] }
 0x145   : > { %v1892_v41 = vrot.slane %v1890_v5, 4  ;;  %v1895_v15 = vrot.slane %v1893_v20, 5  ;;  %v1903_v22 = vshrl.u32 %v1644_v60, 16  ;;  %v8520_v53 = vcombine.low %v1643_v2, %v1644_v60  ;;  %v10630_v4 = vld [vmem:[#allocation2 + $0x7c] sm:$0xf] }
 0x146   : > { %v1899_v16 = vshll.u32 %v1644_v60, 16  ;;  %v1909_v56 = vshll.u32 %v1666_v36, 16  ;;  %v8535_v49 = vcombine.low %v1878_v9, %v1888_v34  ;;  %v2186_v14 = vrot.slane %v1644_v60, 5  ;;  %v10619_v38 = vpop.permute.xlu0 %3550  ;;  %v10626_v9 = vpop.permute.xlu1 %3472  ;;  %v969_v40 = vld [vmem:[#allocation2 + $0x84] sm:$0xf] }
 0x147   : > { %3148 = vrot.lane.b32.xlu1 %v8520_v53, %s9389_s13  ;;  %v1896_v6 = vor.u32 %v1895_v15, %v1892_v41  ;;  %v1905_v44 = vrot.slane %v1903_v22, 4  ;;  %v2189_v48 = vrot.slane %v1666_v36, 5  ;;  %v743_v18 = vshrl.u32 %v8961_v13, 16  ;;  %v10637_v63 = vld [vmem:[#allocation2 + $0x80] sm:$0x1] }
 0x148   : > { %v1901_v10 = vrot.slane %v1899_v16, 5  ;;  %v1911_v17 = vrot.slane %v1909_v56, 5  ;;  %3226 = vrot.lane.b32.xlu0 %v8535_v49, %s9393_s17  ;;  %v10624_v0 = vsel %vm9810_vm5, %v8440_v32, %v2186_v14  ;;  %v2188_v46 = vrot.slane %v2186_v14, 4  ;;  %v973_v53 = vld [vmem:[#allocation2 + $0x8c] sm:$0x1] }
 0x149   : > { %v1897_v57 = vrot.slane %v1896_v6, 4  ;;  %v746_v39 = vshll.u32 %v8961_v13, 16  ;;  %v2475_v50 = vshrl.u32 %v2250_v33, 16  ;;  %v2478_v19 = vshll.u32 %v2250_v33, 16  ;;  %v1031_v14 = vld [vmem:[#allocation2 + $0x78] sm:$0xf] }
 0x14a   : > { %v1906_v31 = vor.u32 %v1905_v44, %v1901_v10  ;;  %v2190_v30 = vsel %vm9810_vm5, %v2188_v46, %v2189_v48  ;;  %v745_v27 = vrot.slane %v743_v18, 7  ;;  %v751_v28 = vshrl.u32 %v8962_v21, 16  ;;  %v10651_v58 = vld [vmem:[#allocation2 + $0x7c] sm:$0xf]  ;;  %v10653_v6 = vpop.permute.xlu1 %2962 }
 0x14b   : > { %v1902_v2 = vsel %vm9826_vm10, %v1897_v57, %v1901_v10  ;;  %v8552_v54 = vcombine.low %v10624_v0, %v2190_v30  ;;  %v754_v43 = vshll.u32 %v8962_v21, 16  ;;  %v2477_v5 = vrot.slane %v2475_v50, 4 }
 0x14c   : > { %v1907_v11 = vrot.slane %v1906_v31, 4  ;;  %3306 = vrot.lane.b32.xlu0 %v8551_v51, %s9391_s15  ;;  %v2480_v20 = vrot.slane %v2478_v19, 5  ;;  %v748_v32 = vor.u32 %v746_v39, %v745_v27  ;;  %v749_v1 = vrot.slane %v745_v27, 4  ;;  %v10639_v3 = vpop.permute.xlu0 %3552 }
 0x14d   : > { %v753_v60 = vrot.slane %v751_v28, 7  ;;  %v2488_v34 = vshrl.u32 %v10630_v4, 16  ;;  %v8567_v15 = vcombine.low %v2250_v33, %v10630_v4  ;;  %v3635_v51 = vsel %vm3627_vm2, %v3590_v12, %v10510_v52 }
 0x14e   : > { %v1912_v41 = vsel %vm9826_vm10, %v1907_v11, %v1911_v17  ;;  %v3633_v22 = vsel %vm3627_vm2, %v10592_v23, %v10480_v24  ;;  %v970_v56 = vsel %vm9831_vm14, %v748_v32, %v969_v40  ;;  %v2481_v52 = vor.u32 %v2480_v20, %v2477_v5  ;;  %v10658_v23 = vld [vmem:[#allocation2 + $0x80] sm:$0x1]  ;;  %v2674_v17 = vld [vmem:[#allocation2 + $0x78] sm:$0xe]  ;;  %v10678_v40 = vpop.permute.xlu1 %2964 }
 0x14f   : > { %v8536_v36 = vcombine.low %v1902_v2, %v1912_v41  ;;  %v756_v16 = vor.u32 %v754_v43, %v753_v60  ;;  %v758_v49 = vrot.slane %v753_v60, 4  ;;  %971 = vst [vmem:[#allocation2 + $0x84] sm:$0xf] %v970_v56  ;;  %v2484_v12 = vshll.u32 %v10630_v4, 16 }
 0x150   : > { %3402 = vrot.lane.b32.xlu0 %v8567_v15, %s9390_s14  ;;  %v2490_v44 = vrot.slane %v2488_v34, 4  ;;  %v2494_v24 = vshll.u32 %v10637_v63, 16  ;;  %v3668_v33 = vsel %vm3660_vm3, %v3635_v51, %v10542_v55  ;;  %v3666_v10 = vsel %vm3660_vm3, %v3633_v22, %v10495_v35  ;;  %v10669_v0 = vpop.permute.xlu0 %3042 }
 0x151   : > { %3228 = vrot.lane.b32.xlu1 %v8536_v36, %s9393_s17  ;;  %v757_v48 = vsel %vm9837_vm15, %v749_v1, %v756_v16  ;;  %v974_v13 = vsel %vm9856_vm0, %v758_v49, %v973_v53  ;;  %v2482_v46 = vrot.slane %v2481_v52, 4  ;;  %v2486_v57 = vrot.slane %v2484_v12, 5 }
 0x152   : > { %972 = vst.msk [vmem:[#allocation2 + $0x88] sm:$0xf] %vm893_vm11, %v757_v48  ;;  %975 = vst [vmem:[#allocation2 + $0x8c] sm:$0x1] %v974_v13  ;;  %v2496_v21 = vrot.slane %v2494_v24, 5  ;;  %v1303_v18 = vshrl.u32 %v1031_v14, 16  ;;  %v3701_v1 = vsel %vm3693_vm4, %v3668_v33, %v10565_v59 }
 0x153   : > { %v1306_v39 = vshll.u32 %v1031_v14, 16  ;;  %v1312_v31 = vshll.u32 %v10651_v58, 16  ;;  %v1316_v30 = vshrl.u32 %v10651_v58, 16  ;;  %v1322_v55 = vshll.u32 %v10658_v23, 16 }
 0x154   : > { %v2487_v35 = vsel %vm9826_vm10, %v2482_v46, %v2486_v57  ;;  %v2491_v50 = vor.u32 %v2490_v44, %v2486_v57  ;;  %v1305_v19 = vrot.slane %v1303_v18, 4  ;;  %v8455_v2 = vrot.slane %v2674_v17, 9  ;;  %v10690_v51 = vpop.permute.xlu0 %3138  ;;  %v10708_v17 = vpop.permute.xlu1 %3044 }
 0x155   : > { %3308 = vrot.lane.b32.xlu1 %v8552_v54, %s9391_s15  ;;  %v1308_v27 = vrot.slane %v1306_v39, 5  ;;  %v1314_v28 = vrot.slane %v1312_v31, 5  ;;  %v1318_v11 = vrot.slane %v1316_v30, 4  ;;  %v1324_v43 = vrot.slane %v1322_v55, 5 }
 0x156   : > { %v2492_v5 = vrot.slane %v2491_v50, 4  ;;  %v2788_v20 = vrot.slane %v10630_v4, 5  ;;  %v2791_v32 = vrot.slane %v10637_v63, 5  ;;  %v2252_v60 = vld [vmem:[#allocation2 + $0x84] sm:$0xf]  ;;  %v3699_v54 = vsel %vm3693_vm4, %v3666_v10, %v10512_v25 }
 0x157   : > { %v1309_v34 = vor.u32 %v1308_v27, %v1305_v19  ;;  %v1319_v41 = vor.u32 %v1318_v11, %v1314_v28  ;;  %v10688_v15 = vsel %vm3726_vm6, %v3701_v1, %v10586_v26  ;;  %v2499_v22 = vshrl.u32 %v2252_v60, 16  ;;  %v1033_v44 = vld [vmem:[#allocation2 + $0x84] sm:$0xf] }
 0x158   : > { %v2502_v53 = vshll.u32 %v2252_v60, 16  ;;  %v2497_v4 = vsel %vm9826_vm10, %v2492_v5, %v2496_v21  ;;  %v2789_v59 = vsel %vm9810_vm5, %v8455_v2, %v2788_v20  ;;  %v10700_v26 = vsel %vm3726_vm6, %v3699_v54, %v10544_v47 }
 0x159   : > { %v2253_v63 = vld [vmem:[#allocation2 + $0x88] sm:$0xf]  ;;  %v10696_v36 = vld [vmem:[#allocation2 + $0x8c] sm:$0x1]  ;;  %v8583_v16 = vcombine.low %v2487_v35, %v2497_v4  ;;  %v1310_v56 = vrot.slane %v1309_v34, 4  ;;  %v1320_v25 = vrot.slane %v1319_v41, 4 }
 0x15a   : > { %v2501_v49 = vrot.slane %v2499_v22, 4  ;;  %v2504_v14 = vrot.slane %v2502_v53, 5  ;;  %v2512_v52 = vshrl.u32 %v2253_v63, 16  ;;  %v8568_v12 = vcombine.low %v2252_v60, %v2253_v63  ;;  %v1034_v10 = vld [vmem:[#allocation2 + $0x88] sm:$0xf] }
 0x15b   : > { %v2508_v24 = vshll.u32 %v2253_v63, 16  ;;  %v2518_v48 = vshll.u32 %v10696_v36, 16  ;;  %3482 = vrot.lane.b32.xlu0 %v8583_v16, %s9394_s18  ;;  %v1315_v13 = vsel %vm9826_vm10, %v1310_v56, %v1314_v28  ;;  %v1325_v33 = vsel %vm9826_vm10, %v1320_v25, %v1324_v43  ;;  %v1054_v31 = vld [vmem:[#allocation2 + $0x8c] sm:$0x1]  ;;  %v10713_v35 = vpop.permute.xlu0 %3218  ;;  %v2675_v28 = vld [vmem:[#allocation2 + $0x84] sm:$0xe] }
 0x15c   : > { %3404 = vrot.lane.b32.xlu1 %v8568_v12, %s9390_s14  ;;  %v2505_v47 = vor.u32 %v2504_v14, %v2501_v49  ;;  %v2514_v46 = vrot.slane %v2512_v52, 4  ;;  %v10711_v57 = vcombine.low %v1315_v13, %v1325_v33  ;;  %v2790_v21 = vrot.slane %v2788_v20, 4  ;;  %v1457_v60 = vld [vmem:[#allocation2 + $0x84] sm:$0xe]  ;;  %v1456_v14 = vld [vmem:[#allocation2 + $0x78] sm:$0xe] }
 0x15d   : > { %v2510_v18 = vrot.slane %v2508_v24, 5  ;;  %v2520_v39 = vrot.slane %v2518_v48, 5  ;;  %v1327_v30 = vshrl.u32 %v1033_v44, 16  ;;  %v1330_v55 = vshll.u32 %v1033_v44, 16  ;;  %v10720_v16 = vpop.permute.xlu1 %3140 }
 0x15e   : > { %v2506_v50 = vrot.slane %v2505_v47, 4  ;;  %v2792_v19 = vsel %vm9810_vm5, %v2790_v21, %v2791_v32  ;;  %v1336_v2 = vshll.u32 %v1034_v10, 16  ;;  %v1340_v27 = vshrl.u32 %v1034_v10, 16 }
 0x15f   : > { %v2515_v11 = vor.u32 %v2514_v46, %v2510_v18  ;;  %v8599_v43 = vcombine.low %v2789_v59, %v2792_v19  ;;  %v1329_v5 = vrot.slane %v1327_v30, 4  ;;  %v1332_v1 = vrot.slane %v1330_v55, 5  ;;  %v10727_v48 = vpop.permute.xlu0 %3298  ;;  %v1645_v19 = vld [vmem:[#allocation2 + $0x84] sm:$0xf] }
 0x160   : > { %v2511_v20 = vsel %vm9826_vm10, %v2506_v50, %v2510_v18  ;;  %v1338_v34 = vrot.slane %v1336_v2, 5  ;;  %v1342_v41 = vrot.slane %v1340_v27, 4  ;;  %v1346_v54 = vshll.u32 %v1054_v31, 16  ;;  %v464_v50 = vld [vmem:[%s9459_s7 + $0xb8] sm:$0xff] }
 0x161   : > { %v2516_v22 = vrot.slane %v2515_v11, 4  ;;  %3562 = vrot.lane.b32.xlu0 %v8599_v43, %s9392_s16  ;;  %v1333_v53 = vor.u32 %v1332_v1, %v1329_v5  ;;  %v8456_v4 = vrot.slane %v2675_v28, 9  ;;  %v2795_v32 = vrot.slane %v2253_v63, 5 }
 0x162   : > { %v1343_v56 = vor.u32 %v1342_v41, %v1338_v34  ;;  %v1348_v25 = vrot.slane %v1346_v54, 5  ;;  %v2798_v59 = vrot.slane %v10696_v36, 5  ;;  %v8426_v49 = vrot.slane %v1457_v60, 9 }
 0x163   : > { %v2521_v52 = vsel %vm9826_vm10, %v2516_v22, %v2520_v39  ;;  %v1334_v12 = vrot.slane %v1333_v53, 4  ;;  %v2796_v44 = vsel %vm9810_vm5, %v8456_v4, %v2795_v32  ;;  %v2797_v24 = vrot.slane %v2795_v32, 4  ;;  %v463_v39 = vld [vmem:[%s9459_s7 + $0xb0] sm:$0xff]  ;;  %v10762_v22 = vpop.permute.xlu0 %3394 }
 0x164   : > { %v8584_v63 = vcombine.low %v2511_v20, %v2521_v52  ;;  %v1344_v13 = vrot.slane %v1343_v56, 4  ;;  %v1592_v33 = vrot.slane %v1034_v10, 5  ;;  %v1595_v47 = vrot.slane %v1054_v31, 5  ;;  %v10757_v20 = vld [vmem:[#allocation2 + $0x88] sm:$0xf] }
 0x165   : > { %v1339_v36 = vsel %vm9826_vm10, %v1334_v12, %v1338_v34  ;;  %v2799_v46 = vsel %vm9810_vm5, %v2797_v24, %v2798_v59  ;;  %v8425_v21 = vrot.slane %v1456_v14, 9  ;;  %v1585_v18 = vrot.slane %v10651_v58, 5  ;;  %v976_v12 = vld [vmem:[#allocation2 + $0x90] sm:$0xf] }
 0x166   : > { %3484 = vrot.lane.b32.xlu1 %v8584_v63, %s9394_s18  ;;  %v1349_v30 = vsel %vm9826_vm10, %v1344_v13, %v1348_v25  ;;  %v8600_v55 = vcombine.low %v2796_v44, %v2799_v46  ;;  %v10740_v10 = vsel %vm9810_vm5, %v8426_v49, %v1592_v33  ;;  %v1594_v31 = vrot.slane %v1592_v33, 4  ;;  %v10767_v25 = vld [vmem:[#allocation2 + $0x8c] sm:$0x1] }
 0x167   : > { %v8490_v2 = vcombine.low %v1339_v36, %v1349_v30  ;;  %v1586_v27 = vsel %vm9810_vm5, %v8425_v21, %v1585_v18  ;;  %v1587_v28 = vrot.slane %v1585_v18, 4  ;;  %v1588_v58 = vrot.slane %v10658_v23, 5  ;;  %v10746_v11 = vpop.permute.xlu1 %3220  ;;  %v980_v36 = vld [vmem:[#allocation2 + $0x98] sm:$0x1]  ;;  %v9269_v30 = vld [vmem:[#allocation2 + $0x30] sm:$0xf] }
 0x168   : > { %3564 = vrot.lane.b32.xlu0 %v8600_v55, %s9392_s16  ;;  %v1596_v43 = vsel %vm9810_vm5, %v1594_v31, %v1595_v47  ;;  %v3767_v5 = vsel %vm3759_vm7, %v10688_v15, %v10606_v29  ;;  %v3765_v1 = vsel %vm3759_vm7, %v10700_v26, %v10567_v62  ;;  %v8963_v60 = vpack.c.bf16 %v463_v39, %v463_v39  ;;  %v9270_v55 = vld [vmem:[#allocation2 + $0x34] sm:$0xf] }
 0x169   : > { %v8506_v23 = vcombine.low %v10740_v10, %v1596_v43  ;;  %v1589_v34 = vsel %vm9810_vm5, %v1587_v28, %v1588_v58  ;;  %v8964_v41 = vpack.c.bf16 %v464_v50, %v464_v50  ;;  %v1914_v54 = vshrl.u32 %v1645_v19, 16  ;;  %v2067_v10 = vld [vmem:[#allocation2 + $0x84] sm:$0xe] }
 0x16a   : > { %2974 = vrot.lane.b32.xlu1 %v10711_v57, %s9388_s12  ;;  %v8505_v29 = vcombine.low %v1586_v27, %v1589_v34  ;;  %v760_v15 = vshrl.u32 %v8963_v60, 16  ;;  %v763_v53 = vshll.u32 %v8963_v60, 16  ;;  %v1917_v4 = vshll.u32 %v1645_v19, 16  ;;  %v465_v28 = vld [vmem:[%s9459_s7 + $0xc0] sm:$0xff]  ;;  %v466_v60 = vld [vmem:[%s9459_s7 + $0xc8] sm:$0xff] }
 0x16b   : > { %v768_v62 = vshrl.u32 %v8964_v41, 16  ;;  %v771_v26 = vshll.u32 %v8964_v41, 16  ;;  %v1916_v32 = vrot.slane %v1914_v54, 4  ;;  %v1927_v56 = vshrl.u32 %v10757_v20, 16  ;;  %v10776_v13 = vpop.permute.xlu1 %3300 }
 0x16c   : > { %3054 = vrot.lane.b32.xlu0 %v8505_v29, %s9387_s11  ;;  %v762_v59 = vrot.slane %v760_v15, 7  ;;  %v1919_v49 = vrot.slane %v1917_v4, 5  ;;  %v8521_v14 = vcombine.low %v1645_v19, %v10757_v20  ;;  %v3800_v57 = vsel %vm13817_vm8, %v3767_v5, %v10626_v9  ;;  %v10780_v31 = vpop.permute.xlu0 %3474  ;;  %v9271_v15 = vld [vmem:[#allocation2 + $0x3c] sm:$0xf] }
 0x16d   : > { %v770_v52 = vrot.slane %v768_v62, 7  ;;  %v3798_v44 = vsel %vm13817_vm8, %v3765_v1, %v10599_v61  ;;  %v1923_v24 = vshll.u32 %v10757_v20, 16  ;;  %v1929_v63 = vrot.slane %v1927_v56, 4 }
 0x16e   : > { %2976 = vrot.lane.b32.xlu1 %v8490_v2, %s9388_s12  ;;  %v765_v33 = vor.u32 %v763_v53, %v762_v59  ;;  %v766_v47 = vrot.slane %v762_v59, 4  ;;  %v1920_v46 = vor.u32 %v1919_v49, %v1916_v32  ;;  %v1933_v21 = vshll.u32 %v10767_v25, 16  ;;  %v9272_v53 = vld [vmem:[#allocation2 + $0x40] sm:$0xf] }
 0x16f   : > { %v773_v9 = vor.u32 %v771_v26, %v770_v52  ;;  %v775_v18 = vrot.slane %v770_v52, 4  ;;  %v1925_v39 = vrot.slane %v1923_v24, 5  ;;  %v8467_v61 = vcombine.low %v9269_v30, %v9270_v55  ;;  %v10804_v62 = vpop.permute.xlu1 %3396 }
 0x170   : > { %v977_v50 = vsel %vm9831_vm14, %v765_v33, %v976_v12  ;;  %3150 = vrot.lane.b32.xlu0 %v8521_v14, %s9389_s13  ;;  %v1921_v19 = vrot.slane %v1920_v46, 4  ;;  %v1935_v2 = vrot.slane %v1933_v21, 5  ;;  %v3831_v27 = vsel %vm13816_vm12, %v3798_v44, %v10619_v38  ;;  %v467_v44 = vld [vmem:[%s9459_s7 + $0xd0] sm:$0xff] }
 0x171   : > { %v774_v58 = vsel %vm9837_vm15, %v766_v47, %v773_v9  ;;  %978 = vst [vmem:[#allocation2 + $0x90] sm:$0xf] %v977_v50  ;;  %v981_v43 = vsel %vm9856_vm0, %v775_v18, %v980_v36  ;;  %v1930_v5 = vor.u32 %v1929_v63, %v1925_v39  ;;  %v3593_v1 = vsel %vm3578_vm1, %v8467_v61, %v10653_v6 }
 0x172   : > { %9061 = vmatprep.mubr.msk.bf16.mxu0 %vm13815_vm13, %v3831_v27  ;;  %3056 = vrot.lane.b32.xlu1 %v8506_v23, %s9387_s11  ;;  %979 = vst.msk [vmem:[#allocation2 + $0x94] sm:$0xf] %vm893_vm11, %v774_v58  ;;  %982 = vst [vmem:[#allocation2 + $0x98] sm:$0x1] %v981_v43  ;;  %v1926_v38 = vsel %vm9826_vm10, %v1921_v19, %v1925_v39  ;;  %v8441_v34 = vrot.slane %v2067_v10, 9  ;;  %v2193_v41 = vrot.slane %v10757_v20, 5 }
 0x173   : > { %v2196_v54 = vrot.slane %v10767_v25, 5  ;;  %v1931_v29 = vrot.slane %v1930_v5, 4  ;;  %v8468_v6 = vcombine.low %v9271_v15, %v9272_v53  ;;  %v3833_v4 = vsel %vm13816_vm12, %v3800_v57, %v10639_v3  ;;  %v10813_v3 = vpop.permute.xlu0 %3554  ;;  %v10835_v61 = vpop.permute.xlu1 %3476  ;;  %v983_v27 = vld [vmem:[#allocation2 + $0x9c] sm:$0xf] }
 0x174   : > { %v8965_v23 = vpack.c.bf16 %v465_v28, %v465_v28  ;;  %v2194_v26 = vsel %vm9810_vm5, %v8441_v34, %v2193_v41  ;;  %v2195_v32 = vrot.slane %v2193_v41, 4  ;;  %v8966_v56 = vpack.c.bf16 %v466_v60, %v466_v60  ;;  %9062 = vmatmul.mubr.msk.bf16.gmra.mrb[4].mxu0 %vm13815_vm13, %v3833_v4 }
 0x175   : > { %v1936_v20 = vsel %vm9826_vm10, %v1931_v29, %v1935_v2  ;;  %v3596_v25 = vsel %vm3578_vm1, %v8468_v6, %v10678_v40  ;;  %v3637_v12 = vsel %vm3627_vm2, %v3593_v1, %v10669_v0 }
 0x176   : > { %v777_v59 = vshrl.u32 %v8965_v23, 16  ;;  %v780_v49 = vshll.u32 %v8965_v23, 16  ;;  %v8537_v14 = vcombine.low %v1926_v38, %v1936_v20  ;;  %v2197_v57 = vsel %vm9810_vm5, %v2195_v32, %v2196_v54 }
 0x177   : > { %v785_v52 = vshrl.u32 %v8966_v56, 16  ;;  %v788_v63 = vshll.u32 %v8966_v56, 16  ;;  %v3639_v33 = vsel %vm3627_vm2, %v3596_v25, %v10708_v17  ;;  %v3670_v40 = vsel %vm3660_vm3, %v3637_v12, %v10690_v51  ;;  %v987_v12 = vld [vmem:[#allocation2 + $0xa4] sm:$0x1] }
 0x178   : > { %v779_v24 = vrot.slane %v777_v59, 7  ;;  %v1647_v47 = vld [vmem:[#allocation2 + $0x90] sm:$0xf]  ;;  %3230 = vrot.lane.b32.xlu0 %v8537_v14, %s9393_s17  ;;  %v8553_v46 = vcombine.low %v2194_v26, %v2197_v57  ;;  %v3672_v9 = vsel %vm3660_vm3, %v3639_v33, %v10720_v16  ;;  %v10831_v0 = vsel %vm3693_vm4, %v3670_v40, %v10713_v35  ;;  %v10837_v5 = vpop.permute.xlu0 %3556  ;;  %v10855_v59 = vpop.permute.xlu1 %2966 }
 0x179   : > { %v2068_v36 = vld [vmem:[#allocation2 + $0x90] sm:$0xe]  ;;  %v10825_v21 = vrot.slane %v785_v52, 7  ;;  %v1648_v18 = vld [vmem:[#allocation2 + $0x94] sm:$0xf]  ;;  %v1938_v39 = vshrl.u32 %v1647_v47, 16  ;;  %v10833_v51 = vpack.c.bf16 %v467_v44, %v467_v44  ;;  %v10845_v41 = vsel %vm3693_vm4, %v3672_v9, %v10746_v11 }
 0x17a   : > { %v1941_v17 = vshll.u32 %v1647_v47, 16  ;;  %v1668_v30 = vld [vmem:[#allocation2 + $0x98] sm:$0x1]  ;;  %v782_v55 = vor.u32 %v780_v49, %v779_v24  ;;  %v1951_v10 = vshrl.u32 %v1648_v18, 16  ;;  %v8522_v50 = vcombine.low %v1647_v47, %v1648_v18  ;;  %v2254_v35 = vld [vmem:[#allocation2 + $0x90] sm:$0xf] }
 0x17b   : > { %v1947_v19 = vshll.u32 %v1648_v18, 16  ;;  %v1957_v2 = vshll.u32 %v1668_v30, 16  ;;  %v1940_v28 = vrot.slane %v1938_v39, 4  ;;  %v8442_v58 = vrot.slane %v2068_v36, 9  ;;  %v10841_v34 = vld [vmem:[#allocation2 + $0x94] sm:$0xf] }
 0x17c   : > { %v1943_v16 = vrot.slane %v1941_v17, 5  ;;  %v2200_v43 = vrot.slane %v1648_v18, 5  ;;  %3152 = vrot.lane.b32.xlu1 %v8522_v50, %s9389_s13  ;;  %v1953_v60 = vrot.slane %v1951_v10, 4  ;;  %v2203_v38 = vrot.slane %v1668_v30, 5  ;;  %3310 = vrot.lane.b32.xlu0 %v8553_v46, %s9391_s15  ;;  %v10853_v25 = vld [vmem:[#allocation2 + $0x98] sm:$0x1]  ;;  %v10868_v36 = vpop.permute.xlu0 %3046 }
 0x17d   : > { %v1949_v1 = vrot.slane %v1947_v19, 5  ;;  %v1959_v29 = vrot.slane %v1957_v2, 5  ;;  %v783_v53 = vrot.slane %v779_v24, 4  ;;  %v790_v4 = vor.u32 %v788_v63, %v10825_v21  ;;  %v1035_v44 = vld [vmem:[#allocation2 + $0x90] sm:$0xf] }
 0x17e   : > { %v1944_v54 = vor.u32 %v1943_v16, %v1940_v28  ;;  %v2202_v15 = vrot.slane %v2200_v43, 4  ;;  %v984_v23 = vsel %vm9831_vm14, %v782_v55, %v983_v27  ;;  %v2523_v26 = vshrl.u32 %v2254_v35, 16  ;;  %v10866_v47 = vld [vmem:[#allocation2 + $0x94] sm:$0xf]  ;;  %v10874_v17 = vld [vmem:[#allocation2 + $0x98] sm:$0x1] }
 0x17f   : > { %v1954_v6 = vor.u32 %v1953_v60, %v1949_v1  ;;  %v2201_v56 = vsel %vm9810_vm5, %v8442_v58, %v2200_v43  ;;  %985 = vst [vmem:[#allocation2 + $0x9c] sm:$0xf] %v984_v23  ;;  %v2526_v20 = vshll.u32 %v2254_v35, 16  ;;  %v2536_v11 = vshrl.u32 %v10841_v34, 16 }
 0x180   : > { %v1945_v32 = vrot.slane %v1944_v54, 4  ;;  %v2204_v14 = vsel %vm9810_vm5, %v2202_v15, %v2203_v38  ;;  %v791_v57 = vsel %vm9837_vm15, %v783_v53, %v790_v4  ;;  %v2525_v52 = vrot.slane %v2523_v26, 4  ;;  %v10887_v26 = vpop.permute.xlu0 %3142 }
 0x181   : > { %v1955_v49 = vrot.slane %v1954_v6, 4  ;;  %986 = vst.msk [vmem:[#allocation2 + $0xa0] sm:$0xf] %vm893_vm11, %v791_v57  ;;  %v2528_v63 = vrot.slane %v2526_v20, 5  ;;  %v8569_v33 = vcombine.low %v2254_v35, %v10841_v34  ;;  %v792_v40 = vrot.slane %v10825_v21, 4 }
 0x182   : > { %v1950_v24 = vsel %vm9826_vm10, %v1945_v32, %v1949_v1  ;;  %v2532_v9 = vshll.u32 %v10841_v34, 16  ;;  %v2538_v18 = vrot.slane %v2536_v11, 4  ;;  %v2542_v39 = vshll.u32 %v10853_v25, 16  ;;  %v2676_v35 = vld [vmem:[#allocation2 + $0x90] sm:$0xe]  ;;  %v10883_v1 = vpop.permute.xlu1 %2968 }
 0x183   : > { %v1960_v46 = vsel %vm9826_vm10, %v1955_v49, %v1959_v29  ;;  %3406 = vrot.lane.b32.xlu0 %v8569_v33, %s9390_s14  ;;  %v988_v21 = vsel %vm9856_vm0, %v792_v40, %v987_v12  ;;  %v2529_v55 = vor.u32 %v2528_v63, %v2525_v52  ;;  %v1351_v10 = vshrl.u32 %v1035_v44, 16 }
 0x184   : > { %v8538_v30 = vcombine.low %v1950_v24, %v1960_v46  ;;  %v8554_v50 = vcombine.low %v2201_v56, %v2204_v14  ;;  %989 = vst [vmem:[#allocation2 + $0xa4] sm:$0x1] %v988_v21  ;;  %v2534_v19 = vrot.slane %v2532_v9, 5  ;;  %v1354_v2 = vshll.u32 %v1035_v44, 16 }
 0x185   : > { %v1360_v27 = vshll.u32 %v10866_v47, 16  ;;  %v2530_v28 = vrot.slane %v2529_v55, 4  ;;  %v1353_v16 = vrot.slane %v1351_v10, 4  ;;  %v1364_v58 = vshrl.u32 %v10866_v47, 16 }
 0x186   : > { %3232 = vrot.lane.b32.xlu1 %v8538_v30, %s9393_s17  ;;  %v1370_v43 = vshll.u32 %v10874_v17, 16  ;;  %v2256_v60 = vld [vmem:[#allocation2 + $0x9c] sm:$0xf]  ;;  %v2539_v38 = vor.u32 %v2538_v18, %v2534_v19  ;;  %v2544_v54 = vrot.slane %v2542_v39, 5  ;;  %v1356_v29 = vrot.slane %v1354_v2, 5  ;;  %v10898_v21 = vpop.permute.xlu1 %3048 }
 0x187   : > { %v1362_v15 = vrot.slane %v1360_v27, 5  ;;  %v2547_v53 = vshrl.u32 %v2256_v60, 16  ;;  %v2550_v6 = vshll.u32 %v2256_v60, 16  ;;  %v2535_v4 = vsel %vm9826_vm10, %v2530_v28, %v2534_v19  ;;  %v1037_v30 = vld [vmem:[#allocation2 + $0x9c] sm:$0xf] }
 0x188   : > { %v1366_v23 = vrot.slane %v1364_v58, 4  ;;  %v10889_v32 = vld [vmem:[#allocation2 + $0xa0] sm:$0xf]  ;;  %v2540_v56 = vrot.slane %v2539_v38, 4  ;;  %v1357_v20 = vor.u32 %v1356_v29, %v1353_v16  ;;  %v1372_v11 = vrot.slane %v1370_v43, 5  ;;  %v10907_v58 = vpop.permute.xlu0 %3222 }
 0x189   : > { %v8457_v49 = vrot.slane %v2676_v35, 9  ;;  %v2549_v14 = vrot.slane %v2547_v53, 4  ;;  %v2552_v57 = vrot.slane %v2550_v6, 5  ;;  %v2560_v52 = vshrl.u32 %v10889_v32, 16  ;;  %v1038_v16 = vld [vmem:[#allocation2 + $0xa0] sm:$0xf] }
 0x18a   : > { %3312 = vrot.lane.b32.xlu1 %v8554_v50, %s9391_s15  ;;  %v8570_v12 = vcombine.low %v2256_v60, %v10889_v32  ;;  %v2556_v44 = vshll.u32 %v10889_v32, 16  ;;  %v2545_v24 = vsel %vm9826_vm10, %v2540_v56, %v2544_v54  ;;  %v1358_v63 = vrot.slane %v1357_v20, 4  ;;  %v2677_v6 = vld [vmem:[#allocation2 + $0x9c] sm:$0xe] }
 0x18b   : > { %v1367_v33 = vor.u32 %v1366_v23, %v1362_v15  ;;  %v2277_v40 = vld [vmem:[#allocation2 + $0xa4] sm:$0x1]  ;;  %v2553_v46 = vor.u32 %v2552_v57, %v2549_v14  ;;  %v2562_v9 = vrot.slane %v2560_v52, 4  ;;  %v8585_v18 = vcombine.low %v2535_v4, %v2545_v24  ;;  %v10919_v52 = vpop.permute.xlu1 %3144 }
 0x18c   : > { %v2802_v39 = vrot.slane %v10841_v34, 5  ;;  %v2558_v55 = vrot.slane %v2556_v44, 5  ;;  %v2566_v10 = vshll.u32 %v2277_v40, 16  ;;  %v1363_v50 = vsel %vm9826_vm10, %v1358_v63, %v1362_v15  ;;  %v10911_v38 = vld [vmem:[#allocation2 + $0xa4] sm:$0x1] }
 0x18d   : > { %v1368_v19 = vrot.slane %v1367_v33, 4  ;;  %v2554_v2 = vrot.slane %v2553_v46, 4  ;;  %3486 = vrot.lane.b32.xlu0 %v8585_v18, %s9394_s18  ;;  %v2805_v34 = vrot.slane %v10853_v25, 5  ;;  %v1375_v54 = vshrl.u32 %v1037_v30, 16  ;;  %v1459_v63 = vld [vmem:[#allocation2 + $0x9c] sm:$0xe] }
 0x18e   : > { %3408 = vrot.lane.b32.xlu1 %v8570_v12, %s9390_s14  ;;  %v2803_v27 = vsel %vm9810_vm5, %v8457_v49, %v2802_v39  ;;  %v2804_v28 = vrot.slane %v2802_v39, 4  ;;  %v2563_v43 = vor.u32 %v2562_v9, %v2558_v55  ;;  %v2568_v35 = vrot.slane %v2566_v10, 5  ;;  %v1458_v39 = vld [vmem:[#allocation2 + $0x90] sm:$0xe] }
 0x18f   : > { %v1373_v60 = vsel %vm9826_vm10, %v1368_v19, %v1372_v11  ;;  %v2559_v29 = vsel %vm9826_vm10, %v2554_v2, %v2558_v55  ;;  %v1602_v15 = vrot.slane %v10874_v17, 5  ;;  %v1378_v25 = vshll.u32 %v1037_v30, 16  ;;  %v10926_v30 = vpop.permute.xlu0 %3302 }
 0x190   : > { %v2806_v53 = vsel %vm9810_vm5, %v2804_v28, %v2805_v34  ;;  %v2564_v4 = vrot.slane %v2563_v43, 4  ;;  %v1377_v56 = vrot.slane %v1375_v54, 4  ;;  %v1384_v20 = vshll.u32 %v1038_v16, 16 }
 0x191   : > { %v8601_v23 = vcombine.low %v2803_v27, %v2806_v53  ;;  %v8491_v49 = vcombine.low %v1363_v50, %v1373_v60  ;;  %v1380_v14 = vrot.slane %v1378_v25, 5  ;;  %v1388_v11 = vshrl.u32 %v1038_v16, 16 }
 0x192   : > { %v1394_v57 = vshll.u32 %v10911_v38, 16  ;;  %v2569_v12 = vsel %vm9826_vm10, %v2564_v4, %v2568_v35  ;;  %v1386_v17 = vrot.slane %v1384_v20, 5  ;;  %v8458_v44 = vrot.slane %v2677_v6, 9 }
 0x193   : > { %3566 = vrot.lane.b32.xlu0 %v8601_v23, %s9392_s16  ;;  %v2809_v24 = vrot.slane %v10889_v32, 5  ;;  %v8586_v33 = vcombine.low %v2559_v29, %v2569_v12  ;;  %v1381_v46 = vor.u32 %v1380_v14, %v1377_v56  ;;  %v1390_v9 = vrot.slane %v1388_v11, 4  ;;  %v10943_v25 = vpop.permute.xlu1 %3224  ;;  %v1649_v23 = vld [vmem:[#allocation2 + $0x9c] sm:$0xf]  ;;  %v10956_v56 = vld [vmem:[#allocation2 + $0xa0] sm:$0xf]  ;;  %v10958_v20 = vpop.permute.xlu0 %3398 }
 0x194   : > { %v1609_v18 = vrot.slane %v10911_v38, 5  ;;  %v1396_v55 = vrot.slane %v1394_v57, 5  ;;  %v2812_v19 = vrot.slane %v2277_v40, 5  ;;  %v3738_v27 = vsel %vm3726_vm6, %v10845_v41, %v10776_v13  ;;  %v468_v38 = vld [vmem:[%s9459_s7 + $0xd8] sm:$0xff] }
 0x195   : > { %v2810_v10 = vsel %vm9810_vm5, %v8458_v44, %v2809_v24  ;;  %v2811_v50 = vrot.slane %v2809_v24, 4  ;;  %3488 = vrot.lane.b32.xlu1 %v8586_v33, %s9394_s18  ;;  %v1382_v2 = vrot.slane %v1381_v46, 4  ;;  %v1391_v32 = vor.u32 %v1390_v9, %v1386_v17 }
 0x196   : > { %v8428_v28 = vrot.slane %v1459_v63, 9  ;;  %v1606_v43 = vrot.slane %v1038_v16, 5  ;;  %v8427_v35 = vrot.slane %v1458_v39, 9  ;;  %v1599_v60 = vrot.slane %v10866_v47, 5  ;;  %v990_v63 = vld [vmem:[#allocation2 + $0xa8] sm:$0xf] }
 0x197   : > { %v2813_v34 = vsel %vm9810_vm5, %v2811_v50, %v2812_v19  ;;  %v1387_v40 = vsel %vm9826_vm10, %v1382_v2, %v1386_v17  ;;  %v1392_v54 = vrot.slane %v1391_v32, 4  ;;  %v3736_v53 = vsel %vm3726_vm6, %v10831_v0, %v10727_v48 }
 0x198   : > { %v8602_v29 = vcombine.low %v2810_v10, %v2813_v34  ;;  %v1607_v13 = vsel %vm9810_vm5, %v8428_v28, %v1606_v43  ;;  %v1608_v41 = vrot.slane %v1606_v43, 4  ;;  %v1600_v16 = vsel %vm9810_vm5, %v8427_v35, %v1599_v60  ;;  %v10969_v10 = vpop.permute.xlu1 %3304  ;;  %v994_v28 = vld [vmem:[#allocation2 + $0xb0] sm:$0x1] }
 0x199   : > { %v1601_v47 = vrot.slane %v1599_v60, 4  ;;  %2978 = vrot.lane.b32.xlu1 %v8491_v49, %s9388_s12  ;;  %v1397_v6 = vsel %vm9826_vm10, %v1392_v54, %v1396_v55  ;;  %v3769_v48 = vsel %vm3759_vm7, %v3736_v53, %v10762_v22  ;;  %v8968_v0 = vpack.c.bf16 %v468_v38, %v468_v38  ;;  %v2069_v38 = vld [vmem:[#allocation2 + $0x9c] sm:$0xe]  ;;  %v9274_v53 = vld [vmem:[#allocation2 + $0x4c] sm:$0xf] }
 0x19a   : > { %3568 = vrot.lane.b32.xlu0 %v8602_v29, %s9392_s16  ;;  %v794_v4 = vshrl.u32 %v10833_v51, 16  ;;  %v8492_v14 = vcombine.low %v1387_v40, %v1397_v6  ;;  %v1610_v49 = vsel %vm9810_vm5, %v1608_v41, %v1609_v18  ;;  %v797_v57 = vshll.u32 %v10833_v51, 16  ;;  %v1669_v51 = vld [vmem:[#allocation2 + $0xa4] sm:$0x1]  ;;  %v10978_v40 = vpop.permute.xlu0 %3478  ;;  %v9273_v29 = vld [vmem:[#allocation2 + $0x48] sm:$0xf] }
 0x19b   : > { %v1603_v11 = vsel %vm9810_vm5, %v1601_v47, %v1602_v15  ;;  %v8508_v12 = vcombine.low %v1607_v13, %v1610_v49  ;;  %v802_v44 = vshrl.u32 %v8968_v0, 16  ;;  %v805_v24 = vshll.u32 %v8968_v0, 16  ;;  %v469_v6 = vld [vmem:[%s9459_s7 + $0xe0] sm:$0xff] }
 0x19c   : > { %v8507_v17 = vcombine.low %v1600_v16, %v1603_v11  ;;  %v796_v22 = vrot.slane %v794_v4, 7  ;;  %v1962_v33 = vshrl.u32 %v1649_v23, 16  ;;  %v1965_v46 = vshll.u32 %v1649_v23, 16 }
 0x19d   : > { %v1975_v9 = vshrl.u32 %v10956_v56, 16  ;;  %2980 = vrot.lane.b32.xlu1 %v8492_v14, %s9388_s12  ;;  %v804_v55 = vrot.slane %v802_v44, 7  ;;  %v8523_v15 = vcombine.low %v1649_v23, %v10956_v56  ;;  %v3771_v50 = vsel %vm3759_vm7, %v3738_v27, %v10804_v62 }
 0x19e   : > { %3058 = vrot.lane.b32.xlu0 %v8507_v17, %s9387_s11  ;;  %v799_v18 = vor.u32 %v797_v57, %v796_v22  ;;  %v800_v39 = vrot.slane %v796_v22, 4  ;;  %v1964_v19 = vrot.slane %v1962_v33, 4  ;;  %v1967_v2 = vrot.slane %v1965_v46, 5  ;;  %v9276_v17 = vld [vmem:[#allocation2 + $0x58] sm:$0xf]  ;;  %v10995_v22 = vpop.permute.xlu1 %3400 }
 0x19f   : > { %v3802_v32 = vsel %vm13817_vm8, %v3769_v48, %v10780_v31  ;;  %v807_v34 = vor.u32 %v805_v24, %v804_v55  ;;  %v809_v35 = vrot.slane %v804_v55, 4  ;;  %v1971_v60 = vshll.u32 %v10956_v56, 16  ;;  %v470_v48 = vld [vmem:[%s9459_s7 + $0xe8] sm:$0xff] }
 0x1a0   : > { %v991_v43 = vsel %vm9831_vm14, %v799_v18, %v990_v63  ;;  %v1968_v62 = vor.u32 %v1967_v2, %v1964_v19  ;;  %v1977_v27 = vrot.slane %v1975_v9, 4  ;;  %v1981_v54 = vshll.u32 %v1669_v51, 16  ;;  %v11006_v9 = vpop.permute.xlu0 %3558 }
 0x1a1   : > { %992 = vst [vmem:[#allocation2 + $0xa8] sm:$0xf] %v991_v43  ;;  %v8469_v31 = vcombine.low %v9273_v29, %v9274_v53  ;;  %3060 = vrot.lane.b32.xlu1 %v8508_v12, %s9387_s11  ;;  %v808_v13 = vsel %vm9837_vm15, %v800_v39, %v807_v34  ;;  %v995_v41 = vsel %vm9856_vm0, %v809_v35, %v994_v28  ;;  %v1973_v16 = vrot.slane %v1971_v60, 5  ;;  %v9275_v12 = vld [vmem:[#allocation2 + $0x54] sm:$0xf] }
 0x1a2   : > { %3154 = vrot.lane.b32.xlu0 %v8523_v15, %s9389_s13  ;;  %v3835_v47 = vsel %vm13816_vm12, %v3802_v32, %v10813_v3  ;;  %993 = vst.msk [vmem:[#allocation2 + $0xac] sm:$0xf] %vm893_vm11, %v808_v13  ;;  %v3804_v0 = vsel %vm13817_vm8, %v3771_v50, %v10835_v61  ;;  %996 = vst [vmem:[#allocation2 + $0xb0] sm:$0x1] %v995_v41  ;;  %v1969_v4 = vrot.slane %v1968_v62, 4  ;;  %v1983_v23 = vrot.slane %v1981_v54, 5  ;;  %v11020_v54 = vpop.permute.xlu1 %3480 }
 0x1a3   : > { %v8443_v14 = vrot.slane %v2069_v38, 9  ;;  %9065 = vmatprep.mubr.msk.bf16.mxu0 %vm13815_vm13, %v3835_v47  ;;  %v1978_v49 = vor.u32 %v1977_v27, %v1973_v16  ;;  %v2207_v11 = vrot.slane %v10956_v56, 5  ;;  %v2210_v57 = vrot.slane %v1669_v51, 5  ;;  %v997_v41 = vld [vmem:[#allocation2 + $0xb4] sm:$0xf] }
 0x1a4   : > { %v8470_v3 = vcombine.low %v9275_v12, %v9276_v17  ;;  %v3837_v44 = vsel %vm13816_vm12, %v3804_v0, %v10837_v5  ;;  %v8969_v24 = vpack.c.bf16 %v469_v6, %v469_v6  ;;  %v8970_v61 = vpack.c.bf16 %v470_v48, %v470_v48 }
 0x1a5   : > { %v1974_v63 = vsel %vm9826_vm10, %v1969_v4, %v1973_v16  ;;  %v1979_v33 = vrot.slane %v1978_v49, 4  ;;  %v11003_v46 = vsel %vm3578_vm1, %v8469_v31, %v10855_v59  ;;  %v2209_v56 = vrot.slane %v2207_v11, 4  ;;  %9066 = vmatmul.mubr.msk.bf16.gmra.mrb[8].mxu0 %vm13815_vm13, %v3837_v44 }
 0x1a6   : > { %v2208_v18 = vsel %vm9810_vm5, %v8443_v14, %v2207_v11  ;;  %v3602_v5 = vsel %vm3578_vm1, %v8470_v3, %v10883_v1  ;;  %v811_v39 = vshrl.u32 %v8969_v24, 16  ;;  %v819_v55 = vshrl.u32 %v8970_v61, 16  ;;  %v11023_v4 = vpop.permute.xlu0 %3560 }
 0x1a7   : > { %v1984_v51 = vsel %vm9826_vm10, %v1979_v33, %v1983_v23  ;;  %v2211_v59 = vsel %vm9810_vm5, %v2209_v56, %v2210_v57  ;;  %v814_v19 = vshll.u32 %v8969_v24, 16  ;;  %v822_v2 = vshll.u32 %v8970_v61, 16 }
 0x1a8   : > { %v1651_v15 = vld [vmem:[#allocation2 + $0xa8] sm:$0xf]  ;;  %v8539_v34 = vcombine.low %v1974_v63, %v1984_v51  ;;  %v8555_v38 = vcombine.low %v2208_v18, %v2211_v59  ;;  %v813_v1 = vrot.slane %v811_v39, 7  ;;  %v821_v62 = vrot.slane %v819_v55, 7  ;;  %v11040_v55 = vpop.permute.xlu1 %2970 }
 0x1a9   : > { %v2070_v50 = vld [vmem:[#allocation2 + $0xa8] sm:$0xe]  ;;  %v1986_v32 = vshrl.u32 %v1651_v15, 16  ;;  %v1989_v28 = vshll.u32 %v1651_v15, 16  ;;  %v1652_v35 = vld [vmem:[#allocation2 + $0xac] sm:$0xf]  ;;  %v11018_v27 = vsel %vm3627_vm2, %v3602_v5, %v10898_v21  ;;  %v11049_v59 = vsel %vm3627_vm2, %v11003_v46, %v10868_v36 }
 0x1aa   : > { %v8444_v43 = vrot.slane %v2070_v50, 9  ;;  %v1670_v60 = vld [vmem:[#allocation2 + $0xb0] sm:$0x1]  ;;  %v1999_v31 = vshrl.u32 %v1652_v35, 16  ;;  %v8524_v13 = vcombine.low %v1651_v15, %v1652_v35  ;;  %3234 = vrot.lane.b32.xlu0 %v8539_v34, %s9393_s17  ;;  %v1995_v16 = vshll.u32 %v1652_v35, 16 }
 0x1ab   : > { %v1988_v29 = vrot.slane %v1986_v32, 4  ;;  %v1991_v53 = vrot.slane %v1989_v28, 5  ;;  %v2005_v47 = vshll.u32 %v1670_v60, 16  ;;  %v2214_v6 = vrot.slane %v1652_v35, 5  ;;  %v2258_v0 = vld [vmem:[#allocation2 + $0xa8] sm:$0xf]  ;;  %v11055_v35 = vpop.permute.xlu0 %3050 }
 0x1ac   : > { %v2217_v48 = vrot.slane %v1670_v60, 5  ;;  %3156 = vrot.lane.b32.xlu1 %v8524_v13, %s9389_s13  ;;  %v2001_v23 = vrot.slane %v1999_v31, 4  ;;  %v816_v14 = vor.u32 %v814_v19, %v813_v1  ;;  %v817_v49 = vrot.slane %v813_v1, 4  ;;  %v11026_v11 = vld [vmem:[#allocation2 + $0xac] sm:$0xf] }
 0x1ad   : > { %v1992_v21 = vor.u32 %v1991_v53, %v1988_v29  ;;  %v1997_v57 = vrot.slane %v1995_v16, 5  ;;  %v2007_v12 = vrot.slane %v2005_v47, 5  ;;  %v11030_v17 = vsel %vm9810_vm5, %v8444_v43, %v2214_v6  ;;  %v11038_v39 = vld [vmem:[#allocation2 + $0xb0] sm:$0x1]  ;;  %v1001_v19 = vld [vmem:[#allocation2 + $0xbc] sm:$0x1] }
 0x1ae   : > { %v2216_v3 = vrot.slane %v2214_v6, 4  ;;  %3314 = vrot.lane.b32.xlu0 %v8555_v38, %s9391_s15  ;;  %v824_v24 = vor.u32 %v822_v2, %v821_v62  ;;  %v998_v61 = vsel %vm9831_vm14, %v816_v14, %v997_v41  ;;  %v2571_v63 = vshrl.u32 %v2258_v0, 16  ;;  %v11051_v2 = vld [vmem:[#allocation2 + $0xa8] sm:$0xf]  ;;  %v11060_v46 = vld [vmem:[#allocation2 + $0xac] sm:$0xf] }
 0x1af   : > { %v1993_v44 = vrot.slane %v1992_v21, 4  ;;  %v2002_v33 = vor.u32 %v2001_v23, %v1997_v57  ;;  %999 = vst [vmem:[#allocation2 + $0xb4] sm:$0xf] %v998_v61  ;;  %v2574_v18 = vshll.u32 %v2258_v0, 16  ;;  %v2584_v5 = vshrl.u32 %v11026_v11, 16 }
 0x1b0   : > { %v2218_v56 = vsel %vm9810_vm5, %v2216_v3, %v2217_v48  ;;  %v825_v51 = vsel %vm9837_vm15, %v817_v49, %v824_v24  ;;  %v2573_v50 = vrot.slane %v2571_v63, 4  ;;  %v8571_v34 = vcombine.low %v2258_v0, %v11026_v11  ;;  %v11067_v31 = vld [vmem:[#allocation2 + $0xb0] sm:$0x1]  ;;  %v2678_v41 = vld [vmem:[#allocation2 + $0xa8] sm:$0xe]  ;;  %v11073_v49 = vpop.permute.xlu1 %2972 }
 0x1b1   : > { %v1998_v15 = vsel %vm9826_vm10, %v1993_v44, %v1997_v57  ;;  %v2003_v32 = vrot.slane %v2002_v33, 4  ;;  %1000 = vst.msk [vmem:[#allocation2 + $0xb8] sm:$0xf] %vm893_vm11, %v825_v51  ;;  %v2576_v28 = vrot.slane %v2574_v18, 5  ;;  %v826_v43 = vrot.slane %v821_v62, 4 }
 0x1b2   : > { %v8556_v60 = vcombine.low %v11030_v17, %v2218_v56  ;;  %v2580_v38 = vshll.u32 %v11026_v11, 16  ;;  %v2586_v1 = vrot.slane %v2584_v5, 4  ;;  %v2590_v36 = vshll.u32 %v11038_v39, 16  ;;  %3410 = vrot.lane.b32.xlu0 %v8571_v34, %s9390_s14  ;;  %v11079_v56 = vpop.permute.xlu0 %3146 }
 0x1b3   : > { %v2008_v29 = vsel %vm9826_vm10, %v2003_v32, %v2007_v12  ;;  %v1002_v53 = vsel %vm9856_vm0, %v826_v43, %v1001_v19  ;;  %v2577_v62 = vor.u32 %v2576_v28, %v2573_v50  ;;  %v1399_v13 = vshrl.u32 %v11051_v2, 16 }
 0x1b4   : > { %v8540_v16 = vcombine.low %v1998_v15, %v2008_v29  ;;  %1003 = vst [vmem:[#allocation2 + $0xbc] sm:$0x1] %v1002_v53  ;;  %v2582_v47 = vrot.slane %v2580_v38, 5  ;;  %v2592_v6 = vrot.slane %v2590_v36, 5  ;;  %v1402_v48 = vshll.u32 %v11051_v2, 16 }
 0x1b5   : > { %v2578_v0 = vrot.slane %v2577_v62, 4  ;;  %v1401_v21 = vrot.slane %v1399_v13, 4  ;;  %v1408_v23 = vshll.u32 %v11060_v46, 16  ;;  %v1412_v14 = vshrl.u32 %v11060_v46, 16 }
 0x1b6   : > { %3236 = vrot.lane.b32.xlu1 %v8540_v16, %s9393_s17  ;;  %v2260_v57 = vld [vmem:[#allocation2 + $0xb4] sm:$0xf]  ;;  %v2587_v12 = vor.u32 %v2586_v1, %v2582_v47  ;;  %v1404_v17 = vrot.slane %v1402_v48, 5  ;;  %v1418_v3 = vshll.u32 %v11067_v31, 16  ;;  %v8459_v44 = vrot.slane %v2678_v41, 9  ;;  %v11090_v16 = vpop.permute.xlu1 %3052 }
 0x1b7   : > { %v2595_v24 = vshrl.u32 %v2260_v57, 16  ;;  %v2598_v61 = vshll.u32 %v2260_v57, 16  ;;  %v2583_v63 = vsel %vm9826_vm10, %v2578_v0, %v2582_v47  ;;  %v1410_v33 = vrot.slane %v1408_v23, 5 }
 0x1b8   : > { %v11081_v18 = vld [vmem:[#allocation2 + $0xb8] sm:$0xf]  ;;  %v2588_v5 = vrot.slane %v2587_v12, 4  ;;  %v1405_v15 = vor.u32 %v1404_v17, %v1401_v21  ;;  %v1414_v51 = vrot.slane %v1412_v14, 4  ;;  %v1420_v50 = vrot.slane %v1418_v3, 5 }
 0x1b9   : > { %v2597_v19 = vrot.slane %v2595_v24, 4  ;;  %v2600_v32 = vrot.slane %v2598_v61, 5  ;;  %v2608_v28 = vshrl.u32 %v11081_v18, 16  ;;  %v8572_v34 = vcombine.low %v2260_v57, %v11081_v18  ;;  %v11095_v21 = vld [vmem:[#allocation2 + $0xb4] sm:$0xf] }
 0x1ba   : > { %3316 = vrot.lane.b32.xlu1 %v8556_v60, %s9391_s15  ;;  %v2604_v43 = vshll.u32 %v11081_v18, 16  ;;  %v2593_v38 = vsel %vm9826_vm10, %v2588_v5, %v2592_v6  ;;  %v1406_v1 = vrot.slane %v1405_v15, 4  ;;  %v1415_v36 = vor.u32 %v1414_v51, %v1410_v33  ;;  %v11101_v57 = vld [vmem:[#allocation2 + $0xb8] sm:$0xf]  ;;  %v11103_v12 = vpop.permute.xlu0 %3226 }
 0x1bb   : > { %v2279_v29 = vld [vmem:[#allocation2 + $0xbc] sm:$0x1]  ;;  %v2601_v53 = vor.u32 %v2600_v32, %v2597_v19  ;;  %v2610_v62 = vrot.slane %v2608_v28, 4  ;;  %v8587_v13 = vcombine.low %v2583_v63, %v2593_v38  ;;  %v2816_v41 = vrot.slane %v11026_v11, 5 }
 0x1bc   : > { %v2606_v47 = vrot.slane %v2604_v43, 5  ;;  %v2614_v48 = vshll.u32 %v2279_v29, 16  ;;  %v3676_v60 = vsel %vm3660_vm3, %v11018_v27, %v10919_v52  ;;  %v1416_v0 = vrot.slane %v1415_v36, 4  ;;  %v11111_v24 = vld [vmem:[#allocation2 + $0xbc] sm:$0x1] }
 0x1bd   : > { %v2602_v6 = vrot.slane %v2601_v53, 4  ;;  %3490 = vrot.lane.b32.xlu0 %v8587_v13, %s9394_s18  ;;  %v2817_v23 = vsel %vm9810_vm5, %v8459_v44, %v2816_v41  ;;  %v2818_v14 = vrot.slane %v2816_v41, 4  ;;  %v2819_v11 = vrot.slane %v11038_v39, 5  ;;  %v2679_v44 = vld [vmem:[#allocation2 + $0xb4] sm:$0xe] }
 0x1be   : > { %3412 = vrot.lane.b32.xlu1 %v8572_v34, %s9390_s14  ;;  %v2611_v17 = vor.u32 %v2610_v62, %v2606_v47  ;;  %v2616_v52 = vrot.slane %v2614_v48, 5  ;;  %v3674_v27 = vsel %vm3660_vm3, %v11049_v59, %v10887_v26  ;;  %v1411_v3 = vsel %vm9826_vm10, %v1406_v1, %v1410_v33  ;;  %v1461_v1 = vld [vmem:[#allocation2 + $0xb4] sm:$0xe]  ;;  %v11132_v41 = vpop.permute.xlu0 %3306 }
 0x1bf   : > { %v2607_v39 = vsel %vm9826_vm10, %v2602_v6, %v2606_v47  ;;  %v1421_v61 = vsel %vm9826_vm10, %v1416_v0, %v1420_v50  ;;  %v2820_v63 = vsel %vm9810_vm5, %v2818_v14, %v2819_v11  ;;  %v3709_v5 = vsel %vm3693_vm4, %v3676_v60, %v10943_v25  ;;  %v11126_v50 = vpop.permute.xlu1 %3148  ;;  %v1460_v6 = vld [vmem:[#allocation2 + $0xa8] sm:$0xe] }
 0x1c0   : > { %v2612_v15 = vrot.slane %v2611_v17, 4  ;;  %v8603_v26 = vcombine.low %v2817_v23, %v2820_v63  ;;  %v1423_v59 = vshrl.u32 %v11095_v21, 16  ;;  %v1426_v33 = vshll.u32 %v11095_v21, 16 }
 0x1c1   : > { %v1432_v51 = vshll.u32 %v11101_v57, 16  ;;  %v1436_v19 = vshrl.u32 %v11101_v57, 16  ;;  %v1442_v32 = vshll.u32 %v11111_v24, 16  ;;  %v8460_v28 = vrot.slane %v2679_v44, 9 }
 0x1c2   : > { %v2617_v34 = vsel %vm9826_vm10, %v2612_v15, %v2616_v52  ;;  %3570 = vrot.lane.b32.xlu0 %v8603_v26, %s9392_s16  ;;  %v1425_v25 = vrot.slane %v1423_v59, 4  ;;  %v1428_v43 = vrot.slane %v1426_v33, 5  ;;  %v2823_v38 = vrot.slane %v11081_v18, 5  ;;  %v471_v15 = vld [vmem:[%s9459_s7 + $0xf0] sm:$0xff] }
 0x1c3   : > { %v8588_v36 = vcombine.low %v2607_v39, %v2617_v34  ;;  %v8493_v53 = vcombine.low %v1411_v3, %v1421_v61  ;;  %v1434_v62 = vrot.slane %v1432_v51, 5  ;;  %v1438_v13 = vrot.slane %v1436_v19, 4  ;;  %v11145_v26 = vpop.permute.xlu1 %3228  ;;  %v472_v51 = vld [vmem:[%s9459_s7 + $0xf8] sm:$0xff]  ;;  %v1653_v19 = vld [vmem:[#allocation2 + $0xb4] sm:$0xf] }
 0x1c4   : > { %v1429_v47 = vor.u32 %v1428_v43, %v1425_v25  ;;  %v2824_v48 = vsel %vm9810_vm5, %v8460_v28, %v2823_v38  ;;  %v2825_v60 = vrot.slane %v2823_v38, 4  ;;  %v2826_v0 = vrot.slane %v2279_v29, 5  ;;  %v11161_v25 = vpop.permute.xlu0 %3402 }
 0x1c5   : > { %3492 = vrot.lane.b32.xlu1 %v8588_v36, %s9394_s18  ;;  %v3707_v18 = vsel %vm3693_vm4, %v3674_v27, %v10907_v58  ;;  %v1439_v23 = vor.u32 %v1438_v13, %v1434_v62  ;;  %v1444_v14 = vrot.slane %v1442_v32, 5  ;;  %v8430_v11 = vrot.slane %v1461_v1, 9  ;;  %v11167_v36 = vld [vmem:[#allocation2 + $0xb8] sm:$0xf] }
 0x1c6   : > { %v1430_v17 = vrot.slane %v1429_v47, 4  ;;  %v2827_v52 = vsel %vm9810_vm5, %v2825_v60, %v2826_v0  ;;  %v1620_v3 = vrot.slane %v11101_v57, 5  ;;  %v1623_v44 = vrot.slane %v11111_v24, 5 }
 0x1c7   : > { %v1440_v39 = vrot.slane %v1439_v23, 4  ;;  %v8604_v29 = vcombine.low %v2824_v48, %v2827_v52  ;;  %v8429_v61 = vrot.slane %v1460_v6, 9  ;;  %v1613_v63 = vrot.slane %v11060_v46, 5  ;;  %v11173_v23 = vld [vmem:[#allocation2 + $0xbc] sm:$0x1] }
 0x1c8   : > { %v1435_v58 = vsel %vm9826_vm10, %v1430_v17, %v1434_v62  ;;  %v1621_v27 = vsel %vm9810_vm5, %v8430_v11, %v1620_v3  ;;  %v1622_v59 = vrot.slane %v1620_v3, 4  ;;  %v1616_v33 = vrot.slane %v11067_v31, 5 }
 0x1c9   : > { %2982 = vrot.lane.b32.xlu1 %v8493_v53, %s9388_s12  ;;  %v1445_v24 = vsel %vm9826_vm10, %v1440_v39, %v1444_v14  ;;  %3572 = vrot.lane.b32.xlu0 %v8604_v29, %s9392_s16  ;;  %v3742_v32 = vsel %vm3726_vm6, %v3709_v5, %v10969_v10  ;;  %v1614_v28 = vsel %vm9810_vm5, %v8429_v61, %v1613_v63  ;;  %v1615_v34 = vrot.slane %v1613_v63, 4  ;;  %v11175_v14 = vpop.permute.xlu1 %3308  ;;  %v1004_v29 = vld [vmem:[#allocation2 + $0xc0] sm:$0xf] }
 0x1ca   : > { %v8494_v43 = vcombine.low %v1435_v58, %v1445_v24  ;;  %v3740_v31 = vsel %vm3726_vm6, %v3707_v18, %v10926_v30  ;;  %v1624_v38 = vsel %vm9810_vm5, %v1622_v59, %v1623_v44  ;;  %v8971_v1 = vpack.c.bf16 %v471_v15, %v471_v15  ;;  %v1008_v59 = vld [vmem:[#allocation2 + $0xc8] sm:$0x1] }
 0x1cb   : > { %v8510_v53 = vcombine.low %v1621_v27, %v1624_v38  ;;  %v1617_v10 = vsel %vm9810_vm5, %v1615_v34, %v1616_v33  ;;  %v8972_v5 = vpack.c.bf16 %v472_v51, %v472_v51  ;;  %v2010_v62 = vshrl.u32 %v1653_v19, 16  ;;  %v11197_v38 = vld [vmem:[#allocation2 + $0xcc] sm:$0xf] }
 0x1cc   : > { %v8509_v13 = vcombine.low %v1614_v28, %v1617_v10  ;;  %v828_v47 = vshrl.u32 %v8971_v1, 16  ;;  %v831_v48 = vshll.u32 %v8971_v1, 16  ;;  %v2013_v60 = vshll.u32 %v1653_v19, 16 }
 0x1cd   : > { %2984 = vrot.lane.b32.xlu1 %v8494_v43, %s9388_s12  ;;  %v836_v0 = vshrl.u32 %v8972_v5, 16  ;;  %v839_v30 = vshll.u32 %v8972_v5, 16  ;;  %v2012_v6 = vrot.slane %v2010_v62, 4  ;;  %v2023_v18 = vshrl.u32 %v11167_v36, 16  ;;  %v11184_v15 = vpop.permute.xlu0 %3482  ;;  %v11204_v5 = vld [vmem:[#allocation2 + $0xd0] sm:$0xf] }
 0x1ce   : > { %3062 = vrot.lane.b32.xlu0 %v8509_v13, %s9387_s11  ;;  %v3775_v11 = vsel %vm3759_vm7, %v3742_v32, %v10995_v22  ;;  %v830_v17 = vrot.slane %v828_v47, 7  ;;  %v2015_v52 = vrot.slane %v2013_v60, 5  ;;  %v8525_v3 = vcombine.low %v1653_v19, %v11167_v36  ;;  %v2071_v32 = vld [vmem:[#allocation2 + $0xb4] sm:$0xe]  ;;  %v9277_v60 = vld [vmem:[#allocation2 + $0x6c] sm:$0xf] }
 0x1cf   : > { %v3773_v44 = vsel %vm3759_vm7, %v3740_v31, %v10958_v20  ;;  %v838_v39 = vrot.slane %v836_v0, 7  ;;  %v2019_v61 = vshll.u32 %v11167_v36, 16  ;;  %v2025_v63 = vrot.slane %v2023_v18, 4  ;;  %v9278_v0 = vld [vmem:[#allocation2 + $0x70] sm:$0xf] }
 0x1d0   : > { %v833_v58 = vor.u32 %v831_v48, %v830_v17  ;;  %v834_v27 = vrot.slane %v830_v17, 4  ;;  %v2016_v33 = vor.u32 %v2015_v52, %v2012_v6  ;;  %v2029_v22 = vshll.u32 %v11173_v23, 16  ;;  %v9279_v17 = vld [vmem:[#allocation2 + $0x60] sm:$0xf]  ;;  %v9280_v52 = vld [vmem:[#allocation2 + $0x64] sm:$0xf] }
 0x1d1   : > { %3064 = vrot.lane.b32.xlu1 %v8510_v53, %s9387_s11  ;;  %v841_v51 = vor.u32 %v839_v30, %v838_v39  ;;  %v3806_v19 = vsel %vm13817_vm8, %v3773_v44, %v10978_v40  ;;  %v843_v20 = vrot.slane %v838_v39, 4  ;;  %v2021_v24 = vrot.slane %v2019_v61, 5 }
 0x1d2   : > { %v1005_v28 = vsel %vm9831_vm14, %v833_v58, %v1004_v29  ;;  %3158 = vrot.lane.b32.xlu0 %v8525_v3, %s9389_s13  ;;  %v3808_v34 = vsel %vm13817_vm8, %v3775_v11, %v11020_v54  ;;  %v2017_v43 = vrot.slane %v2016_v33, 4  ;;  %v3839_v31 = vsel %vm13816_vm12, %v3806_v19, %v11006_v9  ;;  %v11206_v54 = vpop.permute.xlu1 %3404 }
 0x1d3   : > { %v842_v40 = vsel %vm9837_vm15, %v834_v27, %v841_v51  ;;  %1006 = vst [vmem:[#allocation2 + $0xc0] sm:$0xf] %v1005_v28  ;;  %v1009_v1 = vsel %vm9856_vm0, %v843_v20, %v1008_v59  ;;  %v2026_v53 = vor.u32 %v2025_v63, %v2021_v24  ;;  %v2031_v10 = vrot.slane %v2029_v22, 5  ;;  %9069 = vmatprep.mubr.msk.bf16.mxu0 %vm13815_vm13, %v3839_v31  ;;  %v11216_v11 = vpop.permute.xlu0 %3562 }
 0x1d4   : > { %1007 = vst.msk [vmem:[#allocation2 + $0xc4] sm:$0xf] %vm893_vm11, %v842_v40  ;;  %1010 = vst [vmem:[#allocation2 + $0xc8] sm:$0x1] %v1009_v1  ;;  %v2022_v9 = vsel %vm9826_vm10, %v2017_v43, %v2021_v24  ;;  %v8445_v62 = vrot.slane %v2071_v32, 9  ;;  %v2221_v13 = vrot.slane %v11167_v36, 5  ;;  %v8472_v30 = vcombine.low %v9277_v60, %v9278_v0 }
 0x1d5   : > { %v2224_v47 = vrot.slane %v11173_v23, 5  ;;  %v2027_v48 = vrot.slane %v2026_v53, 4  ;;  %v3841_v6 = vsel %vm13816_vm12, %v3808_v34, %v11023_v4  ;;  %v2643_v18 = vshrl.u32 %v11197_v38, 16 }
 0x1d6   : > { %v8471_v3 = vcombine.low %v9279_v17, %v9280_v52  ;;  %v2223_v44 = vrot.slane %v2221_v13, 4  ;;  %v2646_v39 = vshll.u32 %v11197_v38, 16  ;;  %v2656_v36 = vshrl.u32 %v11204_v5, 16  ;;  %9070 = vmatmul.mubr.msk.bf16.gmra.mrb[12].mxu0 %vm13815_vm13, %v3841_v6 }
 0x1d7   : > { %v2032_v23 = vsel %vm9826_vm10, %v2027_v48, %v2031_v10  ;;  %v2222_v4 = vsel %vm9810_vm5, %v8445_v62, %v2221_v13  ;;  %v3608_v63 = vsel %vm3578_vm1, %v8472_v30, %v11073_v49  ;;  %v2645_v58 = vrot.slane %v2643_v18, 4 }
 0x1d8   : > { %v8541_v29 = vcombine.low %v2022_v9, %v2032_v23  ;;  %v2225_v61 = vsel %vm9810_vm5, %v2223_v44, %v2224_v47  ;;  %v2648_v27 = vrot.slane %v2646_v39, 5  ;;  %v11229_v59 = vpop.permute.xlu1 %3484  ;;  %v3605_v22 = vsel %vm3578_vm1, %v8471_v3, %v11040_v55 }
 0x1d9   : > { %v8557_v19 = vcombine.low %v2222_v4, %v2225_v61  ;;  %v2652_v20 = vshll.u32 %v11204_v5, 16  ;;  %v2658_v24 = vrot.slane %v2656_v36, 4  ;;  %v8574_v49 = vcombine.low %v11197_v38, %v11204_v5  ;;  %v4916_v38 = vld [vmem:[#allocation3 + $0x8] sm:$0x1] }
 0x1da   : > { %v1655_v33 = vld [vmem:[#allocation2 + $0xc0] sm:$0xf]  ;;  %3238 = vrot.lane.b32.xlu0 %v8541_v29, %s9393_s17  ;;  %v3647_v31 = vsel %vm3627_vm2, %v3608_v63, %v11090_v16  ;;  %v11239_v40 = vpop.permute.xlu0 %3564  ;;  %v2649_v16 = vor.u32 %v2648_v27, %v2645_v58  ;;  %v11249_v29 = vld [vmem:[#allocation2 + $0xd4] sm:$0x1]  ;;  %v3645_v58 = vsel %vm3627_vm2, %v3605_v22, %v11055_v35 }
 0x1db   : > { %v2072_v51 = vld [vmem:[#allocation2 + $0xc0] sm:$0xe]  ;;  %v1656_v32 = vld [vmem:[#allocation2 + $0xc4] sm:$0xf]  ;;  %v2034_v28 = vshrl.u32 %v1655_v33, 16  ;;  %v2037_v34 = vshll.u32 %v1655_v33, 16 }
 0x1dc   : > { %v1672_v43 = vld [vmem:[#allocation2 + $0xc8] sm:$0x1]  ;;  %v2047_v1 = vshrl.u32 %v1656_v32, 16  ;;  %v8526_v53 = vcombine.low %v1655_v33, %v1656_v32  ;;  %v2043_v55 = vshll.u32 %v1656_v32, 16  ;;  %v2262_v9 = vld [vmem:[#allocation2 + $0xc0] sm:$0xf]  ;;  %v11245_v44 = vpop.permute.xlu1 %2974 }
 0x1dd   : > { %v2053_v10 = vshll.u32 %v1672_v43, 16  ;;  %v2036_v62 = vrot.slane %v2034_v28, 4  ;;  %v2039_v13 = vrot.slane %v2037_v34, 5  ;;  %v8446_v47 = vrot.slane %v2072_v51, 9  ;;  %v11241_v60 = vld [vmem:[#allocation2 + $0xc4] sm:$0xf] }
 0x1de   : > { %v2228_v48 = vrot.slane %v1656_v32, 5  ;;  %3160 = vrot.lane.b32.xlu1 %v8526_v53, %s9389_s13  ;;  %v2045_v0 = vrot.slane %v2043_v55, 5  ;;  %v2049_v30 = vrot.slane %v2047_v1, 4  ;;  %v2231_v6 = vrot.slane %v1672_v43, 5  ;;  %3318 = vrot.lane.b32.xlu0 %v8557_v19, %s9391_s15  ;;  %v11255_v27 = vpop.permute.xlu0 %3054  ;;  %v2280_v34 = vld [vmem:[#allocation2 + $0xc8] sm:$0x1] }
 0x1df   : > { %v2040_v18 = vor.u32 %v2039_v13, %v2036_v62  ;;  %v2055_v17 = vrot.slane %v2053_v10, 5  ;;  %v2619_v3 = vshrl.u32 %v2262_v9, 16  ;;  %v2622_v36 = vshll.u32 %v2262_v9, 16  ;;  %v2680_v62 = vld [vmem:[#allocation2 + $0xc0] sm:$0xe] }
 0x1e0   : > { %v2230_v52 = vrot.slane %v2228_v48, 4  ;;  %v2050_v39 = vor.u32 %v2049_v30, %v2045_v0  ;;  %v2632_v23 = vshrl.u32 %v11241_v60, 16  ;;  %v8573_v4 = vcombine.low %v2262_v9, %v11241_v60  ;;  %v11268_v30 = vpop.permute.xlu1 %2976 }
 0x1e1   : > { %v2041_v61 = vrot.slane %v2040_v18, 4  ;;  %v2229_v63 = vsel %vm9810_vm5, %v8446_v47, %v2228_v48  ;;  %v2621_v33 = vrot.slane %v2619_v3, 4  ;;  %v2624_v32 = vrot.slane %v2622_v36, 5  ;;  %v2681_v3 = vld [vmem:[#allocation2 + $0xcc] sm:$0xe] }
 0x1e2   : > { %v2051_v51 = vrot.slane %v2050_v39, 4  ;;  %v2232_v19 = vsel %vm9810_vm5, %v2230_v52, %v2231_v6  ;;  %3414 = vrot.lane.b32.xlu0 %v8573_v4, %s9390_s14  ;;  %v2654_v28 = vrot.slane %v2652_v20, 5  ;;  %v2662_v1 = vshll.u32 %v11249_v29, 16  ;;  %v11273_v36 = vpop.permute.xlu0 %3150 }
 0x1e3   : > { %v2046_v43 = vsel %vm9826_vm10, %v2041_v61, %v2045_v0  ;;  %v2628_v53 = vshll.u32 %v11241_v60, 16  ;;  %v2634_v55 = vrot.slane %v2632_v23, 4  ;;  %v2650_v22 = vrot.slane %v2649_v16, 4 }
 0x1e4   : > { %v2056_v35 = vsel %vm9826_vm10, %v2051_v51, %v2055_v17  ;;  %v2659_v10 = vor.u32 %v2658_v24, %v2654_v28  ;;  %v2625_v9 = vor.u32 %v2624_v32, %v2621_v33  ;;  %v2638_v48 = vshll.u32 %v2280_v34, 16 }
 0x1e5   : > { %v8542_v13 = vcombine.low %v2046_v43, %v2056_v35  ;;  %v2630_v47 = vrot.slane %v2628_v53, 5  ;;  %v3680_v20 = vsel %vm3660_vm3, %v3647_v31, %v11126_v50  ;;  %v2664_v6 = vrot.slane %v2662_v1, 5 }
 0x1e6   : > { %v2660_v0 = vrot.slane %v2659_v10, 4  ;;  %v2626_v18 = vrot.slane %v2625_v9, 4  ;;  %v3678_v52 = vsel %vm3660_vm3, %v3645_v58, %v11079_v56  ;;  %v8558_v16 = vcombine.low %v2229_v63, %v2232_v19 }
 0x1e7   : > { %3240 = vrot.lane.b32.xlu1 %v8542_v13, %s9393_s17  ;;  %v2635_v24 = vor.u32 %v2634_v55, %v2630_v47  ;;  %v2640_v17 = vrot.slane %v2638_v48, 5  ;;  %v8461_v39 = vrot.slane %v2680_v62, 9  ;;  %v2655_v50 = vsel %vm9826_vm10, %v2650_v22, %v2654_v28 }
 0x1e8   : > { %v2837_v31 = vrot.slane %v11204_v5, 5  ;;  %v3713_v23 = vsel %vm3693_vm4, %v3680_v20, %v11145_v26  ;;  %v3711_v56 = vsel %vm3693_vm4, %v3678_v52, %v11103_v12  ;;  %v2631_v4 = vsel %vm9826_vm10, %v2626_v18, %v2630_v47  ;;  %v5316_v18 = vld [vmem:[#allocation3] sm:$0xe] }
 0x1e9   : > { %v2636_v61 = vrot.slane %v2635_v24, 4  ;;  %v2830_v63 = vrot.slane %v11241_v60, 5  ;;  %v2833_v33 = vrot.slane %v2280_v34, 5  ;;  %v2665_v58 = vsel %vm9826_vm10, %v2660_v0, %v2664_v6  ;;  %v11297_v34 = vpop.permute.xlu1 %3056 }
 0x1ea   : > { %v8462_v51 = vrot.slane %v2681_v3, 9  ;;  %v2840_v19 = vrot.slane %v11249_v29, 5  ;;  %v3746_v32 = vsel %vm3726_vm6, %v3713_v23, %v11175_v14  ;;  %v3744_v60 = vsel %vm3726_vm6, %v3711_v56, %v11132_v41  ;;  %v11309_v41 = vpop.permute.xlu0 %3230 }
 0x1eb   : > { %3320 = vrot.lane.b32.xlu1 %v8558_v16, %s9391_s15  ;;  %v2641_v12 = vsel %vm9826_vm10, %v2636_v61, %v2640_v17  ;;  %v2831_v26 = vsel %vm9810_vm5, %v8461_v39, %v2830_v63  ;;  %v2832_v28 = vrot.slane %v2830_v63, 4  ;;  %v2839_v1 = vrot.slane %v2837_v31, 4  ;;  %v9281_v63 = vld [vmem:[#allocation2 + $0x78] sm:$0xf] }
 0x1ec   : > { %v8589_v43 = vcombine.low %v2631_v4, %v2641_v12  ;;  %v3779_v29 = vsel %vm3759_vm7, %v3746_v32, %v11206_v54  ;;  %v3777_v14 = vsel %vm3759_vm7, %v3744_v60, %v11161_v25  ;;  %v2838_v10 = vsel %vm9810_vm5, %v8462_v51, %v2837_v31 }
 0x1ed   : > { %v2834_v53 = vsel %vm9810_vm5, %v2832_v28, %v2833_v33  ;;  %v3812_v55 = vsel %vm13817_vm8, %v3779_v29, %v11229_v59  ;;  %v3810_v35 = vsel %vm13817_vm8, %v3777_v14, %v11184_v15  ;;  %v8590_v59 = vcombine.low %v2655_v50, %v2665_v58  ;;  %v11321_v15 = vld [vmem:[#allocation3] sm:$0xf]  ;;  %v9282_v33 = vld [vmem:[#allocation2 + $0x7c] sm:$0xf]  ;;  %v9283_v14 = vld [vmem:[#allocation2 + $0x84] sm:$0xf] }
 0x1ee   : > { %3494 = vrot.lane.b32.xlu0 %v8589_v43, %s9394_s18  ;;  %v8605_v22 = vcombine.low %v2831_v26, %v2834_v53  ;;  %v3843_v54 = vsel %vm13816_vm12, %v3810_v35, %v11216_v11  ;;  %v3845_v25 = vsel %vm13816_vm12, %v3812_v55, %v11239_v40  ;;  %v2841_v9 = vsel %vm9810_vm5, %v2839_v1, %v2840_v19  ;;  %v11330_v40 = vld [vmem:[#allocation3 + $0x4] sm:$0xf]  ;;  %v3153_v5 = vpop.permute.xlu1 %3152  ;;  %v3311_v48 = vpop.permute.xlu0 %3310  ;;  %v9284_v53 = vld [vmem:[#allocation2 + $0x88] sm:$0xf] }
 0x1ef   : > { %3416 = vrot.lane.b32.xlu1 %v8574_v49, %s9390_s14  ;;  %9073 = vmatprep.mubr.msk.bf16.mxu0 %vm13815_vm13, %v3843_v54  ;;  %v8477_v11 = vcombine.low %v11051_v2, %v11060_v46  ;;  %v8478_v49 = vcombine.low %v11095_v21, %v11101_v57  ;;  %v4933_v62 = vshrl.u32 %v11321_v15, 16  ;;  %v4936_v13 = vshll.u32 %v11321_v15, 16 }
 0x1f0   : > { %9074 = vmatmul.mubr.msk.bf16.gmra.mrb[16].mxu0 %vm13815_vm13, %v3845_v25  ;;  %v8606_v47 = vcombine.low %v2838_v10, %v2841_v9  ;;  %v4942_v20 = vshll.u32 %v11330_v40, 16  ;;  %v4946_v0 = vshrl.u32 %v11330_v40, 16  ;;  %v4952_v6 = vshll.u32 %v4916_v38, 16 }
 0x1f1   : > { %v4935_v52 = vrot.slane %v4933_v62, 4  ;;  %v4938_v16 = vrot.slane %v4936_v13, 5  ;;  %v5382_v24 = vrot.slane %v11330_v40, 5  ;;  %v8693_v50 = vrot.slane %v5316_v18, 9 }
 0x1f2   : > { %3574 = vrot.lane.b32.xlu0 %v8605_v22, %s9392_s16  ;;  %v4944_v17 = vrot.slane %v4942_v20, 5  ;;  %v4948_v3 = vrot.slane %v4946_v0, 4  ;;  %v4954_v56 = vrot.slane %v4952_v6, 5  ;;  %v5385_v61 = vrot.slane %v4916_v38, 5 }
 0x1f3   : > { %3496 = vrot.lane.b32.xlu1 %v8590_v59, %s9394_s18  ;;  %v4939_v39 = vor.u32 %v4938_v16, %v4935_v52  ;;  %v5384_v4 = vrot.slane %v5382_v24, 4  ;;  %v8473_v58 = vcombine.low %v9281_v63, %v9282_v33  ;;  %v5383_v28 = vsel %vm9810_vm5, %v8693_v50, %v5382_v24  ;;  %v4101_v16 = vld [vmem:[#allocation4 + $0x10] sm:$0xff] }
 0x1f4   : > { %v4949_v23 = vor.u32 %v4948_v3, %v4944_v17  ;;  %v8474_v55 = vcombine.low %v9283_v14, %v9284_v53  ;;  %v4102_v3 = vld [vmem:[#allocation4 + $0x18] sm:$0xff]  ;;  %v4133_v50 = vmul.f32 0.5, %v4101_v16  ;;  %v13818_v14 = vmov 0.0   ;;  %v4779_v16 = vld [vmem:[#allocation3 + $0x18] sm:$0xf] }
 0x1f5   : > { %v4940_v51 = vrot.slane %v4939_v39, 4  ;;  %v3407_v19 = vpop.permute.xlu0 %3406  ;;  %v5386_v60 = vsel %vm9810_vm5, %v5384_v4, %v5385_v61  ;;  %v3611_v43 = vsel %vm3578_vm1, %v8473_v58, %v11245_v44  ;;  %v4134_v63 = vmul.f32 0.5, %v4102_v3 }
 0x1f6   : > { %v4950_v32 = vrot.slane %v4949_v23, 4  ;;  %v8773_v35 = vcombine.low %v5383_v28, %v5386_v60  ;;  %v3649_v22 = vsel %vm3627_vm2, %v3611_v43, %v11255_v27  ;;  %v3614_v59 = vsel %vm3578_vm1, %v8474_v55, %v11268_v30 }
 0x1f7   : > { %3576 = vrot.lane.b32.xlu1 %v8606_v47, %s9392_s16  ;;  %v4945_v12 = vsel %vm9826_vm10, %v4940_v51, %v4944_v17  ;;  %v3682_v25 = vsel %vm3660_vm3, %v3649_v22, %v11273_v36  ;;  %v3651_v27 = vsel %vm3627_vm2, %v3614_v59, %v11297_v34  ;;  %v11385_v17 = vld [vmem:[%s13810_s2] ss:$0 sm:$0xff]  ;;  %v9285_v59 = vld [vmem:[#allocation2 + $0x90] sm:$0xf] }
 0x1f8   : > { %v3233_v31 = vpop.permute.xlu1 %3232  ;;  %v4955_v26 = vsel %vm9826_vm10, %v4950_v32, %v4954_v56  ;;  %v3715_v44 = vsel %vm3693_vm4, %v3682_v25, %v11309_v41  ;;  %v3684_v30 = vsel %vm3660_vm3, %v3651_v27, %v3153_v5  ;;  %v4099_v5 = vld [vmem:[#allocation4] sm:$0xff]  ;;  %v9287_v27 = vld [vmem:[#allocation2 + $0x9c] sm:$0xf] }
 0x1f9   : > { %v8757_v29 = vcombine.low %v4945_v12, %v4955_v26  ;;  %v3748_v10 = vsel %vm3726_vm6, %v3715_v44, %v3311_v48  ;;  %v3717_v41 = vsel %vm3693_vm4, %v3684_v30, %v3233_v31  ;;  %v4100_v31 = vld [vmem:[#allocation4 + $0x8] sm:$0xff]  ;;  %v4131_v56 = vmul.f32 0.5, %v4099_v5  ;;  %v9286_v44 = vld [vmem:[#allocation2 + $0x94] sm:$0xf] }
 0x1fa   : > { %v3781_v38 = vsel %vm3759_vm7, %v3748_v10, %v3407_v19  ;;  %v4132_v51 = vmul.f32 0.5, %v4100_v31  ;;  %v8475_v10 = vcombine.low %v9285_v59, %v9286_v44 }
 0x1fb   : > { %6821 = vrot.lane.b32.xlu0 %v8757_v29, %s9388_s12 }
 0x1fc   : > { %v3313_v1 = vpop.permute.xlu1 %3312 }
 0x1fd   : > { %v3750_v48 = vsel %vm3726_vm6, %v3717_v41, %v3313_v1 }
 0x1ff   : > { %v3487_v54 = vpop.permute.xlu0 %3486  ;;  %6901 = vrot.lane.b32.xlu0 %v8773_v35, %s9387_s11 }
 0x200   : > { %v3409_v9 = vpop.permute.xlu1 %3408  ;;  %v3814_v62 = vsel %vm13817_vm8, %v3781_v38, %v3487_v54 }
 0x201   : > { %v3783_v20 = vsel %vm3759_vm7, %v3750_v48, %v3409_v9 }
 0x205   : > { %v3567_v13 = vpop.permute.xlu0 %3566 }
 0x206   : > { %v3847_v36 = vsel %vm13816_vm12, %v3814_v62, %v3567_v13  ;;  %v9288_v62 = vld [vmem:[#allocation2 + $0xa0] sm:$0xf] }
 0x207   : > { %9077 = vmatprep.mubr.msk.bf16.mxu0 %vm13815_vm13, %v3847_v36  ;;  %v3489_v47 = vpop.permute.xlu1 %3488  ;;  %v8476_v13 = vcombine.low %v9287_v27, %v9288_v62  ;;  %v4109_v27 = vld [vmem:[#allocation4 + $0x50] sm:$0xff] }
 0x208   : > { %v3816_v0 = vsel %vm13817_vm8, %v3783_v20, %v3489_v47 }
 0x20b   : > { %v11376_v18 = vpop.permute.xlu1 %2978 }
 0x20c   : > { %v3569_v6 = vpop.permute.xlu0 %3568 }
 0x20d   : > { %v3849_v34 = vsel %vm13816_vm12, %v3816_v0, %v3569_v6 }
 0x20e   : > { %9078 = vmatmul.mubr.msk.bf16.gmra.mrb[20].mxu0 %vm13815_vm13, %v3849_v34 }
 0x20f   : > { %v11380_v24 = vpop.permute.xlu1 %2980 }
 0x210   : > { %v11378_v52 = vpop.permute.xlu0 %3058 }
 0x213   : > { %v11392_v26 = vpop.permute.xlu1 %3060 }
 0x214   : > { %v11387_v39 = vpop.permute.xlu0 %3154 }
 0x217   : > { %v9059_v23 = vpop.f32.mrb[0].mxu0 }
 0x218   : > { %v3981_v4 = vadd.f32 %v9059_v23, %v11385_v17  ;;  %v3972_v61 = vpop.f32.mrb[1].mxu0  ;;  %v4772_v23 = vld [vmem:[#allocation3 + $0xc] sm:$0xf] }
 0x219   : > { %v3973_v33 = vadd.f32 %v11385_v17, %v3972_v61  ;;  %v9060_v58 = vpop.f32.mrb[2].mxu0 }
 0x21a   : > { %v4165_v19 = vadd.f32 %v4133_v50, %v3981_v4  ;;  %v3984_v32 = vadd.f32 %v9060_v58, %v11385_v17  ;;  %v3975_v12 = vpop.f32.mrb[3].mxu0  ;;  %v3617_v4 = vsel %vm3578_vm1, %v8475_v10, %v11376_v18  ;;  %v4103_v18 = vld [vmem:[#allocation4 + $0x20] sm:$0xff] }
 0x21b   : > { %v4163_v28 = vadd.f32 %v4131_v56, %v3973_v33  ;;  %v3976_v60 = vadd.f32 %v11385_v17, %v3975_v12  ;;  %v3620_v33 = vsel %vm3578_vm1, %v8476_v13, %v11380_v24 }
 0x21c   : > { %v11395_v43 = vpop.permute.xlu0 %3234  ;;  %vm4197_vm9 = vcmp.ge.f32.partialorder %v4165_v19, 1.0  ;;  %v4166_v1 = vadd.f32 %v4134_v63, %v3984_v32  ;;  %v3655_v59 = vsel %vm3627_vm2, %v3620_v33, %v11392_v26 }
 0x21d   : > { %v4229_v29 = vsel %vm4197_vm9, 0.0, %v4165_v19  ;;  %v8631_v53 = vsel %vm4197_vm9, 1.0, %v13818_v14  ;;  %vm4195_vm13 = vcmp.ge.f32.partialorder %v4163_v28, 1.0  ;;  %v4164_v55 = vadd.f32 %v4132_v51, %v3976_v60 }
 0x21e   : > { %4261 = vst.msk [vmem:[#allocation4 + $0x10] sm:$0xff] %vm3578_vm1, %v4229_v29  ;;  %v8975_v35 = vpack.c.bf16 %v8631_v53, %v8631_v53  ;;  %v4227_v22 = vsel %vm4195_vm13, 0.0, %v4163_v28  ;;  %v8629_v54 = vsel %vm4195_vm13, 1.0, %v13818_v14  ;;  %vm4198_vm12 = vcmp.ge.f32.partialorder %v4166_v1, 1.0  ;;  %v3157_v36 = vpop.permute.xlu1 %3156  ;;  %v4783_v28 = vld [vmem:[#allocation3 + $0x20] sm:$0x1] }
 0x21f   : > { %4259 = vst.msk [vmem:[#allocation4] sm:$0xff] %vm3578_vm1, %v4227_v22  ;;  %v8973_v25 = vpack.c.bf16 %v8629_v54, %v8629_v54  ;;  %vm4196_vm8 = vcmp.ge.f32.partialorder %v4164_v55, 1.0  ;;  %v4230_v38 = vsel %vm4198_vm12, 0.0, %v4166_v1  ;;  %v8632_v41 = vsel %vm4198_vm12, 1.0, %v13818_v14  ;;  %v4105_v29 = vld [vmem:[#allocation4 + $0x30] sm:$0xff] }
 0x220   : > { %v4469_v9 = vshrl.u32 %v8975_v35, 16  ;;  %4262 = vst.msk [vmem:[#allocation4 + $0x18] sm:$0xff] %vm3578_vm1, %v4230_v38  ;;  %v4228_v47 = vsel %vm4196_vm8, 0.0, %v4164_v55  ;;  %v11404_v48 = vpop.permute.xlu0 %3314  ;;  %v4472_v0 = vshll.u32 %v8975_v35, 16  ;;  %v8976_v6 = vpack.c.bf16 %v8632_v41, %v8632_v41  ;;  %v4776_v54 = vld [vmem:[#allocation3 + $0x14] sm:$0x1] }
 0x221   : > { %v4452_v30 = vshrl.u32 %v8973_v25, 16  ;;  %4260 = vst.msk [vmem:[#allocation4 + $0x8] sm:$0xff] %vm3578_vm1, %v4228_v47  ;;  %v8630_v34 = vsel %vm4196_vm8, 1.0, %v13818_v14  ;;  %v4455_v3 = vshll.u32 %v8973_v25, 16  ;;  %v3653_v53 = vsel %vm3627_vm2, %v3617_v4, %v11378_v52  ;;  %v4106_v25 = vld [vmem:[#allocation4 + $0x38] sm:$0xff]  ;;  %v4104_v38 = vld [vmem:[#allocation4 + $0x28] sm:$0xff] }
 0x222   : > { %v4471_v20 = vrot.slane %v4469_v9, 7  ;;  %v8974_v50 = vpack.c.bf16 %v8630_v34, %v8630_v34  ;;  %v4477_v56 = vshrl.u32 %v8976_v6, 16  ;;  %v4480_v19 = vshll.u32 %v8976_v6, 16  ;;  %v4107_v41 = vld [vmem:[#allocation4 + $0x40] sm:$0xff]  ;;  %v4110_v47 = vld [vmem:[#allocation4 + $0x58] sm:$0xff] }
 0x223   : > { %v4454_v5 = vrot.slane %v4452_v30, 7  ;;  %v11425_v13 = vmul.f32 0.5, %v4105_v29  ;;  %v11427_v30 = vmul.f32 0.5, %v4103_v18  ;;  %v3686_v26 = vsel %vm3660_vm3, %v3653_v53, %v11387_v39 }
 0x224   : > { %v4474_v31 = vor.u32 %v4472_v0, %v4471_v20  ;;  %v4460_v63 = vshrl.u32 %v8974_v50, 16  ;;  %v4479_v51 = vrot.slane %v4477_v56, 7  ;;  %v4463_v1 = vshll.u32 %v8974_v50, 16  ;;  %v3411_v55 = vpop.permute.xlu0 %3410 }
 0x225   : > { %v4457_v61 = vor.u32 %v4455_v3, %v4454_v5  ;;  %v4475_v24 = vrot.slane %v4471_v20, 4  ;;  %v4458_v44 = vrot.slane %v4454_v5, 4  ;;  %v4108_v20 = vld [vmem:[#allocation4 + $0x48] sm:$0xff]  ;;  %v3688_v5 = vsel %vm3660_vm3, %v3655_v59, %v3157_v36  ;;  %v4113_v36 = vld [vmem:[#allocation4 + $0x70] sm:$0xff] }
 0x226   : > { %v4780_v58 = vsel %vm9831_vm14, %v4474_v31, %v4779_v16  ;;  %v4462_v60 = vrot.slane %v4460_v63, 7  ;;  %v4482_v35 = vor.u32 %v4480_v19, %v4479_v51  ;;  %v4484_v22 = vrot.slane %v4479_v51, 4 }
 0x227   : > { %4781 = vst [vmem:[#allocation3 + $0x18] sm:$0xf] %v4780_v58  ;;  %v4773_v12 = vsel %vm9831_vm14, %v4457_v61, %v4772_v23  ;;  %v11436_v16 = vmul.f32 0.5, %v4106_v25  ;;  %v3719_v3 = vsel %vm3693_vm4, %v3686_v26, %v11395_v43  ;;  %v11442_v39 = vmul.f32 0.5, %v4104_v38 }
 0x228   : > { %v3237_v32 = vpop.permute.xlu1 %3236  ;;  %4774 = vst [vmem:[#allocation3 + $0xc] sm:$0xf] %v4773_v12  ;;  %v4465_v10 = vor.u32 %v4463_v1, %v4462_v60  ;;  %v4467_v9 = vrot.slane %v4462_v60, 4  ;;  %v4483_v62 = vsel %vm9837_vm15, %v4475_v24, %v4482_v35  ;;  %v4784_v52 = vsel %vm9856_vm0, %v4484_v22, %v4783_v28 }
 0x229   : > { %4782 = vst.msk [vmem:[#allocation3 + $0x1c] sm:$0xf] %vm893_vm11, %v4483_v62  ;;  %4785 = vst [vmem:[#allocation3 + $0x20] sm:$0x1] %v4784_v52  ;;  %v11444_v50 = vmul.f32 0.5, %v4109_v27  ;;  %v3752_v31 = vsel %vm3726_vm6, %v3719_v3, %v11404_v48  ;;  %v11448_v23 = vmul.f32 0.5, %v4107_v41  ;;  %v3721_v51 = vsel %vm3693_vm4, %v3688_v5, %v3237_v32 }
 0x22a   : > { %v4466_v6 = vsel %vm9837_vm15, %v4458_v44, %v4465_v10  ;;  %v4777_v34 = vsel %vm9856_vm0, %v4467_v9, %v4776_v54  ;;  %v11450_v56 = vmul.f32 0.5, %v4110_v47  ;;  %v11452_v4 = vmul.f32 0.5, %v4108_v20 }
 0x22b   : > { %4775 = vst.msk [vmem:[#allocation3 + $0x10] sm:$0xf] %vm893_vm11, %v4466_v6  ;;  %4778 = vst [vmem:[#allocation3 + $0x14] sm:$0x1] %v4777_v34  ;;  %v3785_v61 = vsel %vm3759_vm7, %v3752_v31, %v3411_v55  ;;  %v11456_v53 = vmul.f32 0.5, %v4113_v36  ;;  %vm13835_vm8 = vcmask 457728  }
 0x22c   : > { %v3317_v0 = vpop.permute.xlu1 %3316  ;;  %vm13836_vm9 = vcmask 523264   ;;  %vm13837_vm12 = vcmask 588800   ;;  %vm13838_vm13 = vmmov %vm13835_vm8 }
 0x22d   : > { %v3754_v32 = vsel %vm3726_vm6, %v3721_v51, %v3317_v0 }
 0x22e   : > { %v5494_v63 = vld [vmem:[#allocation3 + $0x18] sm:$0xf] }
 0x22f   : > { %v3491_v43 = vpop.permute.xlu0 %3490  ;;  %v6101_v33 = vld [vmem:[#allocation3 + $0x18] sm:$0xf]  ;;  %v5565_v19 = vshrl.u32 %v5494_v63, 16  ;;  %v5568_v12 = vshll.u32 %v5494_v63, 16  ;;  %v5492_v60 = vld [vmem:[#allocation3 + $0xc] sm:$0xf] }
 0x230   : > { %v5925_v58 = vld [vmem:[#allocation3 + $0x18] sm:$0xe]  ;;  %v6150_v28 = vshrl.u32 %v6101_v33, 16  ;;  %v3413_v48 = vpop.permute.xlu1 %3412  ;;  %v6153_v1 = vshll.u32 %v6101_v33, 16  ;;  %v5541_v29 = vshrl.u32 %v5492_v60, 16  ;;  %v5544_v18 = vshll.u32 %v5492_v60, 16 }
 0x231   : > { %v11458_v24 = vrot.slane %v5565_v19, 4  ;;  %v11460_v35 = vrot.slane %v5568_v12, 5  ;;  %v8710_v22 = vrot.slane %v5925_v58, 9  ;;  %v6533_v54 = vld [vmem:[#allocation3 + $0x18] sm:$0xe]  ;;  %v3818_v59 = vsel %vm13835_vm8, %v3785_v61, %v3491_v43  ;;  %vm13839_vm8 = vmmov %vm13836_vm9 }
 0x232   : > { %v11462_v55 = vrot.slane %v6150_v28, 4  ;;  %v5317_v25 = vld [vmem:[#allocation3 + $0xc] sm:$0xe]  ;;  %v11466_v44 = vld [vmem:[#allocation3 + $0x1c] sm:$0xf]  ;;  %v11470_v9 = vrot.slane %v6153_v1, 5  ;;  %v3787_v0 = vsel %vm3759_vm7, %v3754_v32, %v3413_v48 }
 0x233   : > { %v11468_v10 = vld [vmem:[#allocation3 + $0x1c] sm:$0xf]  ;;  %v11472_v38 = vrot.slane %v5541_v29, 4  ;;  %v8790_v62 = vcombine.low %v5494_v63, %v11466_v44  ;;  %v5578_v52 = vshrl.u32 %v11466_v44, 16  ;;  %v11478_v20 = vld [vmem:[#allocation3 + $0x10] sm:$0xf]  ;;  %v5571_v2 = vor.u32 %v11460_v35, %v11458_v24 }
 0x234   : > { %v3571_v27 = vpop.permute.xlu0 %3570  ;;  %v6163_v41 = vshrl.u32 %v11468_v10, 16  ;;  %v8837_v47 = vcombine.low %v6101_v33, %v11468_v10  ;;  %v11480_v26 = vld [vmem:[#allocation3 + $0x20] sm:$0x1]  ;;  %v11484_v34 = vrot.slane %v5544_v18, 5  ;;  %v11489_v31 = vld [vmem:[#allocation3 + $0x10] sm:$0xf]  ;;  %v8789_v36 = vcombine.low %v5492_v60, %v11478_v20 }
 0x235   : > { %v3851_v6 = vsel %vm13836_vm9, %v3818_v59, %v3571_v27  ;;  %v11487_v3 = vld [vmem:[#allocation3 + $0x20] sm:$0x1]  ;;  %6999 = vrot.lane.b32.xlu1 %v8790_v62, %s9389_s13  ;;  %v5997_v61 = vrot.slane %v11466_v44, 5  ;;  %v6000_v43 = vrot.slane %v11480_v26, 5  ;;  %v6599_v63 = vrot.slane %v11468_v10, 5  ;;  %vm13840_vm9 = vmmov %vm13837_vm12 }
 0x236   : > { %9081 = vmatprep.mubr.msk.bf16.mxu0 %vm13837_vm12, %v3851_v6  ;;  %v11497_v33 = vld [vmem:[#allocation3 + $0x14] sm:$0x1]  ;;  %7253 = vrot.lane.b32.xlu0 %v8837_v47, %s9390_s14  ;;  %v8725_v51 = vrot.slane %v6533_v54, 9  ;;  %v6602_v19 = vrot.slane %v11487_v3, 5  ;;  %v8694_v12 = vrot.slane %v5317_v25, 9  ;;  %v5389_v28 = vrot.slane %v11489_v31, 5 }
 0x237   : > { %v3493_v58 = vpop.permute.xlu1 %3492  ;;  %v11502_v48 = vld [vmem:[#allocation3 + $0x1c] sm:$0xf]  ;;  %v5998_v1 = vsel %vm9810_vm5, %v8710_v22, %v5997_v61  ;;  %v5999_v29 = vrot.slane %v5997_v61, 4  ;;  %v5392_v18 = vrot.slane %v11497_v33, 5  ;;  %v11508_v32 = vld [vmem:[#allocation3 + $0x20] sm:$0x1] }
 0x238   : > { %v3820_v60 = vsel %vm13838_vm13, %v3787_v0, %v3493_v58  ;;  %v5318_v59 = vld [vmem:[#allocation3 + $0x18] sm:$0xe]  ;;  %v6600_v54 = vsel %vm9810_vm5, %v8725_v51, %v6599_v63  ;;  %v6601_v27 = vrot.slane %v6599_v63, 4  ;;  %v5390_v25 = vsel %vm9810_vm5, %v8694_v12, %v5389_v28  ;;  %v5924_v6 = vld [vmem:[#allocation3 + $0xc] sm:$0xe] }
 0x239   : > { %v5391_v62 = vrot.slane %v5389_v28, 4  ;;  %v6001_v47 = vsel %vm9810_vm5, %v5999_v29, %v6000_v43  ;;  %v8695_v0 = vrot.slane %v5318_v59, 9  ;;  %v5396_v22 = vrot.slane %v11502_v48, 5  ;;  %v11524_v43 = vld [vmem:[#allocation3 + $0x14] sm:$0x1] }
 0x23a   : > { %v5990_v61 = vrot.slane %v11478_v20, 5  ;;  %6997 = vrot.lane.b32.xlu0 %v8789_v36, %s9389_s13  ;;  %v8822_v14 = vcombine.low %v5998_v1, %v6001_v47  ;;  %v6603_v63 = vsel %vm9810_vm5, %v6601_v27, %v6602_v19  ;;  %v5399_v12 = vrot.slane %v11508_v32, 5 }
 0x23b   : > { %v2983_v58 = vpop.permute.xlu1 %2982  ;;  %v3573_v5 = vpop.permute.xlu0 %3572  ;;  %v5393_v51 = vsel %vm9810_vm5, %v5391_v62, %v5392_v18  ;;  %v8869_v59 = vcombine.low %v6600_v54, %v6603_v63  ;;  %v8709_v36 = vrot.slane %v5924_v6, 9  ;;  %v5397_v1 = vsel %vm9810_vm5, %v8695_v0, %v5396_v22  ;;  %v11554_v0 = vld [vmem:[#allocation3 + $0x18] sm:$0xf] }
 0x23c   : > { %v3623_v28 = vsel %vm3578_vm1, %v8477_v11, %v2983_v58  ;;  %v3853_v29 = vsel %vm13839_vm8, %v3820_v60, %v3573_v5  ;;  %7159 = vrot.lane.b32.xlu1 %v8822_v14, %s9391_s15  ;;  %v8774_v19 = vcombine.low %v5390_v25, %v5393_v51  ;;  %v5398_v18 = vrot.slane %v5396_v22, 4 }
 0x23d   : > { %9082 = vmatmul.mubr.msk.bf16.gmra.mrb[24].mxu0 %vm13840_vm9, %v3853_v29  ;;  %v5992_v27 = vrot.slane %v5990_v61, 4  ;;  %v5993_v62 = vrot.slane %v11524_v43, 5  ;;  %v5574_v46 = vshll.u32 %v11466_v44, 16  ;;  %v5580_v11 = vrot.slane %v5578_v52, 4 }
 0x23e   : > { %7413 = vrot.lane.b32.xlu0 %v8869_v59, %s9392_s16  ;;  %v5400_v14 = vsel %vm9810_vm5, %v5398_v18, %v5399_v12  ;;  %v5584_v60 = vshll.u32 %v11480_v26, 16  ;;  %v6156_v54 = vor.u32 %v11470_v9, %v11462_v55  ;;  %v6159_v25 = vshll.u32 %v11468_v10, 16 }
 0x23f   : > { %v2985_v5 = vpop.permute.xlu1 %2984  ;;  %v5991_v44 = vsel %vm9810_vm5, %v8709_v36, %v5990_v61  ;;  %v5994_v52 = vsel %vm9810_vm5, %v5992_v27, %v5993_v62  ;;  %v5572_v47 = vrot.slane %v5571_v2, 4  ;;  %v8775_v55 = vcombine.low %v5397_v1, %v5400_v14 }
 0x240   : > { %v3626_v24 = vsel %vm3578_vm1, %v8478_v49, %v2985_v5  ;;  %v3063_v35 = vpop.permute.xlu0 %3062  ;;  %6903 = vrot.lane.b32.xlu1 %v8774_v19, %s9387_s11  ;;  %v8821_v9 = vcombine.low %v5991_v44, %v5994_v52  ;;  %v5576_v22 = vrot.slane %v5574_v46, 5  ;;  %v6157_v21 = vrot.slane %v6156_v54, 4 }
 0x241   : > { %v3657_v26 = vsel %vm3627_vm2, %v3623_v28, %v3063_v35  ;;  %v6161_v57 = vrot.slane %v6159_v25, 5  ;;  %v6165_v49 = vrot.slane %v6163_v41, 4  ;;  %v6169_v6 = vshll.u32 %v11487_v3, 16 }
 0x242   : > { %6905 = vrot.lane.b32.xlu0 %v8775_v55, %s9387_s11  ;;  %v5581_v58 = vor.u32 %v5580_v11, %v5576_v22  ;;  %v5586_v63 = vrot.slane %v5584_v60, 5  ;;  %v4981_v51 = vshrl.u32 %v11554_v0, 16  ;;  %v4984_v12 = vshll.u32 %v11554_v0, 16 }
 0x243   : > { %v3065_v61 = vpop.permute.xlu1 %3064  ;;  %v5577_v59 = vsel %vm9826_vm10, %v5572_v47, %v5576_v22  ;;  %v6162_v10 = vsel %vm9826_vm10, %v6157_v21, %v6161_v57  ;;  %v6166_v41 = vor.u32 %v6165_v49, %v6161_v57  ;;  %v6171_v36 = vrot.slane %v6169_v6, 5 }
 0x244   : > { %v11565_v28 = vsel %vm3627_vm2, %v3626_v24, %v3065_v61  ;;  %v3159_v29 = vpop.permute.xlu0 %3158  ;;  %v5582_v3 = vrot.slane %v5581_v58, 4  ;;  %v4983_v19 = vrot.slane %v4981_v51, 4  ;;  %v4986_v1 = vrot.slane %v4984_v12, 5 }
 0x245   : > { %v6167_v18 = vrot.slane %v6166_v41, 4  ;;  %v4990_v27 = vshll.u32 %v11502_v48, 16  ;;  %v4994_v62 = vshrl.u32 %v11502_v48, 16  ;;  %v5000_v2 = vshll.u32 %v11508_v32, 16 }
 0x246   : > { %v3690_v46 = vsel %vm3660_vm3, %v3657_v26, %v3159_v29  ;;  %7157 = vrot.lane.b32.xlu0 %v8821_v9, %s9391_s15  ;;  %v5587_v5 = vsel %vm9826_vm10, %v5582_v3, %v5586_v63  ;;  %v4987_v14 = vor.u32 %v4986_v1, %v4983_v19  ;;  %v5547_v60 = vor.u32 %v11484_v34, %v11472_v38 }
 0x247   : > { %v9063_v11 = vpop.f32.mrb[4].mxu0  ;;  %v6172_v24 = vsel %vm9826_vm10, %v6167_v18, %v6171_v36  ;;  %v11583_v35 = vrot.slane %v4990_v27, 5  ;;  %v5550_v32 = vshll.u32 %v11478_v20, 16  ;;  %v11587_v47 = vcombine.low %v5577_v59, %v5587_v5 }
 0x248   : > { %v3997_v54 = vadd.f32 %v9063_v11, %v11385_v17  ;;  %v3988_v25 = vpop.f32.mrb[5].mxu0  ;;  %v11589_v26 = vrot.slane %v4987_v14, 4  ;;  %v4996_v55 = vrot.slane %v4994_v62, 4  ;;  %v11593_v22 = vcombine.low %v6162_v10, %v6172_v24 }
 0x249   : > { %v3989_v44 = vadd.f32 %v11385_v17, %v3988_v25  ;;  %v9064_v52 = vpop.f32.mrb[6].mxu0  ;;  %v11595_v21 = vrot.slane %v5000_v2, 5  ;;  %v11603_v61 = vrot.slane %v5547_v60, 4  ;;  %v11607_v51 = vrot.slane %v5550_v32, 5 }
 0x24a   : > { %v4169_v38 = vadd.f32 %v11425_v13, %v3997_v54  ;;  %v4000_v34 = vadd.f32 %v9064_v52, %v11385_v17  ;;  %v3991_v9 = vpop.f32.mrb[7].mxu0  ;;  %v4993_v6 = vsel %vm9826_vm10, %v11589_v26, %v11583_v35  ;;  %v4997_v63 = vor.u32 %v4996_v55, %v11583_v35 }
 0x24b   : > { %v4167_v57 = vadd.f32 %v11427_v30, %v3989_v44  ;;  %v3992_v49 = vadd.f32 %v11385_v17, %v3991_v9  ;;  %v13841_v29 = vmov 0.0   ;;  %v13842_v17 = vshrl.u32 %v11478_v20, 16 }
 0x24c   : > { %v3239_v58 = vpop.permute.xlu0 %3238  ;;  %vm4201_vm12 = vcmp.ge.f32.partialorder %v4169_v38, 1.0  ;;  %v4170_v13 = vadd.f32 %v11436_v16, %v4000_v34  ;;  %v4998_v11 = vrot.slane %v4997_v63, 4  ;;  %v4797_v63 = vld [vmem:[#allocation3 + $0x38] sm:$0x1] }
 0x24d   : > { %v4233_v12 = vsel %vm4201_vm12, 0.0, %v4169_v38  ;;  %v8635_v30 = vsel %vm4201_vm12, 1.0, %v13841_v29  ;;  %vm4199_vm13 = vcmp.ge.f32.partialorder %v4167_v57, 1.0  ;;  %v5556_v59 = vrot.slane %v13842_v17, 4  ;;  %v4786_v38 = vld [vmem:[#allocation3 + $0x24] sm:$0xf] }
 0x24e   : > { %4265 = vst.msk [vmem:[#allocation4 + $0x30] sm:$0xff] %vm3578_vm1, %v4233_v12  ;;  %v8979_v10 = vpack.c.bf16 %v8635_v30, %v8635_v30  ;;  %v4231_v41 = vsel %vm4199_vm13, 0.0, %v4167_v57  ;;  %v8633_v3 = vsel %vm4199_vm13, 1.0, %v13841_v29  ;;  %vm4202_vm8 = vcmp.ge.f32.partialorder %v4170_v13, 1.0 }
 0x24f   : > { %4263 = vst.msk [vmem:[#allocation4 + $0x20] sm:$0xff] %vm3578_vm1, %v4231_v41  ;;  %v8977_v16 = vpack.c.bf16 %v8633_v3, %v8633_v3  ;;  %v4234_v36 = vsel %vm4202_vm8, 0.0, %v4170_v13  ;;  %v8636_v19 = vsel %vm4202_vm8, 1.0, %v13841_v29  ;;  %v4168_v1 = vadd.f32 %v11442_v39, %v3992_v49  ;;  %v4793_v39 = vld [vmem:[#allocation3 + $0x30] sm:$0xf] }
 0x250   : > { %v3161_v18 = vpop.permute.xlu1 %3160  ;;  %v3723_v27 = vsel %vm3693_vm4, %v3690_v46, %v3239_v58  ;;  %v3319_v20 = vpop.permute.xlu0 %3318  ;;  %v4503_v62 = vshrl.u32 %v8979_v10, 16  ;;  %4266 = vst.msk [vmem:[#allocation4 + $0x38] sm:$0xff] %vm3578_vm1, %v4234_v36  ;;  %v8980_v2 = vpack.c.bf16 %v8636_v19, %v8636_v19  ;;  %v4506_v60 = vshll.u32 %v8979_v10, 16  ;;  %v11632_v41 = vld [vmem:[#allocation3 + $0xc] sm:$0xf] }
 0x251   : > { %v3692_v5 = vsel %vm3660_vm3, %v11565_v28, %v3161_v18  ;;  %v3756_v14 = vsel %vm3726_vm6, %v3723_v27, %v3319_v20  ;;  %v4486_v54 = vshrl.u32 %v8977_v16, 16  ;;  %v4489_v24 = vshll.u32 %v8977_v16, 16 }
 0x252   : > { %v4505_v25 = vrot.slane %v4503_v62, 7  ;;  %v4511_v35 = vshrl.u32 %v8980_v2, 16  ;;  %vm4200_vm9 = vcmp.ge.f32.partialorder %v4168_v1, 1.0  ;;  %v4514_v46 = vshll.u32 %v8980_v2, 16  ;;  %v4790_v62 = vld [vmem:[#allocation3 + $0x2c] sm:$0x1] }
 0x253   : > { %v4488_v32 = vrot.slane %v4486_v54, 7  ;;  %v4232_v44 = vsel %vm4200_vm9, 0.0, %v4168_v1  ;;  %v8634_v52 = vsel %vm4200_vm9, 1.0, %v13841_v29  ;;  %v5003_v9 = vsel %vm9826_vm10, %v4998_v11, %v11595_v21 }
 0x254   : > { %v3415_v26 = vpop.permute.xlu0 %3414  ;;  %v4508_v55 = vor.u32 %v4506_v60, %v4505_v25  ;;  %v4513_v34 = vrot.slane %v4511_v35, 7  ;;  %4264 = vst.msk [vmem:[#allocation4 + $0x28] sm:$0xff] %vm3578_vm1, %v4232_v44  ;;  %v8978_v28 = vpack.c.bf16 %v8634_v52, %v8634_v52  ;;  %v4509_v49 = vrot.slane %v4505_v25, 4  ;;  %v4111_v25 = vld [vmem:[#allocation4 + $0x60] sm:$0xff] }
 0x255   : > { %v11628_v57 = vsel %vm3759_vm7, %v3756_v14, %v3415_v26  ;;  %v4491_v58 = vor.u32 %v4489_v24, %v4488_v32  ;;  %v4492_v13 = vrot.slane %v4488_v32, 4  ;;  %v11636_v16 = vcombine.low %v4993_v6, %v5003_v9 }
 0x256   : > { %v4794_v12 = vsel %vm9831_vm14, %v4508_v55, %v4793_v39  ;;  %v4516_v30 = vor.u32 %v4514_v46, %v4513_v34  ;;  %v4518_v17 = vrot.slane %v4513_v34, 4  ;;  %v4494_v10 = vshrl.u32 %v8978_v28, 16  ;;  %v4114_v46 = vld [vmem:[#allocation4 + $0x78] sm:$0xff] }
 0x257   : > { %4795 = vst [vmem:[#allocation3 + $0x30] sm:$0xf] %v4794_v12  ;;  %v4787_v3 = vsel %vm9831_vm14, %v4491_v58, %v4786_v38  ;;  %v4497_v21 = vshll.u32 %v8978_v28, 16  ;;  %v5557_v36 = vor.u32 %v5556_v59, %v11607_v51  ;;  %v5560_v27 = vshll.u32 %v11524_v43, 16 }
 0x258   : > { %4788 = vst [vmem:[#allocation3 + $0x24] sm:$0xf] %v4787_v3  ;;  %v4517_v19 = vsel %vm9837_vm15, %v4509_v49, %v4516_v30  ;;  %v4798_v1 = vsel %vm9856_vm0, %v4518_v17, %v4797_v63  ;;  %v4496_v18 = vrot.slane %v4494_v10, 7  ;;  %v4957_v6 = vshrl.u32 %v11632_v41, 16 }
 0x259   : > { %v3241_v20 = vpop.permute.xlu1 %3240  ;;  %4796 = vst.msk [vmem:[#allocation3 + $0x34] sm:$0xf] %vm893_vm11, %v4517_v19  ;;  %4799 = vst [vmem:[#allocation3 + $0x38] sm:$0x1] %v4798_v1  ;;  %v5558_v2 = vrot.slane %v5557_v36, 4  ;;  %v4960_v59 = vshll.u32 %v11632_v41, 16  ;;  %v5553_v54 = vsel %vm9826_vm10, %v11603_v61, %v11607_v51 }
 0x25a   : > { %v4966_v11 = vshll.u32 %v11489_v31, 16  ;;  %v4499_v14 = vor.u32 %v4497_v21, %v4496_v18  ;;  %v4501_v60 = vrot.slane %v4496_v18, 4  ;;  %v5562_v43 = vrot.slane %v5560_v27, 5 }
 0x25b   : > { %v3725_v24 = vsel %vm3693_vm4, %v3692_v5, %v3241_v20  ;;  %v11653_v35 = vrot.slane %v4957_v6, 4  ;;  %v11655_v39 = vrot.slane %v4960_v59, 5  ;;  %v4970_v32 = vshrl.u32 %v11489_v31, 16 }
 0x25c   : > { %v4500_v44 = vsel %vm9837_vm15, %v4492_v13, %v4499_v14  ;;  %v4791_v52 = vsel %vm9856_vm0, %v4501_v60, %v4790_v62  ;;  %v5563_v61 = vsel %vm9826_vm10, %v5558_v2, %v5562_v43  ;;  %v4976_v51 = vshll.u32 %v11497_v33, 16 }
 0x25d   : > { %v3321_v26 = vpop.permute.xlu1 %3320  ;;  %4789 = vst.msk [vmem:[#allocation3 + $0x28] sm:$0xf] %vm893_vm11, %v4500_v44  ;;  %4792 = vst [vmem:[#allocation3 + $0x2c] sm:$0x1] %v4791_v52  ;;  %v11666_v5 = vcombine.low %v5553_v54, %v5563_v61  ;;  %v11668_v55 = vrot.slane %v4966_v11, 5  ;;  %v4972_v38 = vrot.slane %v4970_v32, 4  ;;  %v4963_v58 = vor.u32 %v11655_v39, %v11653_v35 }
 0x25e   : > { %v11670_v34 = vmul.f32 0.5, %v4111_v25  ;;  %v3758_v28 = vsel %vm3726_vm6, %v3725_v24, %v3321_v26  ;;  %v5498_v9 = vld [vmem:[#allocation3 + $0x30] sm:$0xf]  ;;  %v11675_v13 = vrot.slane %v4976_v51, 5  ;;  %v11677_v33 = vmul.f32 0.5, %v4114_v46 }
 0x25f   : > { %v6105_v49 = vld [vmem:[#allocation3 + $0x30] sm:$0xf]  ;;  %v5613_v63 = vshrl.u32 %v5498_v9, 16  ;;  %v5616_v12 = vshll.u32 %v5498_v9, 16  ;;  %v11679_v10 = vld [vmem:[#allocation3 + $0x24] sm:$0xf]  ;;  %v4973_v11 = vor.u32 %v4972_v38, %v11668_v55 }
 0x260   : > { %v6198_v30 = vshrl.u32 %v6105_v49, 16  ;;  %v6201_v17 = vshll.u32 %v6105_v49, 16  ;;  %v3495_v3 = vpop.permute.xlu0 %3494  ;;  %v11681_v21 = vld [vmem:[#allocation3 + $0x34] sm:$0xf]  ;;  %v6174_v19 = vshrl.u32 %v11679_v10, 16  ;;  %v6177_v1 = vshll.u32 %v11679_v10, 16 }
 0x261   : > { %v11683_v36 = vld [vmem:[#allocation3 + $0x34] sm:$0xf]  ;;  %v3417_v20 = vpop.permute.xlu1 %3416  ;;  %v11691_v62 = vrot.slane %v5613_v63, 4  ;;  %v11693_v2 = vrot.slane %v5616_v12, 5  ;;  %v8792_v6 = vcombine.low %v5498_v9, %v11681_v21  ;;  %v11696_v59 = vld [vmem:[#allocation3 + $0x24] sm:$0xf] }
 0x262   : > { %vm13843_vm12 = vcmask 457728   ;;  %v5626_v60 = vshrl.u32 %v11681_v21, 16  ;;  %v11702_v54 = vrot.slane %v6198_v30, 4  ;;  %v11704_v43 = vrot.slane %v6201_v17, 5  ;;  %v11713_v32 = vld [vmem:[#allocation3 + $0x38] sm:$0x1] }
 0x263   : > { %v3822_v14 = vsel %vm13843_vm12, %v11628_v57, %v3495_v3  ;;  %7003 = vrot.lane.b32.xlu1 %v8792_v6, %s9389_s13  ;;  %v8839_v24 = vcombine.low %v6105_v49, %v11683_v36  ;;  %v11709_v35 = vrot.slane %v6174_v19, 4  ;;  %v11711_v39 = vrot.slane %v6177_v1, 5  ;;  %v6535_v46 = vld [vmem:[#allocation3 + $0x30] sm:$0xe]  ;;  %v11729_v12 = vld [vmem:[#allocation3 + $0x38] sm:$0x1]  ;;  %vm13845_vm8 = vmmov %vm13843_vm12 }
 0x264   : > { %v3791_v57 = vsel %vm3759_vm7, %v3758_v28, %v3417_v20  ;;  %v3575_v44 = vpop.permute.xlu0 %3574  ;;  %v11716_v52 = vld [vmem:[#allocation3 + $0x28] sm:$0xf]  ;;  %v5589_v51 = vshrl.u32 %v11696_v59, 16  ;;  %v5592_v26 = vshll.u32 %v11696_v59, 16  ;;  %v5619_v38 = vor.u32 %v11693_v2, %v11691_v62  ;;  %v5927_v30 = vld [vmem:[#allocation3 + $0x30] sm:$0xe] }
 0x265   : > { %v11718_v61 = vld [vmem:[#allocation3 + $0x28] sm:$0xf]  ;;  %v3497_v9 = vpop.permute.xlu1 %3496  ;;  %vm13844_vm13 = vcmask 523264   ;;  %7257 = vrot.lane.b32.xlu0 %v8839_v24, %s9390_s14  ;;  %v8838_v28 = vcombine.low %v11679_v10, %v11716_v52  ;;  %vm13846_vm9 = vcmask 588800   ;;  %v11740_v6 = vld [vmem:[#allocation3 + $0x34] sm:$0xf] }
 0x266   : > { %v3855_v49 = vsel %vm13844_vm13, %v3822_v14, %v3575_v44  ;;  %v3824_v3 = vsel %vm13845_vm8, %v3791_v57, %v3497_v9  ;;  %v11735_v19 = vrot.slane %v5589_v51, 4  ;;  %v11737_v1 = vrot.slane %v5592_v26, 5  ;;  %v11747_v44 = vld [vmem:[#allocation3 + $0x38] sm:$0x1]  ;;  %v5320_v27 = vld [vmem:[#allocation3 + $0x30] sm:$0xe]  ;;  %vm13847_vm12 = vmmov %vm13844_vm13 }
 0x267   : > { %9085 = vmatprep.mubr.msk.bf16.mxu0 %vm13846_vm9, %v3855_v49  ;;  %7079 = vrot.lane.b32.xlu1 %v11587_v47, %s9393_s17  ;;  %v8791_v10 = vcombine.low %v11696_v59, %v11718_v61  ;;  %v4964_v14 = vrot.slane %v4963_v58, 4  ;;  %v4974_v24 = vrot.slane %v4973_v11, 4  ;;  %v6613_v57 = vrot.slane %v11683_v36, 5  ;;  %vm13848_vm13 = vmmov %vm13846_vm9  ;;  %v11772_v17 = vld [vmem:[#allocation3 + $0x2c] sm:$0x1] }
 0x268   : > { %v8727_v51 = vrot.slane %v6535_v46, 9  ;;  %v6616_v26 = vrot.slane %v11713_v32, 5  ;;  %v8712_v9 = vrot.slane %v5927_v30, 9  ;;  %v6011_v49 = vrot.slane %v11681_v21, 5  ;;  %v11760_v46 = vld [vmem:[#allocation3 + $0x28] sm:$0xf] }
 0x269   : > { %v3577_v18 = vpop.permute.xlu1 %3576  ;;  %7333 = vrot.lane.b32.xlu0 %v11593_v22, %s9394_s18  ;;  %v4969_v47 = vsel %vm9826_vm10, %v4964_v14, %v11668_v55  ;;  %v4979_v58 = vsel %vm9826_vm10, %v4974_v24, %v11675_v13  ;;  %v6615_v59 = vrot.slane %v6613_v57, 4  ;;  %v6014_v11 = vrot.slane %v11729_v12, 5  ;;  %v5319_v30 = vld [vmem:[#allocation3 + $0x24] sm:$0xe] }
 0x26a   : > { %v3857_v63 = vsel %vm13847_vm12, %v3824_v3, %v3577_v18  ;;  %v8758_v20 = vcombine.low %v4969_v47, %v4979_v58  ;;  %v6614_v22 = vsel %vm9810_vm5, %v8727_v51, %v6613_v57  ;;  %v6013_v25 = vrot.slane %v6011_v49, 4  ;;  %v11774_v18 = vld [vmem:[#allocation3 + $0x2c] sm:$0x1]  ;;  %v6534_v51 = vld [vmem:[#allocation3 + $0x24] sm:$0xe] }
 0x26b   : > { %9086 = vmatmul.mubr.msk.bf16.gmra.mrb[28].mxu0 %vm13848_vm13, %v3857_v63  ;;  %7255 = vrot.lane.b32.xlu1 %v8838_v28, %s9390_s14  ;;  %v6617_v55 = vsel %vm9810_vm5, %v6615_v59, %v6616_v26  ;;  %v6012_v13 = vsel %vm9810_vm5, %v8712_v9, %v6011_v49  ;;  %v8697_v14 = vrot.slane %v5320_v27, 9  ;;  %v5410_v24 = vrot.slane %v11740_v6, 5  ;;  %v5926_v47 = vld [vmem:[#allocation3 + $0x24] sm:$0xe] }
 0x26c   : > { %v6015_v3 = vsel %vm9810_vm5, %v6013_v25, %v6014_v11  ;;  %v5413_v63 = vrot.slane %v11747_v44, 5  ;;  %v8696_v57 = vrot.slane %v5319_v30, 9  ;;  %v5403_v28 = vrot.slane %v11760_v46, 5  ;;  %v11789_v30 = vld [vmem:[#allocation3 + $0x2c] sm:$0x1] }
 0x26d   : > { %7001 = vrot.lane.b32.xlu0 %v8791_v10, %s9389_s13  ;;  %v8871_v26 = vcombine.low %v6614_v22, %v6617_v55  ;;  %v8824_v9 = vcombine.low %v6012_v13, %v6015_v3  ;;  %v5411_v27 = vsel %vm9810_vm5, %v8697_v14, %v5410_v24  ;;  %v5412_v49 = vrot.slane %v5410_v24, 4 }
 0x26e   : > { %v11785_v58 = vsel %vm9810_vm5, %v8696_v57, %v5403_v28  ;;  %v5405_v25 = vrot.slane %v5403_v28, 4  ;;  %v5406_v59 = vrot.slane %v11772_v17, 5  ;;  %v6606_v11 = vrot.slane %v11716_v52, 5 }
 0x26f   : > { %6825 = vrot.lane.b32.xlu1 %v11636_v16, %s9388_s12  ;;  %v5414_v10 = vsel %vm9810_vm5, %v5412_v49, %v5413_v63  ;;  %v8726_v22 = vrot.slane %v6534_v51, 9  ;;  %v6609_v55 = vrot.slane %v11774_v18, 5  ;;  %v6004_v13 = vrot.slane %v11718_v61, 5 }
 0x270   : > { %v8777_v14 = vcombine.low %v5411_v27, %v5414_v10  ;;  %v5407_v24 = vsel %vm9810_vm5, %v5405_v25, %v5406_v59  ;;  %v6608_v3 = vrot.slane %v6606_v11, 4  ;;  %v8711_v57 = vrot.slane %v5926_v47, 9  ;;  %v4892_v25 = vld [vmem:[#allocation3 + $0x30] sm:$0xf] }
 0x271   : > { %7077 = vrot.lane.b32.xlu0 %v11666_v5, %s9393_s17  ;;  %v8776_v28 = vcombine.low %v11785_v58, %v5407_v24  ;;  %v6607_v16 = vsel %vm9810_vm5, %v8726_v22, %v6606_v11  ;;  %v6006_v63 = vrot.slane %v6004_v13, 4  ;;  %v6007_v51 = vrot.slane %v11789_v30, 5  ;;  %v4112_v22 = vld [vmem:[#allocation4 + $0x68] sm:$0xff] }
 0x272   : > { %v6610_v49 = vsel %vm9810_vm5, %v6608_v3, %v6609_v55  ;;  %v11809_v27 = vsel %vm9810_vm5, %v8711_v57, %v6004_v13  ;;  %v5622_v47 = vshll.u32 %v11681_v21, 16  ;;  %v5628_v5 = vrot.slane %v5626_v60, 4 }
 0x273   : > { %6823 = vrot.lane.b32.xlu1 %v8758_v20, %s9388_s12  ;;  %v8870_v58 = vcombine.low %v6607_v16, %v6610_v49  ;;  %v11817_v59 = vsel %vm9810_vm5, %v6006_v63, %v6007_v51  ;;  %v5620_v11 = vrot.slane %v5619_v38, 4  ;;  %v5632_v10 = vshll.u32 %v11729_v12, 16 }
 0x274   : > { %v5624_v55 = vrot.slane %v5622_v47, 5  ;;  %v13849_v21 = vor.u32 %v11704_v43, %v11702_v54  ;;  %v6207_v13 = vshll.u32 %v11683_v36, 16  ;;  %v13850_v20 = vshrl.u32 %v11683_v36, 16 }
 0x275   : > { %7417 = vrot.lane.b32.xlu0 %v8871_v26, %s9392_s16  ;;  %v8823_v3 = vcombine.low %v11809_v27, %v11817_v59  ;;  %v5634_v62 = vrot.slane %v5632_v10, 5  ;;  %v6217_v2 = vshll.u32 %v11713_v32, 16  ;;  %v5029_v38 = vshrl.u32 %v4892_v25, 16 }
 0x276   : > { %v6205_v60 = vrot.slane %v13849_v21, 4  ;;  %v6213_v24 = vrot.slane %v13850_v20, 4  ;;  %v5629_v12 = vor.u32 %v5628_v5, %v5624_v55  ;;  %v6209_v57 = vrot.slane %v6207_v13, 5  ;;  %v11843_v5 = vld [vmem:[%s13810_s2] ss:$0 sm:$0xff] }
 0x277   : > { %v11833_v16 = vmul.f32 0.5, %v4112_v22  ;;  %v5032_v54 = vshll.u32 %v4892_v25, 16  ;;  %7163 = vrot.lane.b32.xlu1 %v8824_v9, %s9391_s15  ;;  %v5625_v36 = vsel %vm9826_vm10, %v5620_v11, %v5624_v55  ;;  %v5031_v43 = vrot.slane %v5029_v38, 4 }
 0x278   : > { %v5038_v26 = vshll.u32 %v11740_v6, 16  ;;  %v5042_v63 = vshrl.u32 %v11740_v6, 16  ;;  %v9067_v51 = vpop.f32.mrb[8].mxu0  ;;  %v5630_v49 = vrot.slane %v5629_v12, 4  ;;  %v6214_v47 = vor.u32 %v6213_v24, %v6209_v57 }
 0x279   : > { %v6219_v32 = vrot.slane %v6217_v2, 5  ;;  %v5034_v10 = vrot.slane %v5032_v54, 5  ;;  %v4013_v9 = vadd.f32 %v11843_v5, %v9067_v51  ;;  %v4004_v25 = vpop.f32.mrb[9].mxu0  ;;  %6909 = vrot.lane.b32.xlu0 %v8777_v14, %s9387_s11  ;;  %v6210_v11 = vsel %vm9826_vm10, %v6205_v60, %v6209_v57 }
 0x27a   : > { %v11849_v22 = vrot.slane %v5038_v26, 5  ;;  %v5044_v6 = vrot.slane %v5042_v63, 4  ;;  %v4005_v55 = vadd.f32 %v11843_v5, %v4004_v25  ;;  %v9068_v21 = vpop.f32.mrb[10].mxu0  ;;  %v5635_v13 = vsel %vm9826_vm10, %v5630_v49, %v5634_v62 }
 0x27b   : > { %v6215_v20 = vrot.slane %v6214_v47, 4  ;;  %v5035_v24 = vor.u32 %v5034_v10, %v5031_v43  ;;  %v4173_v2 = vadd.f32 %v11444_v50, %v4013_v9  ;;  %v4016_v38 = vadd.f32 %v11843_v5, %v9068_v21  ;;  %v4007_v12 = vpop.f32.mrb[11].mxu0  ;;  %6907 = vrot.lane.b32.xlu1 %v8776_v28, %s9387_s11 }
 0x27c   : > { %v11857_v14 = vcombine.low %v5625_v36, %v5635_v13  ;;  %v5048_v60 = vshll.u32 %v11747_v44, 16  ;;  %v4171_v57 = vadd.f32 %v11448_v23, %v4005_v55  ;;  %v4008_v54 = vadd.f32 %v11843_v5, %v4007_v12 }
 0x27d   : > { %v6220_v62 = vsel %vm9826_vm10, %v6215_v20, %v6219_v32  ;;  %v5045_v43 = vor.u32 %v5044_v6, %v11849_v22  ;;  %vm4205_vm8 = vcmp.ge.f32.partialorder %v4173_v2, 1.0  ;;  %v4174_v50 = vadd.f32 %v11450_v56, %v4016_v38  ;;  %7415 = vrot.lane.b32.xlu0 %v8870_v58, %s9392_s16 }
 0x27e   : > { %v11867_v26 = vcombine.low %v6210_v11, %v6220_v62  ;;  %v11869_v28 = vrot.slane %v5035_v24, 4  ;;  %v4237_v36 = vsel %vm4205_vm8, 0.0, %v4173_v2  ;;  %v8639_v44 = vsel %vm4205_vm8, 1.0, %v13841_v29  ;;  %v4807_v2 = vld [vmem:[#allocation3 + $0x48] sm:$0xf] }
 0x27f   : > { %vm4203_vm9 = vcmp.ge.f32.partialorder %v4171_v57, 1.0  ;;  %v4172_v23 = vadd.f32 %v11452_v4, %v4008_v54  ;;  %4269 = vst.msk [vmem:[#allocation4 + $0x50] sm:$0xff] %vm3578_vm1, %v4237_v36  ;;  %v8983_v63 = vpack.c.bf16 %v8639_v44, %v8639_v44  ;;  %vm4206_vm12 = vcmp.ge.f32.partialorder %v4174_v50, 1.0  ;;  %v4811_v44 = vld [vmem:[#allocation3 + $0x50] sm:$0x1] }
 0x280   : > { %v4235_v51 = vsel %vm4203_vm9, 0.0, %v4171_v57  ;;  %v8637_v49 = vsel %vm4203_vm9, 1.0, %v13841_v29  ;;  %v4238_v58 = vsel %vm4206_vm12, 0.0, %v4174_v50  ;;  %v8640_v47 = vsel %vm4206_vm12, 1.0, %v13841_v29  ;;  %v4800_v57 = vld [vmem:[#allocation3 + $0x3c] sm:$0xf] }
 0x281   : > { %4267 = vst.msk [vmem:[#allocation4 + $0x40] sm:$0xff] %vm3578_vm1, %v4235_v51  ;;  %v8981_v56 = vpack.c.bf16 %v8637_v49, %v8637_v49  ;;  %vm4204_vm13 = vcmp.ge.f32.partialorder %v4172_v23, 1.0  ;;  %v4537_v32 = vshrl.u32 %v8983_v63, 16  ;;  %4270 = vst.msk [vmem:[#allocation4 + $0x58] sm:$0xff] %vm3578_vm1, %v4238_v58  ;;  %v8984_v10 = vpack.c.bf16 %v8640_v47, %v8640_v47  ;;  %7161 = vrot.lane.b32.xlu0 %v8823_v3, %s9391_s15  ;;  %v4804_v49 = vld [vmem:[#allocation3 + $0x44] sm:$0x1] }
 0x282   : > { %v4236_v9 = vsel %vm4204_vm13, 0.0, %v4172_v23  ;;  %v5046_v4 = vrot.slane %v5045_v43, 4  ;;  %v4540_v25 = vshll.u32 %v8983_v63, 16  ;;  %v8638_v55 = vsel %vm4204_vm13, 1.0, %v13841_v29 }
 0x283   : > { %v4520_v11 = vshrl.u32 %v8981_v56, 16  ;;  %v4523_v6 = vshll.u32 %v8981_v56, 16  ;;  %4268 = vst.msk [vmem:[#allocation4 + $0x48] sm:$0xff] %vm3578_vm1, %v4236_v9  ;;  %v4539_v21 = vrot.slane %v4537_v32, 7  ;;  %v4545_v13 = vshrl.u32 %v8984_v10, 16 }
 0x284   : > { %v8982_v20 = vpack.c.bf16 %v8638_v55, %v8638_v55  ;;  %v5041_v24 = vsel %vm9826_vm10, %v11869_v28, %v11849_v22  ;;  %v5050_v27 = vrot.slane %v5048_v60, 5  ;;  %v5595_v59 = vor.u32 %v11737_v1, %v11735_v19 }
 0x285   : > { %v4522_v38 = vrot.slane %v4520_v11, 7  ;;  %v5598_v3 = vshll.u32 %v11718_v61, 16  ;;  %v4542_v12 = vor.u32 %v4540_v25, %v4539_v21  ;;  %v4547_v54 = vrot.slane %v4545_v13, 7 }
 0x286   : > { %v4548_v62 = vshll.u32 %v8984_v10, 16  ;;  %v4528_v43 = vshrl.u32 %v8982_v20, 16  ;;  %v4543_v50 = vrot.slane %v4539_v21, 4  ;;  %v4531_v23 = vshll.u32 %v8982_v20, 16  ;;  %v11913_v21 = vld [vmem:[#allocation3 + $0x24] sm:$0xf] }
 0x287   : > { %v4525_v36 = vor.u32 %v4523_v6, %v4522_v38  ;;  %v5051_v22 = vsel %vm9826_vm10, %v5046_v4, %v5050_v27  ;;  %v4808_v60 = vsel %vm9831_vm14, %v4542_v12, %v4807_v2  ;;  %v4552_v63 = vrot.slane %v4547_v54, 4 }
 0x288   : > { %v4550_v28 = vor.u32 %v4548_v62, %v4547_v54  ;;  %v4530_v19 = vrot.slane %v4528_v43, 7  ;;  %4809 = vst [vmem:[#allocation3 + $0x48] sm:$0xf] %v4808_v60  ;;  %v4526_v1 = vrot.slane %v4522_v38, 4  ;;  %v11897_v56 = vrot.slane %v5595_v59, 4 }
 0x289   : > { %v4801_v51 = vsel %vm9831_vm14, %v4525_v36, %v4800_v57  ;;  %v11899_v58 = vrot.slane %v5598_v3, 5  ;;  %v4812_v32 = vsel %vm9856_vm0, %v4552_v63, %v4811_v44  ;;  %v11906_v4 = vcombine.low %v5041_v24, %v5051_v22 }
 0x28a   : > { %4802 = vst [vmem:[#allocation3 + $0x3c] sm:$0xf] %v4801_v51  ;;  %v4551_v47 = vsel %vm9837_vm15, %v4543_v50, %v4550_v28  ;;  %v4533_v10 = vor.u32 %v4531_v23, %v4530_v19  ;;  %v4535_v9 = vrot.slane %v4530_v19, 4  ;;  %4813 = vst [vmem:[#allocation3 + $0x50] sm:$0x1] %v4812_v32  ;;  %v13851_v25 = vshrl.u32 %v11718_v61, 16  ;;  %v6822_v61 = vpop.permute.xlu0 %6821 }
 0x28b   : > { %4810 = vst.msk [vmem:[#allocation3 + $0x4c] sm:$0xf] %vm893_vm11, %v4551_v47  ;;  %v5608_v6 = vshll.u32 %v11789_v30, 16  ;;  %v6180_v55 = vor.u32 %v11711_v39, %v11709_v35  ;;  %v6183_v2 = vshll.u32 %v11716_v52, 16  ;;  %v13852_v24 = vshrl.u32 %v11716_v52, 16 }
 0x28c   : > { %v5604_v11 = vrot.slane %v13851_v25, 4  ;;  %v4534_v13 = vsel %vm9837_vm15, %v4526_v1, %v4533_v10  ;;  %v4805_v20 = vsel %vm9856_vm0, %v4535_v9, %v4804_v49  ;;  %v5601_v35 = vsel %vm9826_vm10, %v11897_v56, %v11899_v58 }
 0x28d   : > { %v6189_v38 = vrot.slane %v13852_v24, 4  ;;  %4803 = vst.msk [vmem:[#allocation3 + $0x40] sm:$0xf] %vm893_vm11, %v4534_v13  ;;  %4806 = vst [vmem:[#allocation3 + $0x44] sm:$0x1] %v4805_v20  ;;  %v11928_v30 = vrot.slane %v6180_v55, 4  ;;  %v13853_v22 = vcombine.low %v11321_v15, %v11330_v40 }
 0x28e   : > { %v5605_v39 = vor.u32 %v5604_v11, %v11899_v58  ;;  %v6193_v27 = vshll.u32 %v11774_v18, 16  ;;  %v5610_v59 = vrot.slane %v5608_v6, 5  ;;  %v11931_v3 = vrot.slane %v6183_v2, 5  ;;  %v6902_v15 = vpop.permute.xlu0 %6901 }
 0x28f   : > { %v5005_v52 = vshrl.u32 %v11913_v21, 16  ;;  %v5008_v12 = vshll.u32 %v11913_v21, 16  ;;  %v5014_v62 = vshll.u32 %v11760_v46, 16  ;;  %v5018_v43 = vshrl.u32 %v11760_v46, 16  ;;  %v5502_v50 = vld [vmem:[#allocation3 + $0x48] sm:$0xf] }
 0x290   : > { %v5606_v57 = vrot.slane %v5605_v39, 4  ;;  %v6195_v54 = vrot.slane %v6193_v27, 5  ;;  %v6109_v36 = vld [vmem:[#allocation3 + $0x48] sm:$0xf]  ;;  %v6186_v18 = vsel %vm9826_vm10, %v11928_v30, %v11931_v3  ;;  %v6190_v44 = vor.u32 %v6189_v38, %v11931_v3 }
 0x291   : > { %v5024_v23 = vshll.u32 %v11772_v17, 16  ;;  %v7447_v60 = vsel %vm3578_vm1, %v13853_v22, %v6822_v61  ;;  %v5661_v28 = vshrl.u32 %v5502_v50, 16  ;;  %v5664_v63 = vshll.u32 %v5502_v50, 16  ;;  %v11947_v51 = vld [vmem:[#allocation3 + $0x3c] sm:$0xf] }
 0x292   : > { %v6246_v19 = vshrl.u32 %v6109_v36, 16  ;;  %v6249_v1 = vshll.u32 %v6109_v36, 16  ;;  %v11949_v49 = vld [vmem:[#allocation3 + $0x4c] sm:$0xf]  ;;  %v6222_v32 = vshrl.u32 %v11947_v51, 16  ;;  %v6225_v10 = vshll.u32 %v11947_v51, 16 }
 0x293   : > { %v11951_v47 = vld [vmem:[#allocation3 + $0x4c] sm:$0xf]  ;;  %v5611_v17 = vsel %vm9826_vm10, %v5606_v57, %v5610_v59  ;;  %v11959_v9 = vrot.slane %v5661_v28, 4  ;;  %v11961_v25 = vrot.slane %v5664_v63, 5  ;;  %v8794_v11 = vcombine.low %v5502_v50, %v11949_v49  ;;  %v5500_v6 = vld [vmem:[#allocation3 + $0x3c] sm:$0xf] }
 0x294   : > { %v6537_v55 = vld [vmem:[#allocation3 + $0x48] sm:$0xe]  ;;  %v11965_v21 = vsel %vm3627_vm2, %v7447_v60, %v6902_v15  ;;  %v5674_v13 = vshrl.u32 %v11949_v49, 16  ;;  %v11968_v20 = vrot.slane %v6246_v19, 4  ;;  %v11970_v2 = vrot.slane %v6249_v1, 5 }
 0x295   : > { %v8841_v24 = vcombine.low %v6109_v36, %v11951_v47  ;;  %v11973_v38 = vld [vmem:[#allocation3 + $0x40] sm:$0xf]  ;;  %7007 = vrot.lane.b32.xlu1 %v8794_v11, %s9389_s13  ;;  %v6259_v61 = vshrl.u32 %v11951_v47, 16  ;;  %v11980_v27 = vrot.slane %v6222_v32, 4  ;;  %v11985_v3 = vrot.slane %v6225_v10, 5 }
 0x296   : > { %v8840_v30 = vcombine.low %v11947_v51, %v11973_v38  ;;  %v11982_v59 = vld [vmem:[#allocation3 + $0x40] sm:$0xf]  ;;  %v5637_v57 = vshrl.u32 %v5500_v6, 16  ;;  %v5640_v50 = vshll.u32 %v5500_v6, 16  ;;  %v11988_v22 = vld [vmem:[#allocation3 + $0x50] sm:$0x1] }
 0x297   : > { %7261 = vrot.lane.b32.xlu0 %v8841_v24, %s9390_s14  ;;  %v5650_v36 = vshrl.u32 %v11982_v59, 16  ;;  %v8793_v60 = vcombine.low %v5500_v6, %v11982_v59  ;;  %v6191_v28 = vrot.slane %v6190_v44, 4  ;;  %v8729_v63 = vrot.slane %v6537_v55, 9  ;;  %v11997_v15 = vld [vmem:[#allocation3 + $0x4c] sm:$0xf] }
 0x298   : > { %v6627_v19 = vrot.slane %v11951_v47, 5  ;;  %v11992_v1 = vrot.slane %v5637_v57, 4  ;;  %v11994_v51 = vrot.slane %v5640_v50, 5  ;;  %v6630_v32 = vrot.slane %v11988_v22, 5  ;;  %v12008_v24 = vld [vmem:[#allocation3 + $0x50] sm:$0x1] }
 0x299   : > { %v5007_v10 = vrot.slane %v5005_v52, 4  ;;  %7083 = vrot.lane.b32.xlu1 %v11857_v14, %s9393_s17  ;;  %v8807_v44 = vcombine.low %v5601_v35, %v5611_v17  ;;  %v6196_v11 = vsel %vm9826_vm10, %v6191_v28, %v6195_v54  ;;  %v5010_v55 = vrot.slane %v5008_v12, 5  ;;  %v5322_v57 = vld [vmem:[#allocation3 + $0x48] sm:$0xe]  ;;  %v12019_v28 = vld [vmem:[#allocation3 + $0x50] sm:$0x1] }
 0x29a   : > { %v6629_v6 = vrot.slane %v6627_v19, 4  ;;  %v8854_v52 = vcombine.low %v6186_v18, %v6196_v11  ;;  %v6628_v14 = vsel %vm9810_vm5, %v8729_v63, %v6627_v19  ;;  %v5016_v50 = vrot.slane %v5014_v62, 5  ;;  %v5929_v58 = vld [vmem:[#allocation3 + $0x48] sm:$0xe]  ;;  %v6536_v63 = vld [vmem:[#allocation3 + $0x3c] sm:$0xe] }
 0x29b   : > { %7337 = vrot.lane.b32.xlu0 %v11867_v26, %s9394_s18  ;;  %v5020_v56 = vrot.slane %v5018_v43, 4  ;;  %v5011_v54 = vor.u32 %v5010_v55, %v5007_v10  ;;  %v5026_v12 = vrot.slane %v5024_v23, 5  ;;  %v5424_v17 = vrot.slane %v11997_v15, 5  ;;  %v5928_v39 = vld [vmem:[#allocation3 + $0x3c] sm:$0xe] }
 0x29c   : > { %v6631_v35 = vsel %vm9810_vm5, %v6629_v6, %v6630_v32  ;;  %v8699_v18 = vrot.slane %v5322_v57, 9  ;;  %v5427_v11 = vrot.slane %v12008_v24, 5  ;;  %v8714_v43 = vrot.slane %v5929_v58, 9  ;;  %v12024_v32 = vld [vmem:[#allocation3 + $0x44] sm:$0x1] }
 0x29d   : > { %v8873_v40 = vcombine.low %v6628_v14, %v6631_v35  ;;  %v5021_v26 = vor.u32 %v5020_v56, %v5016_v50  ;;  %7259 = vrot.lane.b32.xlu1 %v8840_v30, %s9390_s14  ;;  %v5012_v46 = vrot.slane %v5011_v54, 4  ;;  %v5426_v62 = vrot.slane %v5424_v17, 4  ;;  %v12033_v57 = vld [vmem:[#allocation3 + $0x40] sm:$0xf]  ;;  %v5321_v35 = vld [vmem:[#allocation3 + $0x3c] sm:$0xe] }
 0x29e   : > { %v6025_v19 = vrot.slane %v11949_v49, 5  ;;  %v12029_v10 = vsel %vm9810_vm5, %v8699_v18, %v5424_v17  ;;  %v6028_v6 = vrot.slane %v12019_v28, 5  ;;  %v6620_v55 = vrot.slane %v11973_v38, 5 }
 0x29f   : > { %7005 = vrot.lane.b32.xlu0 %v8793_v60, %s9389_s13  ;;  %v5022_v23 = vrot.slane %v5021_v26, 4  ;;  %v5017_v30 = vsel %vm9826_vm10, %v5012_v46, %v5016_v50  ;;  %v5428_v14 = vsel %vm9810_vm5, %v5426_v62, %v5427_v11  ;;  %v8728_v58 = vrot.slane %v6536_v63, 9  ;;  %v12039_v60 = vld [vmem:[#allocation3 + $0x44] sm:$0x1] }
 0x2a0   : > { %v6027_v56 = vrot.slane %v6025_v19, 4  ;;  %v8779_v17 = vcombine.low %v12029_v10, %v5428_v14  ;;  %v12046_v26 = vsel %vm9810_vm5, %v8714_v43, %v6025_v19  ;;  %v6622_v18 = vrot.slane %v6620_v55, 4  ;;  %v12059_v46 = vld [vmem:[#allocation3 + $0x44] sm:$0x1] }
 0x2a1   : > { %v5027_v54 = vsel %vm9826_vm10, %v5022_v23, %v5026_v12  ;;  %6829 = vrot.lane.b32.xlu1 %v11906_v4, %s9388_s12  ;;  %v12056_v63 = vsel %vm9810_vm5, %v8728_v58, %v6620_v55  ;;  %v6623_v12 = vrot.slane %v12024_v32, 5  ;;  %v8698_v43 = vrot.slane %v5321_v35, 9 }
 0x2a2   : > { %v8760_v50 = vcombine.low %v5017_v30, %v5027_v54  ;;  %v12052_v11 = vsel %vm9810_vm5, %v6027_v56, %v6028_v6  ;;  %v5417_v4 = vrot.slane %v12033_v57, 5  ;;  %v5420_v19 = vrot.slane %v12039_v60, 5 }
 0x2a3   : > { %7081 = vrot.lane.b32.xlu0 %v8807_v44, %s9393_s17  ;;  %v8826_v62 = vcombine.low %v12046_v26, %v12052_v11  ;;  %v6624_v23 = vsel %vm9810_vm5, %v6622_v18, %v6623_v12  ;;  %v8713_v10 = vrot.slane %v5928_v39, 9  ;;  %v6018_v6 = vrot.slane %v11982_v59, 5  ;;  %v4118_v12 = vld [vmem:[#allocation4 + $0x98] sm:$0xff] }
 0x2a4   : > { %v5667_v55 = vor.u32 %v11961_v25, %v11959_v9  ;;  %v8872_v30 = vcombine.low %v12056_v63, %v6624_v23  ;;  %v5419_v44 = vrot.slane %v5417_v4, 4  ;;  %v6021_v14 = vrot.slane %v12059_v46, 5  ;;  %v4115_v63 = vld [vmem:[#allocation4 + $0x80] sm:$0xff] }
 0x2a5   : > { %v5670_v56 = vshll.u32 %v11949_v49, 16  ;;  %7335 = vrot.lane.b32.xlu1 %v8854_v52, %s9394_s18  ;;  %v12077_v58 = vsel %vm9810_vm5, %v8698_v43, %v5417_v4  ;;  %v6020_v35 = vrot.slane %v6018_v6, 4  ;;  %v5676_v54 = vrot.slane %v5674_v13, 4  ;;  %v4117_v13 = vld [vmem:[#allocation4 + $0x90] sm:$0xff]  ;;  %v4116_v4 = vld [vmem:[#allocation4 + $0x88] sm:$0xff] }
 0x2a6   : > { %v5668_v39 = vrot.slane %v5667_v55, 4  ;;  %v5421_v9 = vsel %vm9810_vm5, %v5419_v44, %v5420_v19  ;;  %v5680_v26 = vshll.u32 %v12019_v28, 16  ;;  %v6252_v52 = vor.u32 %v11970_v2, %v11968_v20 }
 0x2a7   : > { %7421 = vrot.lane.b32.xlu0 %v8873_v40, %s9392_s16  ;;  %v5672_v25 = vrot.slane %v5670_v56, 5  ;;  %v12089_v18 = vsel %vm9810_vm5, %v8713_v10, %v6018_v6  ;;  %v12093_v11 = vsel %vm9810_vm5, %v6020_v35, %v6021_v14  ;;  %v6255_v49 = vshll.u32 %v11951_v47, 16  ;;  %v4896_v10 = vld [vmem:[#allocation3 + $0x48] sm:$0xf] }
 0x2a8   : > { %v6261_v40 = vrot.slane %v6259_v61, 4  ;;  %v8778_v28 = vcombine.low %v12077_v58, %v5421_v9  ;;  %v8825_v20 = vcombine.low %v12089_v18, %v12093_v11  ;;  %v5682_v19 = vrot.slane %v5680_v26, 5 }
 0x2a9   : > { %v5673_v2 = vsel %vm9826_vm10, %v5668_v39, %v5672_v25  ;;  %v5677_v43 = vor.u32 %v5676_v54, %v5672_v25  ;;  %6827 = vrot.lane.b32.xlu1 %v8760_v50, %s9388_s12  ;;  %v12104_v23 = vrot.slane %v6252_v52, 4  ;;  %v12106_v47 = vrot.slane %v6255_v49, 5  ;;  %v9071_v6 = vpop.f32.mrb[12].mxu0 }
 0x2aa   : > { %v6265_v61 = vshll.u32 %v11988_v22, 16  ;;  %v12110_v44 = vmul.f32 0.5, %v4117_v13  ;;  %v12112_v14 = vmul.f32 0.5, %v4115_v63  ;;  %v12114_v56 = vmul.f32 0.5, %v4118_v12  ;;  %v4020_v58 = vpop.f32.mrb[13].mxu0 }
 0x2ab   : > { %6913 = vrot.lane.b32.xlu0 %v8779_v17, %s9387_s11  ;;  %v5678_v55 = vrot.slane %v5677_v43, 4  ;;  %v4029_v50 = vadd.f32 %v11843_v5, %v9071_v6  ;;  %v6258_v35 = vsel %vm9826_vm10, %v12104_v23, %v12106_v47  ;;  %v6262_v22 = vor.u32 %v6261_v40, %v12106_v47  ;;  %v9072_v54 = vpop.f32.mrb[14].mxu0 }
 0x2ac   : > { %v12122_v39 = vmul.f32 0.5, %v4116_v4  ;;  %v4021_v17 = vadd.f32 %v11843_v5, %v4020_v58  ;;  %v5077_v25 = vshrl.u32 %v4896_v10, 16  ;;  %v5080_v26 = vshll.u32 %v4896_v10, 16  ;;  %v4023_v11 = vpop.f32.mrb[15].mxu0 }
 0x2ad   : > { %v5683_v9 = vsel %vm9826_vm10, %v5678_v55, %v5682_v19  ;;  %v4177_v52 = vadd.f32 %v11456_v53, %v4029_v50  ;;  %v4032_v18 = vadd.f32 %v11843_v5, %v9072_v54  ;;  %7167 = vrot.lane.b32.xlu1 %v8826_v62, %s9391_s15  ;;  %v6263_v49 = vrot.slane %v6262_v22, 4 }
 0x2ae   : > { %v6267_v13 = vrot.slane %v6265_v61, 5  ;;  %v4175_v40 = vadd.f32 %v11670_v34, %v4021_v17  ;;  %v4024_v63 = vadd.f32 %v11843_v5, %v4023_v11  ;;  %v12133_v12 = vcombine.low %v5673_v2, %v5683_v9 }
 0x2af   : > { %7419 = vrot.lane.b32.xlu0 %v8872_v30, %s9392_s16  ;;  %v5079_v43 = vrot.slane %v5077_v25, 4  ;;  %vm4209_vm8 = vcmp.ge.f32.partialorder %v4177_v52, 1.0  ;;  %v4178_v4 = vadd.f32 %v11677_v33, %v4032_v18  ;;  %v5082_v19 = vrot.slane %v5080_v26, 5 }
 0x2b0   : > { %v6268_v53 = vsel %vm9826_vm10, %v6263_v49, %v6267_v13  ;;  %v4241_v23 = vsel %vm4209_vm8, 0.0, %v4177_v52  ;;  %v8643_v62 = vsel %vm4209_vm8, 1.0, %v13841_v29  ;;  %vm4207_vm9 = vcmp.ge.f32.partialorder %v4175_v40, 1.0 }
 0x2b1   : > { %v4176_v34 = vadd.f32 %v11833_v16, %v4024_v63  ;;  %4273 = vst.msk [vmem:[#allocation4 + $0x70] sm:$0xff] %vm3578_vm1, %v4241_v23  ;;  %v8987_v47 = vpack.c.bf16 %v8643_v62, %v8643_v62  ;;  %v4239_v30 = vsel %vm4207_vm9, 0.0, %v4175_v40  ;;  %v8641_v2 = vsel %vm4207_vm9, 1.0, %v13841_v29  ;;  %6911 = vrot.lane.b32.xlu1 %v8778_v28, %s9387_s11  ;;  %v4814_v40 = vld [vmem:[#allocation3 + $0x54] sm:$0xf] }
 0x2b2   : > { %vm4210_vm12 = vcmp.ge.f32.partialorder %v4178_v4, 1.0  ;;  %4271 = vst.msk [vmem:[#allocation4 + $0x60] sm:$0xff] %vm3578_vm1, %v4239_v30  ;;  %v8985_v33 = vpack.c.bf16 %v8641_v2, %v8641_v2  ;;  %v5086_v50 = vshll.u32 %v11997_v15, 16  ;;  %v12150_v26 = vcombine.low %v6258_v35, %v6268_v53  ;;  %v4825_v30 = vld [vmem:[#allocation3 + $0x68] sm:$0x1] }
 0x2b3   : > { %v4242_v61 = vsel %vm4210_vm12, 0.0, %v4178_v4  ;;  %v8644_v10 = vsel %vm4210_vm12, 1.0, %v13841_v29  ;;  %vm4208_vm13 = vcmp.ge.f32.partialorder %v4176_v34, 1.0  ;;  %7165 = vrot.lane.b32.xlu0 %v8825_v20, %s9391_s15  ;;  %v4571_v6 = vshrl.u32 %v8987_v47, 16  ;;  %v4821_v20 = vld [vmem:[#allocation3 + $0x60] sm:$0xf] }
 0x2b4   : > { %4274 = vst.msk [vmem:[#allocation4 + $0x78] sm:$0xff] %vm3578_vm1, %v4242_v61  ;;  %v8988_v16 = vpack.c.bf16 %v8644_v10, %v8644_v10  ;;  %v4240_v55 = vsel %vm4208_vm13, 0.0, %v4176_v34  ;;  %v4574_v58 = vshll.u32 %v8987_v47, 16  ;;  %v4554_v22 = vshrl.u32 %v8985_v33, 16 }
 0x2b5   : > { %v4557_v17 = vshll.u32 %v8985_v33, 16  ;;  %4272 = vst.msk [vmem:[#allocation4 + $0x68] sm:$0xff] %vm3578_vm1, %v4240_v55  ;;  %v8642_v28 = vsel %vm4208_vm13, 1.0, %v13841_v29  ;;  %v4573_v54 = vrot.slane %v4571_v6, 7  ;;  %v5083_v11 = vor.u32 %v5082_v19, %v5079_v43  ;;  %v4818_v43 = vld [vmem:[#allocation3 + $0x5c] sm:$0x1] }
 0x2b6   : > { %v4579_v9 = vshrl.u32 %v8988_v16, 16  ;;  %v8986_v25 = vpack.c.bf16 %v8642_v28, %v8642_v28  ;;  %v4556_v52 = vrot.slane %v4554_v22, 7  ;;  %v4582_v18 = vshll.u32 %v8988_v16, 16  ;;  %v12158_v16 = vpop.permute.xlu0 %7253 }
 0x2b7   : > { %v5090_v49 = vshrl.u32 %v11997_v15, 16  ;;  %v4576_v13 = vor.u32 %v4574_v58, %v4573_v54  ;;  %v5088_v23 = vrot.slane %v5086_v50, 5  ;;  %v4577_v62 = vrot.slane %v4573_v54, 4 }
 0x2b8   : > { %v4581_v63 = vrot.slane %v4579_v9, 7  ;;  %v4562_v4 = vshrl.u32 %v8986_v25, 16  ;;  %v4559_v34 = vor.u32 %v4557_v17, %v4556_v52  ;;  %v4560_v47 = vrot.slane %v4556_v52, 4 }
 0x2b9   : > { %v4565_v2 = vshll.u32 %v8986_v25, 16  ;;  %v4822_v35 = vsel %vm9831_vm14, %v4576_v13, %v4821_v20  ;;  %v5084_v19 = vrot.slane %v5083_v11, 4  ;;  %v5092_v10 = vrot.slane %v5090_v49, 4 }
 0x2ba   : > { %v4584_v53 = vor.u32 %v4582_v18, %v4581_v63  ;;  %v4586_v33 = vrot.slane %v4581_v63, 4  ;;  %v4564_v61 = vrot.slane %v4562_v4, 7  ;;  %4823 = vst [vmem:[#allocation3 + $0x60] sm:$0xf] %v4822_v35  ;;  %v4815_v15 = vsel %vm9831_vm14, %v4559_v34, %v4814_v40  ;;  %v6998_v4 = vpop.permute.xlu0 %6997 }
 0x2bb   : > { %v5096_v6 = vshll.u32 %v12008_v24, 16  ;;  %4816 = vst [vmem:[#allocation3 + $0x54] sm:$0xf] %v4815_v15  ;;  %v5093_v17 = vor.u32 %v5092_v10, %v5088_v23  ;;  %v5643_v54 = vor.u32 %v11994_v51, %v11992_v1  ;;  %v5646_v24 = vshll.u32 %v11982_v59, 16 }
 0x2bc   : > { %v4585_v55 = vsel %vm9837_vm15, %v4577_v62, %v4584_v53  ;;  %v4826_v50 = vsel %vm9856_vm0, %v4586_v33, %v4825_v30  ;;  %v4567_v58 = vor.u32 %v4565_v2, %v4564_v61  ;;  %v4569_v22 = vrot.slane %v4564_v61, 4 }
 0x2bd   : > { %4824 = vst.msk [vmem:[#allocation3 + $0x64] sm:$0xf] %vm893_vm11, %v4585_v55  ;;  %4827 = vst [vmem:[#allocation3 + $0x68] sm:$0x1] %v4826_v50  ;;  %v5098_v28 = vrot.slane %v5096_v6, 5  ;;  %v12174_v20 = vrot.slane %v5650_v36, 4  ;;  %v6228_v51 = vor.u32 %v11985_v3, %v11980_v27  ;;  %v5089_v49 = vsel %vm9826_vm10, %v5084_v19, %v5088_v23 }
 0x2be   : > { %v4568_v9 = vsel %vm9837_vm15, %v4560_v47, %v4567_v58  ;;  %v4819_v25 = vsel %vm9856_vm0, %v4569_v22, %v4818_v43  ;;  %v5656_v52 = vshll.u32 %v12059_v46, 16  ;;  %v5094_v18 = vrot.slane %v5093_v17, 4 }
 0x2bf   : > { %4817 = vst.msk [vmem:[#allocation3 + $0x58] sm:$0xf] %vm893_vm11, %v4568_v9  ;;  %4820 = vst [vmem:[#allocation3 + $0x5c] sm:$0x1] %v4819_v25  ;;  %v12178_v11 = vrot.slane %v5643_v54, 4  ;;  %v12180_v1 = vrot.slane %v5646_v24, 5  ;;  %v12224_v6 = vsel %vm3660_vm3, %v11965_v21, %v6998_v4 }
 0x2c0   : > { %v12186_v13 = vrot.slane %v5656_v52, 5  ;;  %v6231_v59 = vshll.u32 %v11973_v38, 16  ;;  %v6241_v36 = vshll.u32 %v12024_v32, 16  ;;  %v5099_v46 = vsel %vm9826_vm10, %v5094_v18, %v5098_v28 }
 0x2c1   : > { %v5649_v40 = vsel %vm9826_vm10, %v12178_v11, %v12180_v1  ;;  %v12196_v63 = vrot.slane %v6228_v51, 4  ;;  %v13854_v27 = vshrl.u32 %v11973_v38, 16  ;;  %v5506_v23 = vld [vmem:[#allocation3 + $0x60] sm:$0xf]  ;;  %v12202_v34 = vcombine.low %v5089_v49, %v5099_v46 }
 0x2c2   : > { %v6113_v62 = vld [vmem:[#allocation3 + $0x60] sm:$0xf]  ;;  %v5653_v32 = vor.u32 %v12174_v20, %v12180_v1  ;;  %v12206_v47 = vrot.slane %v6231_v59, 5  ;;  %v12208_v30 = vrot.slane %v6241_v36, 5  ;;  %v5709_v2 = vshrl.u32 %v5506_v23, 16 }
 0x2c3   : > { %v12200_v3 = vrot.slane %v13854_v27, 4  ;;  %v5712_v35 = vshll.u32 %v5506_v23, 16  ;;  %v6294_v53 = vshrl.u32 %v6113_v62, 16  ;;  %v6297_v33 = vshll.u32 %v6113_v62, 16  ;;  %v12210_v61 = vld [vmem:[#allocation3 + $0x54] sm:$0xf] }
 0x2c4   : > { %v12212_v38 = vld [vmem:[#allocation3 + $0x64] sm:$0xf]  ;;  %v6270_v43 = vshrl.u32 %v12210_v61, 16  ;;  %v6273_v19 = vshll.u32 %v12210_v61, 16  ;;  %v6234_v10 = vsel %vm9826_vm10, %v12196_v63, %v12206_v47  ;;  %v12226_v55 = vrot.slane %v5709_v2, 4  ;;  %v9075_v22 = vpop.f32.mrb[16].mxu0 }
 0x2c5   : > { %v12214_v15 = vld [vmem:[#allocation3 + $0x64] sm:$0xf]  ;;  %v12228_v50 = vrot.slane %v5712_v35, 5  ;;  %v8796_v58 = vcombine.low %v5506_v23, %v12212_v38  ;;  %v12231_v17 = vld [vmem:[#allocation3 + $0x54] sm:$0xf]  ;;  %v6238_v28 = vor.u32 %v12200_v3, %v12206_v47  ;;  %v5722_v54 = vshrl.u32 %v12212_v38, 16 }
 0x2c6   : > { %v12236_v24 = vrot.slane %v6294_v53, 4  ;;  %v12238_v9 = vrot.slane %v6297_v33, 5  ;;  %v8843_v21 = vcombine.low %v6113_v62, %v12214_v15  ;;  %v4036_v25 = vpop.f32.mrb[17].mxu0  ;;  %v12241_v52 = vld [vmem:[#allocation3 + $0x58] sm:$0xf]  ;;  %v4045_v51 = vadd.f32 %v11843_v5, %v9075_v22  ;;  %v9247_v47 = vld [vmem:[%s13811_s3 + $0x18] sm:$0xff]  }
 0x2c7   : > { %7011 = vrot.lane.b32.xlu1 %v8796_v58, %s9389_s13  ;;  %v4037_v49 = vadd.f32 %v11843_v5, %v4036_v25  ;;  %v9076_v59 = vpop.f32.mrb[18].mxu0  ;;  %v12248_v46 = vld [vmem:[#allocation3 + $0x58] sm:$0xf]  ;;  %v8842_v4 = vcombine.low %v12210_v61, %v12241_v52  ;;  %v12254_v23 = vrot.slane %v6270_v43, 4  ;;  %v5685_v62 = vshrl.u32 %v12231_v17, 16  ;;  %v9244_v58 = vld [vmem:[%s13811_s3] sm:$0xff]  }
 0x2c8   : > { %7265 = vrot.lane.b32.xlu0 %v8843_v21, %s9390_s14  ;;  %v4048_v27 = vadd.f32 %v11843_v5, %v9076_v59  ;;  %v4039_v3 = vpop.f32.mrb[19].mxu0  ;;  %v4181_v2 = vadd.f32 %v12110_v44, %v4045_v51  ;;  %v12260_v33 = vrot.slane %v6273_v19, 5  ;;  %v5688_v61 = vshll.u32 %v12231_v17, 16  ;;  %9089 = vmatprep.subr.bf16.mxu1 %v9244_v58  ;;  %v4894_v20 = vld [vmem:[#allocation3 + $0x3c] sm:$0xf] }
 0x2c9   : > { %v4179_v35 = vadd.f32 %v12112_v14, %v4037_v49  ;;  %v4040_v53 = vadd.f32 %v11843_v5, %v4039_v3  ;;  %v12266_v21 = vrot.slane %v5685_v62, 4  ;;  %v8795_v44 = vcombine.low %v12231_v17, %v12248_v46  ;;  %9090 = vmatpush3.bf16.msra.mxu1 %v9244_v58 }
 0x2ca   : > { %v4182_v22 = vadd.f32 %v12114_v56, %v4048_v27  ;;  %vm4213_vm8 = vcmp.ge.f32.partialorder %v4181_v2, 1.0  ;;  %v6539_v27 = vld [vmem:[#allocation3 + $0x60] sm:$0xe]  ;;  %v5053_v63 = vshrl.u32 %v4894_v20, 16 }
 0x2cb   : > { %7087 = vrot.lane.b32.xlu1 %v12133_v12, %s9393_s17  ;;  %vm4211_vm9 = vcmp.ge.f32.partialorder %v4179_v35, 1.0  ;;  %v4180_v5 = vadd.f32 %v12122_v39, %v4040_v53  ;;  %v4245_v14 = vsel %vm4213_vm8, 0.0, %v4181_v2  ;;  %v8647_v56 = vsel %vm4213_vm8, 1.0, %v13841_v29 }
 0x2cc   : > { %7341 = vrot.lane.b32.xlu0 %v12150_v26, %s9394_s18  ;;  %v4243_v19 = vsel %vm4211_vm9, 0.0, %v4179_v35  ;;  %v8645_v25 = vsel %vm4211_vm9, 1.0, %v13841_v29  ;;  %4277 = vst.msk [vmem:[#allocation4 + $0x90] sm:$0xff] %vm3578_vm1, %v4245_v14  ;;  %v8991_v12 = vpack.c.bf16 %v8647_v56, %v8647_v56  ;;  %vm4214_vm12 = vcmp.ge.f32.partialorder %v4182_v22, 1.0  ;;  %v4835_v56 = vld [vmem:[#allocation3 + $0x78] sm:$0xf] }
 0x2cd   : > { %4275 = vst.msk [vmem:[#allocation4 + $0x80] sm:$0xff] %vm3578_vm1, %v4243_v19  ;;  %v8989_v39 = vpack.c.bf16 %v8645_v25, %v8645_v25  ;;  %vm4212_vm13 = vcmp.ge.f32.partialorder %v4180_v5, 1.0  ;;  %v4246_v51 = vsel %vm4214_vm12, 0.0, %v4182_v22  ;;  %v8648_v49 = vsel %vm4214_vm12, 1.0, %v13841_v29 }
 0x2ce   : > { %v4244_v59 = vsel %vm4212_vm13, 0.0, %v4180_v5  ;;  %v8646_v26 = vsel %vm4212_vm13, 1.0, %v13841_v29  ;;  %v4605_v3 = vshrl.u32 %v8991_v12, 16  ;;  %v4608_v62 = vshll.u32 %v8991_v12, 16  ;;  %4278 = vst.msk [vmem:[#allocation4 + $0x98] sm:$0xff] %vm3578_vm1, %v4246_v51 }
 0x2cf   : > { %v4588_v2 = vshrl.u32 %v8989_v39, 16  ;;  %v4591_v35 = vshll.u32 %v8989_v39, 16  ;;  %4276 = vst.msk [vmem:[#allocation4 + $0x88] sm:$0xff] %vm3578_vm1, %v4244_v59  ;;  %7263 = vrot.lane.b32.xlu1 %v8842_v4, %s9390_s14  ;;  %v8992_v53 = vpack.c.bf16 %v8648_v49, %v8648_v49  ;;  %v8990_v58 = vpack.c.bf16 %v8646_v26, %v8646_v26  ;;  %v4828_v39 = vld [vmem:[#allocation3 + $0x6c] sm:$0xf] }
 0x2d0   : > { %7009 = vrot.lane.b32.xlu0 %v8795_v44, %s9389_s13  ;;  %v5654_v22 = vrot.slane %v5653_v32, 4  ;;  %v6239_v5 = vrot.slane %v6238_v28, 4  ;;  %v4607_v14 = vrot.slane %v4605_v3, 7  ;;  %v8731_v25 = vrot.slane %v6539_v27, 9  ;;  %v9245_v32 = vld [vmem:[%s13811_s3 + $0x8] sm:$0xff]  }
 0x2d1   : > { %v4590_v19 = vrot.slane %v4588_v2, 7  ;;  %v6641_v12 = vrot.slane %v12214_v15, 5  ;;  %v4613_v51 = vshrl.u32 %v8992_v53, 16  ;;  %v4616_v59 = vshll.u32 %v8992_v53, 16  ;;  %v12302_v2 = vld [vmem:[#allocation3 + $0x68] sm:$0x1]  ;;  %9091 = vmatprep.subr.bf16.mxu1 %v9245_v32 }
 0x2d2   : > { %v4596_v36 = vshrl.u32 %v8990_v58, 16  ;;  %v4599_v4 = vshll.u32 %v8990_v58, 16  ;;  %v4610_v49 = vor.u32 %v4608_v62, %v4607_v14  ;;  %v4611_v26 = vrot.slane %v4607_v14, 4  ;;  %v4839_v53 = vld [vmem:[#allocation3 + $0x80] sm:$0x1]  ;;  %9092 = vmatpush3.bf16.msra.mxu1 %v9245_v32 }
 0x2d3   : > { %v4593_v43 = vor.u32 %v4591_v35, %v4590_v19  ;;  %v4594_v44 = vrot.slane %v4590_v19, 4  ;;  %6833 = vrot.lane.b32.xlu1 %v12202_v34, %s9388_s12  ;;  %v4615_v28 = vrot.slane %v4613_v51, 7  ;;  %v5659_v3 = vsel %vm9826_vm10, %v5654_v22, %v12186_v13  ;;  %v9246_v34 = vld [vmem:[%s13811_s3 + $0x10] sm:$0xff]   ;;  %v4832_v58 = vld [vmem:[#allocation3 + $0x74] sm:$0x1] }
 0x2d4   : > { %v4598_v27 = vrot.slane %v4596_v36, 7  ;;  %v6244_v62 = vsel %vm9826_vm10, %v6239_v5, %v12208_v30  ;;  %v4836_v35 = vsel %vm9831_vm14, %v4610_v49, %v4835_v56  ;;  %v8809_v13 = vcombine.low %v5649_v40, %v5659_v3  ;;  %v5324_v51 = vld [vmem:[#allocation3 + $0x60] sm:$0xe]  ;;  %9093 = vmatprep.subr.bf16.mxu1 %v9246_v34 }
 0x2d5   : > { %v4829_v36 = vsel %vm9831_vm14, %v4593_v43, %v4828_v39  ;;  %v8856_v30 = vcombine.low %v6234_v10, %v6244_v62  ;;  %4837 = vst [vmem:[#allocation3 + $0x78] sm:$0xf] %v4836_v35  ;;  %v4618_v22 = vor.u32 %v4616_v59, %v4615_v28  ;;  %v4620_v5 = vrot.slane %v4615_v28, 4  ;;  %v12339_v39 = vld [vmem:[#allocation3 + $0x68] sm:$0x1] }
 0x2d6   : > { %4830 = vst [vmem:[#allocation3 + $0x6c] sm:$0xf] %v4829_v36  ;;  %v4601_v43 = vor.u32 %v4599_v4, %v4598_v27  ;;  %v4603_v14 = vrot.slane %v4598_v27, 4  ;;  %7085 = vrot.lane.b32.xlu0 %v8809_v13, %s9393_s17  ;;  %v6642_v11 = vsel %vm9810_vm5, %v8731_v25, %v6641_v12  ;;  %v6643_v1 = vrot.slane %v6641_v12, 4  ;;  %v12337_v12 = vld [vmem:[#allocation3 + $0x64] sm:$0xf]  ;;  %9094 = vmatpush3.bf16.msra.mxu1 %v9246_v34 }
 0x2d7   : > { %7339 = vrot.lane.b32.xlu1 %v8856_v30, %s9394_s18  ;;  %v6644_v40 = vrot.slane %v12302_v2, 5  ;;  %v4619_v10 = vsel %vm9837_vm15, %v4611_v26, %v4618_v22  ;;  %v4840_v56 = vsel %vm9856_vm0, %v4620_v5, %v4839_v53  ;;  %v5055_v4 = vrot.slane %v5053_v63, 4  ;;  %9095 = vmatprep.subr.bf16.mxu1 %v9247_v47  ;;  %v12360_v5 = vld [vmem:[#allocation3 + $0x5c] sm:$0x1]  ;;  %v12369_v63 = vld [vmem:[#allocation3 + $0x58] sm:$0xf] }
 0x2d8   : > { %v4602_v19 = vsel %vm9837_vm15, %v4594_v44, %v4601_v43  ;;  %v4833_v25 = vsel %vm9856_vm0, %v4603_v14, %v4832_v58  ;;  %4838 = vst.msk [vmem:[#allocation3 + $0x7c] sm:$0xf] %vm893_vm11, %v4619_v10  ;;  %4841 = vst [vmem:[#allocation3 + $0x80] sm:$0x1] %v4840_v56  ;;  %v5056_v49 = vshll.u32 %v4894_v20, 16  ;;  %v5062_v26 = vshll.u32 %v12033_v57, 16 }
 0x2d9   : > { %4831 = vst.msk [vmem:[#allocation3 + $0x70] sm:$0xf] %vm893_vm11, %v4602_v19  ;;  %4834 = vst [vmem:[#allocation3 + $0x74] sm:$0x1] %v4833_v25  ;;  %v6645_v59 = vsel %vm9810_vm5, %v6643_v1, %v6644_v40  ;;  %v5931_v44 = vld [vmem:[#allocation3 + $0x60] sm:$0xe]  ;;  %v12367_v40 = vpop.permute.xlu0 %7413 }
 0x2da   : > { %v12348_v32 = vrot.slane %v5688_v61, 5  ;;  %v8875_v28 = vcombine.low %v6642_v11, %v6645_v59  ;;  %v5066_v27 = vshrl.u32 %v12033_v57, 16  ;;  %v5072_v3 = vshll.u32 %v12039_v60, 16  ;;  %v12353_v58 = vld [vmem:[#allocation3 + $0x68] sm:$0x1]  ;;  %9096 = vmatpush3.bf16.msra.mxu1 %v9247_v47 }
 0x2db   : > { %v5058_v62 = vrot.slane %v5056_v49, 5  ;;  %v5064_v35 = vrot.slane %v5062_v26, 5  ;;  %v8701_v36 = vrot.slane %v5324_v51, 9  ;;  %v5438_v53 = vrot.slane %v12337_v12, 5  ;;  %v6538_v57 = vld [vmem:[#allocation3 + $0x54] sm:$0xe] }
 0x2dc   : > { %7425 = vrot.lane.b32.xlu0 %v8875_v28, %s9392_s16  ;;  %v5068_v20 = vrot.slane %v5066_v27, 4  ;;  %v5441_v17 = vrot.slane %v12339_v39, 5  ;;  %v8716_v61 = vrot.slane %v5931_v44, 9  ;;  %v6039_v13 = vrot.slane %v12212_v38, 5  ;;  %v5323_v10 = vld [vmem:[#allocation3 + $0x54] sm:$0xe]  ;;  %v12379_v27 = vpop.permute.xlu1 %6999 }
 0x2dd   : > { %v5059_v30 = vor.u32 %v5058_v62, %v5055_v4  ;;  %v5074_v60 = vrot.slane %v5072_v3, 5  ;;  %v5439_v34 = vsel %vm9810_vm5, %v8701_v36, %v5438_v53  ;;  %v5440_v22 = vrot.slane %v5438_v53, 4  ;;  %v12374_v59 = vld [vmem:[#allocation3 + $0x5c] sm:$0x1]  ;;  %v5930_v28 = vld [vmem:[#allocation3 + $0x54] sm:$0xe] }
 0x2de   : > { %v5069_v43 = vor.u32 %v5068_v20, %v5064_v35  ;;  %v12364_v14 = vsel %vm9810_vm5, %v8716_v61, %v6039_v13  ;;  %v6041_v11 = vrot.slane %v6039_v13, 4  ;;  %v6042_v1 = vrot.slane %v12353_v58, 5  ;;  %13855 = vst [vmem:[#allocation6_spill] sm:$0xff] %v12379_v27  ;;  %v12384_v53 = vld [vmem:[#allocation3 + $0x5c] sm:$0x1] }
 0x2df   : > { %v5060_v56 = vrot.slane %v5059_v30, 4  ;;  %v5442_v19 = vsel %vm9810_vm5, %v5440_v22, %v5441_v17  ;;  %v8730_v25 = vrot.slane %v6538_v57, 9  ;;  %v6634_v51 = vrot.slane %v12241_v52, 5  ;;  %v12386_v20 = vld [vmem:[#allocation3 + $0x78] sm:$0xf] }
 0x2e0   : > { %v5070_v4 = vrot.slane %v5069_v43, 4  ;;  %v8781_v49 = vcombine.low %v5439_v34, %v5442_v19  ;;  %v6043_v26 = vsel %vm9810_vm5, %v6041_v11, %v6042_v1  ;;  %v6637_v44 = vrot.slane %v12360_v5, 5  ;;  %v12395_v57 = vld [vmem:[#allocation3 + $0x78] sm:$0xf]  ;;  %v12403_v19 = vpop.permute.xlu0 %6905 }
 0x2e1   : > { %v5065_v47 = vsel %vm9826_vm10, %v5060_v56, %v5064_v35  ;;  %v8828_v3 = vcombine.low %v12364_v14, %v6043_v26  ;;  %v6636_v62 = vrot.slane %v6634_v51, 4  ;;  %v8700_v36 = vrot.slane %v5323_v10, 9  ;;  %v9079_v30 = vpop.f32.mrb[20].mxu0 }
 0x2e2   : > { %v5075_v17 = vsel %vm9826_vm10, %v5070_v4, %v5074_v60  ;;  %6917 = vrot.lane.b32.xlu0 %v8781_v49, %s9387_s11  ;;  %v6635_v61 = vsel %vm9810_vm5, %v8730_v25, %v6634_v51  ;;  %v5431_v13 = vrot.slane %v12369_v63, 5  ;;  %v5434_v35 = vrot.slane %v12374_v59, 5  ;;  %v12400_v60 = vld [vmem:[#allocation3 + $0x7c] sm:$0xf]  ;;  %v4052_v11 = vpop.f32.mrb[21].mxu0 }
 0x2e3   : > { %v8762_v34 = vcombine.low %v5065_v47, %v5075_v17  ;;  %v6638_v22 = vsel %vm9810_vm5, %v6636_v62, %v6637_v44  ;;  %v8715_v43 = vrot.slane %v5930_v28, 9  ;;  %v6032_v14 = vrot.slane %v12248_v46, 5  ;;  %v9080_v51 = vpop.f32.mrb[22].mxu0  ;;  %v12412_v28 = vld [vmem:[#allocation3 + $0x7c] sm:$0xf] }
 0x2e4   : > { %v8874_v1 = vcombine.low %v6635_v61, %v6638_v22  ;;  %v5433_v10 = vrot.slane %v5431_v13, 4  ;;  %v6035_v56 = vrot.slane %v12384_v53, 5  ;;  %v5757_v25 = vshrl.u32 %v12386_v20, 16  ;;  %v4055_v47 = vpop.f32.mrb[23].mxu0 }
 0x2e5   : > { %6831 = vrot.lane.b32.xlu1 %v8762_v34, %s9388_s12  ;;  %v5432_v4 = vsel %vm9810_vm5, %v8700_v36, %v5431_v13  ;;  %v6033_v49 = vsel %vm9810_vm5, %v8715_v43, %v6032_v14  ;;  %v6034_v26 = vrot.slane %v6032_v14, 4  ;;  %v5760_v44 = vshll.u32 %v12386_v20, 16  ;;  %v12422_v13 = vpop.permute.xlu1 %7159 }
 0x2e6   : > { %7423 = vrot.lane.b32.xlu0 %v8874_v1, %s9392_s16  ;;  %v5435_v62 = vsel %vm9810_vm5, %v5433_v10, %v5434_v35  ;;  %v12417_v17 = vrot.slane %v5757_v25, 4  ;;  %v8798_v61 = vcombine.low %v12386_v20, %v12400_v60  ;;  %v6342_v36 = vshrl.u32 %v12395_v57, 16  ;;  %13856 = vst [vmem:[#allocation7_spill] sm:$0xff] %v12422_v13  ;;  %v4122_v35 = vld [vmem:[#allocation4 + $0xb8] sm:$0xff] }
 0x2e7   : > { %v8780_v34 = vcombine.low %v5432_v4, %v5435_v62  ;;  %v6036_v22 = vsel %vm9810_vm5, %v6034_v26, %v6035_v56  ;;  %v12426_v43 = vrot.slane %v5760_v44, 5  ;;  %v8845_v20 = vcombine.low %v12395_v57, %v12412_v28  ;;  %v12442_v26 = vpop.permute.xlu0 %7157 }
 0x2e8   : > { %v8827_v1 = vcombine.low %v6033_v49, %v6036_v22  ;;  %v12429_v18 = vrot.slane %v6342_v36, 4  ;;  %v5715_v25 = vor.u32 %v12228_v50, %v12226_v55  ;;  %v5718_v56 = vshll.u32 %v12212_v38, 16  ;;  %v4121_v49 = vld [vmem:[#allocation4 + $0xb0] sm:$0xff] }
 0x2e9   : > { %7171 = vrot.lane.b32.xlu1 %v8828_v3, %s9391_s15  ;;  %v5724_v4 = vrot.slane %v5722_v54, 4  ;;  %v5728_v44 = vshll.u32 %v12353_v58, 16  ;;  %v6300_v3 = vor.u32 %v12238_v9, %v12236_v24  ;;  %v6303_v62 = vshll.u32 %v12214_v15, 16  ;;  %v12454_v54 = vld [vmem:[%s13810_s2] ss:$0 sm:$0xff]  ;;  %v4119_v58 = vld [vmem:[#allocation4 + $0xa0] sm:$0xff]  ;;  %v12457_v13 = vpop.permute.xlu1 %6903 }
 0x2ea   : > { %7169 = vrot.lane.b32.xlu0 %v8827_v1, %s9391_s15  ;;  %v13857_v36 = vshrl.u32 %v12214_v15, 16  ;;  %v5716_v50 = vrot.slane %v5715_v25, 4  ;;  %v5720_v22 = vrot.slane %v5718_v56, 5  ;;  %v6313_v38 = vshll.u32 %v12302_v2, 16 }
 0x2eb   : > { %v4061_v1 = vadd.f32 %v12454_v54, %v9079_v30  ;;  %v5730_v10 = vrot.slane %v5728_v44, 5  ;;  %v6301_v14 = vrot.slane %v6300_v3, 4  ;;  %v6305_v24 = vrot.slane %v6303_v62, 5  ;;  %v12466_v62 = vpop.permute.xlu0 %7257 }
 0x2ec   : > { %v6309_v55 = vrot.slane %v13857_v36, 4  ;;  %v4153_v9 = vmul.f32 0.5, %v4121_v49  ;;  %v5721_v15 = vsel %vm9826_vm10, %v5716_v50, %v5720_v22  ;;  %v5725_v2 = vor.u32 %v5724_v4, %v5720_v22  ;;  %v4120_v36 = vld [vmem:[#allocation4 + $0xa8] sm:$0xff]  ;;  %13858 = vst [vmem:[#allocation8_spill] sm:$0xff] %v12466_v62 }
 0x2ed   : > { %6915 = vrot.lane.b32.xlu1 %v8780_v34, %s9387_s11  ;;  %v6315_v25 = vrot.slane %v6313_v38, 5  ;;  %v4053_v56 = vadd.f32 %v12454_v54, %v4052_v11  ;;  %v6306_v30 = vsel %vm9826_vm10, %v6301_v14, %v6305_v24  ;;  %v4151_v3 = vmul.f32 0.5, %v4119_v58  ;;  %v9248_v34 = vld [vmem:[%s13811_s3 + $0x20] ss:$0 sps:$4 sm:$0xff]  }
 0x2ee   : > { %7269 = vrot.lane.b32.xlu0 %v8845_v20, %s9390_s14  ;;  %v6310_v44 = vor.u32 %v6309_v55, %v6305_v24  ;;  %v4185_v49 = vadd.f32 %v4153_v9, %v4061_v1  ;;  %v5726_v50 = vrot.slane %v5725_v2, 4  ;;  %v4064_v4 = vadd.f32 %v12454_v54, %v9080_v51  ;;  %v12478_v24 = vpop.permute.xlu1 %7003  ;;  %v12483_v9 = vld [vmem:[#allocation3 + $0x70] sm:$0xf] }
 0x2ef   : > { %v4154_v22 = vmul.f32 0.5, %v4122_v35  ;;  %v4056_v11 = vadd.f32 %v12454_v54, %v4055_v47  ;;  %v4183_v20 = vadd.f32 %v4151_v3, %v4053_v56  ;;  %v4152_v27 = vmul.f32 0.5, %v4120_v36  ;;  %13860 = vst [vmem:[#allocation9_spill] sm:$0xff] %v12478_v24  ;;  %13861 = vst [vmem:[#allocation10_spill] sm:$0xff] %v12483_v9  ;;  %v6115_v56 = vld [vmem:[#allocation3 + $0x6c] sm:$0xf] }
 0x2f0   : > { %v6311_v38 = vrot.slane %v6310_v44, 4  ;;  %vm4217_vm8 = vcmp.ge.f32.partialorder %v4185_v49, 1.0  ;;  %vm13859_vm9 = vcmask 1043456   ;;  %v5731_v14 = vsel %vm9826_vm10, %v5726_v50, %v5730_v10  ;;  %v12491_v3 = vld [vmem:[#allocation3 + $0x6c] sm:$0xf] }
 0x2f1   : > { %9132 = vmatprep.subr.msk.bf16.mxu1 %vm13859_vm9, %v9248_v34  ;;  %7015 = vrot.lane.b32.xlu1 %v8798_v61, %s9389_s13  ;;  %v4249_v55 = vsel %vm4217_vm8, 0.0, %v4185_v49  ;;  %v8651_v1 = vsel %vm4217_vm8, 1.0, %v13841_v29  ;;  %v4186_v58 = vadd.f32 %v4154_v22, %v4064_v4  ;;  %v8812_v51 = vcombine.low %v5721_v15, %v5731_v14  ;;  %v12493_v34 = vpop.permute.xlu0 %7333  ;;  %v4853_v24 = vld [vmem:[#allocation3 + $0x98] sm:$0x1] }
 0x2f2   : > { %v6316_v47 = vsel %vm9826_vm10, %v6311_v38, %v6315_v25  ;;  %4281 = vst.msk [vmem:[#allocation4 + $0xb0] sm:$0xff] %vm3578_vm1, %v4249_v55  ;;  %v8995_v35 = vpack.c.bf16 %v8651_v1, %v8651_v1  ;;  %vm4215_vm12 = vcmp.ge.f32.partialorder %v4183_v20, 1.0  ;;  %v13862_v36 = vshll.u32 %v12395_v57, 16  ;;  %v4849_v55 = vld [vmem:[#allocation3 + $0x90] sm:$0xf] }
 0x2f3   : > { %v8859_v61 = vcombine.low %v6306_v30, %v6316_v47  ;;  %v4247_v2 = vsel %vm4215_vm12, 0.0, %v4183_v20  ;;  %v8649_v10 = vsel %vm4215_vm12, 1.0, %v13841_v29  ;;  %vm4218_vm13 = vcmp.ge.f32.partialorder %v4186_v58, 1.0  ;;  %v12502_v47 = vpop.permute.xlu1 %7079 }
 0x2f4   : > { %v12488_v44 = vrot.slane %v13862_v36, 5  ;;  %v4639_v15 = vshrl.u32 %v8995_v35, 16  ;;  %4279 = vst.msk [vmem:[#allocation4 + $0xa0] sm:$0xff] %vm3578_vm1, %v4247_v2  ;;  %v8993_v25 = vpack.c.bf16 %v8649_v10, %v8649_v10  ;;  %v4250_v49 = vsel %vm4218_vm13, 0.0, %v4186_v58  ;;  %13863 = vst [vmem:[#allocation11_spill] sm:$0xff] %v12502_v47 }
 0x2f5   : > { %7091 = vrot.lane.b32.xlu1 %v8812_v51, %s9393_s17  ;;  %7345 = vrot.lane.b32.xlu0 %v8859_v61, %s9394_s18  ;;  %v4642_v30 = vshll.u32 %v8995_v35, 16  ;;  %4282 = vst.msk [vmem:[#allocation4 + $0xb8] sm:$0xff] %vm3578_vm1, %v4250_v49  ;;  %v8652_v57 = vsel %vm4218_vm13, 1.0, %v13841_v29  ;;  %v4184_v50 = vadd.f32 %v4152_v27, %v4056_v11  ;;  %v8844_v14 = vcombine.low %v6115_v56, %v12483_v9  ;;  %v4842_v11 = vld [vmem:[#allocation3 + $0x84] sm:$0xf] }
 0x2f6   : > { %v4641_v22 = vrot.slane %v4639_v15, 7  ;;  %v4622_v38 = vshrl.u32 %v8993_v25, 16  ;;  %v8996_v20 = vpack.c.bf16 %v8652_v57, %v8652_v57  ;;  %v6318_v1 = vshrl.u32 %v6115_v56, 16  ;;  %v4900_v47 = vld [vmem:[#allocation3 + $0x60] sm:$0xf] }
 0x2f7   : > { %vm4216_vm8 = vcmp.ge.f32.partialorder %v4184_v50, 1.0  ;;  %v6321_v58 = vshll.u32 %v6115_v56, 16  ;;  %v5733_v51 = vshrl.u32 %v12491_v3, 16  ;;  %v4625_v2 = vshll.u32 %v8993_v25, 16  ;;  %v12511_v25 = vld [vmem:[#allocation3 + $0x70] sm:$0xf] }
 0x2f8   : > { %v4644_v35 = vor.u32 %v4642_v30, %v4641_v22  ;;  %v4624_v61 = vrot.slane %v4622_v38, 7  ;;  %v4647_v10 = vshrl.u32 %v8996_v20, 16  ;;  %v4645_v27 = vrot.slane %v4641_v22, 4  ;;  %v12513_v22 = vpop.permute.xlu0 %7001 }
 0x2f9   : > { %v4650_v36 = vshll.u32 %v8996_v20, 16  ;;  %v4248_v15 = vsel %vm4216_vm8, 0.0, %v4184_v50  ;;  %v8650_v49 = vsel %vm4216_vm8, 1.0, %v13841_v29  ;;  %7267 = vrot.lane.b32.xlu1 %v8844_v14, %s9390_s14  ;;  %v12509_v30 = vrot.slane %v6318_v1, 4  ;;  %13864 = vst [vmem:[#allocation12_spill] sm:$0xff] %v12513_v22 }
 0x2fa   : > { %v4850_v57 = vsel %vm9831_vm14, %v4644_v35, %v4849_v55  ;;  %v4627_v56 = vor.u32 %v4625_v2, %v4624_v61  ;;  %v4649_v4 = vrot.slane %v4647_v10, 7  ;;  %4280 = vst.msk [vmem:[#allocation4 + $0xa8] sm:$0xff] %vm3578_vm1, %v4248_v15  ;;  %v4628_v50 = vrot.slane %v4624_v61, 4 }
 0x2fb   : > { %4851 = vst [vmem:[#allocation3 + $0x90] sm:$0xf] %v4850_v57  ;;  %v8994_v38 = vpack.c.bf16 %v8650_v49, %v8650_v49  ;;  %v12515_v20 = vrot.slane %v6321_v58, 5  ;;  %v12517_v14 = vrot.slane %v5733_v51, 4  ;;  %v5736_v1 = vshll.u32 %v12491_v3, 16  ;;  %v12525_v58 = vpop.permute.xlu1 %7255 }
 0x2fc   : > { %v4843_v55 = vsel %vm9831_vm14, %v4627_v56, %v4842_v11  ;;  %v4652_v35 = vor.u32 %v4650_v36, %v4649_v4  ;;  %v4654_v2 = vrot.slane %v4649_v4, 4  ;;  %v8797_v61 = vcombine.low %v12491_v3, %v12511_v25  ;;  %13865 = vst [vmem:[#allocation13_spill] sm:$0xff] %v12525_v58 }
 0x2fd   : > { %4844 = vst [vmem:[#allocation3 + $0x84] sm:$0xf] %v4843_v55  ;;  %v4630_v10 = vshrl.u32 %v8994_v38, 16  ;;  %v4633_v15 = vshll.u32 %v8994_v38, 16  ;;  %v5125_v36 = vshrl.u32 %v4900_v47, 16  ;;  %v5128_v4 = vshll.u32 %v4900_v47, 16 }
 0x2fe   : > { %v4653_v51 = vsel %vm9837_vm15, %v4645_v27, %v4652_v35  ;;  %v4854_v11 = vsel %vm9856_vm0, %v4654_v2, %v4853_v24  ;;  %7013 = vrot.lane.b32.xlu0 %v8797_v61, %s9389_s13  ;;  %v5134_v57 = vshll.u32 %v12337_v12, 16  ;;  %v5138_v3 = vshrl.u32 %v12337_v12, 16  ;;  %v4846_v38 = vld [vmem:[#allocation3 + $0x8c] sm:$0x1]  ;;  %v12539_v35 = vpop.permute.xlu0 %7077 }
 0x2ff   : > { %4852 = vst.msk [vmem:[#allocation3 + $0x94] sm:$0xf] %vm893_vm11, %v4653_v51  ;;  %4855 = vst [vmem:[#allocation3 + $0x98] sm:$0x1] %v4854_v11  ;;  %v4632_v49 = vrot.slane %v4630_v10, 7  ;;  %v5144_v56 = vshll.u32 %v12339_v39, 16  ;;  %v5691_v24 = vor.u32 %v12348_v32, %v12266_v21  ;;  %v12549_v22 = vpop.permute.xlu1 %6825 }
 0x300   : > { %v5127_v55 = vrot.slane %v5125_v36, 4  ;;  %v5130_v27 = vrot.slane %v5128_v4, 5  ;;  %v5694_v47 = vshll.u32 %v12248_v46, 16  ;;  %v5136_v51 = vrot.slane %v5134_v57, 5 }
 0x301   : > { %v4635_v2 = vor.u32 %v4633_v15, %v4632_v49  ;;  %v4637_v10 = vrot.slane %v4632_v49, 4  ;;  %v5140_v61 = vrot.slane %v5138_v3, 4  ;;  %v12541_v11 = vrot.slane %v5736_v1, 5 }
 0x302   : > { %v5131_v62 = vor.u32 %v5130_v27, %v5127_v55  ;;  %v5692_v12 = vrot.slane %v5691_v24, 4  ;;  %v5696_v58 = vrot.slane %v5694_v47, 5  ;;  %v13866_v32 = vshrl.u32 %v12248_v46, 16  ;;  %v6541_v27 = vld [vmem:[#allocation3 + $0x78] sm:$0xe] }
 0x303   : > { %v4636_v39 = vsel %vm9837_vm15, %v4628_v50, %v4635_v2  ;;  %v4847_v36 = vsel %vm9856_vm0, %v4637_v10, %v4846_v38  ;;  %v5141_v21 = vor.u32 %v5140_v61, %v5136_v51  ;;  %v5146_v15 = vrot.slane %v5144_v56, 5  ;;  %v12563_v47 = vld [vmem:[#allocation3 + $0x80] sm:$0x1] }
 0x304   : > { %v5700_v4 = vrot.slane %v13866_v32, 4  ;;  %4845 = vst.msk [vmem:[#allocation3 + $0x88] sm:$0xf] %vm893_vm11, %v4636_v39  ;;  %4848 = vst [vmem:[#allocation3 + $0x8c] sm:$0x1] %v4847_v36  ;;  %v5132_v1 = vrot.slane %v5131_v62, 4  ;;  %v6276_v57 = vor.u32 %v12260_v33, %v12254_v23  ;;  %v5697_v62 = vsel %vm9826_vm10, %v5692_v12, %v5696_v58  ;;  %v12565_v33 = vpop.permute.xlu0 %7417 }
 0x305   : > { %v5704_v49 = vshll.u32 %v12384_v53, 16  ;;  %v5142_v50 = vrot.slane %v5141_v21, 4  ;;  %v6279_v38 = vshll.u32 %v12241_v52, 16  ;;  %v13867_v55 = vshrl.u32 %v12241_v52, 16  ;;  %v4898_v23 = vld [vmem:[#allocation3 + $0x54] sm:$0xf] }
 0x306   : > { %v5701_v3 = vor.u32 %v5700_v4, %v5696_v58  ;;  %v5137_v24 = vsel %vm9826_vm10, %v5132_v1, %v5136_v51  ;;  %v6277_v56 = vrot.slane %v6276_v57, 4  ;;  %v6289_v53 = vshll.u32 %v12360_v5, 16  ;;  %13868 = vst [vmem:[#allocation14_spill] sm:$0xff] %v12565_v33  ;;  %v12573_v4 = vpop.permute.xlu1 %6823 }
 0x307   : > { %v6285_v46 = vrot.slane %v13867_v55, 4  ;;  %v5147_v2 = vsel %vm9826_vm10, %v5142_v50, %v5146_v15  ;;  %v5706_v10 = vrot.slane %v5704_v49, 5  ;;  %v6281_v61 = vrot.slane %v6279_v38, 5  ;;  %v5326_v50 = vld [vmem:[#allocation3 + $0x78] sm:$0xe] }
 0x308   : > { %v5702_v52 = vrot.slane %v5701_v3, 4  ;;  %v8765_v39 = vcombine.low %v5137_v24, %v5147_v2  ;;  %v6291_v36 = vrot.slane %v6289_v53, 5  ;;  %v8733_v51 = vrot.slane %v6541_v27, 9  ;;  %v12580_v27 = vld [vmem:[#allocation3 + $0x7c] sm:$0xf]  ;;  %v12588_v2 = vpop.permute.xlu0 %6909 }
 0x309   : > { %v6655_v21 = vrot.slane %v12412_v28, 5  ;;  %v6286_v5 = vor.u32 %v6285_v46, %v6281_v61  ;;  %v6658_v12 = vrot.slane %v12563_v47, 5  ;;  %v5101_v32 = vshrl.u32 %v4898_v23, 16  ;;  %13869 = vst [vmem:[#allocation15_spill] sm:$0xff] %v12588_v2  ;;  %v12630_v2 = vld [vmem:[#allocation3 + $0x74] sm:$0x1] }
 0x30a   : > { %v5707_v58 = vsel %vm9826_vm10, %v5702_v52, %v5706_v10  ;;  %6837 = vrot.lane.b32.xlu1 %v8765_v39, %s9388_s12  ;;  %v6282_v15 = vsel %vm9826_vm10, %v6277_v56, %v6281_v61  ;;  %v5104_v57 = vshll.u32 %v4898_v23, 16  ;;  %v5110_v55 = vshll.u32 %v12369_v63, 16  ;;  %v5933_v23 = vld [vmem:[#allocation3 + $0x78] sm:$0xe]  ;;  %v12592_v61 = vld [vmem:[#allocation3 + $0x80] sm:$0x1] }
 0x30b   : > { %v8811_v1 = vcombine.low %v5697_v62, %v5707_v58  ;;  %v6657_v49 = vrot.slane %v6655_v21, 4  ;;  %v6287_v3 = vrot.slane %v6286_v5, 4  ;;  %v5103_v38 = vrot.slane %v5101_v32, 4  ;;  %v12597_v32 = vld [vmem:[#allocation3 + $0x74] sm:$0x1] }
 0x30c   : > { %v5114_v46 = vshrl.u32 %v12369_v63, 16  ;;  %v6656_v24 = vsel %vm9810_vm5, %v8733_v51, %v6655_v21  ;;  %v5106_v56 = vrot.slane %v5104_v57, 5  ;;  %v5120_v53 = vshll.u32 %v12374_v59, 16 }
 0x30d   : > { %7089 = vrot.lane.b32.xlu0 %v8811_v1, %s9393_s17  ;;  %v6659_v62 = vsel %vm9810_vm5, %v6657_v49, %v6658_v12  ;;  %v6292_v52 = vsel %vm9826_vm10, %v6287_v3, %v6291_v36  ;;  %v5112_v63 = vrot.slane %v5110_v55, 5  ;;  %v8703_v39 = vrot.slane %v5326_v50, 9  ;;  %v12595_v12 = vld [vmem:[#allocation3 + $0x80] sm:$0x1]  ;;  %v6540_v36 = vld [vmem:[#allocation3 + $0x6c] sm:$0xe]  ;;  %v12600_v3 = vpop.permute.xlu1 %7163 }
 0x30e   : > { %v5116_v10 = vrot.slane %v5114_v46, 4  ;;  %v8858_v58 = vcombine.low %v6282_v15, %v6292_v52  ;;  %v8877_v5 = vcombine.low %v6656_v24, %v6659_v62  ;;  %v5107_v51 = vor.u32 %v5106_v56, %v5103_v38  ;;  %13870 = vst [vmem:[#allocation16_spill] sm:$0xff] %v12600_v3  ;;  %v12607_v46 = vld [vmem:[#allocation3 + $0x70] sm:$0xf] }
 0x30f   : > { %v5452_v21 = vrot.slane %v12580_v27, 5  ;;  %v5122_v1 = vrot.slane %v5120_v53, 5  ;;  %v8718_v49 = vrot.slane %v5933_v23, 9  ;;  %v6053_v57 = vrot.slane %v12400_v60, 5  ;;  %v5325_v23 = vld [vmem:[#allocation3 + $0x6c] sm:$0xe] }
 0x310   : > { %v5117_v59 = vor.u32 %v5116_v10, %v5112_v63  ;;  %7343 = vrot.lane.b32.xlu1 %v8858_v58, %s9394_s18  ;;  %v5108_v15 = vrot.slane %v5107_v51, 4  ;;  %v5455_v55 = vrot.slane %v12592_v61, 5  ;;  %v6056_v53 = vrot.slane %v12595_v12, 5  ;;  %v12619_v51 = vpop.f32.mrb[24].mxu0 }
 0x311   : > { %7429 = vrot.lane.b32.xlu0 %v8877_v5, %s9392_s16  ;;  %v5453_v50 = vsel %vm9810_vm5, %v8703_v39, %v5452_v21  ;;  %v5454_v38 = vrot.slane %v5452_v21, 4  ;;  %v6054_v62 = vsel %vm9810_vm5, %v8718_v49, %v6053_v57  ;;  %v6055_v56 = vrot.slane %v6053_v57, 4  ;;  %v12617_v5 = vld [vmem:[#allocation3 + $0x74] sm:$0x1]  ;;  %v12621_v21 = vpop.permute.xlu0 %7415 }
 0x312   : > { %v5118_v24 = vrot.slane %v5117_v59, 4  ;;  %v5113_v52 = vsel %vm9826_vm10, %v5108_v15, %v5112_v63  ;;  %v8732_v39 = vrot.slane %v6540_v36, 9  ;;  %v6648_v58 = vrot.slane %v12483_v9, 5  ;;  %v5932_v15 = vld [vmem:[#allocation3 + $0x6c] sm:$0xe] }
 0x313   : > { %v5456_v10 = vsel %vm9810_vm5, %v5454_v38, %v5455_v55  ;;  %v6057_v57 = vsel %vm9810_vm5, %v6055_v56, %v6056_v53  ;;  %v6651_v63 = vrot.slane %v12597_v32, 5  ;;  %v12628_v38 = vpop.f32.mrb[25].mxu0  ;;  %v8702_v33 = vrot.slane %v5325_v23, 9  ;;  %v12640_v53 = vld [vmem:[#allocation3 + $0x90] sm:$0xf]  ;;  %v12644_v23 = vpop.permute.xlu1 %6907 }
 0x314   : > { %v5123_v59 = vsel %vm9826_vm10, %v5118_v24, %v5122_v1  ;;  %v8783_v49 = vcombine.low %v5453_v50, %v5456_v10  ;;  %v8830_v55 = vcombine.low %v6054_v62, %v6057_v57  ;;  %v6650_v3 = vrot.slane %v6648_v58, 4  ;;  %v12632_v9 = vpop.f32.mrb[26].mxu0  ;;  %13871 = vst [vmem:[#allocation17_spill] sm:$0xff] %v12644_v23 }
 0x315   : > { %v8764_v36 = vcombine.low %v5113_v52, %v5123_v59  ;;  %v6649_v1 = vsel %vm9810_vm5, %v8732_v39, %v6648_v58  ;;  %v5445_v50 = vrot.slane %v12607_v46, 5  ;;  %v5448_v24 = vrot.slane %v12617_v5, 5  ;;  %v12642_v62 = vpop.f32.mrb[27].mxu0 }
 0x316   : > { %6921 = vrot.lane.b32.xlu0 %v8783_v49, %s9387_s11  ;;  %v6046_v56 = vrot.slane %v12511_v25, 5  ;;  %v6652_v52 = vsel %vm9810_vm5, %v6650_v3, %v6651_v63  ;;  %v8717_v10 = vrot.slane %v5932_v15, 9  ;;  %v13872_v39 = vcombine.low %v11554_v0, %v11502_v48  ;;  %v12657_v49 = vld [vmem:[#allocation3 + $0x94] sm:$0xf]  ;;  %v6121_v63 = vld [vmem:[#allocation3 + $0x90] sm:$0xf] }
 0x317   : > { %6835 = vrot.lane.b32.xlu1 %v8764_v36, %s9388_s12  ;;  %v7558_v59 = vsel %vm3693_vm4, %v12224_v6, %v12539_v35  ;;  %v8876_v57 = vcombine.low %v6649_v1, %v6652_v52  ;;  %v5446_v36 = vsel %vm9810_vm5, %v8702_v33, %v5445_v50  ;;  %v5447_v23 = vrot.slane %v5445_v50, 4 }
 0x318   : > { %v7453_v58 = vsel %vm3578_vm1, %v13872_v39, %v12549_v22  ;;  %v6049_v3 = vrot.slane %v12630_v2, 5  ;;  %v6047_v15 = vsel %vm9810_vm5, %v8717_v10, %v6046_v56  ;;  %v6048_v48 = vrot.slane %v6046_v56, 4  ;;  %v12669_v22 = vpop.permute.xlu0 %7161  ;;  %v12679_v56 = vld [vmem:[#allocation3 + $0x94] sm:$0xf] }
 0x319   : > { %v12666_v0 = vsel %vm3627_vm2, %v7453_v58, %v12403_v19  ;;  %v5805_v6 = vshrl.u32 %v12640_v53, 16  ;;  %v5449_v35 = vsel %vm9810_vm5, %v5447_v23, %v5448_v24  ;;  %v7590_v33 = vsel %vm3726_vm6, %v7558_v59, %v12442_v26  ;;  %v12681_v19 = vpop.permute.xlu1 %7007 }
 0x31a   : > { %7427 = vrot.lane.b32.xlu0 %v8876_v57, %s9392_s16  ;;  %v5808_v1 = vshll.u32 %v12640_v53, 16  ;;  %v8800_v50 = vcombine.low %v12640_v53, %v12657_v49  ;;  %13873 = vst [vmem:[#allocation18_spill] sm:$0xff] %v12681_v19  ;;  %v8782_v52 = vcombine.low %v5446_v36, %v5449_v35  ;;  %v6050_v10 = vsel %vm9810_vm5, %v6048_v48, %v6049_v3  ;;  %v4860_v57 = vld [vmem:[#allocation3 + $0xa4] sm:$0x1] }
 0x31b   : > { %7175 = vrot.lane.b32.xlu1 %v8830_v55, %s9391_s15  ;;  %v6390_v23 = vshrl.u32 %v6121_v63, 16  ;;  %v8829_v39 = vcombine.low %v6047_v15, %v6050_v10  ;;  %v12687_v26 = vrot.slane %v5805_v6, 4  ;;  %v6393_v59 = vshll.u32 %v6121_v63, 16  ;;  %v4125_v10 = vld [vmem:[#allocation4 + $0xd0] sm:$0xff] }
 0x31c   : > { %v12689_v58 = vrot.slane %v5808_v1, 5  ;;  %v13874_v55 = vcombine.low %v11632_v41, %v11489_v31  ;;  %v5763_v3 = vor.u32 %v12426_v43, %v12417_v17  ;;  %v8847_v48 = vcombine.low %v6121_v63, %v12679_v56 }
 0x31d   : > { %v12691_v53 = vrot.slane %v6390_v23, 4  ;;  %v12702_v15 = vrot.slane %v6393_v59, 5  ;;  %v5766_v6 = vshll.u32 %v12400_v60, 16  ;;  %v13875_v35 = vshrl.u32 %v12400_v60, 16 }
 0x31e   : > { %v7450_v36 = vsel %vm3578_vm1, %v13874_v55, %v12573_v4  ;;  %7173 = vrot.lane.b32.xlu0 %v8829_v39, %s9391_s15  ;;  %v5764_v41 = vrot.slane %v5763_v3, 4  ;;  %v5776_v17 = vshll.u32 %v12595_v12, 16  ;;  %v6348_v43 = vor.u32 %v12488_v44, %v12429_v18  ;;  %v12714_v4 = vpop.permute.xlu0 %7261  ;;  %v12720_v55 = vpop.permute.xlu1 %7083 }
 0x31f   : > { %v5772_v1 = vrot.slane %v13875_v35, 4  ;;  %6919 = vrot.lane.b32.xlu1 %v8782_v52, %s9387_s11  ;;  %v7496_v31 = vsel %vm3627_vm2, %v7450_v36, %v12457_v13  ;;  %v5768_v63 = vrot.slane %v5766_v6, 5  ;;  %v6351_v23 = vshll.u32 %v12412_v28, 16  ;;  %v4123_v52 = vld [vmem:[#allocation4 + $0xc0] sm:$0xff] }
 0x320   : > { %v13876_v60 = vshrl.u32 %v12412_v28, 16  ;;  %v6361_v59 = vshll.u32 %v12563_v47, 16  ;;  %v5778_v13 = vrot.slane %v5776_v17, 5  ;;  %v6349_v36 = vrot.slane %v6348_v43, 4 }
 0x321   : > { %v4077_v12 = vadd.f32 %v12454_v54, %v12619_v51  ;;  %v4157_v3 = vmul.f32 0.5, %v4125_v10  ;;  %v5769_v18 = vsel %vm9826_vm10, %v5764_v41, %v5768_v63  ;;  %v5773_v44 = vor.u32 %v5772_v1, %v5768_v63  ;;  %v4126_v41 = vld [vmem:[#allocation4 + $0xd8] sm:$0xff] }
 0x322   : > { %v6357_v39 = vrot.slane %v13876_v60, 4  ;;  %7273 = vrot.lane.b32.xlu0 %v8847_v48, %s9390_s14  ;;  %v6353_v6 = vrot.slane %v6351_v23, 5  ;;  %v6363_v28 = vrot.slane %v6361_v59, 5  ;;  %v7622_v35 = vsel %vm3759_vm7, %v7590_v33, %v12158_v16  ;;  %v12740_v33 = vpop.permute.xlu0 %7337 }
 0x323   : > { %7019 = vrot.lane.b32.xlu1 %v8800_v50, %s9389_s13  ;;  %v4189_v47 = vadd.f32 %v4157_v3, %v4077_v12  ;;  %v4069_v17 = vadd.f32 %v12454_v54, %v12628_v38  ;;  %v4155_v43 = vmul.f32 0.5, %v4123_v52  ;;  %v5774_v51 = vrot.slane %v5773_v44, 4 }
 0x324   : > { %v6354_v48 = vsel %vm9826_vm10, %v6349_v36, %v6353_v6  ;;  %v6358_v10 = vor.u32 %v6357_v39, %v6353_v6  ;;  %vm13877_vm9 = vcmask 457728   ;;  %vm13878_vm13 = vcmask 523264   ;;  %v12749_v36 = vld [vmem:[#allocation3 + $0x88] sm:$0xf]  ;;  %v6119_v6 = vld [vmem:[#allocation3 + $0x84] sm:$0xf] }
 0x325   : > { %v7654_v1 = vsel %vm13877_vm9, %v7622_v35, %v12493_v34  ;;  %vm4221_vm12 = vcmp.ge.f32.partialorder %v4189_v47, 1.0  ;;  %v4187_v63 = vadd.f32 %v4155_v43, %v4069_v17  ;;  %v4080_v16 = vadd.f32 %v12454_v54, %v12632_v9  ;;  %v12746_v34 = vpop.permute.xlu1 %7259  ;;  %v4124_v9 = vld [vmem:[#allocation4 + $0xc8] sm:$0xff] }
 0x326   : > { %v7686_v50 = vsel %vm13878_vm13, %v7654_v1, %v12367_v40  ;;  %v5779_v38 = vsel %vm9826_vm10, %v5774_v51, %v5778_v13  ;;  %v6359_v23 = vrot.slane %v6358_v10, 4  ;;  %v4253_v60 = vsel %vm4221_vm12, 0.0, %v4189_v47  ;;  %13880 = vst [vmem:[#allocation19_spill] sm:$0xff] %v12746_v34  ;;  %v13881_v47 = vld [vmem:[#allocation6_spill] sm:$0xff]  ;;  %v4867_v1 = vld [vmem:[#allocation3 + $0xb0] sm:$0x1] }
 0x327   : > { %v8655_v39 = vsel %vm4221_vm12, 1.0, %v13841_v29  ;;  %vm13879_vm8 = vcmask 588800   ;;  %v8814_v59 = vcombine.low %v5769_v18, %v5779_v38  ;;  %4285 = vst.msk [vmem:[#allocation4 + $0xd0] sm:$0xff] %vm3578_vm1, %v4253_v60  ;;  %vm4219_vm9 = vcmp.ge.f32.partialorder %v4187_v63, 1.0 }
 0x328   : > { %9099 = vmatprep.mubr.msk.bf16.mxu1 %vm13879_vm8, %v7686_v50  ;;  %v8999_v40 = vpack.c.bf16 %v8655_v39, %v8655_v39  ;;  %v4158_v52 = vmul.f32 0.5, %v4126_v41  ;;  %v6364_v13 = vsel %vm9826_vm10, %v6359_v23, %v6363_v28  ;;  %v4251_v12 = vsel %vm4219_vm9, 0.0, %v4187_v63  ;;  %v5512_v41 = vld [vmem:[#allocation3 + $0x84] sm:$0xf]  ;;  %v12767_v63 = vpop.permute.xlu0 %7005 }
 0x329   : > { %v8653_v3 = vsel %vm4219_vm9, 1.0, %v13841_v29  ;;  %v4072_v44 = vadd.f32 %v12454_v54, %v12642_v62  ;;  %v12758_v18 = vsel %vm3660_vm3, %v7496_v31, %v13881_v47  ;;  %7095 = vrot.lane.b32.xlu1 %v8814_v59, %s9393_s17  ;;  %v8861_v35 = vcombine.low %v6354_v48, %v6364_v13  ;;  %4283 = vst.msk [vmem:[#allocation4 + $0xc0] sm:$0xff] %vm3578_vm1, %v4251_v12  ;;  %v4863_v48 = vld [vmem:[#allocation3 + $0xa8] sm:$0xf]  ;;  %v4856_v13 = vld [vmem:[#allocation3 + $0x9c] sm:$0xf] }
 0x32a   : > { %v4673_v17 = vshrl.u32 %v8999_v40, 16  ;;  %v8997_v43 = vpack.c.bf16 %v8653_v3, %v8653_v3  ;;  %v4676_v51 = vshll.u32 %v8999_v40, 16  ;;  %v4190_v28 = vadd.f32 %v4158_v52, %v4080_v16  ;;  %v12769_v16 = vpop.permute.xlu1 %6829 }
 0x32b   : > { %v4156_v10 = vmul.f32 0.5, %v4124_v9  ;;  %7349 = vrot.lane.b32.xlu0 %v8861_v35, %s9394_s18  ;;  %v8846_v31 = vcombine.low %v6119_v6, %v12749_v36  ;;  %v6366_v50 = vshrl.u32 %v6119_v6, 16  ;;  %v6369_v60 = vshll.u32 %v6119_v6, 16 }
 0x32c   : > { %v12764_v54 = vrot.slane %v4673_v17, 7  ;;  %v4656_v62 = vshrl.u32 %v8997_v43, 16  ;;  %v4659_v38 = vshll.u32 %v8997_v43, 16  ;;  %vm4222_vm12 = vcmp.ge.f32.partialorder %v4190_v28, 1.0  ;;  %v12785_v17 = vld [vmem:[#allocation3 + $0x88] sm:$0xf] }
 0x32d   : > { %v4188_v23 = vadd.f32 %v4156_v10, %v4072_v44  ;;  %v4254_v40 = vsel %vm4222_vm12, 0.0, %v4190_v28  ;;  %7271 = vrot.lane.b32.xlu1 %v8846_v31, %s9390_s14  ;;  %v5781_v52 = vshrl.u32 %v5512_v41, 16  ;;  %v8656_v12 = vsel %vm4222_vm12, 1.0, %v13841_v29  ;;  %v4904_v43 = vld [vmem:[#allocation3 + $0x78] sm:$0xf] }
 0x32e   : > { %v4678_v39 = vor.u32 %v4676_v51, %v12764_v54  ;;  %v12772_v59 = vrot.slane %v4656_v62, 7  ;;  %v4679_v9 = vrot.slane %v12764_v54, 4  ;;  %4286 = vst.msk [vmem:[#allocation4 + $0xd8] sm:$0xff] %vm3578_vm1, %v4254_v40  ;;  %v12778_v3 = vrot.slane %v6366_v50, 4  ;;  %v12799_v40 = vpop.permute.xlu1 %7335 }
 0x32f   : > { %vm4220_vm13 = vcmp.ge.f32.partialorder %v4188_v23, 1.0  ;;  %v9000_v47 = vpack.c.bf16 %v8656_v12, %v8656_v12  ;;  %v12783_v35 = vrot.slane %v6369_v60, 5  ;;  %v5784_v54 = vshll.u32 %v5512_v41, 16 }
 0x330   : > { %v4864_v44 = vsel %vm9831_vm14, %v4678_v39, %v4863_v48  ;;  %v4661_v6 = vor.u32 %v4659_v38, %v12772_v59  ;;  %v4662_v51 = vrot.slane %v12772_v59, 4  ;;  %v4252_v28 = vsel %vm4220_vm13, 0.0, %v4188_v23  ;;  %v12794_v38 = vpop.permute.xlu0 %7081 }
 0x331   : > { %4865 = vst [vmem:[#allocation3 + $0xa8] sm:$0xf] %v4864_v44  ;;  %v8654_v10 = vsel %vm4220_vm13, 1.0, %v13841_v29  ;;  %v4681_v31 = vshrl.u32 %v9000_v47, 16  ;;  %4284 = vst.msk [vmem:[#allocation4 + $0xc8] sm:$0xff] %vm3578_vm1, %v4252_v28  ;;  %v12792_v48 = vrot.slane %v5781_v52, 4  ;;  %v8799_v23 = vcombine.low %v5512_v41, %v12785_v17 }
 0x332   : > { %v4857_v62 = vsel %vm9831_vm14, %v4661_v6, %v4856_v13  ;;  %v8998_v50 = vpack.c.bf16 %v8654_v10, %v8654_v10  ;;  %v4684_v60 = vshll.u32 %v9000_v47, 16  ;;  %v12796_v39 = vrot.slane %v5784_v54, 5 }
 0x333   : > { %4858 = vst [vmem:[#allocation3 + $0x9c] sm:$0xf] %v4857_v62  ;;  %v5173_v59 = vshrl.u32 %v4904_v43, 16  ;;  %v4683_v12 = vrot.slane %v4681_v31, 7  ;;  %v5176_v6 = vshll.u32 %v4904_v43, 16  ;;  %7017 = vrot.lane.b32.xlu0 %v8799_v23, %s9389_s13  ;;  %v5182_v28 = vshll.u32 %v12580_v27, 16 }
 0x334   : > { %v4664_v44 = vshrl.u32 %v8998_v50, 16  ;;  %v4667_v13 = vshll.u32 %v8998_v50, 16  ;;  %v5186_v10 = vshrl.u32 %v12580_v27, 16  ;;  %v5192_v47 = vshll.u32 %v12592_v61, 16  ;;  %v12811_v61 = vpop.permute.xlu0 %7421 }
 0x335   : > { %v5175_v52 = vrot.slane %v5173_v59, 4  ;;  %v4686_v54 = vor.u32 %v4684_v60, %v4683_v12  ;;  %v4688_v62 = vrot.slane %v4683_v12, 4  ;;  %v5178_v24 = vrot.slane %v5176_v6, 5  ;;  %13882 = vst [vmem:[#allocation6_spill] sm:$0xff] %v12811_v61 }
 0x336   : > { %v4666_v41 = vrot.slane %v4664_v44, 7  ;;  %v5184_v19 = vrot.slane %v5182_v28, 5  ;;  %v5188_v31 = vrot.slane %v5186_v10, 4  ;;  %v5194_v34 = vrot.slane %v5192_v47, 5  ;;  %v12815_v28 = vpop.permute.xlu1 %6827 }
 0x337   : > { %v5739_v43 = vor.u32 %v12541_v11, %v12517_v14  ;;  %v4687_v50 = vsel %vm9837_vm15, %v4679_v9, %v4686_v54  ;;  %v4868_v23 = vsel %vm9856_vm0, %v4688_v62, %v4867_v1  ;;  %v5179_v60 = vor.u32 %v5178_v24, %v5175_v52 }
 0x338   : > { %v4669_v27 = vor.u32 %v4667_v13, %v4666_v41  ;;  %v4671_v59 = vrot.slane %v4666_v41, 4  ;;  %4866 = vst.msk [vmem:[#allocation3 + $0xac] sm:$0xf] %vm893_vm11, %v4687_v50  ;;  %4869 = vst [vmem:[#allocation3 + $0xb0] sm:$0x1] %v4868_v23  ;;  %v5189_v12 = vor.u32 %v5188_v31, %v5184_v19  ;;  %v5742_v6 = vshll.u32 %v12511_v25, 16 }
 0x339   : > { %v5740_v44 = vrot.slane %v5739_v43, 4  ;;  %v13883_v1 = vshrl.u32 %v12511_v25, 16  ;;  %v5752_v13 = vshll.u32 %v12630_v2, 16  ;;  %v5180_v24 = vrot.slane %v5179_v60, 4  ;;  %v6542_v31 = vld [vmem:[#allocation3 + $0x84] sm:$0xe] }
 0x33a   : > { %v4670_v14 = vsel %vm9837_vm15, %v4662_v51, %v4669_v27  ;;  %v4861_v11 = vsel %vm9856_vm0, %v4671_v59, %v4860_v57  ;;  %v5190_v52 = vrot.slane %v5189_v12, 4  ;;  %v5744_v10 = vrot.slane %v5742_v6, 5  ;;  %v13884_v51 = vld [vmem:[#allocation10_spill] sm:$0xff]  ;;  %v12836_v27 = vld [vmem:[#allocation3 + $0x8c] sm:$0x1]  ;;  %v12840_v6 = vpop.permute.xlu0 %6913 }
 0x33b   : > { %v5748_v9 = vrot.slane %v13883_v1, 4  ;;  %4859 = vst.msk [vmem:[#allocation3 + $0xa0] sm:$0xf] %vm893_vm11, %v4670_v14  ;;  %4862 = vst [vmem:[#allocation3 + $0xa4] sm:$0x1] %v4861_v11  ;;  %v6324_v47 = vor.u32 %v12515_v20, %v12509_v30  ;;  %v6327_v62 = vshll.u32 %v13884_v51, 16  ;;  %v5185_v2 = vsel %vm9826_vm10, %v5180_v24, %v5184_v19  ;;  %v12843_v1 = vpop.permute.xlu1 %7167 }
 0x33c   : > { %v13885_v57 = vshrl.u32 %v13884_v51, 16  ;;  %v6337_v25 = vshll.u32 %v12597_v32, 16  ;;  %v5195_v43 = vsel %vm9826_vm10, %v5190_v52, %v5194_v34  ;;  %v5754_v23 = vrot.slane %v5752_v13, 5  ;;  %v4902_v30 = vld [vmem:[#allocation3 + $0x6c] sm:$0xf]  ;;  %13886 = vst [vmem:[#allocation10_spill] sm:$0xff] %v12843_v1 }
 0x33d   : > { %v5749_v50 = vor.u32 %v5748_v9, %v5744_v10  ;;  %v8767_v20 = vcombine.low %v5185_v2, %v5195_v43  ;;  %v5745_v59 = vsel %vm9826_vm10, %v5740_v44, %v5744_v10  ;;  %v6325_v60 = vrot.slane %v6324_v47, 4 }
 0x33e   : > { %v6333_v41 = vrot.slane %v13885_v57, 4  ;;  %v6329_v12 = vrot.slane %v6327_v62, 5  ;;  %v6339_v14 = vrot.slane %v6337_v25, 5  ;;  %v8734_v11 = vrot.slane %v6542_v31, 9  ;;  %v5934_v31 = vld [vmem:[#allocation3 + $0x84] sm:$0xe] }
 0x33f   : > { %v5750_v32 = vrot.slane %v5749_v50, 4  ;;  %v6662_v19 = vrot.slane %v12749_v36, 5  ;;  %6841 = vrot.lane.b32.xlu1 %v8767_v20, %s9388_s12  ;;  %v6665_v9 = vrot.slane %v12836_v27, 5  ;;  %v5149_v13 = vshrl.u32 %v4902_v30, 16  ;;  %v12852_v2 = vpop.f32.mrb[28].mxu0 }
 0x340   : > { %v6334_v34 = vor.u32 %v6333_v41, %v6329_v12  ;;  %v5152_v24 = vshll.u32 %v4902_v30, 16  ;;  %v5158_v47 = vshll.u32 %v12607_v46, 16  ;;  %v5162_v50 = vshrl.u32 %v12607_v46, 16  ;;  %v5935_v30 = vld [vmem:[#allocation3 + $0x90] sm:$0xe]  ;;  %v12858_v20 = vpop.f32.mrb[29].mxu0 }
 0x341   : > { %v5755_v44 = vsel %vm9826_vm10, %v5750_v32, %v5754_v23  ;;  %v6663_v52 = vsel %vm9810_vm5, %v8734_v11, %v6662_v19  ;;  %v6664_v10 = vrot.slane %v6662_v19, 4  ;;  %v5151_v57 = vrot.slane %v5149_v13, 4  ;;  %v12867_v13 = vpop.permute.xlu0 %7419 }
 0x342   : > { %v8813_v51 = vcombine.low %v5745_v59, %v5755_v44  ;;  %v6335_v62 = vrot.slane %v6334_v34, 4  ;;  %v5154_v25 = vrot.slane %v5152_v24, 5  ;;  %v5160_v43 = vrot.slane %v5158_v47, 5  ;;  %v5534_v34 = vld [vmem:[#allocation3 + $0x8c] sm:$0x1] }
 0x343   : > { %v6666_v41 = vsel %vm9810_vm5, %v6664_v10, %v6665_v9  ;;  %v5168_v23 = vshll.u32 %v12617_v5, 16  ;;  %v6330_v59 = vsel %vm9826_vm10, %v6325_v60, %v6329_v12  ;;  %v12865_v9 = vpop.f32.mrb[30].mxu0  ;;  %v5164_v5 = vrot.slane %v5162_v50, 4  ;;  %v12870_v10 = vld [vmem:[#allocation3 + $0x98] sm:$0x1]  ;;  %v12874_v60 = vpop.permute.xlu1 %6911 }
 0x344   : > { %7093 = vrot.lane.b32.xlu0 %v8813_v51, %s9393_s17  ;;  %v6340_v32 = vsel %vm9826_vm10, %v6335_v62, %v6339_v14  ;;  %v8878_v11 = vcombine.low %v6663_v52, %v6666_v41  ;;  %v5155_v19 = vor.u32 %v5154_v25, %v5151_v57  ;;  %v8719_v24 = vrot.slane %v5934_v31, 9  ;;  %v12872_v47 = vpop.f32.mrb[31].mxu0  ;;  %13887 = vst [vmem:[#allocation20_spill] sm:$0xff] %v12874_v60  ;;  %v12880_v41 = vld [vmem:[#allocation3 + $0x98] sm:$0x1] }
 0x345   : > { %v8860_v46 = vcombine.low %v6330_v59, %v6340_v32  ;;  %v6060_v44 = vrot.slane %v12785_v17, 5  ;;  %v5170_v14 = vrot.slane %v5168_v23, 5  ;;  %v8720_v52 = vrot.slane %v5935_v30, 9  ;;  %v5327_v32 = vld [vmem:[#allocation3 + $0x84] sm:$0xe] }
 0x346   : > { %v5156_v12 = vrot.slane %v5155_v19, 4  ;;  %v6067_v51 = vrot.slane %v12657_v49, 5  ;;  %v5165_v62 = vor.u32 %v5164_v5, %v5160_v43  ;;  %v6063_v31 = vrot.slane %v5534_v34, 5 }
 0x347   : > { %7347 = vrot.lane.b32.xlu1 %v8860_v46, %s9394_s18  ;;  %v6061_v57 = vsel %vm9810_vm5, %v8719_v24, %v6060_v44  ;;  %v6062_v25 = vrot.slane %v6060_v44, 4  ;;  %v6070_v23 = vrot.slane %v12870_v10, 5  ;;  %v6396_v30 = vor.u32 %v12702_v15, %v12691_v53  ;;  %v12898_v53 = vld [vmem:[#allocation3 + $0x8c] sm:$0x1]  ;;  %v12900_v15 = vpop.permute.xlu0 %7165  ;;  %v12906_v61 = vpop.permute.xlu1 %7011 }
 0x348   : > { %7431 = vrot.lane.b32.xlu0 %v8878_v11, %s9392_s16  ;;  %v6068_v50 = vsel %vm9810_vm5, %v8720_v52, %v6067_v51  ;;  %v6069_v59 = vrot.slane %v6067_v51, 4  ;;  %v5166_v19 = vrot.slane %v5165_v62, 4  ;;  %v6399_v5 = vshll.u32 %v12679_v56, 16  ;;  %v12893_v11 = vld [vmem:[#allocation3 + $0x88] sm:$0xf] }
 0x349   : > { %v6064_v46 = vsel %vm9810_vm5, %v6062_v25, %v6063_v31  ;;  %v13888_v24 = vshrl.u32 %v12679_v56, 16  ;;  %v6397_v51 = vrot.slane %v6396_v30, 4  ;;  %v6409_v1 = vshll.u32 %v12880_v41, 16 }
 0x34a   : > { %v8831_v54 = vcombine.low %v6061_v57, %v6064_v46  ;;  %v6071_v52 = vsel %vm9810_vm5, %v6069_v59, %v6070_v23  ;;  %v5161_v62 = vsel %vm9826_vm10, %v5156_v12, %v5160_v43  ;;  %v5171_v25 = vsel %vm9826_vm10, %v5166_v19, %v5170_v14 }
 0x34b   : > { %v6405_v44 = vrot.slane %v13888_v24, 4  ;;  %v8832_v31 = vcombine.low %v6068_v50, %v6071_v52  ;;  %v6401_v24 = vrot.slane %v6399_v5, 5  ;;  %v8766_v57 = vcombine.low %v5161_v62, %v5171_v25  ;;  %v9291_v62 = vld [vmem:[#allocation3 + $0x34] sm:$0xf]  ;;  %v9292_v25 = vld [vmem:[#allocation3 + $0x30] sm:$0xf] }
 0x34c   : > { %7177 = vrot.lane.b32.xlu0 %v8831_v54, %s9391_s15  ;;  %v6411_v59 = vrot.slane %v6409_v1, 5  ;;  %v8704_v23 = vrot.slane %v5327_v32, 9  ;;  %v5459_v30 = vrot.slane %v12893_v11, 5  ;;  %v5462_v60 = vrot.slane %v12898_v53, 5 }
 0x34d   : > { %v6406_v46 = vor.u32 %v6405_v44, %v6401_v24  ;;  %v5787_v43 = vor.u32 %v12796_v39, %v12792_v48  ;;  %v5790_v12 = vshll.u32 %v12785_v17, 16  ;;  %6839 = vrot.lane.b32.xlu1 %v8766_v57, %s9388_s12  ;;  %v6402_v14 = vsel %vm9826_vm10, %v6397_v51, %v6401_v24  ;;  %v12925_v24 = vpop.permute.xlu0 %7265 }
 0x34e   : > { %v5461_v50 = vrot.slane %v5459_v30, 4  ;;  %v13889_v54 = vshrl.u32 %v12785_v17, 16  ;;  %v5800_v32 = vshll.u32 %v5534_v34, 16  ;;  %v5460_v5 = vsel %vm9810_vm5, %v8704_v23, %v5459_v30  ;;  %v13890_v23 = vld [vmem:[#allocation12_spill] sm:$0xff] }
 0x34f   : > { %v6407_v19 = vrot.slane %v6406_v46, 4  ;;  %v5788_v44 = vrot.slane %v5787_v43, 4  ;;  %v5792_v52 = vrot.slane %v5790_v12, 5  ;;  %v8745_v57 = vcombine.low %v9292_v25, %v9291_v62  ;;  %v12932_v43 = vpop.permute.xlu1 %7087 }
 0x350   : > { %v5796_v1 = vrot.slane %v13889_v54, 4  ;;  %v5463_v48 = vsel %vm9810_vm5, %v5461_v50, %v5462_v60  ;;  %v5802_v39 = vrot.slane %v5800_v32, 5  ;;  %v5811_v51 = vor.u32 %v12689_v58, %v12687_v26  ;;  %v4129_v32 = vld [vmem:[#allocation4 + $0xf0] sm:$0xff] }
 0x351   : > { %v6412_v17 = vsel %vm9826_vm10, %v6407_v19, %v6411_v59  ;;  %v8784_v34 = vcombine.low %v5460_v5, %v5463_v48  ;;  %v7530_v30 = vsel %vm3660_vm3, %v12666_v0, %v13890_v23  ;;  %7179 = vrot.lane.b32.xlu1 %v8832_v31, %s9391_s15  ;;  %v5793_v12 = vsel %vm9826_vm10, %v5788_v44, %v5792_v52  ;;  %v6543_v59 = vld [vmem:[#allocation3 + $0x90] sm:$0xe]  ;;  %v13891_v31 = vld [vmem:[#allocation15_spill] sm:$0xff]  ;;  %v13892_v19 = vld [vmem:[#allocation8_spill] sm:$0xff] }
 0x352   : > { %v5797_v46 = vor.u32 %v5796_v1, %v5792_v52  ;;  %v8863_v60 = vcombine.low %v6402_v14, %v6412_v17  ;;  %v7459_v26 = vsel %vm3578_vm1, %v8745_v57, %v12769_v16  ;;  %v7562_v58 = vsel %vm3693_vm4, %v7530_v30, %v12794_v38 }
 0x353   : > { %v7594_v54 = vsel %vm3726_vm6, %v7562_v58, %v12669_v22  ;;  %v5812_v0 = vrot.slane %v5811_v51, 4  ;;  %v5814_v1 = vshll.u32 %v12657_v49, 16  ;;  %v12947_v14 = vsel %vm3627_vm2, %v7459_v26, %v13891_v31  ;;  %v9293_v51 = vld [vmem:[%s13810_s2] ss:$0 sm:$0xff]  ;;  %v4130_v31 = vld [vmem:[#allocation4 + $0xf8] sm:$0xff] }
 0x354   : > { %v5798_v50 = vrot.slane %v5797_v46, 4  ;;  %7353 = vrot.lane.b32.xlu0 %v8863_v60, %s9394_s18  ;;  %v12951_v16 = vsel %vm3759_vm7, %v7594_v54, %v13892_v19  ;;  %v13893_v38 = vshrl.u32 %v12657_v49, 16  ;;  %v5824_v44 = vshll.u32 %v12870_v10, 16  ;;  %v4127_v10 = vld [vmem:[#allocation4 + $0xe0] sm:$0xff]  ;;  %v12965_v46 = vpop.permute.xlu0 %7341  ;;  %v9294_v60 = vld [vmem:[%s13811_s3 + $0x20] ss:$0 sps:$4 sm:$0xff]  }
 0x355   : > { %v5816_v52 = vrot.slane %v5814_v1, 5  ;;  %v8735_v48 = vrot.slane %v6543_v59, 9  ;;  %v6669_v62 = vrot.slane %v12679_v56, 5  ;;  %6923 = vrot.lane.b32.xlu1 %v8784_v34, %s9387_s11  ;;  %v6672_v57 = vrot.slane %v12880_v41, 5  ;;  %v12969_v34 = vpop.permute.xlu1 %7263  ;;  %v13896_v54 = vld [vmem:[#allocation7_spill] sm:$0xff] }
 0x356   : > { %v5820_v5 = vrot.slane %v13893_v38, 4  ;;  %v5803_v22 = vsel %vm9826_vm10, %v5798_v50, %v5802_v39  ;;  %v4093_v49 = vadd.f32 %v9293_v51, %v12852_v2  ;;  %v4161_v17 = vmul.f32 0.5, %v4129_v32 }
 0x357   : > { %v8815_v25 = vcombine.low %v5793_v12, %v5803_v22  ;;  %v5826_v23 = vrot.slane %v5824_v44, 5  ;;  %v6670_v56 = vsel %vm9810_vm5, %v8735_v48, %v6669_v62  ;;  %v6671_v30 = vrot.slane %v6669_v62, 4  ;;  %v13895_v12 = vld [vmem:[#allocation11_spill] sm:$0xff]  ;;  %v13897_v62 = vld [vmem:[#allocation13_spill] sm:$0xff] }
 0x358   : > { %v5821_v39 = vor.u32 %v5820_v5, %v5816_v52  ;;  %v4193_v41 = vadd.f32 %v4161_v17, %v4093_v49  ;;  %vm13894_vm8 = vcmask 1043456   ;;  %v7560_v26 = vsel %vm3693_vm4, %v12758_v18, %v13895_v12  ;;  %v6123_v18 = vld [vmem:[#allocation3 + $0x9c] sm:$0xf]  ;;  %v12987_v44 = vld [vmem:[#allocation3 + $0xa0] sm:$0xf]  ;;  %v12996_v49 = vpop.permute.xlu0 %7009 }
 0x359   : > { %7097 = vrot.lane.b32.xlu0 %v8815_v25, %s9393_s17  ;;  %v7793_v2 = vsel %vm13894_vm8, %v9294_v60, 0  ;;  %v4085_v58 = vadd.f32 %v9293_v51, %v12858_v20  ;;  %v6673_v50 = vsel %vm9810_vm5, %v6671_v30, %v6672_v57  ;;  %v7592_v1 = vsel %vm3726_vm6, %v7560_v26, %v13896_v54 }
 0x35a   : > { %v5822_v59 = vrot.slane %v5821_v39, 4  ;;  %9098 = vmatpush3.bf16.msra.mxu1 %v7793_v2  ;;  %v4159_v32 = vmul.f32 0.5, %v4127_v10  ;;  %v5817_v19 = vsel %vm9826_vm10, %v5812_v0, %v5816_v52  ;;  %v8879_v38 = vcombine.low %v6670_v56, %v6673_v50  ;;  %v13002_v56 = vpop.permute.xlu1 %6833  ;;  %v4128_v2 = vld [vmem:[#allocation4 + $0xe8] sm:$0xff] }
 0x35b   : > { %vm4225_vm9 = vcmp.ge.f32.partialorder %v4193_v41, 1.0  ;;  %v4096_v5 = vadd.f32 %v9293_v51, %v12865_v9  ;;  %v7624_v25 = vsel %vm3759_vm7, %v7592_v1, %v13897_v62  ;;  %v4162_v9 = vmul.f32 0.5, %v4130_v31  ;;  %v4877_v50 = vld [vmem:[#allocation3 + $0xc0] sm:$0xf] }
 0x35c   : > { %v5827_v20 = vsel %vm9826_vm10, %v5822_v59, %v5826_v23  ;;  %v4257_v22 = vsel %vm4225_vm9, 0.0, %v4193_v41  ;;  %v8659_v48 = vsel %vm4225_vm9, 1.0, %v13841_v29  ;;  %v4191_v52 = vadd.f32 %v4159_v32, %v4085_v58 }
 0x35d   : > { %v8816_v57 = vcombine.low %v5817_v19, %v5827_v20  ;;  %7433 = vrot.lane.b32.xlu0 %v8879_v38, %s9392_s16  ;;  %4289 = vst.msk [vmem:[#allocation4 + $0xf0] sm:$0xff] %vm3578_vm1, %v4257_v22  ;;  %v9003_v0 = vpack.c.bf16 %v8659_v48, %v8659_v48  ;;  %vm13898_vm12 = vcmask 457728   ;;  %v6427_v10 = vshrl.u32 %v12987_v44, 16 }
 0x35e   : > { %v7656_v17 = vsel %vm13898_vm12, %v7624_v25, %v12799_v40  ;;  %v8848_v39 = vcombine.low %v6123_v18, %v12987_v44  ;;  %v6414_v23 = vshrl.u32 %v6123_v18, 16  ;;  %vm4223_vm13 = vcmp.ge.f32.partialorder %v4191_v52, 1.0 }
 0x35f   : > { %7099 = vrot.lane.b32.xlu1 %v8816_v57, %s9393_s17  ;;  %v4707_v30 = vshrl.u32 %v9003_v0, 16  ;;  %v4194_v41 = vadd.f32 %v4162_v9, %v4096_v5  ;;  %v6417_v60 = vshll.u32 %v6123_v18, 16  ;;  %v4710_v12 = vshll.u32 %v9003_v0, 16  ;;  %v6544_v5 = vld [vmem:[#allocation3 + $0x9c] sm:$0xe]  ;;  %v13026_v9 = vpop.permute.xlu1 %7339 }
 0x360   : > { %v4255_v26 = vsel %vm4223_vm13, 0.0, %v4191_v52  ;;  %v8657_v58 = vsel %vm4223_vm13, 1.0, %v13841_v29  ;;  %v13006_v59 = vrot.slane %v6414_v23, 4  ;;  %v4088_v1 = vadd.f32 %v9293_v51, %v12872_v47  ;;  %v13022_v47 = vld [vmem:[#allocation3 + $0xa4] sm:$0x1]  ;;  %v13024_v51 = vpop.permute.xlu0 %7085 }
 0x361   : > { %v13008_v40 = vrot.slane %v4707_v30, 7  ;;  %4287 = vst.msk [vmem:[#allocation4 + $0xe0] sm:$0xff] %vm3578_vm1, %v4255_v26  ;;  %v9001_v54 = vpack.c.bf16 %v8657_v58, %v8657_v58  ;;  %vm4226_vm8 = vcmp.ge.f32.partialorder %v4194_v41, 1.0  ;;  %v4160_v19 = vmul.f32 0.5, %v4128_v2  ;;  %v9295_v57 = vld [vmem:[#allocation3 + $0x28] sm:$0xf] }
 0x362   : > { %v4258_v32 = vsel %vm4226_vm8, 0.0, %v4194_v41  ;;  %v8660_v31 = vsel %vm4226_vm8, 1.0, %v13841_v29  ;;  %vm13899_vm9 = vcmask 523264   ;;  %v13019_v48 = vrot.slane %v6417_v60, 5  ;;  %v9296_v0 = vld [vmem:[#allocation3 + $0x24] sm:$0xf] }
 0x363   : > { %v7688_v38 = vsel %vm13899_vm9, %v7656_v17, %v12621_v21  ;;  %v4712_v18 = vor.u32 %v4710_v12, %v13008_v40  ;;  %v4713_v20 = vrot.slane %v13008_v40, 4  ;;  %v4690_v22 = vshrl.u32 %v9001_v54, 16  ;;  %4290 = vst.msk [vmem:[#allocation4 + $0xf8] sm:$0xff] %vm3578_vm1, %v4258_v32  ;;  %7275 = vrot.lane.b32.xlu1 %v8848_v39, %s9390_s14  ;;  %v4870_v41 = vld [vmem:[#allocation3 + $0xb4] sm:$0xf] }
 0x364   : > { %vm13900_vm12 = vcmask 588800   ;;  %v4693_v62 = vshll.u32 %v9001_v54, 16  ;;  %v9004_v21 = vpack.c.bf16 %v8660_v31, %v8660_v31  ;;  %v4192_v25 = vadd.f32 %v4160_v19, %v4088_v1  ;;  %v13901_v31 = vld [vmem:[#allocation17_spill] sm:$0xff] }
 0x365   : > { %9100 = vmatmul.mubr.msk.bf16.vlgmr.msra.gmra.mrb[0].mxu1 %vm13900_vm12, %v7688_v38  ;;  %v8744_v52 = vcombine.low %v9296_v0, %v9295_v57  ;;  %v4878_v17 = vsel %vm9831_vm14, %v4712_v18, %v4877_v50  ;;  %v13030_v39 = vrot.slane %v4690_v22, 7  ;;  %v8736_v23 = vrot.slane %v6544_v5, 9  ;;  %v4881_v38 = vld [vmem:[#allocation3 + $0xc8] sm:$0x1] }
 0x366   : > { %v6676_v30 = vrot.slane %v12987_v44, 5  ;;  %4879 = vst [vmem:[#allocation3 + $0xc0] sm:$0xf] %v4878_v17  ;;  %v4715_v60 = vshrl.u32 %v9004_v21, 16  ;;  %vm4224_vm13 = vcmp.ge.f32.partialorder %v4192_v25, 1.0  ;;  %v6679_v12 = vrot.slane %v13022_v47, 5 }
 0x367   : > { %v7456_v2 = vsel %vm3578_vm1, %v8744_v52, %v12815_v28  ;;  %v4695_v26 = vor.u32 %v4693_v62, %v13030_v39  ;;  %v4718_v58 = vshll.u32 %v9004_v21, 16  ;;  %v4256_v40 = vsel %vm4224_vm13, 0.0, %v4192_v25  ;;  %v13051_v62 = vpop.permute.xlu0 %7425  ;;  %v13053_v52 = vpop.permute.xlu1 %6831  ;;  %v13903_v17 = vld [vmem:[#allocation14_spill] sm:$0xff] }
 0x368   : > { %v8658_v50 = vsel %vm4224_vm13, 1.0, %v13841_v29  ;;  %v4696_v54 = vrot.slane %v13030_v39, 4  ;;  %v4717_v1 = vrot.slane %v4715_v60, 7  ;;  %4288 = vst.msk [vmem:[#allocation4 + $0xe8] sm:$0xff] %vm3578_vm1, %v4256_v40  ;;  %v13042_v19 = vsel %vm3627_vm2, %v7456_v2, %v13901_v31 }
 0x369   : > { %v9002_v32 = vpack.c.bf16 %v8658_v50, %v8658_v50  ;;  %v4871_v28 = vsel %vm9831_vm14, %v4695_v26, %v4870_v41  ;;  %v6677_v5 = vsel %vm9810_vm5, %v8736_v23, %v6676_v30  ;;  %v6678_v18 = vrot.slane %v6676_v30, 4  ;;  %vm13904_vm14 = vmmov %vm13899_vm9  ;;  %v5328_v30 = vld [vmem:[#allocation3 + $0x90] sm:$0xe] }
 0x36a   : > { %vm13902_vm8 = vcmask 457728   ;;  %4872 = vst [vmem:[#allocation3 + $0xb4] sm:$0xf] %v4871_v28  ;;  %v4720_v21 = vor.u32 %v4718_v58, %v4717_v1  ;;  %v4722_v25 = vrot.slane %v4717_v1, 4  ;;  %v6372_v23 = vor.u32 %v12783_v35, %v12778_v3  ;;  %vm13905_vm9 = vmmov %vm13900_vm12  ;;  %v4874_v3 = vld [vmem:[#allocation3 + $0xbc] sm:$0x1] }
 0x36b   : > { %v7658_v22 = vsel %vm13902_vm8, %v12951_v16, %v12740_v33  ;;  %v4698_v57 = vshrl.u32 %v9002_v32, 16  ;;  %v4701_v0 = vshll.u32 %v9002_v32, 16  ;;  %v6680_v42 = vsel %vm9810_vm5, %v6678_v18, %v6679_v12  ;;  %v13062_v16 = vld [vmem:[#allocation3 + $0x94] sm:$0xf]  ;;  %v13069_v12 = vld [vmem:[#allocation3 + $0x98] sm:$0x1]  ;;  %vm13917_vm12 = vmmov %vm13902_vm8 }
 0x36c   : > { %v7690_v39 = vsel %vm13904_vm14, %v7658_v22, %v13903_v17  ;;  %v6375_v33 = vshll.u32 %v12749_v36, 16  ;;  %v4721_v41 = vsel %vm9837_vm15, %v4713_v20, %v4720_v21  ;;  %v4882_v60 = vsel %vm9856_vm0, %v4722_v25, %v4881_v38  ;;  %v4906_v38 = vld [vmem:[#allocation3 + $0x84] sm:$0xf]  ;;  %v5516_v25 = vld [vmem:[#allocation3 + $0x9c] sm:$0xf]  ;;  %v13088_v17 = vpop.permute.xlu1 %7171  ;;  %vm13919_vm13 = vmmov %vm13904_vm14 }
 0x36d   : > { %v4700_v2 = vrot.slane %v4698_v57, 7  ;;  %v8880_v26 = vcombine.low %v6677_v5, %v6680_v42  ;;  %9103 = vmatprep.mubr.msk.bf16.mxu1 %vm13905_vm9, %v7690_v39  ;;  %4880 = vst.msk [vmem:[#allocation3 + $0xc4] sm:$0xf] %vm893_vm11, %v4721_v41  ;;  %4883 = vst [vmem:[#allocation3 + $0xc8] sm:$0x1] %v4882_v60  ;;  %v6373_v35 = vrot.slane %v6372_v23, 4 }
 0x36e   : > { %v6377_v58 = vrot.slane %v6375_v33, 5  ;;  %v13906_v40 = vshrl.u32 %v12749_v36, 16  ;;  %v6385_v20 = vshll.u32 %v12836_v27, 16  ;;  %v8705_v31 = vrot.slane %v5328_v30, 9  ;;  %v13080_v36 = vpop.permute.xlu0 %6917  ;;  %v13096_v41 = vld [vmem:[#allocation3 + $0xa0] sm:$0xf] }
 0x36f   : > { %v4703_v1 = vor.u32 %v4701_v0, %v4700_v2  ;;  %v4705_v32 = vrot.slane %v4700_v2, 4  ;;  %7435 = vrot.lane.b32.xlu0 %v8880_v26, %s9392_s16  ;;  %v5466_v28 = vrot.slane %v13062_v16, 5  ;;  %v5469_v21 = vrot.slane %v13069_v12, 5 }
 0x370   : > { %v6381_v50 = vrot.slane %v13906_v40, 4  ;;  %v6378_v5 = vsel %vm9826_vm10, %v6373_v35, %v6377_v58  ;;  %v6387_v22 = vrot.slane %v6385_v20, 5  ;;  %v5197_v23 = vshrl.u32 %v4906_v38, 16 }
 0x371   : > { %v4704_v27 = vsel %vm9837_vm15, %v4696_v54, %v4703_v1  ;;  %v4875_v57 = vsel %vm9856_vm0, %v4705_v32, %v4874_v3  ;;  %v5467_v0 = vsel %vm9810_vm5, %v8705_v31, %v5466_v28  ;;  %v5468_v42 = vrot.slane %v5466_v28, 4  ;;  %vm13913_vm15 = vmmov %vm13904_vm14 }
 0x372   : > { %v6382_v18 = vor.u32 %v6381_v50, %v6377_v58  ;;  %4873 = vst.msk [vmem:[#allocation3 + $0xb8] sm:$0xf] %vm893_vm11, %v4704_v27  ;;  %4876 = vst [vmem:[#allocation3 + $0xbc] sm:$0x1] %v4875_v57  ;;  %v5200_v33 = vshll.u32 %v4906_v38, 16  ;;  %v5206_v30 = vshll.u32 %v12893_v11, 16  ;;  %v13102_v28 = vpop.permute.xlu0 %7423 }
 0x373   : > { %v5470_v45 = vsel %vm9810_vm5, %v5468_v42, %v5469_v21  ;;  %v5210_v8 = vshrl.u32 %v12893_v11, 16  ;;  %v5216_v54 = vshll.u32 %v12898_v53, 16  ;;  %v5829_v60 = vshrl.u32 %v5516_v25, 16  ;;  %v4908_v58 = vld [vmem:[#allocation3 + $0x90] sm:$0xf]  ;;  %vm13912_vm11 = vmmov %vm13902_vm8 }
 0x374   : > { %v6383_v39 = vrot.slane %v6382_v18, 4  ;;  %v8785_v26 = vcombine.low %v5467_v0, %v5470_v45  ;;  %v5199_v3 = vrot.slane %v5197_v23, 4  ;;  %v5202_v35 = vrot.slane %v5200_v33, 5  ;;  %vm13914_vm0 = vmmov %vm13905_vm9 }
 0x375   : > { %v5208_v50 = vrot.slane %v5206_v30, 5  ;;  %v5212_v20 = vrot.slane %v5210_v8, 4  ;;  %v5218_v1 = vrot.slane %v5216_v54, 5  ;;  %v5831_v11 = vrot.slane %v5829_v60, 4  ;;  %v5536_v54 = vld [vmem:[#allocation3 + $0xa4] sm:$0x1]  ;;  %vm13920_vm8 = vmmov %vm13914_vm0 }
 0x376   : > { %v6388_v2 = vsel %vm9826_vm10, %v6383_v39, %v6387_v22  ;;  %6925 = vrot.lane.b32.xlu0 %v8785_v26, %s9387_s11  ;;  %v5203_v32 = vor.u32 %v5202_v35, %v5199_v3  ;;  %v5832_v31 = vshll.u32 %v5516_v25, 16  ;;  %v5842_v53 = vshrl.u32 %v13096_v41, 16  ;;  %vm13923_vm14 = vmmov %vm13912_vm11 }
 0x377   : > { %v8862_v40 = vcombine.low %v6378_v5, %v6388_v2  ;;  %v5213_v38 = vor.u32 %v5212_v20, %v5208_v50  ;;  %v8801_v18 = vcombine.low %v5516_v25, %v13096_v41  ;;  %v5221_v22 = vshrl.u32 %v4908_v58, 16  ;;  %v13106_v5 = vpop.permute.xlu1 %6915  ;;  %v13117_v20 = vpop.permute.xlu0 %7169  ;;  %vm13924_vm9 = vmmov %vm13919_vm13 }
 0x378   : > { %v5224_v21 = vshll.u32 %v4908_v58, 16  ;;  %v5204_v27 = vrot.slane %v5203_v32, 4  ;;  %v5834_v57 = vrot.slane %v5832_v31, 5  ;;  %v5230_v0 = vshll.u32 %v13062_v16, 16 }
 0x379   : > { %7351 = vrot.lane.b32.xlu1 %v8862_v40, %s9394_s18  ;;  %v5234_v42 = vshrl.u32 %v13062_v16, 16  ;;  %v5214_v39 = vrot.slane %v5213_v38, 4  ;;  %v5223_v23 = vrot.slane %v5221_v22, 4  ;;  %v5240_v30 = vshll.u32 %v13069_v12, 16 }
 0x37a   : > { %v5226_v33 = vrot.slane %v5224_v21, 5  ;;  %v5209_v45 = vsel %vm9826_vm10, %v5204_v27, %v5208_v50  ;;  %7021 = vrot.lane.b32.xlu0 %v8801_v18, %s9389_s13  ;;  %v5232_v25 = vrot.slane %v5230_v0, 5  ;;  %v5835_v60 = vor.u32 %v5834_v57, %v5831_v11  ;;  %v13907_v21 = vld [vmem:[#allocation9_spill] sm:$0xff]  ;;  %v5936_v0 = vld [vmem:[#allocation3 + $0x9c] sm:$0xe] }
 0x37b   : > { %v5236_v8 = vrot.slane %v5234_v42, 4  ;;  %v5219_v2 = vsel %vm9826_vm10, %v5214_v39, %v5218_v1  ;;  %v5242_v3 = vrot.slane %v5240_v30, 5  ;;  %v5838_v16 = vshll.u32 %v13096_v41, 16  ;;  %v13121_v11 = vpop.permute.xlu1 %7015  ;;  %v13137_v42 = vld [vmem:[#allocation3 + $0x9c] sm:$0xf] }
 0x37c   : > { %v5227_v26 = vor.u32 %v5226_v33, %v5223_v23  ;;  %v8768_v35 = vcombine.low %v5209_v45, %v5219_v2  ;;  %v5836_v40 = vrot.slane %v5835_v60, 4  ;;  %v5844_v12 = vrot.slane %v5842_v53, 4  ;;  %13908 = vst [vmem:[#allocation12_spill] sm:$0xff] %v13137_v42  ;;  %v13142_v45 = vld [vmem:[#allocation3 + $0xa0] sm:$0xf] }
 0x37d   : > { %v5237_v58 = vor.u32 %v5236_v8, %v5232_v25  ;;  %v5840_v32 = vrot.slane %v5838_v16, 5  ;;  %v5848_v31 = vshll.u32 %v5536_v54, 16  ;;  %v6420_v38 = vor.u32 %v13019_v48, %v13006_v59  ;;  %13909 = vst [vmem:[#allocation15_spill] sm:$0xff] %v13142_v45  ;;  %v4929_v2 = vld [vmem:[#allocation3 + $0xa4] sm:$0x1]  ;;  %v13147_v16 = vpop.permute.xlu0 %7269 }
 0x37e   : > { %v5228_v50 = vrot.slane %v5227_v26, 4  ;;  %6843 = vrot.lane.b32.xlu1 %v8768_v35, %s9388_s12  ;;  %v6423_v18 = vshll.u32 %v12987_v44, 16  ;;  %v6429_v22 = vrot.slane %v6427_v10, 4  ;;  %v6433_v53 = vshll.u32 %v13022_v47, 16 }
 0x37f   : > { %v5238_v1 = vrot.slane %v5237_v58, 4  ;;  %v13131_v27 = vsel %vm3660_vm3, %v13042_v19, %v13907_v21  ;;  %v5841_v48 = vsel %vm9826_vm10, %v5836_v40, %v5840_v32  ;;  %v5845_v57 = vor.u32 %v5844_v12, %v5840_v32  ;;  %v6125_v40 = vld [vmem:[#allocation3 + $0xa8] sm:$0xf]  ;;  %v13153_v12 = vpop.permute.xlu1 %7091  ;;  %v13159_v21 = vld [vmem:[#allocation3 + $0xac] sm:$0xf] }
 0x380   : > { %v5233_v59 = vsel %vm9826_vm10, %v5228_v50, %v5232_v25  ;;  %v5850_v10 = vrot.slane %v5848_v31, 5  ;;  %v6421_v47 = vrot.slane %v6420_v38, 4  ;;  %v6425_v39 = vrot.slane %v6423_v18, 5 }
 0x381   : > { %v5243_v44 = vsel %vm9826_vm10, %v5238_v1, %v5242_v3  ;;  %v5846_v33 = vrot.slane %v5845_v57, 4  ;;  %v6435_v19 = vrot.slane %v6433_v53, 5  ;;  %v6074_v30 = vrot.slane %v13096_v41, 5 }
 0x382   : > { %v8769_v23 = vcombine.low %v5233_v59, %v5243_v44  ;;  %v6426_v25 = vsel %vm9826_vm10, %v6421_v47, %v6425_v39  ;;  %v6430_v8 = vor.u32 %v6429_v22, %v6425_v39  ;;  %v8721_v60 = vrot.slane %v5936_v0, 9  ;;  %v5329_v39 = vld [vmem:[#allocation3 + $0x9c] sm:$0xe] }
 0x383   : > { %v5245_v26 = vshrl.u32 %v13137_v42, 16  ;;  %v5851_v3 = vsel %vm9826_vm10, %v5846_v33, %v5850_v10  ;;  %v6076_v35 = vrot.slane %v6074_v30, 4  ;;  %v6077_v58 = vrot.slane %v5536_v54, 5 }
 0x384   : > { %6845 = vrot.lane.b32.xlu1 %v8769_v23, %s9388_s12  ;;  %v5248_v41 = vshll.u32 %v13137_v42, 16  ;;  %v8817_v50 = vcombine.low %v5841_v48, %v5851_v3  ;;  %v6431_v32 = vrot.slane %v6430_v8, 4  ;;  %v5254_v38 = vshll.u32 %v13142_v45, 16  ;;  %v13167_v3 = vpop.permute.xlu0 %7345 }
 0x385   : > { %v5247_v31 = vrot.slane %v5245_v26, 4  ;;  %v6078_v1 = vsel %vm9810_vm5, %v6076_v35, %v6077_v58  ;;  %v5258_v22 = vshrl.u32 %v13142_v45, 16  ;;  %v5264_v53 = vshll.u32 %v4929_v2, 16 }
 0x386   : > { %v5250_v18 = vrot.slane %v5248_v41, 5  ;;  %7101 = vrot.lane.b32.xlu0 %v8817_v50, %s9393_s17  ;;  %v6436_v54 = vsel %vm9826_vm10, %v6431_v32, %v6435_v19  ;;  %v6075_v59 = vsel %vm9810_vm5, %v8721_v60, %v6074_v30  ;;  %v5256_v48 = vrot.slane %v5254_v38, 5  ;;  %v9297_v50 = vld [vmem:[#allocation3 + $0x4c] sm:$0xf]  ;;  %v9298_v32 = vld [vmem:[#allocation3 + $0x48] sm:$0xf] }
 0x387   : > { %v6438_v57 = vshrl.u32 %v6125_v40, 16  ;;  %v8864_v0 = vcombine.low %v6426_v25, %v6436_v54  ;;  %v8833_v44 = vcombine.low %v6075_v59, %v6078_v1  ;;  %v5260_v47 = vrot.slane %v5258_v22, 4  ;;  %v13172_v25 = vpop.permute.xlu1 %7267  ;;  %v13175_v38 = vld [vmem:[#allocation3 + $0xb0] sm:$0x1] }
 0x388   : > { %v5251_v10 = vor.u32 %v5250_v18, %v5247_v31  ;;  %v5266_v23 = vrot.slane %v5264_v53, 5  ;;  %v6441_v8 = vshll.u32 %v6125_v40, 16  ;;  %v6451_v26 = vshrl.u32 %v13159_v21, 16 }
 0x389   : > { %v6440_v33 = vrot.slane %v6438_v57, 4  ;;  %7355 = vrot.lane.b32.xlu1 %v8864_v0, %s9394_s18  ;;  %v5261_v35 = vor.u32 %v5260_v47, %v5256_v48  ;;  %v8849_v30 = vcombine.low %v6125_v40, %v13159_v21  ;;  %v5473_v60 = vrot.slane %v13142_v45, 5 }
 0x38a   : > { %v5252_v19 = vrot.slane %v5251_v10, 4  ;;  %7181 = vrot.lane.b32.xlu0 %v8833_v44, %s9391_s15  ;;  %v6443_v58 = vrot.slane %v6441_v8, 5  ;;  %v8706_v41 = vrot.slane %v5329_v39, 9  ;;  %v8747_v31 = vcombine.low %v9298_v32, %v9297_v50  ;;  %v5518_v44 = vld [vmem:[#allocation3 + $0xa8] sm:$0xf] }
 0x38b   : > { %v6447_v1 = vshll.u32 %v13159_v21, 16  ;;  %v5262_v22 = vrot.slane %v5261_v35, 4  ;;  %v5475_v40 = vrot.slane %v5473_v60, 4  ;;  %v5476_v53 = vrot.slane %v4929_v2, 5  ;;  %v13189_v8 = vld [vmem:[#allocation3 + $0xac] sm:$0xf] }
 0x38c   : > { %v5257_v18 = vsel %vm9826_vm10, %v5252_v19, %v5256_v48  ;;  %v7465_v54 = vsel %vm3578_vm1, %v8747_v31, %v13002_v56  ;;  %v6444_v59 = vor.u32 %v6443_v58, %v6440_v33  ;;  %v6453_v0 = vrot.slane %v6451_v26, 4  ;;  %v6545_v31 = vld [vmem:[#allocation3 + $0xa8] sm:$0xe] }
 0x38d   : > { %v6449_v57 = vrot.slane %v6447_v1, 5  ;;  %v5267_v10 = vsel %vm9826_vm10, %v5262_v22, %v5266_v23  ;;  %v5474_v47 = vsel %vm9810_vm5, %v8706_v41, %v5473_v60  ;;  %v5477_v39 = vsel %vm9810_vm5, %v5475_v40, %v5476_v53  ;;  %v13196_v23 = vpop.permute.xlu0 %7013  ;;  %v13201_v41 = vpop.permute.xlu1 %6837 }
 0x38e   : > { %v6457_v48 = vshll.u32 %v13175_v38, 16  ;;  %v8770_v2 = vcombine.low %v5257_v18, %v5267_v10  ;;  %7277 = vrot.lane.b32.xlu0 %v8849_v30, %s9390_s14  ;;  %v13194_v56 = vsel %vm3627_vm2, %v7465_v54, %v12840_v6  ;;  %v6445_v33 = vrot.slane %v6444_v59, 4  ;;  %v13219_v54 = vld [vmem:[#allocation3 + $0xb0] sm:$0x1] }
 0x38f   : > { %v6454_v26 = vor.u32 %v6453_v0, %v6449_v57  ;;  %v8786_v19 = vcombine.low %v5474_v47, %v5477_v39  ;;  %v7534_v35 = vsel %vm3660_vm3, %v12947_v14, %v12767_v63  ;;  %v5853_v60 = vshrl.u32 %v5518_v44, 16  ;;  %v13911_v47 = vld [vmem:[#allocation19_spill] sm:$0xff] }
 0x390   : > { %v5856_v58 = vshll.u32 %v5518_v44, 16  ;;  %6847 = vrot.lane.b32.xlu1 %v8770_v2, %s9388_s12  ;;  %v6459_v50 = vrot.slane %v6457_v48, 5  ;;  %v7566_v6 = vsel %vm3693_vm4, %v7534_v35, %v13024_v51  ;;  %v5866_v32 = vshrl.u32 %v13189_v8, 16  ;;  %v13228_v2 = vld [vmem:[#allocation3 + $0xb8] sm:$0xf] }
 0x391   : > { %v6455_v30 = vrot.slane %v6454_v26, 4  ;;  %v6450_v1 = vsel %vm9826_vm10, %v6445_v33, %v6449_v57  ;;  %v7598_v63 = vsel %vm3726_vm6, %v7566_v6, %v12900_v15  ;;  %v5855_v14 = vrot.slane %v5853_v60, 4  ;;  %v13910_v57 = vld [vmem:[#allocation16_spill] sm:$0xff]  ;;  %v13237_v35 = vpop.permute.xlu1 %7343  ;;  %v9300_v6 = vld [vmem:[#allocation3 + $0x3c] sm:$0xf] }
 0x392   : > { %v5858_v18 = vrot.slane %v5856_v58, 5  ;;  %v7630_v40 = vsel %vm3759_vm7, %v7598_v63, %v12714_v4  ;;  %v8802_v53 = vcombine.low %v5518_v44, %v13189_v8  ;;  %v7564_v51 = vsel %vm3693_vm4, %v13131_v27, %v12720_v55  ;;  %v13230_v55 = vpop.permute.xlu0 %7089 }
 0x393   : > { %v6460_v22 = vsel %vm9826_vm10, %v6455_v30, %v6459_v50  ;;  %v7596_v15 = vsel %vm3726_vm6, %v7564_v51, %v13910_v57  ;;  %v8737_v0 = vrot.slane %v6545_v31, 9  ;;  %v6683_v10 = vrot.slane %v13159_v21, 5  ;;  %v9299_v50 = vld [vmem:[#allocation3 + $0x40] sm:$0xf]  ;;  %v13241_v31 = vld [vmem:[#allocation3 + $0xbc] sm:$0x1] }
 0x394   : > { %v8865_v59 = vcombine.low %v6450_v1, %v6460_v22  ;;  %6927 = vrot.lane.b32.xlu1 %v8786_v19, %s9387_s11  ;;  %v7628_v4 = vsel %vm3759_vm7, %v7596_v15, %v13911_v47  ;;  %v5859_v39 = vor.u32 %v5858_v18, %v5855_v14  ;;  %v5862_v44 = vshll.u32 %v13189_v8, 16  ;;  %v6546_v19 = vld [vmem:[#allocation3 + $0xb4] sm:$0xe]  ;;  %v5937_v51 = vld [vmem:[#allocation3 + $0xa8] sm:$0xe] }
 0x395   : > { %v5868_v48 = vrot.slane %v5866_v32, 4  ;;  %v7660_v27 = vsel %vm13912_vm11, %v7628_v4, %v13026_v9  ;;  %v6685_v33 = vrot.slane %v6683_v10, 4  ;;  %v6686_v21 = vrot.slane %v13175_v38, 5  ;;  %v13915_v57 = vld [vmem:[#allocation20_spill] sm:$0xff]  ;;  %vm13925_vm11 = vmmov %vm13914_vm0 }
 0x396   : > { %7357 = vrot.lane.b32.xlu0 %v8865_v59, %s9394_s18  ;;  %v5872_v26 = vshll.u32 %v13219_v54, 16  ;;  %v5860_v60 = vrot.slane %v5859_v39, 4  ;;  %v5864_v58 = vrot.slane %v5862_v44, 5  ;;  %v7692_v30 = vsel %vm13913_vm15, %v7660_v27, %v12867_v13  ;;  %v13257_v47 = vld [vmem:[#allocation3 + $0xac] sm:$0xf]  ;;  %v13916_v39 = vld [vmem:[#allocation18_spill] sm:$0xff]  ;;  %v13268_v27 = vpop.permute.xlu0 %7429  ;;  %vm13926_vm15 = vmmov %vm13917_vm12 }
 0x397   : > { %v8746_v32 = vcombine.low %v9300_v6, %v9299_v50  ;;  %v6684_v9 = vsel %vm9810_vm5, %v8737_v0, %v6683_v10  ;;  %v6687_v38 = vsel %vm9810_vm5, %v6685_v33, %v6686_v21  ;;  %9104 = vmatmul.mubr.msk.bf16.gmra.mrb[4].mxu1 %vm13914_vm0, %v7692_v30  ;;  %v6690_v63 = vrot.slane %v13228_v2, 5  ;;  %v5330_v4 = vld [vmem:[#allocation3 + $0xa8] sm:$0xe]  ;;  %v13918_v21 = vld [vmem:[#allocation6_spill] sm:$0xff]  ;;  %v6127_v30 = vld [vmem:[#allocation3 + $0xb4] sm:$0xf]  ;;  %v13277_v50 = vpop.permute.xlu1 %6835 }
 0x398   : > { %v5874_v1 = vrot.slane %v5872_v26, 5  ;;  %7023 = vrot.lane.b32.xlu1 %v8802_v53, %s9389_s13  ;;  %v8881_v14 = vcombine.low %v6684_v9, %v6687_v38  ;;  %v5869_v13 = vor.u32 %v5868_v48, %v5864_v58  ;;  %v8738_v22 = vrot.slane %v6546_v19, 9  ;;  %v5520_v9 = vld [vmem:[#allocation3 + $0xb4] sm:$0xf]  ;;  %vm13927_vm0 = vmmov %vm13924_vm9 }
 0x399   : > { %v7462_v18 = vsel %vm3578_vm1, %v8746_v32, %v13053_v52  ;;  %v5865_v59 = vsel %vm9826_vm10, %v5860_v60, %v5864_v58  ;;  %v6692_v0 = vrot.slane %v6690_v63, 4  ;;  %v6693_v10 = vrot.slane %v13241_v31, 5  ;;  %v13275_v58 = vld [vmem:[#allocation3 + $0xb0] sm:$0x1] }
 0x39a   : > { %v7504_v15 = vsel %vm3627_vm2, %v7462_v18, %v13915_v57  ;;  %7437 = vrot.lane.b32.xlu0 %v8881_v14, %s9392_s16  ;;  %v5870_v53 = vrot.slane %v5869_v13, 4  ;;  %v6691_v44 = vsel %vm9810_vm5, %v8738_v22, %v6690_v63  ;;  %v7662_v48 = vsel %vm13917_vm12, %v7630_v40, %v12965_v46  ;;  %v13286_v13 = vld [vmem:[#allocation3 + $0xb8] sm:$0xf]  ;;  %vm13928_vm12 = vmmov %vm13920_vm8 }
 0x39b   : > { %v13262_v52 = vsel %vm3660_vm3, %v7504_v15, %v13916_v39  ;;  %v6694_v33 = vsel %vm9810_vm5, %v6692_v0, %v6693_v10  ;;  %v7694_v26 = vsel %vm13919_vm13, %v7662_v48, %v13918_v21  ;;  %v8722_v19 = vrot.slane %v5937_v51, 9  ;;  %v13298_v39 = vpop.permute.xlu0 %6921  ;;  %vm13929_vm13 = vmmov %vm13923_vm14 }
 0x39c   : > { %v6081_v60 = vrot.slane %v13189_v8, 5  ;;  %v5875_v6 = vsel %vm9826_vm10, %v5870_v53, %v5874_v1  ;;  %v8882_v46 = vcombine.low %v6691_v44, %v6694_v33  ;;  %9107 = vmatprep.mubr.msk.bf16.mxu1 %vm13920_vm8, %v7694_v26  ;;  %v8707_v40 = vrot.slane %v5330_v4, 9  ;;  %v13300_v26 = vld [vmem:[#allocation3 + $0xbc] sm:$0x1]  ;;  %vm13930_vm8 = vmmov %vm13929_vm13 }
 0x39d   : > { %v5480_v32 = vrot.slane %v13257_v47, 5  ;;  %v8818_v38 = vcombine.low %v5865_v59, %v5875_v6  ;;  %v6084_v14 = vrot.slane %v13219_v54, 5  ;;  %v5483_v22 = vrot.slane %v13275_v58, 5 }
 0x39e   : > { %v6082_v63 = vsel %vm9810_vm5, %v8722_v19, %v6081_v60  ;;  %v6083_v8 = vrot.slane %v6081_v60, 4  ;;  %7439 = vrot.lane.b32.xlu0 %v8882_v46, %s9392_s16  ;;  %v6462_v51 = vshrl.u32 %v6127_v30, 16  ;;  %v6465_v57 = vshll.u32 %v6127_v30, 16  ;;  %v13302_v19 = vpop.permute.xlu1 %7175 }
 0x39f   : > { %v5481_v1 = vsel %vm9810_vm5, %v8707_v40, %v5480_v32  ;;  %v5482_v18 = vrot.slane %v5480_v32, 4  ;;  %7103 = vrot.lane.b32.xlu1 %v8818_v38, %s9393_s17  ;;  %v5877_v15 = vshrl.u32 %v5520_v9, 16  ;;  %v5880_v0 = vshll.u32 %v5520_v9, 16  ;;  %v13308_v32 = vld [vmem:[#allocation3 + $0xa8] sm:$0xf] }
 0x3a0   : > { %v6085_v59 = vsel %vm9810_vm5, %v6083_v8, %v6084_v14  ;;  %v6464_v4 = vrot.slane %v6462_v51, 4  ;;  %v5890_v53 = vshrl.u32 %v13286_v13, 16  ;;  %v6467_v48 = vrot.slane %v6465_v57, 5 }
 0x3a1   : > { %v8834_v54 = vcombine.low %v6082_v63, %v6085_v59  ;;  %v5484_v10 = vsel %vm9810_vm5, %v5482_v18, %v5483_v22  ;;  %v5879_v33 = vrot.slane %v5877_v15, 4  ;;  %v5882_v21 = vrot.slane %v5880_v0, 5 }
 0x3a2   : > { %v8787_v44 = vcombine.low %v5481_v1, %v5484_v10  ;;  %v8850_v60 = vcombine.low %v6127_v30, %v13228_v2  ;;  %v6471_v6 = vshll.u32 %v13228_v2, 16  ;;  %v6475_v46 = vshrl.u32 %v13228_v2, 16  ;;  %v13318_v10 = vpop.permute.xlu0 %7427 }
 0x3a3   : > { %v6481_v40 = vshll.u32 %v13241_v31, 16  ;;  %7183 = vrot.lane.b32.xlu1 %v8834_v54, %s9391_s15  ;;  %v6468_v38 = vor.u32 %v6467_v48, %v6464_v4  ;;  %v5883_v63 = vor.u32 %v5882_v21, %v5879_v33  ;;  %v5886_v8 = vshll.u32 %v13286_v13, 16  ;;  %v5938_v48 = vld [vmem:[#allocation3 + $0xb4] sm:$0xe]  ;;  %v13324_v33 = vpop.permute.xlu1 %6919 }
 0x3a4   : > { %6929 = vrot.lane.b32.xlu0 %v8787_v44, %s9387_s11  ;;  %v5892_v14 = vrot.slane %v5890_v53, 4  ;;  %v8803_v1 = vcombine.low %v5520_v9, %v13286_v13  ;;  %v6473_v30 = vrot.slane %v6471_v6, 5  ;;  %v6477_v18 = vrot.slane %v6475_v46, 4 }
 0x3a5   : > { %v5896_v22 = vshll.u32 %v13300_v26, 16  ;;  %v6469_v2 = vrot.slane %v6468_v38, 4  ;;  %v5884_v51 = vrot.slane %v5883_v63, 4  ;;  %v5888_v31 = vrot.slane %v5886_v8, 5 }
 0x3a6   : > { %v5269_v59 = vshrl.u32 %v13308_v32, 16  ;;  %v6478_v57 = vor.u32 %v6477_v18, %v6473_v30  ;;  %v6483_v15 = vrot.slane %v6481_v40, 5  ;;  %v5272_v0 = vshll.u32 %v13308_v32, 16 }
 0x3a7   : > { %v5278_v54 = vshll.u32 %v13257_v47, 16  ;;  %7279 = vrot.lane.b32.xlu1 %v8850_v60, %s9390_s14  ;;  %v6474_v9 = vsel %vm9826_vm10, %v6469_v2, %v6473_v30  ;;  %v5893_v4 = vor.u32 %v5892_v14, %v5888_v31  ;;  %v5898_v53 = vrot.slane %v5896_v22, 5  ;;  %v13333_v22 = vld [vmem:[#allocation3 + $0xb4] sm:$0xf]  ;;  %v13335_v2 = vld [vmem:[#allocation3 + $0xb8] sm:$0xf] }
 0x3a8   : > { %7025 = vrot.lane.b32.xlu0 %v8803_v1, %s9389_s13  ;;  %v5271_v44 = vrot.slane %v5269_v59, 4  ;;  %v6479_v21 = vrot.slane %v6478_v57, 4  ;;  %v5274_v6 = vrot.slane %v5272_v0, 5  ;;  %v5282_v40 = vshrl.u32 %v13257_v47, 16 }
 0x3a9   : > { %v5280_v46 = vrot.slane %v5278_v54, 5  ;;  %v5889_v38 = vsel %vm9826_vm10, %v5884_v51, %v5888_v31  ;;  %v5894_v60 = vrot.slane %v5893_v4, 4  ;;  %v5288_v63 = vshll.u32 %v13275_v58, 16  ;;  %v13340_v58 = vld [vmem:[#allocation3 + $0xbc] sm:$0x1]  ;;  %v13342_v4 = vpop.permute.xlu0 %7173 }
 0x3aa   : > { %v6088_v8 = vrot.slane %v13286_v13, 5  ;;  %v6484_v14 = vsel %vm9826_vm10, %v6479_v21, %v6483_v15  ;;  %v5275_v1 = vor.u32 %v5274_v6, %v5271_v44  ;;  %v5284_v30 = vrot.slane %v5282_v40, 4  ;;  %v6129_v21 = vld [vmem:[#allocation3 + $0xc0] sm:$0xf] }
 0x3ab   : > { %v8723_v18 = vrot.slane %v5938_v48, 9  ;;  %v8866_v59 = vcombine.low %v6474_v9, %v6484_v14  ;;  %v5899_v57 = vsel %vm9826_vm10, %v5894_v60, %v5898_v53  ;;  %v5290_v51 = vrot.slane %v5288_v63, 5  ;;  %v13357_v63 = vld [vmem:[#allocation3 + $0xc4] sm:$0xf] }
 0x3ac   : > { %v6091_v31 = vrot.slane %v13300_v26, 5  ;;  %v8819_v13 = vcombine.low %v5889_v38, %v5899_v57  ;;  %v5276_v0 = vrot.slane %v5275_v1, 4  ;;  %v5285_v54 = vor.u32 %v5284_v30, %v5280_v46  ;;  %v13349_v26 = vpop.permute.xlu1 %7019 }
 0x3ad   : > { %v6090_v15 = vrot.slane %v6088_v8, 4  ;;  %7359 = vrot.lane.b32.xlu1 %v8866_v59, %s9394_s18  ;;  %v5293_v44 = vshrl.u32 %v13333_v22, 16  ;;  %v5296_v9 = vshll.u32 %v13333_v22, 16  ;;  %v5302_v48 = vshll.u32 %v13335_v2, 16  ;;  %13921 = vst [vmem:[#allocation8_spill] sm:$0xff] %v13349_v26 }
 0x3ae   : > { %v5306_v53 = vshrl.u32 %v13335_v2, 16  ;;  %7105 = vrot.lane.b32.xlu0 %v8819_v13, %s9393_s17  ;;  %v5286_v6 = vrot.slane %v5285_v54, 4  ;;  %v6089_v40 = vsel %vm9810_vm5, %v8723_v18, %v6088_v8  ;;  %v5312_v60 = vshll.u32 %v13340_v58, 16  ;;  %v5331_v8 = vld [vmem:[#allocation3 + $0xb4] sm:$0xe] }
 0x3af   : > { %v6092_v38 = vsel %vm9810_vm5, %v6090_v15, %v6091_v31  ;;  %v5281_v14 = vsel %vm9826_vm10, %v5276_v0, %v5280_v46  ;;  %v5295_v1 = vrot.slane %v5293_v44, 4  ;;  %v5298_v30 = vrot.slane %v5296_v9, 5  ;;  %v13366_v44 = vpop.permute.xlu0 %7273 }
 0x3b0   : > { %v5304_v59 = vrot.slane %v5302_v48, 5  ;;  %v5291_v57 = vsel %vm9826_vm10, %v5286_v6, %v5290_v51  ;;  %v8835_v13 = vcombine.low %v6089_v40, %v6092_v38  ;;  %v5308_v54 = vrot.slane %v5306_v53, 4  ;;  %v13370_v6 = vld [vmem:[#allocation3 + $0xc8] sm:$0x1]  ;;  %v13372_v40 = vpop.permute.xlu1 %7095 }
 0x3b1   : > { %v6486_v29 = vshrl.u32 %v6129_v21, 16  ;;  %v8771_v18 = vcombine.low %v5281_v14, %v5291_v57  ;;  %v5299_v42 = vor.u32 %v5298_v30, %v5295_v1  ;;  %v6489_v31 = vshll.u32 %v6129_v21, 16  ;;  %v9301_v30 = vld [vmem:[#allocation3 + $0x64] sm:$0xf] }
 0x3b2   : > { %v6499_v15 = vshrl.u32 %v13357_v63, 16  ;;  %7185 = vrot.lane.b32.xlu0 %v8835_v13, %s9391_s15  ;;  %v5309_v45 = vor.u32 %v5308_v54, %v5304_v59  ;;  %v5314_v26 = vrot.slane %v5312_v60, 5  ;;  %v8851_v0 = vcombine.low %v6129_v21, %v13357_v63 }
 0x3b3   : > { %v6488_v46 = vrot.slane %v6486_v29, 4  ;;  %6849 = vrot.lane.b32.xlu1 %v8771_v18, %s9388_s12  ;;  %v5300_v51 = vrot.slane %v5299_v42, 4  ;;  %v6491_v9 = vrot.slane %v6489_v31, 5  ;;  %v8708_v48 = vrot.slane %v5331_v8, 9  ;;  %v9302_v42 = vld [vmem:[#allocation3 + $0x60] sm:$0xf] }
 0x3b4   : > { %v5487_v53 = vrot.slane %v13335_v2, 5  ;;  %v5310_v38 = vrot.slane %v5309_v45, 4  ;;  %v5490_v14 = vrot.slane %v13340_v58, 5  ;;  %v6495_v29 = vshll.u32 %v13357_v63, 16  ;;  %v5522_v18 = vld [vmem:[#allocation3 + $0xc0] sm:$0xf] }
 0x3b5   : > { %v6501_v60 = vrot.slane %v6499_v15, 4  ;;  %v5305_v21 = vsel %vm9826_vm10, %v5300_v51, %v5304_v59  ;;  %v8749_v57 = vcombine.low %v9302_v42, %v9301_v30  ;;  %v6492_v13 = vor.u32 %v6491_v9, %v6488_v46  ;;  %v13388_v51 = vld [vmem:[#allocation3 + $0xc4] sm:$0xf] }
 0x3b6   : > { %v5489_v1 = vrot.slane %v5487_v53, 4  ;;  %v5315_v54 = vsel %vm9826_vm10, %v5310_v38, %v5314_v26  ;;  %7281 = vrot.lane.b32.xlu0 %v8851_v0, %s9390_s14  ;;  %v5488_v45 = vsel %vm9810_vm5, %v8708_v48, %v5487_v53  ;;  %v6497_v58 = vrot.slane %v6495_v29, 5  ;;  %v13393_v53 = vpop.permute.xlu0 %7349 }
 0x3b7   : > { %v6505_v8 = vshll.u32 %v13370_v6, 16  ;;  %v8772_v31 = vcombine.low %v5305_v21, %v5315_v54  ;;  %v7471_v15 = vsel %vm3578_vm1, %v8749_v57, %v13201_v41  ;;  %v6493_v46 = vrot.slane %v6492_v13, 4  ;;  %v6547_v21 = vld [vmem:[#allocation3 + $0xc0] sm:$0xe] }
 0x3b8   : > { %v5491_v59 = vsel %vm9810_vm5, %v5489_v1, %v5490_v14  ;;  %v6502_v9 = vor.u32 %v6501_v60, %v6497_v58  ;;  %v7538_v48 = vsel %vm3660_vm3, %v13194_v56, %v12996_v49  ;;  %v5901_v14 = vshrl.u32 %v5522_v18, 16  ;;  %v13400_v1 = vpop.permute.xlu1 %7271 }
 0x3b9   : > { %v8788_v26 = vcombine.low %v5488_v45, %v5491_v59  ;;  %v6507_v0 = vrot.slane %v6505_v8, 5  ;;  %6851 = vrot.lane.b32.xlu1 %v8772_v31, %s9388_s12  ;;  %v6498_v38 = vsel %vm9826_vm10, %v6493_v46, %v6497_v58  ;;  %v7570_v41 = vsel %vm3693_vm4, %v7538_v48, %v13230_v55  ;;  %v13922_v45 = vld [vmem:[#allocation10_spill] sm:$0xff]  ;;  %v5539_v31 = vld [vmem:[#allocation3 + $0xc8] sm:$0x1] }
 0x3ba   : > { %v5904_v29 = vshll.u32 %v5522_v18, 16  ;;  %v6503_v60 = vrot.slane %v6502_v9, 4  ;;  %v7602_v30 = vsel %vm3726_vm6, %v7570_v41, %v13117_v20  ;;  %v5914_v49 = vshrl.u32 %v13388_v51, 16 }
 0x3bb   : > { %v8804_v56 = vcombine.low %v5522_v18, %v13388_v51  ;;  %v7634_v42 = vsel %vm3759_vm7, %v7602_v30, %v12925_v24  ;;  %v5903_v57 = vrot.slane %v5901_v14, 4  ;;  %v7568_v55 = vsel %vm3693_vm4, %v13262_v52, %v12932_v43  ;;  %v9303_v14 = vld [vmem:[#allocation3 + $0x58] sm:$0xf]  ;;  %v13437_v30 = vld [vmem:[#allocation3 + $0xcc] sm:$0xf] }
 0x3bc   : > { %v5906_v13 = vrot.slane %v5904_v29, 5  ;;  %v6508_v54 = vsel %vm9826_vm10, %v6503_v60, %v6507_v0  ;;  %v7600_v58 = vsel %vm3726_vm6, %v7568_v55, %v13922_v45  ;;  %v8739_v20 = vrot.slane %v6547_v21, 9  ;;  %v9304_v29 = vld [vmem:[#allocation3 + $0x54] sm:$0xf] }
 0x3bd   : > { %v6697_v8 = vrot.slane %v13357_v63, 5  ;;  %6931 = vrot.lane.b32.xlu1 %v8788_v26, %s9387_s11  ;;  %v8867_v18 = vcombine.low %v6498_v38, %v6508_v54  ;;  %v7632_v24 = vsel %vm3759_vm7, %v7600_v58, %v12969_v34  ;;  %v6700_v59 = vrot.slane %v13370_v6, 5  ;;  %v13425_v63 = vpop.permute.xlu0 %7017  ;;  %v13430_v6 = vpop.permute.xlu1 %6841  ;;  %v13446_v54 = vld [vmem:[#allocation3 + $0xd0] sm:$0xf] }
 0x3be   : > { %v5907_v46 = vor.u32 %v5906_v13, %v5903_v57  ;;  %v7664_v43 = vsel %vm13923_vm14, %v7632_v24, %v13237_v35  ;;  %v5910_v0 = vshll.u32 %v13388_v51, 16  ;;  %v5916_v48 = vrot.slane %v5914_v49, 4  ;;  %vm13931_vm14 = vmmov %vm13927_vm0 }
 0x3bf   : > { %v6698_v52 = vsel %vm9810_vm5, %v8739_v20, %v6697_v8  ;;  %v6699_v9 = vrot.slane %v6697_v8, 4  ;;  %7361 = vrot.lane.b32.xlu0 %v8867_v18, %s9394_s18  ;;  %v5920_v38 = vshll.u32 %v5539_v31, 16  ;;  %v7696_v34 = vsel %vm13924_vm9, %v7664_v43, %v13102_v28  ;;  %v5939_v20 = vld [vmem:[#allocation3 + $0xc0] sm:$0xe]  ;;  %vm13932_vm9 = vmmov %vm13925_vm11 }
 0x3c0   : > { %v5908_v26 = vrot.slane %v5907_v46, 4  ;;  %v5912_v41 = vrot.slane %v5910_v0, 5  ;;  %9108 = vmatmul.mubr.msk.bf16.gmra.mrb[8].mxu1 %vm13925_vm11, %v7696_v34  ;;  %v8748_v21 = vcombine.low %v9304_v29, %v9303_v14  ;;  %v7666_v60 = vsel %vm13926_vm15, %v7634_v42, %v13167_v3  ;;  %vm13933_vm11 = vmmov %vm13927_vm0 }
 0x3c1   : > { %v6701_v35 = vsel %vm9810_vm5, %v6699_v9, %v6700_v59  ;;  %7027 = vrot.lane.b32.xlu1 %v8804_v56, %s9389_s13  ;;  %v7698_v28 = vsel %vm13927_vm0, %v7666_v60, %v13051_v62  ;;  %v6095_v55 = vrot.slane %v13388_v51, 5  ;;  %v7510_v3 = vsel %vm3627_vm2, %v7471_v15, %v13080_v36  ;;  %v6148_v62 = vld [vmem:[#allocation3 + $0xd4] sm:$0x1]  ;;  %v7094_v51 = vpop.permute.xlu0 %7093  ;;  %v7348_v59 = vpop.permute.xlu1 %7347 }
 0x3c2   : > { %v8883_v49 = vcombine.low %v6698_v52, %v6701_v35  ;;  %v5917_v57 = vor.u32 %v5916_v48, %v5912_v41  ;;  %v7468_v13 = vsel %vm3578_vm1, %v8748_v21, %v13277_v50  ;;  %9111 = vmatprep.mubr.msk.bf16.mxu1 %vm13928_vm12, %v7698_v28  ;;  %v6510_v56 = vshrl.u32 %v13437_v30, 16  ;;  %vm13937_vm12 = vmmov %vm13927_vm0 }
 0x3c3   : > { %v6513_v42 = vshll.u32 %v13437_v30, 16  ;;  %v5913_v45 = vsel %vm9826_vm10, %v5908_v26, %v5912_v41  ;;  %v5922_v58 = vrot.slane %v5920_v38, 5  ;;  %v6097_v8 = vrot.slane %v6095_v55, 4 }
 0x3c4   : > { %7441 = vrot.lane.b32.xlu0 %v8883_v49, %s9392_s16  ;;  %v5918_v50 = vrot.slane %v5917_v57, 4  ;;  %v7508_v18 = vsel %vm3627_vm2, %v7468_v13, %v13106_v5  ;;  %v6512_v24 = vrot.slane %v6510_v56, 4  ;;  %v6523_v15 = vshrl.u32 %v13446_v54, 16  ;;  %v6548_v49 = vld [vmem:[#allocation3 + $0xcc] sm:$0xe] }
 0x3c5   : > { %v6515_v36 = vrot.slane %v6513_v42, 5  ;;  %v6098_v43 = vrot.slane %v5539_v31, 5  ;;  %v6519_v52 = vshll.u32 %v13446_v54, 16  ;;  %v6529_v9 = vshll.u32 %v6148_v62, 16  ;;  %v7432_v28 = vpop.permute.xlu0 %7431 }
 0x3c6   : > { %v5923_v46 = vsel %vm9826_vm10, %v5918_v50, %v5922_v58  ;;  %v8724_v26 = vrot.slane %v5939_v20, 9  ;;  %v6525_v38 = vrot.slane %v6523_v15, 4  ;;  %v7540_v34 = vsel %vm3660_vm3, %v7508_v18, %v12906_v61  ;;  %v9306_v15 = vld [vmem:[#allocation3 + $0x78] sm:$0xf] }
 0x3c7   : > { %v8820_v0 = vcombine.low %v5913_v45, %v5923_v46  ;;  %v6516_v48 = vor.u32 %v6515_v36, %v6512_v24  ;;  %v6099_v5 = vsel %vm9810_vm5, %v6097_v8, %v6098_v43  ;;  %v6521_v35 = vrot.slane %v6519_v52, 5  ;;  %v9307_v43 = vld [vmem:[#allocation3 + $0x70] sm:$0xf]  ;;  %v9308_v52 = vld [vmem:[#allocation3 + $0x6c] sm:$0xf] }
 0x3c8   : > { %v6096_v41 = vsel %vm9810_vm5, %v8724_v26, %v6095_v55  ;;  %v6704_v31 = vrot.slane %v13446_v54, 5  ;;  %v7542_v14 = vsel %vm3660_vm3, %v7510_v3, %v13196_v23  ;;  %v6531_v60 = vrot.slane %v6529_v9, 5  ;;  %v6840_v55 = vpop.permute.xlu1 %6839 }
 0x3c9   : > { %7107 = vrot.lane.b32.xlu1 %v8820_v0, %s9393_s17  ;;  %v6517_v29 = vrot.slane %v6516_v48, 4  ;;  %v6526_v21 = vor.u32 %v6525_v38, %v6521_v35  ;;  %v7574_v61 = vsel %vm3693_vm4, %v7542_v14, %v7094_v51  ;;  %v8836_v57 = vcombine.low %v6096_v41, %v6099_v5  ;;  %v7178_v8 = vpop.permute.xlu0 %7177 }
 0x3ca   : > { %v7606_v13 = vsel %vm3726_vm6, %v7574_v61, %v13342_v4  ;;  %v7572_v56 = vsel %vm3693_vm4, %v7540_v34, %v13153_v12  ;;  %v8852_v42 = vcombine.low %v13437_v30, %v13446_v54  ;;  %v8740_v3 = vrot.slane %v6548_v49, 9 }
 0x3cb   : > { %v6527_v45 = vrot.slane %v6526_v21, 4  ;;  %v7638_v23 = vsel %vm3759_vm7, %v7606_v13, %v13147_v16  ;;  %v6706_v50 = vrot.slane %v6704_v31, 4  ;;  %v6707_v58 = vrot.slane %v6148_v62, 5  ;;  %v9310_v13 = vld [vmem:[#allocation3 + $0x84] sm:$0xf] }
 0x3cc   : > { %v7604_v20 = vsel %vm3726_vm6, %v7572_v56, %v13088_v17  ;;  %v6522_v4 = vsel %vm9826_vm10, %v6517_v29, %v6521_v35  ;;  %v7670_v16 = vsel %vm13929_vm13, %v7638_v23, %v13393_v53  ;;  %v7180_v51 = vpop.permute.xlu1 %7179  ;;  %v8756_v18 = vcombine.low %v13333_v22, %v13335_v2  ;;  %vm13938_vm13 = vmmov %vm13932_vm9  ;;  %v7962_v2 = vld [vmem:[#allocation5 + $0x30] sm:$0xff] }
 0x3cd   : > { %7187 = vrot.lane.b32.xlu1 %v8836_v57, %s9391_s15  ;;  %v6532_v12 = vsel %vm9826_vm10, %v6527_v45, %v6531_v60  ;;  %v7636_v30 = vsel %vm3759_vm7, %v7604_v20, %v13172_v25  ;;  %v7702_v37 = vsel %vm13933_vm11, %v7670_v16, %v13268_v27  ;;  %v6705_v25 = vsel %vm9810_vm5, %v8740_v3, %v6704_v31  ;;  %vm13934_vm10 = vmmov %vm13932_vm9  ;;  %v7354_v36 = vpop.permute.xlu0 %7353  ;;  %v9305_v27 = vld [vmem:[#allocation3 + $0x7c] sm:$0xf]  ;;  %v13940_v45 = vld [vmem:[#allocation8_spill] sm:$0xff] }
 0x3ce   : > { %v7668_v54 = vsel %vm13930_vm8, %v7636_v30, %v7348_v59  ;;  %v8868_v17 = vcombine.low %v6522_v4, %v6532_v12  ;;  %v6708_v53 = vsel %vm9810_vm5, %v6706_v50, %v6707_v58  ;;  %v8751_v59 = vcombine.low %v9306_v15, %v9305_v27  ;;  %vm13935_vm5 = vmmov %vm13930_vm8 }
 0x3cf   : > { %v7700_v62 = vsel %vm13931_vm14, %v7668_v54, %v13318_v10  ;;  %v8755_v10 = vcombine.low %v13308_v32, %v13257_v47  ;;  %v8884_v24 = vcombine.low %v6705_v25, %v6708_v53  ;;  %v8750_v7 = vcombine.low %v9308_v52, %v9307_v43  ;;  %vm13936_vm15 = vmmov %vm13935_vm5  ;;  %v9311_v54 = vld [vmem:[#allocation3 + $0x94] sm:$0xf] }
 0x3d0   : > { %9112 = vmatmul.mubr.msk.bf16.gmra.mrb[12].mxu1 %vm13932_vm9, %v7700_v62  ;;  %v6924_v46 = vpop.permute.xlu1 %6923  ;;  %v7477_v9 = vsel %vm3578_vm1, %v8751_v59, %v13430_v6  ;;  %vm13939_vm8 = vmmov %vm13932_vm9  ;;  %v9312_v62 = vld [vmem:[#allocation3 + $0x90] sm:$0xf] }
 0x3d1   : > { %7283 = vrot.lane.b32.xlu1 %v8852_v42, %s9390_s14  ;;  %9115 = vmatprep.mubr.msk.bf16.mxu1 %vm13934_vm10, %v7702_v37  ;;  %v7474_v0 = vsel %vm3578_vm1, %v8750_v7, %v6840_v55  ;;  %v7514_v26 = vsel %vm3627_vm2, %v7477_v9, %v13298_v39  ;;  %v7098_v48 = vpop.permute.xlu0 %7097  ;;  %vm13941_vm14 = vmmov %vm13935_vm5 }
 0x3d2   : > { %v7512_v38 = vsel %vm3627_vm2, %v7474_v0, %v13324_v33  ;;  %v7546_v5 = vsel %vm3660_vm3, %v7514_v26, %v13425_v63  ;;  %vm13942_vm9 = vmmov %vm13927_vm0 }
 0x3d3   : > { %v7544_v35 = vsel %vm3660_vm3, %v7512_v38, %v13121_v11  ;;  %v7578_v41 = vsel %vm3693_vm4, %v7546_v5, %v7098_v48  ;;  %vm13943_vm11 = vmmov %vm13939_vm8  ;;  %v13947_v38 = vld [vmem:[#allocation15_spill] sm:$0xff] }
 0x3d4   : > { %v7100_v34 = vpop.permute.xlu1 %7099  ;;  %v7610_v6 = vsel %vm3726_vm6, %v7578_v41, %v7178_v8  ;;  %v7576_v39 = vsel %vm3693_vm4, %v7544_v35, %v13372_v40  ;;  %v8753_v8 = vcombine.low %v9312_v62, %v9311_v54  ;;  %vm13944_vm10 = vmmov %vm13935_vm5 }
 0x3d5   : > { %7363 = vrot.lane.b32.xlu1 %v8868_v17, %s9394_s18  ;;  %v7434_v31 = vpop.permute.xlu0 %7433  ;;  %v7642_v29 = vsel %vm3759_vm7, %v7610_v6, %v13366_v44  ;;  %v7608_v21 = vsel %vm3726_vm6, %v7576_v39, %v13302_v19  ;;  %v9309_v44 = vld [vmem:[#allocation3 + $0x88] sm:$0xf] }
 0x3d6   : > { %v7674_v63 = vsel %vm13935_vm5, %v7642_v29, %v7354_v36  ;;  %v7640_v11 = vsel %vm3759_vm7, %v7608_v21, %v13400_v1  ;;  %v8752_v19 = vcombine.low %v9310_v13, %v9309_v44  ;;  %vm13945_vm5 = vmmov %vm13927_vm0 }
 0x3d7   : > { %v7706_v57 = vsel %vm13937_vm12, %v7674_v63, %v7434_v31  ;;  %vm13950_vm12 = vmmov %vm13945_vm5 }
 0x3d8   : > { %v7276_v14 = vpop.permute.xlu1 %7275 }
 0x3d9   : > { %7443 = vrot.lane.b32.xlu1 %v8884_v24, %s9392_s16 }
 0x3e1   : > { %v7436_v33 = vpop.permute.xlu0 %7435 }
 0x3e8   : > { %v6926_v40 = vpop.permute.xlu0 %6925 }
 0x3eb   : > { %v7352_v60 = vpop.permute.xlu1 %7351 }
 0x3ec   : > { %v7672_v49 = vsel %vm13936_vm15, %v7640_v11, %v7352_v60  ;;  %v7022_v42 = vpop.permute.xlu0 %7021  ;;  %vm13946_vm15 = vmmov %vm13939_vm8 }
 0x3ed   : > { %v7704_v61 = vsel %vm13927_vm0, %v7672_v49, %v7432_v28  ;;  %vm13949_vm0 = vmmov %vm13944_vm10 }
 0x3ee   : > { %9116 = vmatmul.mubr.msk.bf16.gmra.mrb[16].mxu1 %vm13938_vm13, %v7704_v61  ;;  %vm13951_vm13 = vmmov %vm13939_vm8 }
 0x3ef   : > { %9119 = vmatprep.mubr.msk.bf16.mxu1 %vm13939_vm8, %v7706_v57  ;;  %vm13952_vm8 = vmmov %vm13949_vm0 }
 0x3f0   : > { %v6844_v56 = vpop.permute.xlu1 %6843 }
 0x3f1   : > { %v7480_v55 = vsel %vm3578_vm1, %v8752_v19, %v6844_v56 }
 0x3f2   : > { %v7516_v1 = vsel %vm3627_vm2, %v7480_v55, %v6924_v46 }
 0x3f3   : > { %v7548_v23 = vsel %vm3660_vm3, %v7516_v1, %v13940_v45 }
 0x3f4   : > { %v7580_v3 = vsel %vm3693_vm4, %v7548_v23, %v7100_v34  ;;  %v13948_v34 = vld [vmem:[#allocation12_spill] sm:$0xff] }
 0x3f5   : > { %v7612_v58 = vsel %vm3726_vm6, %v7580_v3, %v7180_v51  ;;  %v8754_v5 = vcombine.low %v13948_v34, %v13947_v38  ;;  %v13583_v23 = vld [vmem:[%s13812_s4] ss:$0 sm:$0xff]  ;;  %v13955_v34 = vmov 0.0  }
 0x3f6   : > { %v6846_v28 = vpop.permute.xlu1 %6845  ;;  %v7644_v20 = vsel %vm3759_vm7, %v7612_v58, %v7276_v14 }
 0x3f7   : > { %v7483_v17 = vsel %vm3578_vm1, %v8753_v8, %v6846_v28  ;;  %v7958_v28 = vld [vmem:[#allocation5 + $0x10] sm:$0xff] }
 0x3f8   : > { %v7102_v50 = vpop.permute.xlu0 %7101  ;;  %v7518_v53 = vsel %vm3627_vm2, %v7483_v17, %v6926_v40  ;;  %v9313_v17 = vld [vmem:[%s9459_s7 + $0x10] sm:$0xff] }
 0x3f9   : > { %v7550_v51 = vsel %vm3660_vm3, %v7518_v53, %v7022_v42 }
 0x3fa   : > { %v7582_v27 = vsel %vm3693_vm4, %v7550_v51, %v7102_v50  ;;  %v7956_v50 = vld [vmem:[#allocation5] sm:$0xff] }
 0x3fb   : > { %v7356_v4 = vpop.permute.xlu1 %7355  ;;  %v7988_v62 = vmul.f32 0.5, %v7956_v50 }
 0x3fc   : > { %v7676_v12 = vsel %vm13941_vm14, %v7644_v20, %v7356_v4  ;;  %v7182_v30 = vpop.permute.xlu0 %7181  ;;  %vm13953_vm14 = vmmov %vm13945_vm5  ;;  %v7959_v20 = vld [vmem:[#allocation5 + $0x18] sm:$0xff] }
 0x3fd   : > { %v7708_v16 = vsel %vm13942_vm9, %v7676_v12, %v7436_v33  ;;  %v7614_v15 = vsel %vm3726_vm6, %v7582_v27, %v7182_v30  ;;  %vm13954_vm9 = vmmov %vm13943_vm11  ;;  %v7990_v12 = vmul.f32 0.5, %v7958_v28  ;;  %v7991_v53 = vmul.f32 0.5, %v7959_v20  ;;  %v9318_v20 = vld [vmem:[%s9459_s7 + $0x20] sm:$0xff] }
 0x3fe   : > { %9120 = vmatmul.mubr.msk.bf16.gmra.mrb[20].mxu1 %vm13943_vm11, %v7708_v16  ;;  %v7957_v16 = vld [vmem:[#allocation5 + $0x8] sm:$0xff] }
 0x400   : > { %v7278_v37 = vpop.permute.xlu0 %7277 }
 0x401   : > { %v7646_v59 = vsel %vm3759_vm7, %v7614_v15, %v7278_v37 }
 0x402   : > { %v6848_v25 = vpop.permute.xlu1 %6847 }
 0x403   : > { %v7486_v41 = vsel %vm3578_vm1, %v8754_v5, %v6848_v25 }
 0x406   : > { %v6928_v24 = vpop.permute.xlu1 %6927 }
 0x407   : > { %v7520_v6 = vsel %vm3627_vm2, %v7486_v41, %v6928_v24 }
 0x408   : > { %v7358_v36 = vpop.permute.xlu0 %7357 }
 0x409   : > { %v7678_v43 = vsel %vm13944_vm10, %v7646_v59, %v7358_v36  ;;  %v9314_v36 = vld [vmem:[%s9459_s7] sm:$0xff]  ;;  %v7989_v59 = vmul.f32 0.5, %v7957_v16 }
 0x40a   : > { %v7024_v46 = vpop.permute.xlu1 %7023 }
 0x40b   : > { %v7552_v14 = vsel %vm3660_vm3, %v7520_v6, %v7024_v46 }
 0x40c   : > { %v7438_v52 = vpop.permute.xlu0 %7437 }
 0x40d   : > { %v7710_v7 = vsel %vm13945_vm5, %v7678_v43, %v7438_v52  ;;  %v9315_v43 = vld [vmem:[%s9459_s7 + $0x18] sm:$0xff] }
 0x40e   : > { %9123 = vmatprep.mubr.msk.bf16.mxu1 %vm13946_vm15, %v7710_v7 }
 0x410   : > { %v7440_v9 = vpop.permute.xlu0 %7439 }
 0x411   : > { %v7104_v0 = vpop.permute.xlu1 %7103 }
 0x412   : > { %v7584_v39 = vsel %vm3693_vm4, %v7552_v14, %v7104_v0 }
 0x415   : > { %v7184_v26 = vpop.permute.xlu1 %7183 }
 0x416   : > { %v6930_v48 = vpop.permute.xlu0 %6929  ;;  %v7616_v29 = vsel %vm3726_vm6, %v7584_v39, %v7184_v26 }
 0x419   : > { %v7280_v35 = vpop.permute.xlu1 %7279 }
 0x41a   : > { %v7026_v31 = vpop.permute.xlu0 %7025  ;;  %v7648_v33 = vsel %vm3759_vm7, %v7616_v29, %v7280_v35 }
 0x41f   : > { %v7360_v21 = vpop.permute.xlu1 %7359 }
 0x420   : > { %v7680_v63 = vsel %vm13949_vm0, %v7648_v33, %v7360_v21  ;;  %v7106_v11 = vpop.permute.xlu0 %7105 }
 0x421   : > { %v7712_v60 = vsel %vm13950_vm12, %v7680_v63, %v7440_v9  ;;  %v9316_v9 = vld [vmem:[%s9459_s7 + $0x8] sm:$0xff] }
 0x422   : > { %9124 = vmatmul.mubr.msk.bf16.gmra.mrb[24].mxu1 %vm13951_vm13, %v7712_v60  ;;  %vm13956_vm13 = vmmov %vm13954_vm9 }
 0x424   : > { %v7186_v61 = vpop.permute.xlu0 %7185 }
 0x425   : > { %v6850_v49 = vpop.permute.xlu1 %6849 }
 0x426   : > { %v7489_v57 = vsel %vm3578_vm1, %v8755_v10, %v6850_v49 }
 0x427   : > { %v7522_v40 = vsel %vm3627_vm2, %v7489_v57, %v6930_v48 }
 0x428   : > { %v7554_v44 = vsel %vm3660_vm3, %v7522_v40, %v7026_v31  ;;  %v7282_v19 = vpop.permute.xlu0 %7281 }
 0x429   : > { %v7586_v56 = vsel %vm3693_vm4, %v7554_v44, %v7106_v11 }
 0x42a   : > { %v7618_v1 = vsel %vm3726_vm6, %v7586_v56, %v7186_v61 }
 0x42b   : > { %v13572_v13 = vpop.permute.xlu1 %6851  ;;  %v7650_v45 = vsel %vm3759_vm7, %v7618_v1, %v7282_v19  ;;  %v7963_v19 = vld [vmem:[#allocation5 + $0x38] sm:$0xff] }
 0x42c   : > { %v7492_v21 = vsel %vm3578_vm1, %v8756_v18, %v13572_v13  ;;  %v7960_v18 = vld [vmem:[#allocation5 + $0x20] sm:$0xff]  ;;  %v7995_v50 = vmul.f32 0.5, %v7963_v19 }
 0x42f   : > { %v13575_v55 = vpop.permute.xlu1 %6931 }
 0x430   : > { %v7524_v63 = vsel %vm3627_vm2, %v7492_v21, %v13575_v55  ;;  %v7994_v55 = vmul.f32 0.5, %v7962_v2  ;;  %v9322_v21 = vld [vmem:[%s9459_s7 + $0x40] sm:$0xff] }
 0x431   : > { %v7362_v42 = vpop.permute.xlu0 %7361 }
 0x432   : > { %v7682_v47 = vsel %vm13952_vm8, %v7650_v45, %v7362_v42  ;;  %v7961_v42 = vld [vmem:[#allocation5 + $0x28] sm:$0xff] }
 0x433   : > { %v7028_v32 = vpop.permute.xlu1 %7027 }
 0x434   : > { %v7556_v11 = vsel %vm3660_vm3, %v7524_v63, %v7028_v32 }
 0x436   : > { %v7442_v10 = vpop.permute.xlu0 %7441 }
 0x437   : > { %v7714_v3 = vsel %vm13953_vm14, %v7682_v47, %v7442_v10  ;;  %v7992_v47 = vmul.f32 0.5, %v7960_v18  ;;  %v9317_v10 = vld [vmem:[%s9459_s7 + $0x30] sm:$0xff] }
 0x438   : > { %9127 = vmatprep.mubr.msk.bf16.mxu1 %vm13954_vm9, %v7714_v3  ;;  %v9101_v58 = vpop.f32.mrb[0].mxu1 }
 0x439   : > { %v7838_v4 = vadd.f32 %v9101_v58, %v13583_v23  ;;  %v7829_v30 = vpop.f32.mrb[1].mxu1 }
 0x43a   : > { %v7830_v54 = vadd.f32 %v13583_v23, %v7829_v30  ;;  %v9102_v8 = vpop.f32.mrb[2].mxu1  ;;  %v7993_v30 = vmul.f32 0.5, %v7961_v42 }
 0x43b   : > { %v8022_v37 = vadd.f32 %v9313_v17, %v7838_v4  ;;  %v7841_v25 = vadd.f32 %v9102_v8, %v13583_v23  ;;  %v7832_v51 = vpop.f32.mrb[3].mxu1  ;;  %v7108_v24 = vpop.permute.xlu1 %7107  ;;  %v9320_v17 = vld [vmem:[%s9459_s7 + $0x28] sm:$0xff] }
 0x43c   : > { %v8020_v27 = vadd.f32 %v9314_v36, %v7830_v54  ;;  %v7833_v15 = vadd.f32 %v13583_v23, %v7832_v51  ;;  %v7588_v49 = vsel %vm3693_vm4, %v7556_v11, %v7108_v24  ;;  %v9319_v54 = vld [vmem:[%s9459_s7 + $0x38] sm:$0xff] }
 0x43d   : > { %v8054_v46 = vadd.f32 %v8022_v37, %v7990_v12  ;;  %v8023_v52 = vadd.f32 %v9315_v43, %v7841_v25 }
 0x43e   : > { %v8052_v7 = vadd.f32 %v8020_v27, %v7988_v62  ;;  %v8021_v0 = vadd.f32 %v9316_v9, %v7833_v15 }
 0x43f   : > { %vm8086_vm11 = vcmp.ge.f32.partialorder %v8054_v46, 1.0  ;;  %v8055_v26 = vadd.f32 %v8023_v52, %v7991_v53  ;;  %v7188_v48 = vpop.permute.xlu1 %7187  ;;  %v7966_v52 = vld [vmem:[#allocation5 + $0x50] sm:$0xff] }
 0x440   : > { %v8118_v38 = vsel %vm8086_vm11, 0.0, %v8054_v46  ;;  %v8909_v5 = vsel %vm8086_vm11, 1.0, %v13955_v34  ;;  %vm8084_vm10 = vcmp.ge.f32.partialorder %v8052_v7, 1.0  ;;  %v8053_v35 = vadd.f32 %v8021_v0, %v7989_v59  ;;  %v7967_v0 = vld [vmem:[#allocation5 + $0x58] sm:$0xff] }
 0x441   : > { %8150 = vst.msk [vmem:[#allocation5 + $0x10] sm:$0xff] %vm3578_vm1, %v8118_v38  ;;  %8246 = vst.msk [vmem:[%s9464_s10 + $0x10] sm:$0xff] %vm3578_vm1, %v8909_v5  ;;  %v8116_v41 = vsel %vm8084_vm10, 0.0, %v8052_v7  ;;  %v8907_v31 = vsel %vm8084_vm10, 1.0, %v13955_v34  ;;  %vm8087_vm5 = vcmp.ge.f32.partialorder %v8055_v26, 1.0  ;;  %v7620_v61 = vsel %vm3726_vm6, %v7588_v49, %v7188_v48  ;;  %v7964_v7 = vld [vmem:[#allocation5 + $0x40] sm:$0xff] }
 0x442   : > { %8148 = vst.msk [vmem:[#allocation5] sm:$0xff] %vm3578_vm1, %v8116_v41  ;;  %8244 = vst.msk [vmem:[%s9464_s10] sm:$0xff] %vm3578_vm1, %v8907_v31  ;;  %v8119_v6 = vsel %vm8087_vm5, 0.0, %v8055_v26  ;;  %v8910_v14 = vsel %vm8087_vm5, 1.0, %v13955_v34  ;;  %vm8085_vm15 = vcmp.ge.f32.partialorder %v8053_v35, 1.0  ;;  %v7998_v48 = vmul.f32 0.5, %v7966_v52 }
 0x443   : > { %8151 = vst.msk [vmem:[#allocation5 + $0x18] sm:$0xff] %vm3578_vm1, %v8119_v6  ;;  %8247 = vst.msk [vmem:[%s9464_s10 + $0x18] sm:$0xff] %vm3578_vm1, %v8910_v14  ;;  %v8117_v39 = vsel %vm8085_vm15, 0.0, %v8053_v35  ;;  %v8908_v29 = vsel %vm8085_vm15, 1.0, %v13955_v34  ;;  %v7284_v33 = vpop.permute.xlu1 %7283  ;;  %v7965_v5 = vld [vmem:[#allocation5 + $0x48] sm:$0xff]  ;;  %v7996_v41 = vmul.f32 0.5, %v7964_v7 }
 0x444   : > { %8149 = vst.msk [vmem:[#allocation5 + $0x8] sm:$0xff] %vm3578_vm1, %v8117_v39  ;;  %8245 = vst.msk [vmem:[%s9464_s10 + $0x8] sm:$0xff] %vm3578_vm1, %v8908_v29  ;;  %v7652_v57 = vsel %vm3759_vm7, %v7620_v61, %v7284_v33  ;;  %v9321_v6 = vld [vmem:[%s9459_s7 + $0x50] sm:$0xff]  ;;  %v7999_v29 = vmul.f32 0.5, %v7967_v0  ;;  %v9323_v61 = vld [vmem:[%s9459_s7 + $0x58] sm:$0xff] }
 0x447   : > { %v7364_v60 = vpop.permute.xlu1 %7363 }
 0x448   : > { %v7684_v40 = vsel %vm13949_vm0, %v7652_v57, %v7364_v60  ;;  %v7997_v60 = vmul.f32 0.5, %v7965_v5 }
 0x44b   : > { %v7444_v44 = vpop.permute.xlu1 %7443 }
 0x44c   : > { %v7716_v22 = vsel %vm13950_vm12, %v7684_v40, %v7444_v44  ;;  %v9324_v44 = vld [vmem:[%s9459_s7 + $0x48] sm:$0xff] }
 0x44d   : > { %9128 = vmatmul.mubr.msk.bf16.gmra.mrb[28].mxu1 %vm13956_vm13, %v7716_v22 }
 0x46a   : > { %v9105_v13 = vpop.f32.mrb[4].mxu1 }
 0x46b   : > { %v7854_v56 = vadd.f32 %v9105_v13, %v13583_v23  ;;  %v7845_v1 = vpop.f32.mrb[5].mxu1 }
 0x46c   : > { %v7846_v45 = vadd.f32 %v13583_v23, %v7845_v1  ;;  %v9106_v32 = vpop.f32.mrb[6].mxu1 }
 0x46d   : > { %v8026_v28 = vadd.f32 %v9317_v10, %v7854_v56  ;;  %v7857_v3 = vadd.f32 %v9106_v32, %v13583_v23  ;;  %v7848_v58 = vpop.f32.mrb[7].mxu1  ;;  %v7970_v32 = vld [vmem:[#allocation5 + $0x70] sm:$0xff]  ;;  %v7968_v10 = vld [vmem:[#allocation5 + $0x60] sm:$0xff] }
 0x46e   : > { %v8024_v4 = vadd.f32 %v9318_v20, %v7846_v45  ;;  %v7849_v12 = vadd.f32 %v13583_v23, %v7848_v58  ;;  %v8002_v58 = vmul.f32 0.5, %v7970_v32 }
 0x46f   : > { %v8058_v16 = vadd.f32 %v8026_v28, %v7994_v55  ;;  %v8027_v62 = vadd.f32 %v9319_v54, %v7857_v3  ;;  %v7971_v3 = vld [vmem:[#allocation5 + $0x78] sm:$0xff]  ;;  %v9325_v54 = vld [vmem:[%s9459_s7 + $0x70] sm:$0xff] }
 0x470   : > { %v8056_v8 = vadd.f32 %v8024_v4, %v7992_v47  ;;  %v8025_v37 = vadd.f32 %v9320_v17, %v7849_v12  ;;  %v7969_v4 = vld [vmem:[#allocation5 + $0x68] sm:$0xff]  ;;  %v8003_v17 = vmul.f32 0.5, %v7971_v3 }
 0x471   : > { %vm8090_vm2 = vcmp.ge.f32.partialorder %v8058_v16, 1.0  ;;  %v8059_v25 = vadd.f32 %v8027_v62, %v7995_v50 }
 0x472   : > { %v8122_v53 = vsel %vm8090_vm2, 0.0, %v8058_v16  ;;  %v8913_v51 = vsel %vm8090_vm2, 1.0, %v13955_v34  ;;  %vm8088_vm3 = vcmp.ge.f32.partialorder %v8056_v8, 1.0  ;;  %v8057_v24 = vadd.f32 %v8025_v37, %v7993_v30 }
 0x473   : > { %8154 = vst.msk [vmem:[#allocation5 + $0x30] sm:$0xff] %vm3578_vm1, %v8122_v53  ;;  %8250 = vst.msk [vmem:[%s9464_s10 + $0x30] sm:$0xff] %vm3578_vm1, %v8913_v51  ;;  %v8120_v36 = vsel %vm8088_vm3, 0.0, %v8056_v8  ;;  %v8911_v27 = vsel %vm8088_vm3, 1.0, %v13955_v34  ;;  %vm8091_vm4 = vcmp.ge.f32.partialorder %v8059_v25, 1.0  ;;  %v8000_v30 = vmul.f32 0.5, %v7968_v10 }
 0x474   : > { %8152 = vst.msk [vmem:[#allocation5 + $0x20] sm:$0xff] %vm3578_vm1, %v8120_v36  ;;  %8248 = vst.msk [vmem:[%s9464_s10 + $0x20] sm:$0xff] %vm3578_vm1, %v8911_v27  ;;  %v8123_v15 = vsel %vm8091_vm4, 0.0, %v8059_v25  ;;  %v8914_v59 = vsel %vm8091_vm4, 1.0, %v13955_v34  ;;  %vm8089_vm6 = vcmp.ge.f32.partialorder %v8057_v24, 1.0  ;;  %v9326_v25 = vld [vmem:[%s9459_s7 + $0x60] sm:$0xff] }
 0x475   : > { %8155 = vst.msk [vmem:[#allocation5 + $0x38] sm:$0xff] %vm3578_vm1, %v8123_v15  ;;  %8251 = vst.msk [vmem:[%s9464_s10 + $0x38] sm:$0xff] %vm3578_vm1, %v8914_v59  ;;  %v8121_v46 = vsel %vm8089_vm6, 0.0, %v8057_v24  ;;  %v8912_v43 = vsel %vm8089_vm6, 1.0, %v13955_v34  ;;  %v8001_v24 = vmul.f32 0.5, %v7969_v4  ;;  %v9327_v27 = vld [vmem:[%s9459_s7 + $0x78] sm:$0xff] }
 0x476   : > { %8153 = vst.msk [vmem:[#allocation5 + $0x28] sm:$0xff] %vm3578_vm1, %v8121_v46  ;;  %8249 = vst.msk [vmem:[%s9464_s10 + $0x28] sm:$0xff] %vm3578_vm1, %v8912_v43  ;;  %v9328_v46 = vld [vmem:[%s9459_s7 + $0x68] sm:$0xff] }
 0x493   : > { %v9109_v9 = vpop.f32.mrb[8].mxu1 }
 0x494   : > { %v7870_v26 = vadd.f32 %v9109_v9, %v13583_v23  ;;  %v7861_v38 = vpop.f32.mrb[9].mxu1 }
 0x495   : > { %v7862_v35 = vadd.f32 %v13583_v23, %v7861_v38  ;;  %v9110_v31 = vpop.f32.mrb[10].mxu1 }
 0x496   : > { %v8030_v14 = vadd.f32 %v9321_v6, %v7870_v26  ;;  %v7873_v39 = vadd.f32 %v9110_v31, %v13583_v23  ;;  %v7864_v33 = vpop.f32.mrb[11].mxu1  ;;  %v7974_v31 = vld [vmem:[#allocation5 + $0x90] sm:$0xff]  ;;  %v7972_v6 = vld [vmem:[#allocation5 + $0x80] sm:$0xff] }
 0x497   : > { %v8028_v63 = vadd.f32 %v9322_v21, %v7862_v35  ;;  %v7865_v11 = vadd.f32 %v13583_v23, %v7864_v33  ;;  %v8006_v33 = vmul.f32 0.5, %v7974_v31 }
 0x498   : > { %v8062_v49 = vadd.f32 %v8030_v14, %v7998_v48  ;;  %v8031_v57 = vadd.f32 %v9323_v61, %v7873_v39  ;;  %v7975_v39 = vld [vmem:[#allocation5 + $0x98] sm:$0xff]  ;;  %v9329_v61 = vld [vmem:[%s9459_s7 + $0x90] sm:$0xff] }
 0x499   : > { %v8060_v40 = vadd.f32 %v8028_v63, %v7996_v41  ;;  %v8029_v22 = vadd.f32 %v9324_v44, %v7865_v11  ;;  %v7973_v63 = vld [vmem:[#allocation5 + $0x88] sm:$0xff]  ;;  %v8007_v44 = vmul.f32 0.5, %v7975_v39 }
 0x49a   : > { %vm8094_vm7 = vcmp.ge.f32.partialorder %v8062_v49, 1.0  ;;  %v8063_v2 = vadd.f32 %v8031_v57, %v7999_v29 }
 0x49b   : > { %v8126_v18 = vsel %vm8094_vm7, 0.0, %v8062_v49  ;;  %v8917_v13 = vsel %vm8094_vm7, 1.0, %v13955_v34  ;;  %vm8092_vm8 = vcmp.ge.f32.partialorder %v8060_v40, 1.0  ;;  %v8061_v19 = vadd.f32 %v8029_v22, %v7997_v60 }
 0x49c   : > { %8158 = vst.msk [vmem:[#allocation5 + $0x50] sm:$0xff] %vm3578_vm1, %v8126_v18  ;;  %8254 = vst.msk [vmem:[%s9464_s10 + $0x50] sm:$0xff] %vm3578_vm1, %v8917_v13  ;;  %v8124_v56 = vsel %vm8092_vm8, 0.0, %v8060_v40  ;;  %v8915_v55 = vsel %vm8092_vm8, 1.0, %v13955_v34  ;;  %vm8095_vm14 = vcmp.ge.f32.partialorder %v8063_v2, 1.0  ;;  %v8004_v60 = vmul.f32 0.5, %v7972_v6 }
 0x49d   : > { %8156 = vst.msk [vmem:[#allocation5 + $0x40] sm:$0xff] %vm3578_vm1, %v8124_v56  ;;  %8252 = vst.msk [vmem:[%s9464_s10 + $0x40] sm:$0xff] %vm3578_vm1, %v8915_v55  ;;  %v8127_v1 = vsel %vm8095_vm14, 0.0, %v8063_v2  ;;  %v8918_v42 = vsel %vm8095_vm14, 1.0, %v13955_v34  ;;  %vm8093_vm9 = vcmp.ge.f32.partialorder %v8061_v19, 1.0  ;;  %v9330_v2 = vld [vmem:[%s9459_s7 + $0x80] sm:$0xff] }
 0x49e   : > { %8159 = vst.msk [vmem:[#allocation5 + $0x58] sm:$0xff] %vm3578_vm1, %v8127_v1  ;;  %8255 = vst.msk [vmem:[%s9464_s10 + $0x58] sm:$0xff] %vm3578_vm1, %v8918_v42  ;;  %v8125_v45 = vsel %vm8093_vm9, 0.0, %v8061_v19  ;;  %v8916_v47 = vsel %vm8093_vm9, 1.0, %v13955_v34  ;;  %v8005_v19 = vmul.f32 0.5, %v7973_v63  ;;  %v9331_v55 = vld [vmem:[%s9459_s7 + $0x98] sm:$0xff] }
 0x49f   : > { %8157 = vst.msk [vmem:[#allocation5 + $0x48] sm:$0xff] %vm3578_vm1, %v8125_v45  ;;  %8253 = vst.msk [vmem:[%s9464_s10 + $0x48] sm:$0xff] %vm3578_vm1, %v8916_v47  ;;  %v9332_v45 = vld [vmem:[%s9459_s7 + $0x88] sm:$0xff] }
 0x4a3   : > { %v9113_v28 = vpop.f32.mrb[12].mxu1 }
 0x4a4   : > { %v7886_v50 = vadd.f32 %v9113_v28, %v13583_v23  ;;  %v7877_v20 = vpop.f32.mrb[13].mxu1 }
 0x4a5   : > { %v7878_v12 = vadd.f32 %v13583_v23, %v7877_v20  ;;  %v9114_v16 = vpop.f32.mrb[14].mxu1 }
 0x4a6   : > { %v8034_v62 = vadd.f32 %v9325_v54, %v7886_v50  ;;  %v7889_v8 = vadd.f32 %v9114_v16, %v13583_v23  ;;  %v7880_v37 = vpop.f32.mrb[15].mxu1  ;;  %v7978_v16 = vld [vmem:[#allocation5 + $0xb0] sm:$0xff]  ;;  %v7976_v54 = vld [vmem:[#allocation5 + $0xa0] sm:$0xff] }
 0x4a7   : > { %v8032_v53 = vadd.f32 %v9326_v25, %v7878_v12  ;;  %v7881_v51 = vadd.f32 %v13583_v23, %v7880_v37  ;;  %v8010_v37 = vmul.f32 0.5, %v7978_v16 }
 0x4a8   : > { %v8066_v36 = vadd.f32 %v8034_v62, %v8002_v58  ;;  %v8035_v15 = vadd.f32 %v9327_v27, %v7889_v8  ;;  %v7979_v8 = vld [vmem:[#allocation5 + $0xb8] sm:$0xff]  ;;  %v9333_v27 = vld [vmem:[%s9459_s7 + $0xb0] sm:$0xff] }
 0x4a9   : > { %v8064_v59 = vadd.f32 %v8032_v53, %v8000_v30  ;;  %v8033_v43 = vadd.f32 %v9328_v46, %v7881_v51  ;;  %v7977_v53 = vld [vmem:[#allocation5 + $0xa8] sm:$0xff]  ;;  %v8011_v46 = vmul.f32 0.5, %v7979_v8 }
 0x4aa   : > { %vm8098_vm11 = vcmp.ge.f32.partialorder %v8066_v36, 1.0  ;;  %v8067_v52 = vadd.f32 %v8035_v15, %v8003_v17 }
 0x4ab   : > { %v8130_v7 = vsel %vm8098_vm11, 0.0, %v8066_v36  ;;  %v8921_v9 = vsel %vm8098_vm11, 1.0, %v13955_v34  ;;  %vm8096_vm10 = vcmp.ge.f32.partialorder %v8064_v59, 1.0  ;;  %v8065_v0 = vadd.f32 %v8033_v43, %v8001_v24 }
 0x4ac   : > { %8162 = vst.msk [vmem:[#allocation5 + $0x70] sm:$0xff] %vm3578_vm1, %v8130_v7  ;;  %8258 = vst.msk [vmem:[%s9464_s10 + $0x70] sm:$0xff] %vm3578_vm1, %v8921_v9  ;;  %v8128_v26 = vsel %vm8096_vm10, 0.0, %v8064_v59  ;;  %v8919_v48 = vsel %vm8096_vm10, 1.0, %v13955_v34  ;;  %vm8099_vm5 = vcmp.ge.f32.partialorder %v8067_v52, 1.0  ;;  %v8008_v24 = vmul.f32 0.5, %v7976_v54 }
 0x4ad   : > { %8160 = vst.msk [vmem:[#allocation5 + $0x60] sm:$0xff] %vm3578_vm1, %v8128_v26  ;;  %8256 = vst.msk [vmem:[%s9464_s10 + $0x60] sm:$0xff] %vm3578_vm1, %v8919_v48  ;;  %v8131_v38 = vsel %vm8099_vm5, 0.0, %v8067_v52  ;;  %v8922_v5 = vsel %vm8099_vm5, 1.0, %v13955_v34  ;;  %vm8097_vm15 = vcmp.ge.f32.partialorder %v8065_v0, 1.0  ;;  %v9334_v52 = vld [vmem:[%s9459_s7 + $0xa0] sm:$0xff] }
 0x4ae   : > { %8163 = vst.msk [vmem:[#allocation5 + $0x78] sm:$0xff] %vm3578_vm1, %v8131_v38  ;;  %8259 = vst.msk [vmem:[%s9464_s10 + $0x78] sm:$0xff] %vm3578_vm1, %v8922_v5  ;;  %v8129_v35 = vsel %vm8097_vm15, 0.0, %v8065_v0  ;;  %v8920_v41 = vsel %vm8097_vm15, 1.0, %v13955_v34  ;;  %v8009_v0 = vmul.f32 0.5, %v7977_v53  ;;  %v9335_v48 = vld [vmem:[%s9459_s7 + $0xb8] sm:$0xff] }
 0x4af   : > { %8161 = vst.msk [vmem:[#allocation5 + $0x68] sm:$0xff] %vm3578_vm1, %v8129_v35  ;;  %8257 = vst.msk [vmem:[%s9464_s10 + $0x68] sm:$0xff] %vm3578_vm1, %v8920_v41  ;;  %v9336_v35 = vld [vmem:[%s9459_s7 + $0xa8] sm:$0xff] }
 0x4c1   : > { %v9117_v14 = vpop.f32.mrb[16].mxu1 }
 0x4c2   : > { %v7902_v29 = vadd.f32 %v9117_v14, %v13583_v23  ;;  %v7893_v21 = vpop.f32.mrb[17].mxu1 }
 0x4c3   : > { %v7894_v11 = vadd.f32 %v13583_v23, %v7893_v21  ;;  %v9118_v49 = vpop.f32.mrb[18].mxu1 }
 0x4c4   : > { %v8038_v57 = vadd.f32 %v9329_v61, %v7902_v29  ;;  %v7905_v40 = vadd.f32 %v9118_v49, %v13583_v23  ;;  %v7896_v22 = vpop.f32.mrb[19].mxu1  ;;  %v7982_v49 = vld [vmem:[#allocation5 + $0xd0] sm:$0xff]  ;;  %v7980_v61 = vld [vmem:[#allocation5 + $0xc0] sm:$0xff] }
 0x4c5   : > { %v8036_v18 = vadd.f32 %v9330_v2, %v7894_v11  ;;  %v7897_v13 = vadd.f32 %v13583_v23, %v7896_v22  ;;  %v8014_v22 = vmul.f32 0.5, %v7982_v49 }
 0x4c6   : > { %v8070_v56 = vadd.f32 %v8038_v57, %v8006_v33  ;;  %v8039_v1 = vadd.f32 %v9331_v55, %v7905_v40  ;;  %v7983_v40 = vld [vmem:[#allocation5 + $0xd8] sm:$0xff]  ;;  %v9337_v55 = vld [vmem:[%s9459_s7 + $0xd0] sm:$0xff] }
 0x4c7   : > { %v8068_v42 = vadd.f32 %v8036_v18, %v8004_v60  ;;  %v8037_v47 = vadd.f32 %v9332_v45, %v7897_v13  ;;  %v7981_v18 = vld [vmem:[#allocation5 + $0xc8] sm:$0xff]  ;;  %v8015_v45 = vmul.f32 0.5, %v7983_v40 }
 0x4c8   : > { %vm8102_vm0 = vcmp.ge.f32.partialorder %v8070_v56, 1.0  ;;  %v8071_v32 = vadd.f32 %v8039_v1, %v8007_v44 }
 0x4c9   : > { %v8134_v10 = vsel %vm8102_vm0, 0.0, %v8070_v56  ;;  %v8925_v28 = vsel %vm8102_vm0, 1.0, %v13955_v34  ;;  %vm8100_vm12 = vcmp.ge.f32.partialorder %v8068_v42, 1.0  ;;  %v8069_v3 = vadd.f32 %v8037_v47, %v8005_v19 }
 0x4ca   : > { %8166 = vst.msk [vmem:[#allocation5 + $0x90] sm:$0xff] %vm3578_vm1, %v8134_v10  ;;  %8262 = vst.msk [vmem:[%s9464_s10 + $0x90] sm:$0xff] %vm3578_vm1, %v8925_v28  ;;  %v8132_v50 = vsel %vm8100_vm12, 0.0, %v8068_v42  ;;  %v8923_v58 = vsel %vm8100_vm12, 1.0, %v13955_v34  ;;  %vm8103_vm13 = vcmp.ge.f32.partialorder %v8071_v32, 1.0  ;;  %v8012_v19 = vmul.f32 0.5, %v7980_v61 }
 0x4cb   : > { %8164 = vst.msk [vmem:[#allocation5 + $0x80] sm:$0xff] %vm3578_vm1, %v8132_v50  ;;  %8260 = vst.msk [vmem:[%s9464_s10 + $0x80] sm:$0xff] %vm3578_vm1, %v8923_v58  ;;  %v8135_v20 = vsel %vm8103_vm13, 0.0, %v8071_v32  ;;  %v8926_v4 = vsel %vm8103_vm13, 1.0, %v13955_v34  ;;  %vm8101_vm2 = vcmp.ge.f32.partialorder %v8069_v3, 1.0  ;;  %v9338_v32 = vld [vmem:[%s9459_s7 + $0xc0] sm:$0xff] }
 0x4cc   : > { %8167 = vst.msk [vmem:[#allocation5 + $0x98] sm:$0xff] %vm3578_vm1, %v8135_v20  ;;  %8263 = vst.msk [vmem:[%s9464_s10 + $0x98] sm:$0xff] %vm3578_vm1, %v8926_v4  ;;  %v8133_v12 = vsel %vm8101_vm2, 0.0, %v8069_v3  ;;  %v8924_v30 = vsel %vm8101_vm2, 1.0, %v13955_v34  ;;  %v8013_v3 = vmul.f32 0.5, %v7981_v18  ;;  %v9339_v58 = vld [vmem:[%s9459_s7 + $0xd8] sm:$0xff] }
 0x4cd   : > { %8165 = vst.msk [vmem:[#allocation5 + $0x88] sm:$0xff] %vm3578_vm1, %v8133_v12  ;;  %8261 = vst.msk [vmem:[%s9464_s10 + $0x88] sm:$0xff] %vm3578_vm1, %v8924_v30  ;;  %v9340_v12 = vld [vmem:[%s9459_s7 + $0xc8] sm:$0xff] }
 0x4d1   : > { %v9121_v62 = vpop.f32.mrb[20].mxu1 }
 0x4d2   : > { %v7918_v17 = vadd.f32 %v9121_v62, %v13583_v23  ;;  %v7909_v25 = vpop.f32.mrb[21].mxu1 }
 0x4d3   : > { %v7910_v51 = vadd.f32 %v13583_v23, %v7909_v25  ;;  %v9122_v36 = vpop.f32.mrb[22].mxu1 }
 0x4d4   : > { %v8042_v15 = vadd.f32 %v9333_v27, %v7918_v17  ;;  %v7921_v59 = vadd.f32 %v9122_v36, %v13583_v23  ;;  %v7912_v43 = vpop.f32.mrb[23].mxu1  ;;  %v7986_v36 = vld [vmem:[#allocation5 + $0xf0] sm:$0xff]  ;;  %v7984_v27 = vld [vmem:[#allocation5 + $0xe0] sm:$0xff] }
 0x4d5   : > { %v8040_v7 = vadd.f32 %v9334_v52, %v7910_v51  ;;  %v7913_v9 = vadd.f32 %v13583_v23, %v7912_v43  ;;  %v8018_v43 = vmul.f32 0.5, %v7986_v36 }
 0x4d6   : > { %v8074_v26 = vadd.f32 %v8042_v15, %v8010_v37  ;;  %v8043_v38 = vadd.f32 %v9335_v48, %v7921_v59  ;;  %v7987_v59 = vld [vmem:[#allocation5 + $0xf8] sm:$0xff]  ;;  %v9341_v48 = vld [vmem:[%s9459_s7 + $0xf0] sm:$0xff] }
 0x4d7   : > { %v8072_v5 = vadd.f32 %v8040_v7, %v8008_v24  ;;  %v8041_v41 = vadd.f32 %v9336_v35, %v7913_v9  ;;  %v7985_v7 = vld [vmem:[#allocation5 + $0xe8] sm:$0xff]  ;;  %v8019_v35 = vmul.f32 0.5, %v7987_v59 }
 0x4d8   : > { %vm8106_vm3 = vcmp.ge.f32.partialorder %v8074_v26, 1.0  ;;  %v8075_v31 = vadd.f32 %v8043_v38, %v8011_v46 }
 0x4d9   : > { %v8138_v6 = vsel %vm8106_vm3, 0.0, %v8074_v26  ;;  %v8929_v14 = vsel %vm8106_vm3, 1.0, %v13955_v34  ;;  %vm8104_vm4 = vcmp.ge.f32.partialorder %v8072_v5, 1.0  ;;  %v8073_v39 = vadd.f32 %v8041_v41, %v8009_v0 }
 0x4da   : > { %8170 = vst.msk [vmem:[#allocation5 + $0xb0] sm:$0xff] %vm3578_vm1, %v8138_v6  ;;  %8266 = vst.msk [vmem:[%s9464_s10 + $0xb0] sm:$0xff] %vm3578_vm1, %v8929_v14  ;;  %v8136_v29 = vsel %vm8104_vm4, 0.0, %v8072_v5  ;;  %v8927_v33 = vsel %vm8104_vm4, 1.0, %v13955_v34  ;;  %vm8107_vm6 = vcmp.ge.f32.partialorder %v8075_v31, 1.0  ;;  %v8016_v0 = vmul.f32 0.5, %v7984_v27 }
 0x4db   : > { %8168 = vst.msk [vmem:[#allocation5 + $0xa0] sm:$0xff] %vm3578_vm1, %v8136_v29  ;;  %8264 = vst.msk [vmem:[%s9464_s10 + $0xa0] sm:$0xff] %vm3578_vm1, %v8927_v33  ;;  %v8139_v21 = vsel %vm8107_vm6, 0.0, %v8075_v31  ;;  %v8930_v63 = vsel %vm8107_vm6, 1.0, %v13955_v34  ;;  %vm8105_vm7 = vcmp.ge.f32.partialorder %v8073_v39, 1.0  ;;  %v9342_v31 = vld [vmem:[%s9459_s7 + $0xe0] sm:$0xff] }
 0x4dc   : > { %8171 = vst.msk [vmem:[#allocation5 + $0xb8] sm:$0xff] %vm3578_vm1, %v8139_v21  ;;  %8267 = vst.msk [vmem:[%s9464_s10 + $0xb8] sm:$0xff] %vm3578_vm1, %v8930_v63  ;;  %v8137_v11 = vsel %vm8105_vm7, 0.0, %v8073_v39  ;;  %v8928_v60 = vsel %vm8105_vm7, 1.0, %v13955_v34  ;;  %v8017_v39 = vmul.f32 0.5, %v7985_v7  ;;  %v9343_v33 = vld [vmem:[%s9459_s7 + $0xf8] sm:$0xff] }
 0x4dd   : > { %8169 = vst.msk [vmem:[#allocation5 + $0xa8] sm:$0xff] %vm3578_vm1, %v8137_v11  ;;  %8265 = vst.msk [vmem:[%s9464_s10 + $0xa8] sm:$0xff] %vm3578_vm1, %v8928_v60  ;;  %v9344_v11 = vld [vmem:[%s9459_s7 + $0xe8] sm:$0xff] }
 0x4f5   : > { %v9125_v57 = vpop.f32.mrb[24].mxu1 }
 0x4f6   : > { %v7934_v44 = vadd.f32 %v9125_v57, %v13583_v23  ;;  %v7925_v2 = vpop.f32.mrb[25].mxu1 }
 0x4f7   : > { %v7926_v13 = vadd.f32 %v13583_v23, %v7925_v2  ;;  %v9126_v56 = vpop.f32.mrb[26].mxu1 }
 0x4f8   : > { %v8046_v1 = vadd.f32 %v9337_v55, %v7934_v44  ;;  %v7937_v42 = vadd.f32 %v9126_v56, %v13583_v23  ;;  %v7928_v47 = vpop.f32.mrb[27].mxu1 }
 0x4f9   : > { %v8044_v10 = vadd.f32 %v9338_v32, %v7926_v13  ;;  %v7929_v28 = vadd.f32 %v13583_v23, %v7928_v47 }
 0x4fa   : > { %v8078_v50 = vadd.f32 %v8046_v1, %v8014_v22  ;;  %v8047_v20 = vadd.f32 %v9339_v58, %v7937_v42 }
 0x4fb   : > { %v8076_v4 = vadd.f32 %v8044_v10, %v8012_v19  ;;  %v8045_v30 = vadd.f32 %v9340_v12, %v7929_v28 }
 0x4fc   : > { %vm8110_vm8 = vcmp.ge.f32.partialorder %v8078_v50, 1.0  ;;  %v8079_v16 = vadd.f32 %v8047_v20, %v8015_v45 }
 0x4fd   : > { %v8142_v54 = vsel %vm8110_vm8, 0.0, %v8078_v50  ;;  %v8933_v62 = vsel %vm8110_vm8, 1.0, %v13955_v34  ;;  %vm8108_vm14 = vcmp.ge.f32.partialorder %v8076_v4, 1.0  ;;  %v8077_v8 = vadd.f32 %v8045_v30, %v8013_v3 }
 0x4fe   : > { %8174 = vst.msk [vmem:[#allocation5 + $0xd0] sm:$0xff] %vm3578_vm1, %v8142_v54  ;;  %8270 = vst.msk [vmem:[%s9464_s10 + $0xd0] sm:$0xff] %vm3578_vm1, %v8933_v62  ;;  %v8140_v17 = vsel %vm8108_vm14, 0.0, %v8076_v4  ;;  %v8931_v37 = vsel %vm8108_vm14, 1.0, %v13955_v34  ;;  %vm8111_vm9 = vcmp.ge.f32.partialorder %v8079_v16, 1.0 }
 0x4ff   : > { %8172 = vst.msk [vmem:[#allocation5 + $0xc0] sm:$0xff] %vm3578_vm1, %v8140_v17  ;;  %8268 = vst.msk [vmem:[%s9464_s10 + $0xc0] sm:$0xff] %vm3578_vm1, %v8931_v37  ;;  %v8143_v25 = vsel %vm8111_vm9, 0.0, %v8079_v16  ;;  %v8934_v53 = vsel %vm8111_vm9, 1.0, %v13955_v34  ;;  %vm8109_vm11 = vcmp.ge.f32.partialorder %v8077_v8, 1.0 }
 0x500   : > { %8175 = vst.msk [vmem:[#allocation5 + $0xd8] sm:$0xff] %vm3578_vm1, %v8143_v25  ;;  %8271 = vst.msk [vmem:[%s9464_s10 + $0xd8] sm:$0xff] %vm3578_vm1, %v8934_v53  ;;  %v8141_v51 = vsel %vm8109_vm11, 0.0, %v8077_v8  ;;  %v8932_v24 = vsel %vm8109_vm11, 1.0, %v13955_v34 }
 0x501   : > { %8173 = vst.msk [vmem:[#allocation5 + $0xc8] sm:$0xff] %vm3578_vm1, %v8141_v51  ;;  %8269 = vst.msk [vmem:[%s9464_s10 + $0xc8] sm:$0xff] %vm3578_vm1, %v8932_v24 }
 0x520   : > { %v9129_v15 = vpop.f32.mrb[28].mxu1 }
 0x521   : > { %v7950_v46 = vadd.f32 %v9129_v15, %v13583_v23  ;;  %v7941_v52 = vpop.f32.mrb[29].mxu1 }
 0x522   : > { %v7942_v9 = vadd.f32 %v13583_v23, %v7941_v52  ;;  %v9130_v26 = vpop.f32.mrb[30].mxu1 }
 0x523   : > { %v8050_v38 = vadd.f32 %v9341_v48, %v7950_v46  ;;  %v7953_v5 = vadd.f32 %v9130_v26, %v13583_v23  ;;  %v7944_v41 = vpop.f32.mrb[31].mxu1 }
 0x524   : > { %v8048_v6 = vadd.f32 %v9342_v31, %v7942_v9  ;;  %v7945_v14 = vadd.f32 %v13583_v23, %v7944_v41 }
 0x525   : > { %v8082_v29 = vadd.f32 %v8050_v38, %v8018_v43  ;;  %v8051_v21 = vadd.f32 %v9343_v33, %v7953_v5 }
 0x526   : > { %v8080_v63 = vadd.f32 %v8048_v6, %v8016_v0  ;;  %v8049_v60 = vadd.f32 %v9344_v11, %v7945_v14 }
 0x527   : > { %vm8114_vm10 = vcmp.ge.f32.partialorder %v8082_v29, 1.0  ;;  %v8083_v49 = vadd.f32 %v8051_v21, %v8019_v35 }
 0x528   : > { %v8146_v61 = vsel %vm8114_vm10, 0.0, %v8082_v29  ;;  %v8937_v57 = vsel %vm8114_vm10, 1.0, %v13955_v34  ;;  %vm8112_vm5 = vcmp.ge.f32.partialorder %v8080_v63, 1.0  ;;  %v8081_v40 = vadd.f32 %v8049_v60, %v8017_v39 }
 0x529   : > { %8178 = vst.msk [vmem:[#allocation5 + $0xf0] sm:$0xff] %vm3578_vm1, %v8146_v61  ;;  %8274 = vst.msk [vmem:[%s9464_s10 + $0xf0] sm:$0xff] %vm3578_vm1, %v8937_v57  ;;  %v8144_v23 = vsel %vm8112_vm5, 0.0, %v8080_v63  ;;  %v8935_v44 = vsel %vm8112_vm5, 1.0, %v13955_v34  ;;  %vm8115_vm15 = vcmp.ge.f32.partialorder %v8083_v49, 1.0 }
 0x52a   : > { %8176 = vst.msk [vmem:[#allocation5 + $0xe0] sm:$0xff] %vm3578_vm1, %v8144_v23  ;;  %8272 = vst.msk [vmem:[%s9464_s10 + $0xe0] sm:$0xff] %vm3578_vm1, %v8935_v44  ;;  %v8147_v22 = vsel %vm8115_vm15, 0.0, %v8083_v49  ;;  %v8938_v2 = vsel %vm8115_vm15, 1.0, %v13955_v34  ;;  %vm8113_vm0 = vcmp.ge.f32.partialorder %v8081_v40, 1.0 }
 0x52b   : > { %8179 = vst.msk [vmem:[#allocation5 + $0xf8] sm:$0xff] %vm3578_vm1, %v8147_v22  ;;  %8275 = vst.msk [vmem:[%s9464_s10 + $0xf8] sm:$0xff] %vm3578_vm1, %v8938_v2  ;;  %v8145_v18 = vsel %vm8113_vm0, 0.0, %v8081_v40  ;;  %v8936_v13 = vsel %vm8113_vm0, 1.0, %v13955_v34 }
 0x52c   : > { %8177 = vst.msk [vmem:[#allocation5 + $0xe8] sm:$0xff] %vm3578_vm1, %v8145_v18  ;;  %8273 = vst.msk [vmem:[%s9464_s10 + $0xe8] sm:$0xff] %vm3578_vm1, %v8936_v13 }
 0x52d PF: > { %s15_s22 = sadd.s32 1, %s9383_s22   ;;  %s13957_s18 = smov %s9375_s20 }
 0x52e   : > { %p12_p8 = scmp.ge.s32.totalorder %s15_s22, 10   ;;  %s13958_s19 = smov %s9379_s21 }
 0x52f   : > { %s13959_s20 = smov %s13962_s23  ;;  %s13960_s21 = smov %s13966_s24 }
 0x530   :  { %14 = sbr.rel (!%p12_p8) target bundleno = 3 (0x3), region = 78 }

</bundles_post_ra>
